<compile_context>
chip_gen: v7x
topology: tpu7x:2x2x1
jax: 0.10.0
libtpu: 0.0.40
codegen_flags: <defaults>
</compile_context>

<pallas_src>
import math

import jax
import jax.numpy as jnp
from jax import lax
from jax.experimental import pallas as pl
from jax.experimental.pallas import tpu as pltpu

HIDDEN_DIM = 400
LATENT_DIM = 20
INPUT_DIM = 256 * 22              # 5632 = 44 * 128

N_SPLIT = 2                       # decoder column halves == grid steps == v7x TensorCores
TILE_N = INPUT_DIM // N_SPLIT     # 2816, multiple of 128


def vae_forward_kernel(
    x_ref, eps_ref,
    w_enc1_ref, b_enc1_ref,
    w_mulv_ref, b_mulv_ref,
    w_dec1_ref, b_dec1_ref,
    w_dec2t_ref, b_dec2_ref,
    xrec_ref, mulv_ref,
):
    # encoder.fc1 : (B, 5632) @ (5632, 400), bf16 on the MXU with f32 accumulation, + relu
    h = jnp.maximum(
        jnp.dot(x_ref[...].astype(jnp.bfloat16), w_enc1_ref[...],
                preferred_element_type=jnp.float32) + b_enc1_ref[...],
        0.0)

    # fused mu/logvar heads (mu columns first, logvar second)
    mulv = jnp.dot(h, w_mulv_ref[...],
                   preferred_element_type=jnp.float32) + b_mulv_ref[...]
    mulv_ref[...] = mulv                               # this step's own output slab

    mu = mulv[:, :LATENT_DIM]
    logvar = mulv[:, LATENT_DIM:]

    # reparameterize: z = mu + eps * exp(0.5 * logvar)
    z = mu + eps_ref[...] * jnp.exp(0.5 * logvar)

    # decoder.fc1 : (B, 20) @ (20, 400), + relu
    hd = jnp.maximum(
        jnp.dot(z, w_dec1_ref[...],
                preferred_element_type=jnp.float32) + b_dec1_ref[...],
        0.0)

    # decoder.fc2 : this step's half of the output columns.  w_dec2 is streamed pre-transposed
    # as a contiguous (TILE_N, 400) row-stripe; contract over the shared 400-dim axis.
    xrec = lax.dot_general(
        hd.astype(jnp.bfloat16), w_dec2t_ref[...],
        dimension_numbers=(((1,), (1,)), ((), ())),
        preferred_element_type=jnp.float32) + b_dec2_ref[...]
    xrec_ref[...] = xrec.astype(xrec_ref.dtype)


def vae_forward(x, eps, params):
    """x: (B, INPUT_DIM) f32, eps: (B, LATENT_DIM) f32 (the randn_like draw)."""
    (w_enc1, b_enc1, w_mulv, b_mulv, w_dec1, b_dec1, w_dec2t, b_dec2) = params
    B = x.shape[0]
    B_pad = max(8, ((B + 7) // 8) * 8)                 # pad batch to a full f32 sublane tile
    if B_pad != B:
        x = jnp.pad(x, ((0, B_pad - B), (0, 0)))
        eps = jnp.pad(eps, ((0, B_pad - B), (0, 0)))

    in_specs = [
        pl.BlockSpec((B_pad, INPUT_DIM), lambda i: (0, 0)),             # x (full, fetched once)
        pl.BlockSpec((B_pad, LATENT_DIM), lambda i: (0, 0)),            # eps
        pl.BlockSpec((INPUT_DIM, HIDDEN_DIM), lambda i: (0, 0)),        # w_enc1 (bf16, full)
        pl.BlockSpec((1, HIDDEN_DIM), lambda i: (0, 0)),                # b_enc1
        pl.BlockSpec((HIDDEN_DIM, 2 * LATENT_DIM), lambda i: (0, 0)),   # w_mulv (fused heads)
        pl.BlockSpec((1, 2 * LATENT_DIM), lambda i: (0, 0)),            # b_mulv
        pl.BlockSpec((LATENT_DIM, HIDDEN_DIM), lambda i: (0, 0)),       # w_dec1
        pl.BlockSpec((1, HIDDEN_DIM), lambda i: (0, 0)),                # b_dec1
        pl.BlockSpec((TILE_N, HIDDEN_DIM), lambda i: (i, 0)),           # w_dec2^T row-stripe (bf16)
        pl.BlockSpec((1, TILE_N), lambda i: (0, i)),                    # b_dec2 half
    ]
    out_specs = [
        pl.BlockSpec((B_pad, TILE_N), lambda i: (0, i)),                     # x_reconstructed half
        pl.BlockSpec((None, B_pad, 2 * LATENT_DIM), lambda i: (i, 0, 0)),    # fused mu/logvar slab
    ]
    out_shapes = (
        jax.ShapeDtypeStruct((B_pad, INPUT_DIM), jnp.float32),
        jax.ShapeDtypeStruct((N_SPLIT, B_pad, 2 * LATENT_DIM), jnp.float32),
    )

    xrec, mulv = pl.pallas_call(
        vae_forward_kernel,
        out_shape=out_shapes,
        grid=(N_SPLIT,),
        in_specs=in_specs,
        out_specs=out_specs,
        compiler_params=pltpu.CompilerParams(
            dimension_semantics=("parallel",),        # no cross-step deps -> megacore on v7x
            vmem_limit_bytes=32 * 1024 * 1024,        # ~18 MiB double-buffered; < v7x 64 MiB
        ),
    )(x, eps, w_enc1, b_enc1, w_mulv, b_mulv, w_dec1, b_dec1, w_dec2t, b_dec2)

    mulv0 = mulv[0]                                    # every slab holds identical values
    mu = mulv0[:B, :LATENT_DIM]
    logvar = mulv0[:B, LATENT_DIM:]
    return xrec[:B], mu, logvar


def init_linear(key, in_features, out_features, w_dtype=jnp.float32):
    """Deterministic PyTorch-style init; weight returned pre-transposed as (in, out)."""
    kw, kb = jax.random.split(key)
    bound = 1.0 / math.sqrt(in_features)
    w = jax.random.uniform(kw, (in_features, out_features), jnp.float32, -bound, bound)
    b = jax.random.uniform(kb, (1, out_features), jnp.float32, -bound, bound)
    return w.astype(w_dtype), b


def init_vae_params(key):
    keys = jax.random.split(key, 5)
    w_enc1, b_enc1 = init_linear(keys[0], INPUT_DIM, HIDDEN_DIM, jnp.bfloat16)   # encoder.fc1
    w_mu, b_mu = init_linear(keys[1], HIDDEN_DIM, LATENT_DIM)                    # encoder.fc2_mu
    w_lv, b_lv = init_linear(keys[2], HIDDEN_DIM, LATENT_DIM)                    # encoder.fc2_logvar
    w_dec1, b_dec1 = init_linear(keys[3], LATENT_DIM, HIDDEN_DIM)                # decoder.fc1
    w_dec2, b_dec2 = init_linear(keys[4], HIDDEN_DIM, INPUT_DIM, jnp.bfloat16)   # decoder.fc2
    # Fuse the two latent heads into one weight / bias (mu columns first, logvar second).
    w_mulv = jnp.concatenate([w_mu, w_lv], axis=1)
    b_mulv = jnp.concatenate([b_mu, b_lv], axis=1)
    # Store decoder.fc2 pre-transposed (INPUT_DIM, HIDDEN_DIM) for contiguous row-stripe DMA.
    w_dec2t = jnp.transpose(w_dec2)
    return (w_enc1, b_enc1, w_mulv, b_mulv, w_dec1, b_dec1, w_dec2t, b_dec2)


def vae_forward_ref(x, eps, params):
    """Pure-JAX reference using the same bf16 weight math as the kernel."""
    (w_enc1, b_enc1, w_mulv, b_mulv, w_dec1, b_dec1, w_dec2t, b_dec2) = params
    h = jnp.maximum(
        jnp.dot(x.astype(jnp.bfloat16), w_enc1,
                preferred_element_type=jnp.float32) + b_enc1, 0.0)
    mulv = jnp.dot(h, w_mulv, preferred_element_type=jnp.float32) + b_mulv
    mu = mulv[:, :LATENT_DIM]
    logvar = mulv[:, LATENT_DIM:]
    z = mu + eps * jnp.exp(0.5 * logvar)
    hd = jnp.maximum(jnp.dot(z, w_dec1, preferred_element_type=jnp.float32) + b_dec1, 0.0)
    xrec = lax.dot_general(hd.astype(jnp.bfloat16), w_dec2t,
                           dimension_numbers=(((1,), (1,)), ((), ())),
                           preferred_element_type=jnp.float32) + b_dec2
    return xrec, mu, logvar


if __name__ == "__main__":
    key = jax.random.PRNGKey(0)
    k_params, k_x, k_eps = jax.random.split(key, 3)

    params = init_vae_params(k_params)

    batch = 4
    x = jax.random.normal(k_x, (batch, INPUT_DIM), jnp.float32)
    # torch.randn_like(std) — the stochastic draw, generated deterministically here.
    eps = jax.random.normal(k_eps, (batch, LATENT_DIM), jnp.float32)

    xrec, mu, logvar = vae_forward(x, eps, params)
    jax.block_until_ready((xrec, mu, logvar))

    # Sanity check against a pure-JAX reference that uses identical bf16 weight math.
    xrec_r, mu_r, logvar_r = vae_forward_ref(x, eps, params)
    assert jnp.allclose(mu, mu_r, atol=5e-3, rtol=5e-3)
    assert jnp.allclose(logvar, logvar_r, atol=5e-3, rtol=5e-3)
    assert jnp.allclose(xrec, xrec_r, atol=5e-3, rtol=5e-3)

    print("KERNEL_OK")
</pallas_src>

<mosaic_0001>
module attributes {stable_mosaic.version = 11 : i64} {
  func.func @vae_forward_kernel(%arg0: i32, %arg1: memref<8x5632xf32, #tpu.memory_space<vmem>>, %arg2: memref<8x20xf32, #tpu.memory_space<vmem>>, %arg3: memref<5632x400xbf16, #tpu.memory_space<vmem>>, %arg4: memref<1x400xf32, #tpu.memory_space<vmem>>, %arg5: memref<400x40xf32, #tpu.memory_space<vmem>>, %arg6: memref<1x40xf32, #tpu.memory_space<vmem>>, %arg7: memref<20x400xf32, #tpu.memory_space<vmem>>, %arg8: memref<1x400xf32, #tpu.memory_space<vmem>>, %arg9: memref<2816x400xbf16, #tpu.memory_space<vmem>>, %arg10: memref<1x2816xf32, #tpu.memory_space<vmem>>, %arg11: memref<8x2816xf32, #tpu.memory_space<vmem>>, %arg12: memref<1x8x40xf32, #tpu.memory_space<vmem>>) attributes {dimension_semantics = [#tpu.dimension_semantics<parallel>], iteration_bounds = array<i64: 2>, scalar_prefetch = 0 : i64, scratch_operands = 0 : i64, tpu.core_type = #tpu.core_type<tc>, window_params = [{pipeline_mode = #tpu.pipeline_mode<synchronous>, transform_indices = @transform_0, window_bounds = array<i64: 8, 5632>}, {pipeline_mode = #tpu.pipeline_mode<synchronous>, transform_indices = @transform_1, window_bounds = array<i64: 8, 20>}, {pipeline_mode = #tpu.pipeline_mode<synchronous>, transform_indices = @transform_2, window_bounds = array<i64: 5632, 400>}, {pipeline_mode = #tpu.pipeline_mode<synchronous>, transform_indices = @transform_3, window_bounds = array<i64: 1, 400>}, {pipeline_mode = #tpu.pipeline_mode<synchronous>, transform_indices = @transform_4, window_bounds = array<i64: 400, 40>}, {pipeline_mode = #tpu.pipeline_mode<synchronous>, transform_indices = @transform_5, window_bounds = array<i64: 1, 40>}, {pipeline_mode = #tpu.pipeline_mode<synchronous>, transform_indices = @transform_6, window_bounds = array<i64: 20, 400>}, {pipeline_mode = #tpu.pipeline_mode<synchronous>, transform_indices = @transform_7, window_bounds = array<i64: 1, 400>}, {transform_indices = @transform_8, window_bounds = array<i64: 2816, 400>}, {transform_indices = @transform_9, window_bounds = array<i64: 1, 2816>}, {transform_indices = @transform_10, window_bounds = array<i64: 8, 2816>}, {transform_indices = @transform_11, window_bounds = array<i64: 1, 8, 40>}]} {
    %c0 = arith.constant 0 : index
    %c0_0 = arith.constant 0 : index
    %0 = vector.load %arg1[%c0, %c0_0] : memref<8x5632xf32, #tpu.memory_space<vmem>>, vector<8x5632xf32>
    %1 = arith.truncf %0 : vector<8x5632xf32> to vector<8x5632xbf16>
    %c0_1 = arith.constant 0 : index
    %c0_2 = arith.constant 0 : index
    %2 = vector.load %arg3[%c0_1, %c0_2] : memref<5632x400xbf16, #tpu.memory_space<vmem>>, vector<5632x400xbf16>
    %cst = arith.constant dense<0.000000e+00> : vector<8x400xf32>
    %3 = tpu.matmul %1, %2, %cst {dimension_numbers = #tpu.dot_dimension_numbers<[1], [0], [0], [1], [0, 0, 1, 1], [], []>} : vector<8x5632xbf16>, vector<5632x400xbf16>, vector<8x400xf32> -> vector<8x400xf32>
    %c0_3 = arith.constant 0 : index
    %c0_4 = arith.constant 0 : index
    %4 = vector.load %arg4[%c0_3, %c0_4] : memref<1x400xf32, #tpu.memory_space<vmem>>, vector<1x400xf32>
    %5 = vector.broadcast %4 : vector<1x400xf32> to vector<8x400xf32>
    %6 = arith.addf %3, %5 : vector<8x400xf32>
    %cst_5 = arith.constant 0.000000e+00 : f32
    %7 = vector.broadcast %cst_5 : f32 to vector<8x400xf32>
    %8 = arith.maximumf %6, %7 : vector<8x400xf32>
    %c0_6 = arith.constant 0 : index
    %c0_7 = arith.constant 0 : index
    %9 = vector.load %arg5[%c0_6, %c0_7] : memref<400x40xf32, #tpu.memory_space<vmem>>, vector<400x40xf32>
    %cst_8 = arith.constant dense<0.000000e+00> : vector<8x40xf32>
    %10 = tpu.matmul %8, %9, %cst_8 {dimension_numbers = #tpu.dot_dimension_numbers<[1], [0], [0], [1], [0, 0, 1, 1], [], []>} : vector<8x400xf32>, vector<400x40xf32>, vector<8x40xf32> -> vector<8x40xf32>
    %c0_9 = arith.constant 0 : index
    %c0_10 = arith.constant 0 : index
    %11 = vector.load %arg6[%c0_9, %c0_10] : memref<1x40xf32, #tpu.memory_space<vmem>>, vector<1x40xf32>
    %12 = vector.broadcast %11 : vector<1x40xf32> to vector<8x40xf32>
    %13 = arith.addf %10, %12 : vector<8x40xf32>
    %c0_11 = arith.constant 0 : index
    %c0_12 = arith.constant 0 : index
    %c0_13 = arith.constant 0 : index
    %14 = vector.load %arg12[%c0_11, %c0_12, %c0_13] : memref<1x8x40xf32, #tpu.memory_space<vmem>>, vector<1x8x40xf32>
    %15 = vector.shape_cast %14 : vector<1x8x40xf32> to vector<8x40xf32>
    %16 = vector.shape_cast %13 : vector<8x40xf32> to vector<1x8x40xf32>
    tpu.vector_store %arg12[%c0_11, %c0_12, %c0_13], %16 {strides = array<i32>} : memref<1x8x40xf32, #tpu.memory_space<vmem>>, vector<1x8x40xf32>,
    %17 = vector.extract_strided_slice %13 {offsets = [0, 0], sizes = [8, 20], strides = [1, 1]} : vector<8x40xf32> to vector<8x20xf32>
    %18 = vector.extract_strided_slice %13 {offsets = [0, 20], sizes = [8, 20], strides = [1, 1]} : vector<8x40xf32> to vector<8x20xf32>
    %c0_14 = arith.constant 0 : index
    %c0_15 = arith.constant 0 : index
    %19 = vector.load %arg2[%c0_14, %c0_15] : memref<8x20xf32, #tpu.memory_space<vmem>>, vector<8x20xf32>
    %cst_16 = arith.constant 5.000000e-01 : f32
    %20 = vector.broadcast %cst_16 : f32 to vector<8x20xf32>
    %21 = arith.mulf %20, %18 : vector<8x20xf32>
    %22 = math.exp %21 : vector<8x20xf32>
    %23 = arith.mulf %19, %22 : vector<8x20xf32>
    %24 = arith.addf %17, %23 : vector<8x20xf32>
    %c0_17 = arith.constant 0 : index
    %c0_18 = arith.constant 0 : index
    %25 = vector.load %arg7[%c0_17, %c0_18] : memref<20x400xf32, #tpu.memory_space<vmem>>, vector<20x400xf32>
    %cst_19 = arith.constant dense<0.000000e+00> : vector<8x400xf32>
    %26 = tpu.matmul %24, %25, %cst_19 {dimension_numbers = #tpu.dot_dimension_numbers<[1], [0], [0], [1], [0, 0, 1, 1], [], []>} : vector<8x20xf32>, vector<20x400xf32>, vector<8x400xf32> -> vector<8x400xf32>
    %c0_20 = arith.constant 0 : index
    %c0_21 = arith.constant 0 : index
    %27 = vector.load %arg8[%c0_20, %c0_21] : memref<1x400xf32, #tpu.memory_space<vmem>>, vector<1x400xf32>
    %28 = vector.broadcast %27 : vector<1x400xf32> to vector<8x400xf32>
    %29 = arith.addf %26, %28 : vector<8x400xf32>
    %cst_22 = arith.constant 0.000000e+00 : f32
    %30 = vector.broadcast %cst_22 : f32 to vector<8x400xf32>
    %31 = arith.maximumf %29, %30 : vector<8x400xf32>
    %32 = arith.truncf %31 : vector<8x400xf32> to vector<8x400xbf16>
    %c0_23 = arith.constant 0 : index
    %c0_24 = arith.constant 0 : index
    %33 = vector.load %arg9[%c0_23, %c0_24] : memref<2816x400xbf16, #tpu.memory_space<vmem>>, vector<2816x400xbf16>
    %cst_25 = arith.constant dense<0.000000e+00> : vector<8x2816xf32>
    %34 = tpu.matmul %32, %33, %cst_25 {dimension_numbers = #tpu.dot_dimension_numbers<[1], [1], [0], [0], [0, 0, 1, 0], [], []>} : vector<8x400xbf16>, vector<2816x400xbf16>, vector<8x2816xf32> -> vector<8x2816xf32>
    %c0_26 = arith.constant 0 : index
    %c0_27 = arith.constant 0 : index
    %35 = vector.load %arg10[%c0_26, %c0_27] : memref<1x2816xf32, #tpu.memory_space<vmem>>, vector<1x2816xf32>
    %36 = vector.broadcast %35 : vector<1x2816xf32> to vector<8x2816xf32>
    %37 = arith.addf %34, %36 : vector<8x2816xf32>
    %c0_28 = arith.constant 0 : index
    %c0_29 = arith.constant 0 : index
    %38 = vector.load %arg11[%c0_28, %c0_29] : memref<8x2816xf32, #tpu.memory_space<vmem>>, vector<8x2816xf32>
    tpu.vector_store %arg11[%c0_28, %c0_29], %37 {strides = array<i32>} : memref<8x2816xf32, #tpu.memory_space<vmem>>, vector<8x2816xf32>,
    return
  }
  func.func @transform_0(%arg0: i32) -> (i32, i32) {
    %c0_i32 = arith.constant 0 : i32
    %c0_i32_0 = arith.constant 0 : i32
    %c0_i32_1 = arith.constant 0 : i32
    return %c0_i32, %c0_i32_0 : i32, i32
  }
  func.func @transform_1(%arg0: i32) -> (i32, i32) {
    %c0_i32 = arith.constant 0 : i32
    %c0_i32_0 = arith.constant 0 : i32
    %c0_i32_1 = arith.constant 0 : i32
    return %c0_i32, %c0_i32_0 : i32, i32
  }
  func.func @transform_2(%arg0: i32) -> (i32, i32) {
    %c0_i32 = arith.constant 0 : i32
    %c0_i32_0 = arith.constant 0 : i32
    %c0_i32_1 = arith.constant 0 : i32
    return %c0_i32, %c0_i32_0 : i32, i32
  }
  func.func @transform_3(%arg0: i32) -> (i32, i32) {
    %c0_i32 = arith.constant 0 : i32
    %c0_i32_0 = arith.constant 0 : i32
    %c0_i32_1 = arith.constant 0 : i32
    return %c0_i32, %c0_i32_0 : i32, i32
  }
  func.func @transform_4(%arg0: i32) -> (i32, i32) {
    %c0_i32 = arith.constant 0 : i32
    %c0_i32_0 = arith.constant 0 : i32
    %c0_i32_1 = arith.constant 0 : i32
    return %c0_i32, %c0_i32_0 : i32, i32
  }
  func.func @transform_5(%arg0: i32) -> (i32, i32) {
    %c0_i32 = arith.constant 0 : i32
    %c0_i32_0 = arith.constant 0 : i32
    %c0_i32_1 = arith.constant 0 : i32
    return %c0_i32, %c0_i32_0 : i32, i32
  }
  func.func @transform_6(%arg0: i32) -> (i32, i32) {
    %c0_i32 = arith.constant 0 : i32
    %c0_i32_0 = arith.constant 0 : i32
    %c0_i32_1 = arith.constant 0 : i32
    return %c0_i32, %c0_i32_0 : i32, i32
  }
  func.func @transform_7(%arg0: i32) -> (i32, i32) {
    %c0_i32 = arith.constant 0 : i32
    %c0_i32_0 = arith.constant 0 : i32
    %c0_i32_1 = arith.constant 0 : i32
    return %c0_i32, %c0_i32_0 : i32, i32
  }
  func.func @transform_8(%arg0: i32) -> (i32, i32) {
    %c0_i32 = arith.constant 0 : i32
    %c0_i32_0 = arith.constant 0 : i32
    return %arg0, %c0_i32 : i32, i32
  }
  func.func @transform_9(%arg0: i32) -> (i32, i32) {
    %c0_i32 = arith.constant 0 : i32
    %c0_i32_0 = arith.constant 0 : i32
    return %c0_i32, %arg0 : i32, i32
  }
  func.func @transform_10(%arg0: i32) -> (i32, i32) {
    %c0_i32 = arith.constant 0 : i32
    %c0_i32_0 = arith.constant 0 : i32
    return %c0_i32, %arg0 : i32, i32
  }
  func.func @transform_11(%arg0: i32) -> (i32, i32, i32) {
    %c0_i32 = arith.constant 0 : i32
    %c0_i32_0 = arith.constant 0 : i32
    %c0_i32_1 = arith.constant 0 : i32
    return %arg0, %c0_i32, %c0_i32_0 : i32, i32, i32
  }
}

</mosaic_0001>

<bundles_post_ra>
// kernel: tpu_custom_call.1
= control target key start
LH: loop header
LB: loop body
LE: loop exit
PB: predicated region body
PF: predicated region fallthrough
CT: control target
= control target key end

     0   :  { %s28750_s0 = inlined_call_operand.vmem [shape: f32[8,5632], index: 0, kind: input, shape index: {}]   ;;  %s28751_s1 = inlined_call_operand.vmem [shape: f32[8,20], index: 1, kind: input, shape index: {}]   ;;  %s28752_s2 = inlined_call_operand.vmem [shape: bf16[5632,400], index: 2, kind: input, shape index: {}]   ;;  %s28753_s3 = inlined_call_operand.vmem [shape: f32[1,400], index: 3, kind: input, shape index: {}]   ;;  %s28754_s4 = inlined_call_operand.vmem [shape: f32[400,40], index: 4, kind: input, shape index: {}]   ;;  %s28755_s5 = inlined_call_operand.vmem [shape: f32[1,40], index: 5, kind: input, shape index: {}]   ;;  %s28756_s6 = inlined_call_operand.vmem [shape: f32[20,400], index: 6, kind: input, shape index: {}]   ;;  %s28757_s7 = inlined_call_operand.vmem [shape: f32[1,400], index: 7, kind: input, shape index: {}]   ;;  %s28758_s8 = inlined_call_operand.vmem [shape: bf16[5632,400], index: 8, kind: input, shape index: {}]   ;;  %s28759_s9 = inlined_call_operand.vmem [shape: f32[1,5632], index: 9, kind: input, shape index: {}]   ;;  %s28760_s10 = inlined_call_operand.hbm [shape: f32[8,5632], index: 10, kind: output, shape index: {0}]   ;;  %s28761_s11 = inlined_call_operand.hbm [shape: f32[2,8,40], index: 11, kind: output, shape index: {1}]  }
   0x1   :  { %28762 = sst [smem:[#allocation8_spill]] %s28750_s0 }
   0x2   :  { %28763 = sst [smem:[#allocation9_spill]] %s28751_s1 }
   0x3   :  { %28764 = sst [smem:[#allocation10_spill]] %s28752_s2 }
   0x4   :  { %17 = vsyncpa [#allocation3], 0 }
   0x5   :  { %19 = vsyncpa [#allocation3 + $0x1], 0 }
   0x6   :  { %20 = vsyncpa [#allocation5], 0 }
   0x7   :  { %22 = vsyncpa [#allocation5 + $0x1], 0  ;;  %s22993_s17 = smov 0   ;;  %s22995_s18 = smov 0  }
   0x8   :  { %s22997_s19 = smov 0   ;;  %s22999_s20 = smov 0  }
   0x9 LB: > { %s23014_s21 = sadd.s32 4294967295, %s22926_s20   ;;  %s16953_s22 = sadd.s32 4294967294, %s22926_s20   ;;  %s22926_s20 = sphi %s22999_s20, %s28773_s20   ;;  %s22922_s19 = sphi %s22997_s19, %s28772_s19   ;;  %s22918_s18 = sphi %s22995_s18, %s28771_s18   ;;  %s22914_s17 = sphi %s22993_s17, %s28770_s17  }
   0xa   : > { %s23018_s23 = sadd.s32 1, %s22926_s20   ;;  %s255_s24 = sadd.s32 1, %s22922_s19 }
   0xb   : > { %s252_s25 = ssub.s32 %s22926_s20, %s23018_s23  ;;  %p265_p0 = scmp.ne.s32.totalorder %s22922_s19, %s22918_s18 }
   0xc   : > { %p253_p1 = scmp.eq.s32.totalorder %s252_s25, 0  ;;  %p266_p2 = scmp.eq.s32.totalorder %s23014_s21, 1 }
   0xd   : > { %p271_p3 = scmp.ne.s32.totalorder %s22918_s18, %s22914_s17  ;;  %p272_p4 = scmp.eq.s32.totalorder %s16953_s22, 1 }
   0xe   : > { %s23029_s26 = scalar_select %p253_p1, %s22922_s19, %s255_s24  }
   0xf   : > { %p23031_p5 = por %p266_p2, %p265_p0  ;;  %p23035_p6 = por %p272_p4, %p271_p3 }
  0x10   : > { %p16956_p7 = scmp.ge.s32.totalorder %s22926_s20, 1  ;;  %p358_p8 = scmp.lt.s32.totalorder %s22926_s20, 3 }
  0x12   : > { %p359_p9 = pnand %p16956_p7, %p358_p8 }
  0x13   : > { %s28767_s2 = sld [smem:[#allocation10_spill]] (!%p359_p9)  ;;  %s28768_s0 = sld [smem:[#allocation8_spill]] (!%p359_p9)  ;;  %vm10844_vm0 = vcmask (!%p359_p9), 130048   ;;  %vm10988_vm1 = vcmask (!%p359_p9), 326656   ;;  %vm11038_vm2 = vcmask (!%p359_p9), 1043456   ;;  %vm11034_vm3 = vcmask (!%p359_p9), 162816  }
  0x14   : > { %362 = sbr.rel (%p359_p9) target bundleno = 3735 (0xe97), region = 60  ;;  %s27603_s12 = sand.u32 (!%p359_p9), 1, %s22918_s18  }
  0x15   : > { %s16957_s15 = sshll.u32 (!%p359_p9), %s27603_s12, 3  ;;  %s408_s22 = smul.u32 (!%p359_p9), 352, %s23014_s21 }
  0x16   : > { %s27609_s16 = scalar_lea.vmem (!%p359_p9), [#allocation4], %s16957_s15  ;;  %s22930_s30 = smov (!%p359_p9), 108  }
  0x17   : > { %p409_p10 = scmp.lt.s32.totalorder (!%p359_p9), %s408_s22, 703  ;;  %s28769_s1 = sld [smem:[#allocation9_spill]] (!%p359_p9) }
  0x18   : > { %s19612_s13 = smul.u32 (!%p359_p9), 176, %s27603_s12  ;;  %s19269_s15 = sshll.u32 (!%p359_p9), %s23014_s21, 7 }
  0x19   : > { %v19660_v0 = vld [vmem:[%s28767_s2 + $0x4] ss:$16 sps:$4 sm:$0xff] (!%p359_p9)   ;;  %v19662_v1 = vld [vmem:[%s28767_s2 + $0xc] ss:$16 sps:$4 sm:$0xff] (!%p359_p9)   ;;  %v19664_v2 = vld [vmem:[%s28767_s2] ss:$16 sps:$4 sm:$0xff] (!%p359_p9)   ;;  %s28669_s25 = scalar_lea.hbm (!%p359_p9), %s28761_s11, %s19269_s15 }
  0x1a   : > { %8979 = vmatprep.subr.bf16.mxu0 (!%p359_p9), %v19660_v0  ;;  %v19665_v3 = vld [vmem:[%s28767_s2 + $0x8] ss:$16 sps:$4 sm:$0xff] (!%p359_p9)   ;;  %9881 = vmatprep.subr.bf16.mxu1 (!%p359_p9), %v19662_v1  ;;  %v19666_v4 = vld [vmem:[%s28767_s2 + $0x24] ss:$16 sps:$4 sm:$0xff] (!%p359_p9)   ;;  %v19668_v5 = vld [vmem:[%s28767_s2 + $0x2c] ss:$16 sps:$4 sm:$0xff] (!%p359_p9)  }
  0x1b   : > { %8980 = vmatpush1.bf16.msra.mxu0 %v19664_v2  ;;  %9882 = vmatpush1.bf16.msra.mxu1 %v19665_v3  ;;  %v19670_v6 = vld [vmem:[%s28767_s2 + $0x20] ss:$16 sps:$4 sm:$0xff]   ;;  %v19671_v7 = vld [vmem:[%s28767_s2 + $0x28] ss:$16 sps:$4 sm:$0xff]   ;;  %v19672_v8 = vld [vmem:[%s28767_s2 + $0x44] ss:$16 sps:$4 sm:$0xff]  }
  0x1c   : > { %8981 = vmatprep.subr.bf16.mxu0 %v19666_v4  ;;  %9883 = vmatprep.subr.bf16.mxu1 %v19668_v5  ;;  %v19674_v9 = vld [vmem:[%s28767_s2 + $0x4c] ss:$16 sps:$4 sm:$0xff]   ;;  %v19676_v10 = vld [vmem:[%s28767_s2 + $0x40] ss:$16 sps:$4 sm:$0xff]   ;;  %v19677_v11 = vld [vmem:[%s28767_s2 + $0x48] ss:$16 sps:$4 sm:$0xff]  }
  0x1d   : > { %v19678_v12 = vld [vmem:[%s28767_s2 + $0x64] ss:$16 sps:$4 sm:$0xff]   ;;  %v19680_v13 = vld [vmem:[%s28767_s2 + $0x6c] ss:$16 sps:$4 sm:$0xff]   ;;  %v19682_v14 = vld [vmem:[%s28767_s2 + $0x60] ss:$16 sps:$4 sm:$0xff]  }
  0x1e   : > { %v19683_v15 = vld [vmem:[%s28767_s2 + $0x68] ss:$16 sps:$4 sm:$0xff]   ;;  %v19684_v16 = vld [vmem:[%s28767_s2 + $0x84] ss:$16 sps:$4 sm:$0xff]   ;;  %v19686_v17 = vld [vmem:[%s28767_s2 + $0x8c] ss:$16 sps:$4 sm:$0xff]  }
  0x1f   : > { %8982 = vmatpush1.bf16.msra.mxu0 %v19670_v6  ;;  %9884 = vmatpush1.bf16.msra.mxu1 %v19671_v7  ;;  %v19688_v18 = vld [vmem:[%s28767_s2 + $0x80] ss:$16 sps:$4 sm:$0xff]   ;;  %v19689_v19 = vld [vmem:[%s28767_s2 + $0x88] ss:$16 sps:$4 sm:$0xff]   ;;  %v19690_v20 = vld [vmem:[%s28767_s2 + $0xa4] ss:$16 sps:$4 sm:$0xff]  }
  0x20   : > { %8983 = vmatprep.subr.bf16.mxu0 %v19672_v8  ;;  %9885 = vmatprep.subr.bf16.mxu1 %v19674_v9  ;;  %v19692_v21 = vld [vmem:[%s28767_s2 + $0xac] ss:$16 sps:$4 sm:$0xff]   ;;  %v19694_v22 = vld [vmem:[%s28767_s2 + $0xa0] ss:$16 sps:$4 sm:$0xff]   ;;  %v19695_v23 = vld [vmem:[%s28767_s2 + $0xa8] ss:$16 sps:$4 sm:$0xff]  }
  0x21   : > { %v19696_v24 = vld [vmem:[%s28767_s2 + $0xc4] ss:$16 sps:$4 sm:$0xff]   ;;  %v19698_v25 = vld [vmem:[%s28767_s2 + $0xcc] ss:$16 sps:$4 sm:$0xff]   ;;  %v19700_v26 = vld [vmem:[%s28767_s2 + $0xc0] ss:$16 sps:$4 sm:$0xff]  }
  0x22   : > { %v19701_v27 = vld [vmem:[%s28767_s2 + $0xc8] ss:$16 sps:$4 sm:$0xff]   ;;  %v19702_v28 = vld [vmem:[%s28767_s2 + $0xe4] ss:$16 sps:$4 sm:$0xff]   ;;  %v19704_v29 = vld [vmem:[%s28767_s2 + $0xec] ss:$16 sps:$4 sm:$0xff]  }
  0x23   : > { %8984 = vmatpush1.bf16.msra.mxu0 %v19676_v10  ;;  %9886 = vmatpush1.bf16.msra.mxu1 %v19677_v11  ;;  %v19706_v30 = vld [vmem:[%s28767_s2 + $0xe0] ss:$16 sps:$4 sm:$0xff]   ;;  %v19707_v31 = vld [vmem:[%s28767_s2 + $0xe8] ss:$16 sps:$4 sm:$0xff]   ;;  %v19708_v32 = vld [vmem:[%s28767_s2 + $0x104] ss:$16 sps:$4 sm:$0xff]  }
  0x24   : > { %8985 = vmatprep.subr.bf16.mxu0 %v19678_v12  ;;  %9887 = vmatprep.subr.bf16.mxu1 %v19680_v13  ;;  %v19710_v33 = vld [vmem:[%s28767_s2 + $0x10c] ss:$16 sps:$4 sm:$0xff]   ;;  %v19712_v34 = vld [vmem:[%s28767_s2 + $0x100] ss:$16 sps:$4 sm:$0xff]   ;;  %v19713_v35 = vld [vmem:[%s28767_s2 + $0x108] ss:$16 sps:$4 sm:$0xff]  }
  0x25   : > { %v19714_v36 = vld [vmem:[%s28767_s2 + $0x124] ss:$16 sps:$4 sm:$0xff]   ;;  %v19716_v37 = vld [vmem:[%s28767_s2 + $0x12c] ss:$16 sps:$4 sm:$0xff]   ;;  %v19718_v38 = vld [vmem:[%s28767_s2 + $0x120] ss:$16 sps:$4 sm:$0xff]  }
  0x26   : > { %v19719_v39 = vld [vmem:[%s28767_s2 + $0x128] ss:$16 sps:$4 sm:$0xff]   ;;  %v19720_v40 = vld [vmem:[%s28767_s2 + $0x144] ss:$16 sps:$4 sm:$0xff]   ;;  %v19722_v41 = vld [vmem:[%s28767_s2 + $0x14c] ss:$16 sps:$4 sm:$0xff]  }
  0x27   : > { %8986 = vmatpush1.bf16.msra.mxu0 %v19682_v14  ;;  %9888 = vmatpush1.bf16.msra.mxu1 %v19683_v15  ;;  %v19724_v42 = vld [vmem:[%s28767_s2 + $0x140] ss:$16 sps:$4 sm:$0xff]   ;;  %v19725_v43 = vld [vmem:[%s28767_s2 + $0x148] ss:$16 sps:$4 sm:$0xff]   ;;  %v19726_v44 = vld [vmem:[%s28767_s2 + $0x164] ss:$16 sps:$4 sm:$0xff]  }
  0x28   : > { %8987 = vmatprep.subr.bf16.mxu0 %v19684_v16  ;;  %9889 = vmatprep.subr.bf16.mxu1 %v19686_v17  ;;  %v19728_v45 = vld [vmem:[%s28767_s2 + $0x16c] ss:$16 sps:$4 sm:$0xff]   ;;  %v19730_v47 = vld [vmem:[%s28767_s2 + $0x160] ss:$16 sps:$4 sm:$0xff]   ;;  %v19731_v49 = vld [vmem:[%s28767_s2 + $0x168] ss:$16 sps:$4 sm:$0xff]  }
  0x29   : > { %v422_v46 = vld [vmem:[%s28768_s0 + $0x8] sm:$0xff]  ;;  %v19732_v50 = vld [vmem:[%s28767_s2 + $0x184] ss:$16 sps:$4 sm:$0xff]   ;;  %v19736_v52 = vld [vmem:[%s28767_s2 + $0x180] ss:$16 sps:$4 sm:$0xff]   ;;  %s28775_s22 = smov (!%p409_p10, %s408_s22), 703 }
  0x2a   : > { %v466_v48 = vpack.c.bf16 %v422_v46, %v422_v46  ;;  %v19734_v51 = vld [vmem:[%s28767_s2 + $0x18c] ss:$16 sps:$4 sm:$0xff]   ;;  %v19737_v53 = vld [vmem:[%s28767_s2 + $0x188] ss:$16 sps:$4 sm:$0xff]   ;;  %v19738_v54 = vld [vmem:[%s28767_s2 + $0x1a4] ss:$16 sps:$4 sm:$0xff]  }
  0x2b   : > { %8988 = vmatpush1.bf16.msra.mxu0 %v19688_v18  ;;  %9890 = vmatpush1.bf16.msra.mxu1 %v19689_v19  ;;  %v19740_v55 = vld [vmem:[%s28767_s2 + $0x1ac] ss:$16 sps:$4 sm:$0xff]   ;;  %v19742_v56 = vld [vmem:[%s28767_s2 + $0x1a0] ss:$16 sps:$4 sm:$0xff]   ;;  %v19743_v57 = vld [vmem:[%s28767_s2 + $0x1a8] ss:$16 sps:$4 sm:$0xff]  }
  0x2c   : > { %8989 = vmatprep.subr.bf16.mxu0 %v19690_v20  ;;  %9891 = vmatprep.subr.bf16.mxu1 %v19692_v21  ;;  %v19744_v58 = vld [vmem:[%s28767_s2 + $0x1c4] ss:$16 sps:$4 sm:$0xff]   ;;  %v19746_v59 = vld [vmem:[%s28767_s2 + $0x1cc] ss:$16 sps:$4 sm:$0xff]   ;;  %v19748_v60 = vld [vmem:[%s28767_s2 + $0x1c0] ss:$16 sps:$4 sm:$0xff]  }
  0x2d   : > { %9011 = vmatprep.mubr.bf16.mxu0 %v466_v48  ;;  %9913 = vmatprep.mubr.bf16.mxu1 %v466_v48  ;;  %v19749_v61 = vld [vmem:[%s28767_s2 + $0x1c8] ss:$16 sps:$4 sm:$0xff]   ;;  %v19750_v62 = vld [vmem:[%s28767_s2 + $0x1e4] ss:$16 sps:$4 sm:$0xff]   ;;  %v19752_v63 = vld [vmem:[%s28767_s2 + $0x1ec] ss:$16 sps:$4 sm:$0xff]  }
  0x2e   : > { %v19754_v0 = vld [vmem:[%s28767_s2 + $0x1e0] ss:$16 sps:$4 sm:$0xff]   ;;  %v19755_v1 = vld [vmem:[%s28767_s2 + $0x1e8] ss:$16 sps:$4 sm:$0xff]   ;;  %v19758_v3 = vld [vmem:[%s28767_s2 + $0x204] ss:$16 sps:$4 sm:$0xff]  }
  0x2f   : > { %8990 = vmatpush1.bf16.msra.mxu0 %v19694_v22  ;;  %9892 = vmatpush1.bf16.msra.mxu1 %v19695_v23  ;;  %v421_v2 = vld [vmem:[%s28768_s0] sm:$0xff]  ;;  %v19761_v4 = vld [vmem:[%s28767_s2 + $0x20c] ss:$16 sps:$4 sm:$0xff]   ;;  %v19759_v7 = vld [vmem:[%s28767_s2 + $0x208] ss:$16 sps:$4 sm:$0xff]   ;;  %s19272_s24 = sshll.u32 %s28775_s22, 4 }
  0x30   : > { %8991 = vmatprep.subr.bf16.mxu0 %v19696_v24  ;;  %9893 = vmatprep.subr.bf16.mxu1 %v19698_v25  ;;  %v465_v5 = vpack.c.bf16 %v421_v2, %v421_v2  ;;  %v19756_v6 = vld [vmem:[%s28767_s2 + $0x200] ss:$16 sps:$4 sm:$0xff]   ;;  %v19764_v8 = vld [vmem:[%s28767_s2 + $0x224] ss:$16 sps:$4 sm:$0xff]   ;;  %v19767_v9 = vld [vmem:[%s28767_s2 + $0x22c] ss:$16 sps:$4 sm:$0xff]  }
  0x31   : > { %v19762_v10 = vld [vmem:[%s28767_s2 + $0x220] ss:$16 sps:$4 sm:$0xff]   ;;  %v19765_v11 = vld [vmem:[%s28767_s2 + $0x228] ss:$16 sps:$4 sm:$0xff]   ;;  %v19770_v12 = vld [vmem:[%s28767_s2 + $0x244] ss:$16 sps:$4 sm:$0xff]  }
  0x32   : > { %v19773_v13 = vld [vmem:[%s28767_s2 + $0x24c] ss:$16 sps:$4 sm:$0xff]   ;;  %v19768_v14 = vld [vmem:[%s28767_s2 + $0x240] ss:$16 sps:$4 sm:$0xff]   ;;  %v19771_v15 = vld [vmem:[%s28767_s2 + $0x248] ss:$16 sps:$4 sm:$0xff]  }
  0x33   : > { %8992 = vmatpush1.bf16.msra.mxu0 %v19700_v26  ;;  %9894 = vmatpush1.bf16.msra.mxu1 %v19701_v27  ;;  %v19776_v16 = vld [vmem:[%s28767_s2 + $0x264] ss:$16 sps:$4 sm:$0xff]   ;;  %v19779_v17 = vld [vmem:[%s28767_s2 + $0x26c] ss:$16 sps:$4 sm:$0xff]   ;;  %v19774_v18 = vld [vmem:[%s28767_s2 + $0x260] ss:$16 sps:$4 sm:$0xff]  }
  0x34   : > { %8993 = vmatprep.subr.bf16.mxu0 %v19702_v28  ;;  %9895 = vmatprep.subr.bf16.mxu1 %v19704_v29  ;;  %v19777_v19 = vld [vmem:[%s28767_s2 + $0x268] ss:$16 sps:$4 sm:$0xff]   ;;  %v19782_v20 = vld [vmem:[%s28767_s2 + $0x284] ss:$16 sps:$4 sm:$0xff]   ;;  %v19785_v21 = vld [vmem:[%s28767_s2 + $0x28c] ss:$16 sps:$4 sm:$0xff]  }
  0x35   : > { %v19780_v22 = vld [vmem:[%s28767_s2 + $0x280] ss:$16 sps:$4 sm:$0xff]   ;;  %v19783_v23 = vld [vmem:[%s28767_s2 + $0x288] ss:$16 sps:$4 sm:$0xff]   ;;  %v19788_v24 = vld [vmem:[%s28767_s2 + $0x2a4] ss:$16 sps:$4 sm:$0xff]  }
  0x36   : > { %v19791_v25 = vld [vmem:[%s28767_s2 + $0x2ac] ss:$16 sps:$4 sm:$0xff]   ;;  %v19786_v26 = vld [vmem:[%s28767_s2 + $0x2a0] ss:$16 sps:$4 sm:$0xff]   ;;  %v19789_v27 = vld [vmem:[%s28767_s2 + $0x2a8] ss:$16 sps:$4 sm:$0xff]  }
  0x37   : > { %8994 = vmatpush1.bf16.msra.mxu0 %v19706_v30  ;;  %9896 = vmatpush1.bf16.msra.mxu1 %v19707_v31  ;;  %v19794_v28 = vld [vmem:[%s28767_s2 + $0x2c4] ss:$16 sps:$4 sm:$0xff]   ;;  %v19797_v29 = vld [vmem:[%s28767_s2 + $0x2cc] ss:$16 sps:$4 sm:$0xff]   ;;  %v19792_v31 = vld [vmem:[%s28767_s2 + $0x2c0] ss:$16 sps:$4 sm:$0xff]  }
  0x38   : > { %8995 = vmatprep.subr.bf16.mxu0 %v19708_v32  ;;  %9897 = vmatprep.subr.bf16.mxu1 %v19710_v33  ;;  %v424_v30 = vld [vmem:[%s28768_s0 + $0x18] sm:$0xff]  ;;  %v19818_v46 = vld [vmem:[%s28767_s2 + $0x344] ss:$16 sps:$4 sm:$0xff]   ;;  %v19816_v48 = vld [vmem:[%s28767_s2 + $0x340] ss:$16 sps:$4 sm:$0xff]   ;;  %s27893_s14 = scalar_lea.vmem [#allocation2], %s19612_s13 }
  0x39   : > { %v468_v32 = vpack.c.bf16 %v424_v30, %v424_v30  ;;  %v19795_v33 = vld [vmem:[%s28767_s2 + $0x2c8] ss:$16 sps:$4 sm:$0xff]   ;;  %v19848_v2 = vld [vmem:[%s28767_s2 + $0x3e4] ss:$16 sps:$4 sm:$0xff]   ;;  %s16853_s29 = sshll.u32 %s27609_s16, 4  ;;  %s16854_s29 = int_to_ptr.vmem [resolvable:$true] %s16853_s29 }
  0x3a   : > { %v19884_v30 = vld [vmem:[%s28767_s2 + $0x4a4] ss:$16 sps:$4 sm:$0xff]   ;;  %s22832_s13 = scalar_lea.vmem %s16854_s29, 128 }
  0x3b   : > { %8996 = vmatpush1.bf16.msra.mxu0 %v19712_v34  ;;  %9898 = vmatpush1.bf16.msra.mxu1 %v19713_v35  ;;  %v19800_v34 = vld [vmem:[%s28767_s2 + $0x2e4] ss:$16 sps:$4 sm:$0xff]   ;;  %v19803_v35 = vld [vmem:[%s28767_s2 + $0x2ec] ss:$16 sps:$4 sm:$0xff]   ;;  %p22833_p12 = scmp.ne.s32.totalorder %s16854_s29, %s22832_s13 }
  0x3c   : > { %8997 = vmatprep.subr.bf16.mxu0 %v19714_v36  ;;  %9899 = vmatprep.subr.bf16.mxu1 %v19716_v37  ;;  %v19798_v36 = vld [vmem:[%s28767_s2 + $0x2e0] ss:$16 sps:$4 sm:$0xff]   ;;  %v19801_v37 = vld [vmem:[%s28767_s2 + $0x2e8] ss:$16 sps:$4 sm:$0xff]  }
  0x3d   : > { %p22834_p13 = pnand %p22833_p12, %p23031_p5 }
  0x3f   : > { %8998 = vmatpush1.bf16.msra.mxu0 %v19718_v38  ;;  %9900 = vmatpush1.bf16.msra.mxu1 %v19719_v39  ;;  %v19806_v38 = vld [vmem:[%s28767_s2 + $0x304] ss:$16 sps:$4 sm:$0xff]   ;;  %v19809_v39 = vld [vmem:[%s28767_s2 + $0x30c] ss:$16 sps:$4 sm:$0xff]   ;;  %p22835_p0 = pneg %p22834_p13 }
  0x40   : > { %8999 = vmatprep.subr.bf16.mxu0 %v19720_v40  ;;  %9901 = vmatprep.subr.bf16.mxu1 %v19722_v41  ;;  %v19804_v40 = vld [vmem:[%s28767_s2 + $0x300] ss:$16 sps:$4 sm:$0xff]   ;;  %v19807_v41 = vld [vmem:[%s28767_s2 + $0x308] ss:$16 sps:$4 sm:$0xff]  }
  0x43   : > { %9000 = vmatpush1.bf16.msra.mxu0 %v19724_v42  ;;  %9902 = vmatpush1.bf16.msra.mxu1 %v19725_v43  ;;  %v19812_v42 = vld [vmem:[%s28767_s2 + $0x324] ss:$16 sps:$4 sm:$0xff]   ;;  %v19815_v43 = vld [vmem:[%s28767_s2 + $0x32c] ss:$16 sps:$4 sm:$0xff]  }
  0x44   : > { %9001 = vmatprep.subr.bf16.mxu0 %v19726_v44  ;;  %9903 = vmatprep.subr.bf16.mxu1 %v19728_v45  ;;  %v19810_v44 = vld [vmem:[%s28767_s2 + $0x320] ss:$16 sps:$4 sm:$0xff]   ;;  %v19813_v45 = vld [vmem:[%s28767_s2 + $0x328] ss:$16 sps:$4 sm:$0xff]  }
  0x47   : > { %9002 = vmatpush1.bf16.msra.mxu0 %v19730_v47  ;;  %9904 = vmatpush1.bf16.msra.mxu1 %v19731_v49  ;;  %v19821_v47 = vld [vmem:[%s28767_s2 + $0x34c] ss:$16 sps:$4 sm:$0xff]   ;;  %v19819_v49 = vld [vmem:[%s28767_s2 + $0x348] ss:$16 sps:$4 sm:$0xff]  }
  0x48   : > { %9003 = vmatprep.subr.bf16.mxu0 %v19732_v50  ;;  %9905 = vmatprep.subr.bf16.mxu1 %v19734_v51  ;;  %v19824_v50 = vld [vmem:[%s28767_s2 + $0x364] ss:$16 sps:$4 sm:$0xff]   ;;  %v19827_v51 = vld [vmem:[%s28767_s2 + $0x36c] ss:$16 sps:$4 sm:$0xff]  }
  0x4b   : > { %9004 = vmatpush1.bf16.msra.mxu0 %v19736_v52  ;;  %9906 = vmatpush1.bf16.msra.mxu1 %v19737_v53  ;;  %v19822_v52 = vld [vmem:[%s28767_s2 + $0x360] ss:$16 sps:$4 sm:$0xff]   ;;  %v19825_v53 = vld [vmem:[%s28767_s2 + $0x368] ss:$16 sps:$4 sm:$0xff]  }
  0x4c   : > { %9005 = vmatprep.subr.bf16.mxu0 %v19738_v54  ;;  %9907 = vmatprep.subr.bf16.mxu1 %v19740_v55  ;;  %v19830_v54 = vld [vmem:[%s28767_s2 + $0x384] ss:$16 sps:$4 sm:$0xff]   ;;  %v19833_v55 = vld [vmem:[%s28767_s2 + $0x38c] ss:$16 sps:$4 sm:$0xff]  }
  0x4f   : > { %9006 = vmatpush1.bf16.msra.mxu0 %v19742_v56  ;;  %9908 = vmatpush1.bf16.msra.mxu1 %v19743_v57  ;;  %v19828_v56 = vld [vmem:[%s28767_s2 + $0x380] ss:$16 sps:$4 sm:$0xff]   ;;  %v19831_v57 = vld [vmem:[%s28767_s2 + $0x388] ss:$16 sps:$4 sm:$0xff]  }
  0x50   : > { %9007 = vmatprep.subr.bf16.mxu0 %v19744_v58  ;;  %9909 = vmatprep.subr.bf16.mxu1 %v19746_v59  ;;  %v19836_v58 = vld [vmem:[%s28767_s2 + $0x3a4] ss:$16 sps:$4 sm:$0xff]   ;;  %v19839_v59 = vld [vmem:[%s28767_s2 + $0x3ac] ss:$16 sps:$4 sm:$0xff]  }
  0x53   : > { %9008 = vmatpush1.bf16.msra.mxu0 %v19748_v60  ;;  %9910 = vmatpush1.bf16.msra.mxu1 %v19749_v61  ;;  %v19834_v60 = vld [vmem:[%s28767_s2 + $0x3a0] ss:$16 sps:$4 sm:$0xff]   ;;  %v19837_v61 = vld [vmem:[%s28767_s2 + $0x3a8] ss:$16 sps:$4 sm:$0xff]  }
  0x54   : > { %9009 = vmatprep.subr.bf16.mxu0 %v19750_v62  ;;  %9911 = vmatprep.subr.bf16.mxu1 %v19752_v63  ;;  %v19842_v62 = vld [vmem:[%s28767_s2 + $0x3c4] ss:$16 sps:$4 sm:$0xff]   ;;  %v19845_v63 = vld [vmem:[%s28767_s2 + $0x3cc] ss:$16 sps:$4 sm:$0xff]  }
  0x57   : > { %9010 = vmatpush1.bf16.msra.mxu0 %v19754_v0  ;;  %9912 = vmatpush1.bf16.msra.mxu1 %v19755_v1  ;;  %v19840_v0 = vld [vmem:[%s28767_s2 + $0x3c0] ss:$16 sps:$4 sm:$0xff]   ;;  %v19843_v1 = vld [vmem:[%s28767_s2 + $0x3c8] ss:$16 sps:$4 sm:$0xff]  }
  0x58   : > { %9020 = vmatprep.subr.bf16.mxu0 %v19758_v3  ;;  %9922 = vmatprep.subr.bf16.mxu1 %v19761_v4  ;;  %v19851_v3 = vld [vmem:[%s28767_s2 + $0x3ec] ss:$16 sps:$4 sm:$0xff]   ;;  %v19846_v4 = vld [vmem:[%s28767_s2 + $0x3e0] ss:$16 sps:$4 sm:$0xff]  }
  0x5a   : > { %9012 = vmatmul.mubr.bf16.vlgmr.msra.gmra.mrb[0].mxu0 %v465_v5  ;;  %9914 = vmatmul.mubr.bf16.vlgmr.msra.gmra.mrb[0].mxu1 %v465_v5  ;;  %v19849_v5 = vld [vmem:[%s28767_s2 + $0x3e8] ss:$16 sps:$4 sm:$0xff]  }
  0x5b   : > { %9021 = vmatpush1.bf16.msra.mxu0 %v19756_v6  ;;  %9923 = vmatpush1.bf16.msra.mxu1 %v19759_v7  ;;  %v19854_v6 = vld [vmem:[%s28767_s2 + $0x404] ss:$16 sps:$4 sm:$0xff]  }
  0x5c   : > { %9022 = vmatprep.subr.bf16.mxu0 %v19764_v8  ;;  %9924 = vmatprep.subr.bf16.mxu1 %v19767_v9  ;;  %v423_v7 = vld [vmem:[%s28768_s0 + $0x10] sm:$0xff]  ;;  %v19857_v8 = vld [vmem:[%s28767_s2 + $0x40c] ss:$16 sps:$4 sm:$0xff]  }
  0x5d   : > { %9052 = vmatprep.mubr.bf16.mxu0 %v468_v32  ;;  %9954 = vmatprep.mubr.bf16.mxu1 %v468_v32  ;;  %v19852_v9 = vld [vmem:[%s28767_s2 + $0x400] ss:$16 sps:$4 sm:$0xff]  }
  0x5e   : > { %v19882_v32 = vld [vmem:[%s28767_s2 + $0x4a0] ss:$16 sps:$4 sm:$0xff]  }
  0x5f   : > { %9023 = vmatpush1.bf16.msra.mxu0 %v19762_v10  ;;  %9925 = vmatpush1.bf16.msra.mxu1 %v19765_v11  ;;  %v19855_v10 = vld [vmem:[%s28767_s2 + $0x408] ss:$16 sps:$4 sm:$0xff]   ;;  %v467_v11 = vpack.c.bf16 %v423_v7, %v423_v7  ;;  %v19947_v7 = vld [vmem:[%s28767_s2 + $0x5ec] ss:$16 sps:$4 sm:$0xff]  }
  0x60   : > { %9024 = vmatprep.subr.bf16.mxu0 %v19770_v12  ;;  %9926 = vmatprep.subr.bf16.mxu1 %v19773_v13  ;;  %v19860_v12 = vld [vmem:[%s28767_s2 + $0x424] ss:$16 sps:$4 sm:$0xff]   ;;  %v19863_v13 = vld [vmem:[%s28767_s2 + $0x42c] ss:$16 sps:$4 sm:$0xff]  }
  0x63   : > { %9025 = vmatpush1.bf16.msra.mxu0 %v19768_v14  ;;  %9927 = vmatpush1.bf16.msra.mxu1 %v19771_v15  ;;  %v426_v14 = vld [vmem:[%s28768_s0 + $0x28] sm:$0xff] }
  0x64   : > { %9026 = vmatprep.subr.bf16.mxu0 %v19776_v16  ;;  %9928 = vmatprep.subr.bf16.mxu1 %v19779_v17  ;;  %v470_v15 = vpack.c.bf16 %v426_v14, %v426_v14  ;;  %v19858_v16 = vld [vmem:[%s28767_s2 + $0x420] ss:$16 sps:$4 sm:$0xff]   ;;  %v19861_v17 = vld [vmem:[%s28767_s2 + $0x428] ss:$16 sps:$4 sm:$0xff]  }
  0x65   : > { %v19951_v14 = vld [vmem:[%s28767_s2 + $0x608] ss:$16 sps:$4 sm:$0xff]  }
  0x67   : > { %9027 = vmatpush1.bf16.msra.mxu0 %v19774_v18  ;;  %9929 = vmatpush1.bf16.msra.mxu1 %v19777_v19  ;;  %v19866_v18 = vld [vmem:[%s28767_s2 + $0x444] ss:$16 sps:$4 sm:$0xff]   ;;  %v19869_v19 = vld [vmem:[%s28767_s2 + $0x44c] ss:$16 sps:$4 sm:$0xff]  }
  0x68   : > { %9028 = vmatprep.subr.bf16.mxu0 %v19782_v20  ;;  %9930 = vmatprep.subr.bf16.mxu1 %v19785_v21  ;;  %v19864_v20 = vld [vmem:[%s28767_s2 + $0x440] ss:$16 sps:$4 sm:$0xff]   ;;  %v19867_v21 = vld [vmem:[%s28767_s2 + $0x448] ss:$16 sps:$4 sm:$0xff]  }
  0x6b   : > { %9029 = vmatpush1.bf16.msra.mxu0 %v19780_v22  ;;  %9931 = vmatpush1.bf16.msra.mxu1 %v19783_v23  ;;  %v19872_v22 = vld [vmem:[%s28767_s2 + $0x464] ss:$16 sps:$4 sm:$0xff]   ;;  %v19875_v23 = vld [vmem:[%s28767_s2 + $0x46c] ss:$16 sps:$4 sm:$0xff]  }
  0x6c   : > { %9030 = vmatprep.subr.bf16.mxu0 %v19788_v24  ;;  %9932 = vmatprep.subr.bf16.mxu1 %v19791_v25  ;;  %v19870_v24 = vld [vmem:[%s28767_s2 + $0x460] ss:$16 sps:$4 sm:$0xff]   ;;  %v19873_v25 = vld [vmem:[%s28767_s2 + $0x468] ss:$16 sps:$4 sm:$0xff]  }
  0x6f   : > { %9031 = vmatpush1.bf16.msra.mxu0 %v19786_v26  ;;  %9933 = vmatpush1.bf16.msra.mxu1 %v19789_v27  ;;  %v19878_v26 = vld [vmem:[%s28767_s2 + $0x484] ss:$16 sps:$4 sm:$0xff]   ;;  %v19881_v27 = vld [vmem:[%s28767_s2 + $0x48c] ss:$16 sps:$4 sm:$0xff]  }
  0x70   : > { %9032 = vmatprep.subr.bf16.mxu0 %v19794_v28  ;;  %9934 = vmatprep.subr.bf16.mxu1 %v19797_v29  ;;  %v19876_v28 = vld [vmem:[%s28767_s2 + $0x480] ss:$16 sps:$4 sm:$0xff]   ;;  %v19879_v29 = vld [vmem:[%s28767_s2 + $0x488] ss:$16 sps:$4 sm:$0xff]  }
  0x73   : > { %9033 = vmatpush1.bf16.msra.mxu0 %v19792_v31  ;;  %9935 = vmatpush1.bf16.msra.mxu1 %v19795_v33  ;;  %v19887_v31 = vld [vmem:[%s28767_s2 + $0x4ac] ss:$16 sps:$4 sm:$0xff]   ;;  %v19885_v33 = vld [vmem:[%s28767_s2 + $0x4a8] ss:$16 sps:$4 sm:$0xff]  }
  0x74   : > { %9034 = vmatprep.subr.bf16.mxu0 %v19800_v34  ;;  %9936 = vmatprep.subr.bf16.mxu1 %v19803_v35  ;;  %v19890_v34 = vld [vmem:[%s28767_s2 + $0x4c4] ss:$16 sps:$4 sm:$0xff]   ;;  %v19893_v35 = vld [vmem:[%s28767_s2 + $0x4cc] ss:$16 sps:$4 sm:$0xff]  }
  0x77   : > { %9035 = vmatpush1.bf16.msra.mxu0 %v19798_v36  ;;  %9937 = vmatpush1.bf16.msra.mxu1 %v19801_v37  ;;  %v19888_v36 = vld [vmem:[%s28767_s2 + $0x4c0] ss:$16 sps:$4 sm:$0xff]   ;;  %v19891_v37 = vld [vmem:[%s28767_s2 + $0x4c8] ss:$16 sps:$4 sm:$0xff]  }
  0x78   : > { %9036 = vmatprep.subr.bf16.mxu0 %v19806_v38  ;;  %9938 = vmatprep.subr.bf16.mxu1 %v19809_v39  ;;  %v19896_v38 = vld [vmem:[%s28767_s2 + $0x4e4] ss:$16 sps:$4 sm:$0xff]   ;;  %v19899_v39 = vld [vmem:[%s28767_s2 + $0x4ec] ss:$16 sps:$4 sm:$0xff]  }
  0x7b   : > { %9037 = vmatpush1.bf16.msra.mxu0 %v19804_v40  ;;  %9939 = vmatpush1.bf16.msra.mxu1 %v19807_v41  ;;  %v19894_v40 = vld [vmem:[%s28767_s2 + $0x4e0] ss:$16 sps:$4 sm:$0xff]   ;;  %v19897_v41 = vld [vmem:[%s28767_s2 + $0x4e8] ss:$16 sps:$4 sm:$0xff]  }
  0x7c   : > { %9038 = vmatprep.subr.bf16.mxu0 %v19812_v42  ;;  %9940 = vmatprep.subr.bf16.mxu1 %v19815_v43  ;;  %v19902_v42 = vld [vmem:[%s28767_s2 + $0x504] ss:$16 sps:$4 sm:$0xff]   ;;  %v19905_v43 = vld [vmem:[%s28767_s2 + $0x50c] ss:$16 sps:$4 sm:$0xff]  }
  0x7f   : > { %9039 = vmatpush1.bf16.msra.mxu0 %v19810_v44  ;;  %9941 = vmatpush1.bf16.msra.mxu1 %v19813_v45  ;;  %v19900_v44 = vld [vmem:[%s28767_s2 + $0x500] ss:$16 sps:$4 sm:$0xff]   ;;  %v19903_v45 = vld [vmem:[%s28767_s2 + $0x508] ss:$16 sps:$4 sm:$0xff]  }
  0x80   : > { %9040 = vmatprep.subr.bf16.mxu0 %v19818_v46  ;;  %9942 = vmatprep.subr.bf16.mxu1 %v19821_v47  ;;  %v19908_v46 = vld [vmem:[%s28767_s2 + $0x524] ss:$16 sps:$4 sm:$0xff]   ;;  %v19911_v47 = vld [vmem:[%s28767_s2 + $0x52c] ss:$16 sps:$4 sm:$0xff]  }
  0x83   : > { %9041 = vmatpush1.bf16.msra.mxu0 %v19816_v48  ;;  %9943 = vmatpush1.bf16.msra.mxu1 %v19819_v49  ;;  %v19906_v48 = vld [vmem:[%s28767_s2 + $0x520] ss:$16 sps:$4 sm:$0xff]   ;;  %v19909_v49 = vld [vmem:[%s28767_s2 + $0x528] ss:$16 sps:$4 sm:$0xff]  }
  0x84   : > { %9042 = vmatprep.subr.bf16.mxu0 %v19824_v50  ;;  %9944 = vmatprep.subr.bf16.mxu1 %v19827_v51  ;;  %v19914_v50 = vld [vmem:[%s28767_s2 + $0x544] ss:$16 sps:$4 sm:$0xff]   ;;  %v19917_v51 = vld [vmem:[%s28767_s2 + $0x54c] ss:$16 sps:$4 sm:$0xff]  }
  0x87   : > { %9043 = vmatpush1.bf16.msra.mxu0 %v19822_v52  ;;  %9945 = vmatpush1.bf16.msra.mxu1 %v19825_v53  ;;  %v19912_v52 = vld [vmem:[%s28767_s2 + $0x540] ss:$16 sps:$4 sm:$0xff]   ;;  %v19915_v53 = vld [vmem:[%s28767_s2 + $0x548] ss:$16 sps:$4 sm:$0xff]  }
  0x88   : > { %9044 = vmatprep.subr.bf16.mxu0 %v19830_v54  ;;  %9946 = vmatprep.subr.bf16.mxu1 %v19833_v55  ;;  %v19920_v54 = vld [vmem:[%s28767_s2 + $0x564] ss:$16 sps:$4 sm:$0xff]   ;;  %v19923_v55 = vld [vmem:[%s28767_s2 + $0x56c] ss:$16 sps:$4 sm:$0xff]  }
  0x8b   : > { %9045 = vmatpush1.bf16.msra.mxu0 %v19828_v56  ;;  %9947 = vmatpush1.bf16.msra.mxu1 %v19831_v57  ;;  %v19918_v56 = vld [vmem:[%s28767_s2 + $0x560] ss:$16 sps:$4 sm:$0xff]   ;;  %v19921_v57 = vld [vmem:[%s28767_s2 + $0x568] ss:$16 sps:$4 sm:$0xff]  }
  0x8c   : > { %9046 = vmatprep.subr.bf16.mxu0 %v19836_v58  ;;  %9948 = vmatprep.subr.bf16.mxu1 %v19839_v59  ;;  %v19926_v58 = vld [vmem:[%s28767_s2 + $0x584] ss:$16 sps:$4 sm:$0xff]   ;;  %v19929_v59 = vld [vmem:[%s28767_s2 + $0x58c] ss:$16 sps:$4 sm:$0xff]  }
  0x8f   : > { %9047 = vmatpush1.bf16.msra.mxu0 %v19834_v60  ;;  %9949 = vmatpush1.bf16.msra.mxu1 %v19837_v61  ;;  %v19924_v60 = vld [vmem:[%s28767_s2 + $0x580] ss:$16 sps:$4 sm:$0xff]   ;;  %v19927_v61 = vld [vmem:[%s28767_s2 + $0x588] ss:$16 sps:$4 sm:$0xff]  }
  0x90   : > { %9048 = vmatprep.subr.bf16.mxu0 %v19842_v62  ;;  %9950 = vmatprep.subr.bf16.mxu1 %v19845_v63  ;;  %v19932_v62 = vld [vmem:[%s28767_s2 + $0x5a4] ss:$16 sps:$4 sm:$0xff]   ;;  %v19935_v63 = vld [vmem:[%s28767_s2 + $0x5ac] ss:$16 sps:$4 sm:$0xff]  }
  0x93   : > { %9049 = vmatpush1.bf16.msra.mxu0 %v19840_v0  ;;  %9951 = vmatpush1.bf16.msra.mxu1 %v19843_v1  ;;  %v19930_v0 = vld [vmem:[%s28767_s2 + $0x5a0] ss:$16 sps:$4 sm:$0xff]   ;;  %v19933_v1 = vld [vmem:[%s28767_s2 + $0x5a8] ss:$16 sps:$4 sm:$0xff]  }
  0x94   : > { %9050 = vmatprep.subr.bf16.mxu0 %v19848_v2  ;;  %9952 = vmatprep.subr.bf16.mxu1 %v19851_v3  ;;  %v19938_v2 = vld [vmem:[%s28767_s2 + $0x5c4] ss:$16 sps:$4 sm:$0xff]   ;;  %v19941_v3 = vld [vmem:[%s28767_s2 + $0x5cc] ss:$16 sps:$4 sm:$0xff]  }
  0x97   : > { %9051 = vmatpush1.bf16.msra.mxu0 %v19846_v4  ;;  %9953 = vmatpush1.bf16.msra.mxu1 %v19849_v5  ;;  %v19936_v4 = vld [vmem:[%s28767_s2 + $0x5c0] ss:$16 sps:$4 sm:$0xff]   ;;  %v19939_v5 = vld [vmem:[%s28767_s2 + $0x5c8] ss:$16 sps:$4 sm:$0xff]  }
  0x98   : > { %9061 = vmatprep.subr.bf16.mxu0 %v19854_v6  ;;  %9963 = vmatprep.subr.bf16.mxu1 %v19857_v8  ;;  %v19944_v6 = vld [vmem:[%s28767_s2 + $0x5e4] ss:$16 sps:$4 sm:$0xff]   ;;  %v19942_v8 = vld [vmem:[%s28767_s2 + $0x5e0] ss:$16 sps:$4 sm:$0xff]  }
  0x9a   : > { %9053 = vmatmul.mubr.bf16.vlgmr.msra.gmra.mrb[0].mxu0 %v467_v11  ;;  %9955 = vmatmul.mubr.bf16.vlgmr.msra.gmra.mrb[0].mxu1 %v467_v11  ;;  %v425_v11 = vld [vmem:[%s28768_s0 + $0x20] sm:$0xff] }
  0x9b   : > { %9062 = vmatpush1.bf16.msra.mxu0 %v19852_v9  ;;  %9964 = vmatpush1.bf16.msra.mxu1 %v19855_v10  ;;  %v19945_v9 = vld [vmem:[%s28767_s2 + $0x5e8] ss:$16 sps:$4 sm:$0xff]   ;;  %v19950_v10 = vld [vmem:[%s28767_s2 + $0x604] ss:$16 sps:$4 sm:$0xff]  }
  0x9c   : > { %9063 = vmatprep.subr.bf16.mxu0 %v19860_v12  ;;  %9965 = vmatprep.subr.bf16.mxu1 %v19863_v13  ;;  %v19953_v12 = vld [vmem:[%s28767_s2 + $0x60c] ss:$16 sps:$4 sm:$0xff]   ;;  %v19948_v13 = vld [vmem:[%s28767_s2 + $0x600] ss:$16 sps:$4 sm:$0xff]  }
  0x9d   : > { %9093 = vmatprep.mubr.bf16.mxu0 %v470_v15  ;;  %9995 = vmatprep.mubr.bf16.mxu1 %v470_v15  ;;  %v469_v15 = vpack.c.bf16 %v425_v11, %v425_v11  ;;  %v20043_v11 = vld [vmem:[%s28767_s2 + $0x7ec] ss:$16 sps:$4 sm:$0xff]  }
  0x9f   : > { %9064 = vmatpush1.bf16.msra.mxu0 %v19858_v16  ;;  %9966 = vmatpush1.bf16.msra.mxu1 %v19861_v17  ;;  %v428_v16 = vld [vmem:[%s28768_s0 + $0x38] sm:$0xff]  ;;  %v19956_v17 = vld [vmem:[%s28767_s2 + $0x624] ss:$16 sps:$4 sm:$0xff]  }
  0xa0   : > { %9065 = vmatprep.subr.bf16.mxu0 %v19866_v18  ;;  %9967 = vmatprep.subr.bf16.mxu1 %v19869_v19  ;;  %v19959_v18 = vld [vmem:[%s28767_s2 + $0x62c] ss:$16 sps:$4 sm:$0xff]   ;;  %v472_v19 = vpack.c.bf16 %v428_v16, %v428_v16 }
  0xa1   : > { %v20049_v16 = vld [vmem:[%s28767_s2 + $0x80c] ss:$16 sps:$4 sm:$0xff]  }
  0xa3   : > { %9066 = vmatpush1.bf16.msra.mxu0 %v19864_v20  ;;  %9968 = vmatpush1.bf16.msra.mxu1 %v19867_v21  ;;  %v19954_v20 = vld [vmem:[%s28767_s2 + $0x620] ss:$16 sps:$4 sm:$0xff]   ;;  %v19957_v21 = vld [vmem:[%s28767_s2 + $0x628] ss:$16 sps:$4 sm:$0xff]  }
  0xa4   : > { %9067 = vmatprep.subr.bf16.mxu0 %v19872_v22  ;;  %9969 = vmatprep.subr.bf16.mxu1 %v19875_v23  ;;  %v19962_v22 = vld [vmem:[%s28767_s2 + $0x644] ss:$16 sps:$4 sm:$0xff]   ;;  %v19965_v23 = vld [vmem:[%s28767_s2 + $0x64c] ss:$16 sps:$4 sm:$0xff]  }
  0xa7   : > { %9068 = vmatpush1.bf16.msra.mxu0 %v19870_v24  ;;  %9970 = vmatpush1.bf16.msra.mxu1 %v19873_v25  ;;  %v19960_v24 = vld [vmem:[%s28767_s2 + $0x640] ss:$16 sps:$4 sm:$0xff]   ;;  %v19963_v25 = vld [vmem:[%s28767_s2 + $0x648] ss:$16 sps:$4 sm:$0xff]  }
  0xa8   : > { %9069 = vmatprep.subr.bf16.mxu0 %v19878_v26  ;;  %9971 = vmatprep.subr.bf16.mxu1 %v19881_v27  ;;  %v19968_v26 = vld [vmem:[%s28767_s2 + $0x664] ss:$16 sps:$4 sm:$0xff]   ;;  %v19971_v27 = vld [vmem:[%s28767_s2 + $0x66c] ss:$16 sps:$4 sm:$0xff]  }
  0xab   : > { %9070 = vmatpush1.bf16.msra.mxu0 %v19876_v28  ;;  %9972 = vmatpush1.bf16.msra.mxu1 %v19879_v29  ;;  %v19966_v28 = vld [vmem:[%s28767_s2 + $0x660] ss:$16 sps:$4 sm:$0xff]   ;;  %v19969_v29 = vld [vmem:[%s28767_s2 + $0x668] ss:$16 sps:$4 sm:$0xff]  }
  0xac   : > { %9071 = vmatprep.subr.bf16.mxu0 %v19884_v30  ;;  %9973 = vmatprep.subr.bf16.mxu1 %v19887_v31  ;;  %v19974_v30 = vld [vmem:[%s28767_s2 + $0x684] ss:$16 sps:$4 sm:$0xff]   ;;  %v19977_v31 = vld [vmem:[%s28767_s2 + $0x68c] ss:$16 sps:$4 sm:$0xff]  }
  0xaf   : > { %9072 = vmatpush1.bf16.msra.mxu0 %v19882_v32  ;;  %9974 = vmatpush1.bf16.msra.mxu1 %v19885_v33  ;;  %v19972_v32 = vld [vmem:[%s28767_s2 + $0x680] ss:$16 sps:$4 sm:$0xff]   ;;  %v19975_v33 = vld [vmem:[%s28767_s2 + $0x688] ss:$16 sps:$4 sm:$0xff]  }
  0xb0   : > { %9073 = vmatprep.subr.bf16.mxu0 %v19890_v34  ;;  %9975 = vmatprep.subr.bf16.mxu1 %v19893_v35  ;;  %v19980_v34 = vld [vmem:[%s28767_s2 + $0x6a4] ss:$16 sps:$4 sm:$0xff]   ;;  %v19983_v35 = vld [vmem:[%s28767_s2 + $0x6ac] ss:$16 sps:$4 sm:$0xff]  }
  0xb3   : > { %9074 = vmatpush1.bf16.msra.mxu0 %v19888_v36  ;;  %9976 = vmatpush1.bf16.msra.mxu1 %v19891_v37  ;;  %v19978_v36 = vld [vmem:[%s28767_s2 + $0x6a0] ss:$16 sps:$4 sm:$0xff]   ;;  %v19981_v37 = vld [vmem:[%s28767_s2 + $0x6a8] ss:$16 sps:$4 sm:$0xff]  }
  0xb4   : > { %9075 = vmatprep.subr.bf16.mxu0 %v19896_v38  ;;  %9977 = vmatprep.subr.bf16.mxu1 %v19899_v39  ;;  %v19986_v38 = vld [vmem:[%s28767_s2 + $0x6c4] ss:$16 sps:$4 sm:$0xff]   ;;  %v19989_v39 = vld [vmem:[%s28767_s2 + $0x6cc] ss:$16 sps:$4 sm:$0xff]  }
  0xb7   : > { %9076 = vmatpush1.bf16.msra.mxu0 %v19894_v40  ;;  %9978 = vmatpush1.bf16.msra.mxu1 %v19897_v41  ;;  %v19984_v40 = vld [vmem:[%s28767_s2 + $0x6c0] ss:$16 sps:$4 sm:$0xff]   ;;  %v19987_v41 = vld [vmem:[%s28767_s2 + $0x6c8] ss:$16 sps:$4 sm:$0xff]  }
  0xb8   : > { %9077 = vmatprep.subr.bf16.mxu0 %v19902_v42  ;;  %9979 = vmatprep.subr.bf16.mxu1 %v19905_v43  ;;  %v19992_v42 = vld [vmem:[%s28767_s2 + $0x6e4] ss:$16 sps:$4 sm:$0xff]   ;;  %v19995_v43 = vld [vmem:[%s28767_s2 + $0x6ec] ss:$16 sps:$4 sm:$0xff]  }
  0xbb   : > { %9078 = vmatpush1.bf16.msra.mxu0 %v19900_v44  ;;  %9980 = vmatpush1.bf16.msra.mxu1 %v19903_v45  ;;  %v19990_v44 = vld [vmem:[%s28767_s2 + $0x6e0] ss:$16 sps:$4 sm:$0xff]   ;;  %v19993_v45 = vld [vmem:[%s28767_s2 + $0x6e8] ss:$16 sps:$4 sm:$0xff]  }
  0xbc   : > { %9079 = vmatprep.subr.bf16.mxu0 %v19908_v46  ;;  %9981 = vmatprep.subr.bf16.mxu1 %v19911_v47  ;;  %v19998_v46 = vld [vmem:[%s28767_s2 + $0x704] ss:$16 sps:$4 sm:$0xff]   ;;  %v20001_v47 = vld [vmem:[%s28767_s2 + $0x70c] ss:$16 sps:$4 sm:$0xff]  }
  0xbf   : > { %9080 = vmatpush1.bf16.msra.mxu0 %v19906_v48  ;;  %9982 = vmatpush1.bf16.msra.mxu1 %v19909_v49  ;;  %v19996_v48 = vld [vmem:[%s28767_s2 + $0x700] ss:$16 sps:$4 sm:$0xff]   ;;  %v19999_v49 = vld [vmem:[%s28767_s2 + $0x708] ss:$16 sps:$4 sm:$0xff]  }
  0xc0   : > { %9081 = vmatprep.subr.bf16.mxu0 %v19914_v50  ;;  %9983 = vmatprep.subr.bf16.mxu1 %v19917_v51  ;;  %v20004_v50 = vld [vmem:[%s28767_s2 + $0x724] ss:$16 sps:$4 sm:$0xff]   ;;  %v20007_v51 = vld [vmem:[%s28767_s2 + $0x72c] ss:$16 sps:$4 sm:$0xff]  }
  0xc3   : > { %9082 = vmatpush1.bf16.msra.mxu0 %v19912_v52  ;;  %9984 = vmatpush1.bf16.msra.mxu1 %v19915_v53  ;;  %v20002_v52 = vld [vmem:[%s28767_s2 + $0x720] ss:$16 sps:$4 sm:$0xff]   ;;  %v20005_v53 = vld [vmem:[%s28767_s2 + $0x728] ss:$16 sps:$4 sm:$0xff]  }
  0xc4   : > { %9083 = vmatprep.subr.bf16.mxu0 %v19920_v54  ;;  %9985 = vmatprep.subr.bf16.mxu1 %v19923_v55  ;;  %v20010_v54 = vld [vmem:[%s28767_s2 + $0x744] ss:$16 sps:$4 sm:$0xff]   ;;  %v20013_v55 = vld [vmem:[%s28767_s2 + $0x74c] ss:$16 sps:$4 sm:$0xff]  }
  0xc7   : > { %9084 = vmatpush1.bf16.msra.mxu0 %v19918_v56  ;;  %9986 = vmatpush1.bf16.msra.mxu1 %v19921_v57  ;;  %v20008_v56 = vld [vmem:[%s28767_s2 + $0x740] ss:$16 sps:$4 sm:$0xff]   ;;  %v20011_v57 = vld [vmem:[%s28767_s2 + $0x748] ss:$16 sps:$4 sm:$0xff]  }
  0xc8   : > { %9085 = vmatprep.subr.bf16.mxu0 %v19926_v58  ;;  %9987 = vmatprep.subr.bf16.mxu1 %v19929_v59  ;;  %v20016_v58 = vld [vmem:[%s28767_s2 + $0x764] ss:$16 sps:$4 sm:$0xff]   ;;  %v20019_v59 = vld [vmem:[%s28767_s2 + $0x76c] ss:$16 sps:$4 sm:$0xff]  }
  0xcb   : > { %9086 = vmatpush1.bf16.msra.mxu0 %v19924_v60  ;;  %9988 = vmatpush1.bf16.msra.mxu1 %v19927_v61  ;;  %v20014_v60 = vld [vmem:[%s28767_s2 + $0x760] ss:$16 sps:$4 sm:$0xff]   ;;  %v20017_v61 = vld [vmem:[%s28767_s2 + $0x768] ss:$16 sps:$4 sm:$0xff]  }
  0xcc   : > { %9087 = vmatprep.subr.bf16.mxu0 %v19932_v62  ;;  %9989 = vmatprep.subr.bf16.mxu1 %v19935_v63  ;;  %v20022_v62 = vld [vmem:[%s28767_s2 + $0x784] ss:$16 sps:$4 sm:$0xff]   ;;  %v20025_v63 = vld [vmem:[%s28767_s2 + $0x78c] ss:$16 sps:$4 sm:$0xff]  }
  0xcf   : > { %9088 = vmatpush1.bf16.msra.mxu0 %v19930_v0  ;;  %9990 = vmatpush1.bf16.msra.mxu1 %v19933_v1  ;;  %v20020_v0 = vld [vmem:[%s28767_s2 + $0x780] ss:$16 sps:$4 sm:$0xff]   ;;  %v20023_v1 = vld [vmem:[%s28767_s2 + $0x788] ss:$16 sps:$4 sm:$0xff]  }
  0xd0   : > { %9089 = vmatprep.subr.bf16.mxu0 %v19938_v2  ;;  %9991 = vmatprep.subr.bf16.mxu1 %v19941_v3  ;;  %v20028_v2 = vld [vmem:[%s28767_s2 + $0x7a4] ss:$16 sps:$4 sm:$0xff]   ;;  %v20031_v3 = vld [vmem:[%s28767_s2 + $0x7ac] ss:$16 sps:$4 sm:$0xff]  }
  0xd3   : > { %9090 = vmatpush1.bf16.msra.mxu0 %v19936_v4  ;;  %9992 = vmatpush1.bf16.msra.mxu1 %v19939_v5  ;;  %v20026_v4 = vld [vmem:[%s28767_s2 + $0x7a0] ss:$16 sps:$4 sm:$0xff]   ;;  %v20029_v5 = vld [vmem:[%s28767_s2 + $0x7a8] ss:$16 sps:$4 sm:$0xff]  }
  0xd4   : > { %9091 = vmatprep.subr.bf16.mxu0 %v19944_v6  ;;  %9993 = vmatprep.subr.bf16.mxu1 %v19947_v7  ;;  %v20034_v6 = vld [vmem:[%s28767_s2 + $0x7c4] ss:$16 sps:$4 sm:$0xff]   ;;  %v20037_v7 = vld [vmem:[%s28767_s2 + $0x7cc] ss:$16 sps:$4 sm:$0xff]  }
  0xd7   : > { %9092 = vmatpush1.bf16.msra.mxu0 %v19942_v8  ;;  %9994 = vmatpush1.bf16.msra.mxu1 %v19945_v9  ;;  %v20032_v8 = vld [vmem:[%s28767_s2 + $0x7c0] ss:$16 sps:$4 sm:$0xff]   ;;  %v20035_v9 = vld [vmem:[%s28767_s2 + $0x7c8] ss:$16 sps:$4 sm:$0xff]  }
  0xd8   : > { %9102 = vmatprep.subr.bf16.mxu0 %v19950_v10  ;;  %10004 = vmatprep.subr.bf16.mxu1 %v19953_v12  ;;  %v20040_v10 = vld [vmem:[%s28767_s2 + $0x7e4] ss:$16 sps:$4 sm:$0xff]   ;;  %v20038_v12 = vld [vmem:[%s28767_s2 + $0x7e0] ss:$16 sps:$4 sm:$0xff]  }
  0xda   : > { %9094 = vmatmul.mubr.bf16.vlgmr.msra.gmra.mrb[0].mxu0 %v469_v15  ;;  %9996 = vmatmul.mubr.bf16.vlgmr.msra.gmra.mrb[0].mxu1 %v469_v15  ;;  %v20046_v15 = vld [vmem:[%s28767_s2 + $0x804] ss:$16 sps:$4 sm:$0xff]  }
  0xdb   : > { %9103 = vmatpush1.bf16.msra.mxu0 %v19948_v13  ;;  %10005 = vmatpush1.bf16.msra.mxu1 %v19951_v14  ;;  %v20041_v13 = vld [vmem:[%s28767_s2 + $0x7e8] ss:$16 sps:$4 sm:$0xff]   ;;  %v427_v14 = vld [vmem:[%s28768_s0 + $0x30] sm:$0xff] }
  0xdc   : > { %9104 = vmatprep.subr.bf16.mxu0 %v19956_v17  ;;  %10006 = vmatprep.subr.bf16.mxu1 %v19959_v18  ;;  %v471_v17 = vpack.c.bf16 %v427_v14, %v427_v14  ;;  %v430_v18 = vld [vmem:[%s28768_s0 + $0x48] sm:$0xff]  ;;  %v20136_v14 = vld [vmem:[%s28767_s2 + $0x9e4] ss:$16 sps:$4 sm:$0xff]  }
  0xdd   : > { %9134 = vmatprep.mubr.bf16.mxu0 %v472_v19  ;;  %10036 = vmatprep.mubr.bf16.mxu1 %v472_v19  ;;  %v20044_v19 = vld [vmem:[%s28767_s2 + $0x800] ss:$16 sps:$4 sm:$0xff]  }
  0xdf   : > { %9105 = vmatpush1.bf16.msra.mxu0 %v19954_v20  ;;  %10007 = vmatpush1.bf16.msra.mxu1 %v19957_v21  ;;  %v20047_v20 = vld [vmem:[%s28767_s2 + $0x808] ss:$16 sps:$4 sm:$0xff]   ;;  %v20052_v21 = vld [vmem:[%s28767_s2 + $0x824] ss:$16 sps:$4 sm:$0xff]  }
  0xe0   : > { %9106 = vmatprep.subr.bf16.mxu0 %v19962_v22  ;;  %10008 = vmatprep.subr.bf16.mxu1 %v19965_v23  ;;  %v20055_v22 = vld [vmem:[%s28767_s2 + $0x82c] ss:$16 sps:$4 sm:$0xff]   ;;  %v474_v23 = vpack.c.bf16 %v430_v18, %v430_v18  ;;  %v20142_v18 = vld [vmem:[%s28767_s2 + $0xa04] ss:$16 sps:$4 sm:$0xff]  }
  0xe3   : > { %9107 = vmatpush1.bf16.msra.mxu0 %v19960_v24  ;;  %10009 = vmatpush1.bf16.msra.mxu1 %v19963_v25  ;;  %v20050_v24 = vld [vmem:[%s28767_s2 + $0x820] ss:$16 sps:$4 sm:$0xff]   ;;  %v20053_v25 = vld [vmem:[%s28767_s2 + $0x828] ss:$16 sps:$4 sm:$0xff]  }
  0xe4   : > { %9108 = vmatprep.subr.bf16.mxu0 %v19968_v26  ;;  %10010 = vmatprep.subr.bf16.mxu1 %v19971_v27  ;;  %v20058_v26 = vld [vmem:[%s28767_s2 + $0x844] ss:$16 sps:$4 sm:$0xff]   ;;  %v20061_v27 = vld [vmem:[%s28767_s2 + $0x84c] ss:$16 sps:$4 sm:$0xff]  }
  0xe7   : > { %9109 = vmatpush1.bf16.msra.mxu0 %v19966_v28  ;;  %10011 = vmatpush1.bf16.msra.mxu1 %v19969_v29  ;;  %v20056_v28 = vld [vmem:[%s28767_s2 + $0x840] ss:$16 sps:$4 sm:$0xff]   ;;  %v20059_v29 = vld [vmem:[%s28767_s2 + $0x848] ss:$16 sps:$4 sm:$0xff]  }
  0xe8   : > { %9110 = vmatprep.subr.bf16.mxu0 %v19974_v30  ;;  %10012 = vmatprep.subr.bf16.mxu1 %v19977_v31  ;;  %v20064_v30 = vld [vmem:[%s28767_s2 + $0x864] ss:$16 sps:$4 sm:$0xff]   ;;  %v20067_v31 = vld [vmem:[%s28767_s2 + $0x86c] ss:$16 sps:$4 sm:$0xff]  }
  0xeb   : > { %9111 = vmatpush1.bf16.msra.mxu0 %v19972_v32  ;;  %10013 = vmatpush1.bf16.msra.mxu1 %v19975_v33  ;;  %v20062_v32 = vld [vmem:[%s28767_s2 + $0x860] ss:$16 sps:$4 sm:$0xff]   ;;  %v20065_v33 = vld [vmem:[%s28767_s2 + $0x868] ss:$16 sps:$4 sm:$0xff]  }
  0xec   : > { %9112 = vmatprep.subr.bf16.mxu0 %v19980_v34  ;;  %10014 = vmatprep.subr.bf16.mxu1 %v19983_v35  ;;  %v20070_v34 = vld [vmem:[%s28767_s2 + $0x884] ss:$16 sps:$4 sm:$0xff]   ;;  %v20073_v35 = vld [vmem:[%s28767_s2 + $0x88c] ss:$16 sps:$4 sm:$0xff]  }
  0xef   : > { %9113 = vmatpush1.bf16.msra.mxu0 %v19978_v36  ;;  %10015 = vmatpush1.bf16.msra.mxu1 %v19981_v37  ;;  %v20068_v36 = vld [vmem:[%s28767_s2 + $0x880] ss:$16 sps:$4 sm:$0xff]   ;;  %v20071_v37 = vld [vmem:[%s28767_s2 + $0x888] ss:$16 sps:$4 sm:$0xff]  }
  0xf0   : > { %9114 = vmatprep.subr.bf16.mxu0 %v19986_v38  ;;  %10016 = vmatprep.subr.bf16.mxu1 %v19989_v39  ;;  %v20076_v38 = vld [vmem:[%s28767_s2 + $0x8a4] ss:$16 sps:$4 sm:$0xff]   ;;  %v20079_v39 = vld [vmem:[%s28767_s2 + $0x8ac] ss:$16 sps:$4 sm:$0xff]  }
  0xf3   : > { %9115 = vmatpush1.bf16.msra.mxu0 %v19984_v40  ;;  %10017 = vmatpush1.bf16.msra.mxu1 %v19987_v41  ;;  %v20074_v40 = vld [vmem:[%s28767_s2 + $0x8a0] ss:$16 sps:$4 sm:$0xff]   ;;  %v20077_v41 = vld [vmem:[%s28767_s2 + $0x8a8] ss:$16 sps:$4 sm:$0xff]  }
  0xf4   : > { %9116 = vmatprep.subr.bf16.mxu0 %v19992_v42  ;;  %10018 = vmatprep.subr.bf16.mxu1 %v19995_v43  ;;  %v20082_v42 = vld [vmem:[%s28767_s2 + $0x8c4] ss:$16 sps:$4 sm:$0xff]   ;;  %v20085_v43 = vld [vmem:[%s28767_s2 + $0x8cc] ss:$16 sps:$4 sm:$0xff]  }
  0xf7   : > { %9117 = vmatpush1.bf16.msra.mxu0 %v19990_v44  ;;  %10019 = vmatpush1.bf16.msra.mxu1 %v19993_v45  ;;  %v20080_v44 = vld [vmem:[%s28767_s2 + $0x8c0] ss:$16 sps:$4 sm:$0xff]   ;;  %v20083_v45 = vld [vmem:[%s28767_s2 + $0x8c8] ss:$16 sps:$4 sm:$0xff]  }
  0xf8   : > { %9118 = vmatprep.subr.bf16.mxu0 %v19998_v46  ;;  %10020 = vmatprep.subr.bf16.mxu1 %v20001_v47  ;;  %v20088_v46 = vld [vmem:[%s28767_s2 + $0x8e4] ss:$16 sps:$4 sm:$0xff]   ;;  %v20091_v47 = vld [vmem:[%s28767_s2 + $0x8ec] ss:$16 sps:$4 sm:$0xff]  }
  0xfb   : > { %9119 = vmatpush1.bf16.msra.mxu0 %v19996_v48  ;;  %10021 = vmatpush1.bf16.msra.mxu1 %v19999_v49  ;;  %v20086_v48 = vld [vmem:[%s28767_s2 + $0x8e0] ss:$16 sps:$4 sm:$0xff]   ;;  %v20089_v49 = vld [vmem:[%s28767_s2 + $0x8e8] ss:$16 sps:$4 sm:$0xff]  }
  0xfc   : > { %9120 = vmatprep.subr.bf16.mxu0 %v20004_v50  ;;  %10022 = vmatprep.subr.bf16.mxu1 %v20007_v51  ;;  %v20094_v50 = vld [vmem:[%s28767_s2 + $0x904] ss:$16 sps:$4 sm:$0xff]   ;;  %v20097_v51 = vld [vmem:[%s28767_s2 + $0x90c] ss:$16 sps:$4 sm:$0xff]  }
  0xff   : > { %9121 = vmatpush1.bf16.msra.mxu0 %v20002_v52  ;;  %10023 = vmatpush1.bf16.msra.mxu1 %v20005_v53  ;;  %v20092_v52 = vld [vmem:[%s28767_s2 + $0x900] ss:$16 sps:$4 sm:$0xff]   ;;  %v20095_v53 = vld [vmem:[%s28767_s2 + $0x908] ss:$16 sps:$4 sm:$0xff]  }
 0x100   : > { %9122 = vmatprep.subr.bf16.mxu0 %v20010_v54  ;;  %10024 = vmatprep.subr.bf16.mxu1 %v20013_v55  ;;  %v20100_v54 = vld [vmem:[%s28767_s2 + $0x924] ss:$16 sps:$4 sm:$0xff]   ;;  %v20103_v55 = vld [vmem:[%s28767_s2 + $0x92c] ss:$16 sps:$4 sm:$0xff]  }
 0x103   : > { %9123 = vmatpush1.bf16.msra.mxu0 %v20008_v56  ;;  %10025 = vmatpush1.bf16.msra.mxu1 %v20011_v57  ;;  %v20098_v56 = vld [vmem:[%s28767_s2 + $0x920] ss:$16 sps:$4 sm:$0xff]   ;;  %v20101_v57 = vld [vmem:[%s28767_s2 + $0x928] ss:$16 sps:$4 sm:$0xff]  }
 0x104   : > { %9124 = vmatprep.subr.bf16.mxu0 %v20016_v58  ;;  %10026 = vmatprep.subr.bf16.mxu1 %v20019_v59  ;;  %v20106_v58 = vld [vmem:[%s28767_s2 + $0x944] ss:$16 sps:$4 sm:$0xff]   ;;  %v20109_v59 = vld [vmem:[%s28767_s2 + $0x94c] ss:$16 sps:$4 sm:$0xff]  }
 0x107   : > { %9125 = vmatpush1.bf16.msra.mxu0 %v20014_v60  ;;  %10027 = vmatpush1.bf16.msra.mxu1 %v20017_v61  ;;  %v20104_v60 = vld [vmem:[%s28767_s2 + $0x940] ss:$16 sps:$4 sm:$0xff]   ;;  %v20107_v61 = vld [vmem:[%s28767_s2 + $0x948] ss:$16 sps:$4 sm:$0xff]  }
 0x108   : > { %9126 = vmatprep.subr.bf16.mxu0 %v20022_v62  ;;  %10028 = vmatprep.subr.bf16.mxu1 %v20025_v63  ;;  %v20112_v62 = vld [vmem:[%s28767_s2 + $0x964] ss:$16 sps:$4 sm:$0xff]   ;;  %v20115_v63 = vld [vmem:[%s28767_s2 + $0x96c] ss:$16 sps:$4 sm:$0xff]  }
 0x10b   : > { %9127 = vmatpush1.bf16.msra.mxu0 %v20020_v0  ;;  %10029 = vmatpush1.bf16.msra.mxu1 %v20023_v1  ;;  %v20110_v0 = vld [vmem:[%s28767_s2 + $0x960] ss:$16 sps:$4 sm:$0xff]   ;;  %v20113_v1 = vld [vmem:[%s28767_s2 + $0x968] ss:$16 sps:$4 sm:$0xff]  }
 0x10c   : > { %9128 = vmatprep.subr.bf16.mxu0 %v20028_v2  ;;  %10030 = vmatprep.subr.bf16.mxu1 %v20031_v3  ;;  %v20118_v2 = vld [vmem:[%s28767_s2 + $0x984] ss:$16 sps:$4 sm:$0xff]   ;;  %v20121_v3 = vld [vmem:[%s28767_s2 + $0x98c] ss:$16 sps:$4 sm:$0xff]  }
 0x10f   : > { %9129 = vmatpush1.bf16.msra.mxu0 %v20026_v4  ;;  %10031 = vmatpush1.bf16.msra.mxu1 %v20029_v5  ;;  %v20116_v4 = vld [vmem:[%s28767_s2 + $0x980] ss:$16 sps:$4 sm:$0xff]   ;;  %v20119_v5 = vld [vmem:[%s28767_s2 + $0x988] ss:$16 sps:$4 sm:$0xff]  }
 0x110   : > { %9130 = vmatprep.subr.bf16.mxu0 %v20034_v6  ;;  %10032 = vmatprep.subr.bf16.mxu1 %v20037_v7  ;;  %v20124_v6 = vld [vmem:[%s28767_s2 + $0x9a4] ss:$16 sps:$4 sm:$0xff]   ;;  %v20127_v7 = vld [vmem:[%s28767_s2 + $0x9ac] ss:$16 sps:$4 sm:$0xff]  }
 0x113   : > { %9131 = vmatpush1.bf16.msra.mxu0 %v20032_v8  ;;  %10033 = vmatpush1.bf16.msra.mxu1 %v20035_v9  ;;  %v20122_v8 = vld [vmem:[%s28767_s2 + $0x9a0] ss:$16 sps:$4 sm:$0xff]   ;;  %v20125_v9 = vld [vmem:[%s28767_s2 + $0x9a8] ss:$16 sps:$4 sm:$0xff]  }
 0x114   : > { %9132 = vmatprep.subr.bf16.mxu0 %v20040_v10  ;;  %10034 = vmatprep.subr.bf16.mxu1 %v20043_v11  ;;  %v20130_v10 = vld [vmem:[%s28767_s2 + $0x9c4] ss:$16 sps:$4 sm:$0xff]   ;;  %v20133_v11 = vld [vmem:[%s28767_s2 + $0x9cc] ss:$16 sps:$4 sm:$0xff]  }
 0x117   : > { %9133 = vmatpush1.bf16.msra.mxu0 %v20038_v12  ;;  %10035 = vmatpush1.bf16.msra.mxu1 %v20041_v13  ;;  %v20128_v12 = vld [vmem:[%s28767_s2 + $0x9c0] ss:$16 sps:$4 sm:$0xff]   ;;  %v20131_v13 = vld [vmem:[%s28767_s2 + $0x9c8] ss:$16 sps:$4 sm:$0xff]  }
 0x118   : > { %9143 = vmatprep.subr.bf16.mxu0 %v20046_v15  ;;  %10045 = vmatprep.subr.bf16.mxu1 %v20049_v16  ;;  %v20139_v15 = vld [vmem:[%s28767_s2 + $0x9ec] ss:$16 sps:$4 sm:$0xff]   ;;  %v20134_v16 = vld [vmem:[%s28767_s2 + $0x9e0] ss:$16 sps:$4 sm:$0xff]  }
 0x11a   : > { %9135 = vmatmul.mubr.bf16.vlgmr.msra.gmra.mrb[0].mxu0 %v471_v17  ;;  %10037 = vmatmul.mubr.bf16.vlgmr.msra.gmra.mrb[0].mxu1 %v471_v17  ;;  %v20137_v17 = vld [vmem:[%s28767_s2 + $0x9e8] ss:$16 sps:$4 sm:$0xff]  }
 0x11b   : > { %9144 = vmatpush1.bf16.msra.mxu0 %v20044_v19  ;;  %10046 = vmatpush1.bf16.msra.mxu1 %v20047_v20  ;;  %v429_v19 = vld [vmem:[%s28768_s0 + $0x40] sm:$0xff]  ;;  %v20145_v20 = vld [vmem:[%s28767_s2 + $0xa0c] ss:$16 sps:$4 sm:$0xff]  }
 0x11c   : > { %9145 = vmatprep.subr.bf16.mxu0 %v20052_v21  ;;  %10047 = vmatprep.subr.bf16.mxu1 %v20055_v22  ;;  %v432_v21 = vld [vmem:[%s28768_s0 + $0x58] sm:$0xff]  ;;  %v473_v22 = vpack.c.bf16 %v429_v19, %v429_v19 }
 0x11d   : > { %9175 = vmatprep.mubr.bf16.mxu0 %v474_v23  ;;  %10077 = vmatprep.mubr.bf16.mxu1 %v474_v23  ;;  %v20140_v23 = vld [vmem:[%s28767_s2 + $0xa00] ss:$16 sps:$4 sm:$0xff]   ;;  %v20235_v19 = vld [vmem:[%s28767_s2 + $0xbec] ss:$16 sps:$4 sm:$0xff]  }
 0x11f   : > { %9146 = vmatpush1.bf16.msra.mxu0 %v20050_v24  ;;  %10048 = vmatpush1.bf16.msra.mxu1 %v20053_v25  ;;  %v20143_v24 = vld [vmem:[%s28767_s2 + $0xa08] ss:$16 sps:$4 sm:$0xff]   ;;  %v20148_v25 = vld [vmem:[%s28767_s2 + $0xa24] ss:$16 sps:$4 sm:$0xff]  }
 0x120   : > { %9147 = vmatprep.subr.bf16.mxu0 %v20058_v26  ;;  %10049 = vmatprep.subr.bf16.mxu1 %v20061_v27  ;;  %v20151_v26 = vld [vmem:[%s28767_s2 + $0xa2c] ss:$16 sps:$4 sm:$0xff]   ;;  %v476_v27 = vpack.c.bf16 %v432_v21, %v432_v21  ;;  %v20233_v21 = vld [vmem:[%s28767_s2 + $0xbe8] ss:$16 sps:$4 sm:$0xff]  }
 0x123   : > { %9148 = vmatpush1.bf16.msra.mxu0 %v20056_v28  ;;  %10050 = vmatpush1.bf16.msra.mxu1 %v20059_v29  ;;  %v20146_v28 = vld [vmem:[%s28767_s2 + $0xa20] ss:$16 sps:$4 sm:$0xff]   ;;  %v20149_v29 = vld [vmem:[%s28767_s2 + $0xa28] ss:$16 sps:$4 sm:$0xff]  }
 0x124   : > { %9149 = vmatprep.subr.bf16.mxu0 %v20064_v30  ;;  %10051 = vmatprep.subr.bf16.mxu1 %v20067_v31  ;;  %v20154_v30 = vld [vmem:[%s28767_s2 + $0xa44] ss:$16 sps:$4 sm:$0xff]   ;;  %v20157_v31 = vld [vmem:[%s28767_s2 + $0xa4c] ss:$16 sps:$4 sm:$0xff]  }
 0x127   : > { %9150 = vmatpush1.bf16.msra.mxu0 %v20062_v32  ;;  %10052 = vmatpush1.bf16.msra.mxu1 %v20065_v33  ;;  %v20152_v32 = vld [vmem:[%s28767_s2 + $0xa40] ss:$16 sps:$4 sm:$0xff]   ;;  %v20155_v33 = vld [vmem:[%s28767_s2 + $0xa48] ss:$16 sps:$4 sm:$0xff]  }
 0x128   : > { %9151 = vmatprep.subr.bf16.mxu0 %v20070_v34  ;;  %10053 = vmatprep.subr.bf16.mxu1 %v20073_v35  ;;  %v20160_v34 = vld [vmem:[%s28767_s2 + $0xa64] ss:$16 sps:$4 sm:$0xff]   ;;  %v20163_v35 = vld [vmem:[%s28767_s2 + $0xa6c] ss:$16 sps:$4 sm:$0xff]  }
 0x12b   : > { %9152 = vmatpush1.bf16.msra.mxu0 %v20068_v36  ;;  %10054 = vmatpush1.bf16.msra.mxu1 %v20071_v37  ;;  %v20158_v36 = vld [vmem:[%s28767_s2 + $0xa60] ss:$16 sps:$4 sm:$0xff]   ;;  %v20161_v37 = vld [vmem:[%s28767_s2 + $0xa68] ss:$16 sps:$4 sm:$0xff]  }
 0x12c   : > { %9153 = vmatprep.subr.bf16.mxu0 %v20076_v38  ;;  %10055 = vmatprep.subr.bf16.mxu1 %v20079_v39  ;;  %v20166_v38 = vld [vmem:[%s28767_s2 + $0xa84] ss:$16 sps:$4 sm:$0xff]   ;;  %v20169_v39 = vld [vmem:[%s28767_s2 + $0xa8c] ss:$16 sps:$4 sm:$0xff]  }
 0x12f   : > { %9154 = vmatpush1.bf16.msra.mxu0 %v20074_v40  ;;  %10056 = vmatpush1.bf16.msra.mxu1 %v20077_v41  ;;  %v20164_v40 = vld [vmem:[%s28767_s2 + $0xa80] ss:$16 sps:$4 sm:$0xff]   ;;  %v20167_v41 = vld [vmem:[%s28767_s2 + $0xa88] ss:$16 sps:$4 sm:$0xff]  }
 0x130   : > { %9155 = vmatprep.subr.bf16.mxu0 %v20082_v42  ;;  %10057 = vmatprep.subr.bf16.mxu1 %v20085_v43  ;;  %v20172_v42 = vld [vmem:[%s28767_s2 + $0xaa4] ss:$16 sps:$4 sm:$0xff]   ;;  %v20175_v43 = vld [vmem:[%s28767_s2 + $0xaac] ss:$16 sps:$4 sm:$0xff]  }
 0x133   : > { %9156 = vmatpush1.bf16.msra.mxu0 %v20080_v44  ;;  %10058 = vmatpush1.bf16.msra.mxu1 %v20083_v45  ;;  %v20170_v44 = vld [vmem:[%s28767_s2 + $0xaa0] ss:$16 sps:$4 sm:$0xff]   ;;  %v20173_v45 = vld [vmem:[%s28767_s2 + $0xaa8] ss:$16 sps:$4 sm:$0xff]  }
 0x134   : > { %9157 = vmatprep.subr.bf16.mxu0 %v20088_v46  ;;  %10059 = vmatprep.subr.bf16.mxu1 %v20091_v47  ;;  %v20178_v46 = vld [vmem:[%s28767_s2 + $0xac4] ss:$16 sps:$4 sm:$0xff]   ;;  %v20181_v47 = vld [vmem:[%s28767_s2 + $0xacc] ss:$16 sps:$4 sm:$0xff]  }
 0x137   : > { %9158 = vmatpush1.bf16.msra.mxu0 %v20086_v48  ;;  %10060 = vmatpush1.bf16.msra.mxu1 %v20089_v49  ;;  %v20176_v48 = vld [vmem:[%s28767_s2 + $0xac0] ss:$16 sps:$4 sm:$0xff]   ;;  %v20179_v49 = vld [vmem:[%s28767_s2 + $0xac8] ss:$16 sps:$4 sm:$0xff]  }
 0x138   : > { %9159 = vmatprep.subr.bf16.mxu0 %v20094_v50  ;;  %10061 = vmatprep.subr.bf16.mxu1 %v20097_v51  ;;  %v20184_v50 = vld [vmem:[%s28767_s2 + $0xae4] ss:$16 sps:$4 sm:$0xff]   ;;  %v20187_v51 = vld [vmem:[%s28767_s2 + $0xaec] ss:$16 sps:$4 sm:$0xff]  }
 0x13b   : > { %9160 = vmatpush1.bf16.msra.mxu0 %v20092_v52  ;;  %10062 = vmatpush1.bf16.msra.mxu1 %v20095_v53  ;;  %v20182_v52 = vld [vmem:[%s28767_s2 + $0xae0] ss:$16 sps:$4 sm:$0xff]   ;;  %v20185_v53 = vld [vmem:[%s28767_s2 + $0xae8] ss:$16 sps:$4 sm:$0xff]  }
 0x13c   : > { %9161 = vmatprep.subr.bf16.mxu0 %v20100_v54  ;;  %10063 = vmatprep.subr.bf16.mxu1 %v20103_v55  ;;  %v20190_v54 = vld [vmem:[%s28767_s2 + $0xb04] ss:$16 sps:$4 sm:$0xff]   ;;  %v20193_v55 = vld [vmem:[%s28767_s2 + $0xb0c] ss:$16 sps:$4 sm:$0xff]  }
 0x13f   : > { %9162 = vmatpush1.bf16.msra.mxu0 %v20098_v56  ;;  %10064 = vmatpush1.bf16.msra.mxu1 %v20101_v57  ;;  %v20188_v56 = vld [vmem:[%s28767_s2 + $0xb00] ss:$16 sps:$4 sm:$0xff]   ;;  %v20191_v57 = vld [vmem:[%s28767_s2 + $0xb08] ss:$16 sps:$4 sm:$0xff]  }
 0x140   : > { %9163 = vmatprep.subr.bf16.mxu0 %v20106_v58  ;;  %10065 = vmatprep.subr.bf16.mxu1 %v20109_v59  ;;  %v20196_v58 = vld [vmem:[%s28767_s2 + $0xb24] ss:$16 sps:$4 sm:$0xff]   ;;  %v20199_v59 = vld [vmem:[%s28767_s2 + $0xb2c] ss:$16 sps:$4 sm:$0xff]  }
 0x143   : > { %9164 = vmatpush1.bf16.msra.mxu0 %v20104_v60  ;;  %10066 = vmatpush1.bf16.msra.mxu1 %v20107_v61  ;;  %v20194_v60 = vld [vmem:[%s28767_s2 + $0xb20] ss:$16 sps:$4 sm:$0xff]   ;;  %v20197_v61 = vld [vmem:[%s28767_s2 + $0xb28] ss:$16 sps:$4 sm:$0xff]  }
 0x144   : > { %9165 = vmatprep.subr.bf16.mxu0 %v20112_v62  ;;  %10067 = vmatprep.subr.bf16.mxu1 %v20115_v63  ;;  %v20202_v62 = vld [vmem:[%s28767_s2 + $0xb44] ss:$16 sps:$4 sm:$0xff]   ;;  %v20205_v63 = vld [vmem:[%s28767_s2 + $0xb4c] ss:$16 sps:$4 sm:$0xff]  }
 0x147   : > { %9166 = vmatpush1.bf16.msra.mxu0 %v20110_v0  ;;  %10068 = vmatpush1.bf16.msra.mxu1 %v20113_v1  ;;  %v20200_v0 = vld [vmem:[%s28767_s2 + $0xb40] ss:$16 sps:$4 sm:$0xff]   ;;  %v20203_v1 = vld [vmem:[%s28767_s2 + $0xb48] ss:$16 sps:$4 sm:$0xff]  }
 0x148   : > { %9167 = vmatprep.subr.bf16.mxu0 %v20118_v2  ;;  %10069 = vmatprep.subr.bf16.mxu1 %v20121_v3  ;;  %v20208_v2 = vld [vmem:[%s28767_s2 + $0xb64] ss:$16 sps:$4 sm:$0xff]   ;;  %v20211_v3 = vld [vmem:[%s28767_s2 + $0xb6c] ss:$16 sps:$4 sm:$0xff]  }
 0x14b   : > { %9168 = vmatpush1.bf16.msra.mxu0 %v20116_v4  ;;  %10070 = vmatpush1.bf16.msra.mxu1 %v20119_v5  ;;  %v20206_v4 = vld [vmem:[%s28767_s2 + $0xb60] ss:$16 sps:$4 sm:$0xff]   ;;  %v20209_v5 = vld [vmem:[%s28767_s2 + $0xb68] ss:$16 sps:$4 sm:$0xff]  }
 0x14c   : > { %9169 = vmatprep.subr.bf16.mxu0 %v20124_v6  ;;  %10071 = vmatprep.subr.bf16.mxu1 %v20127_v7  ;;  %v20214_v6 = vld [vmem:[%s28767_s2 + $0xb84] ss:$16 sps:$4 sm:$0xff]   ;;  %v20217_v7 = vld [vmem:[%s28767_s2 + $0xb8c] ss:$16 sps:$4 sm:$0xff]  }
 0x14f   : > { %9170 = vmatpush1.bf16.msra.mxu0 %v20122_v8  ;;  %10072 = vmatpush1.bf16.msra.mxu1 %v20125_v9  ;;  %v20212_v8 = vld [vmem:[%s28767_s2 + $0xb80] ss:$16 sps:$4 sm:$0xff]   ;;  %v20215_v9 = vld [vmem:[%s28767_s2 + $0xb88] ss:$16 sps:$4 sm:$0xff]  }
 0x150   : > { %9171 = vmatprep.subr.bf16.mxu0 %v20130_v10  ;;  %10073 = vmatprep.subr.bf16.mxu1 %v20133_v11  ;;  %v20220_v10 = vld [vmem:[%s28767_s2 + $0xba4] ss:$16 sps:$4 sm:$0xff]   ;;  %v20223_v11 = vld [vmem:[%s28767_s2 + $0xbac] ss:$16 sps:$4 sm:$0xff]  }
 0x153   : > { %9172 = vmatpush1.bf16.msra.mxu0 %v20128_v12  ;;  %10074 = vmatpush1.bf16.msra.mxu1 %v20131_v13  ;;  %v20218_v12 = vld [vmem:[%s28767_s2 + $0xba0] ss:$16 sps:$4 sm:$0xff]   ;;  %v20221_v13 = vld [vmem:[%s28767_s2 + $0xba8] ss:$16 sps:$4 sm:$0xff]  }
 0x154   : > { %9173 = vmatprep.subr.bf16.mxu0 %v20136_v14  ;;  %10075 = vmatprep.subr.bf16.mxu1 %v20139_v15  ;;  %v20226_v14 = vld [vmem:[%s28767_s2 + $0xbc4] ss:$16 sps:$4 sm:$0xff]   ;;  %v20229_v15 = vld [vmem:[%s28767_s2 + $0xbcc] ss:$16 sps:$4 sm:$0xff]  }
 0x157   : > { %9174 = vmatpush1.bf16.msra.mxu0 %v20134_v16  ;;  %10076 = vmatpush1.bf16.msra.mxu1 %v20137_v17  ;;  %v20224_v16 = vld [vmem:[%s28767_s2 + $0xbc0] ss:$16 sps:$4 sm:$0xff]   ;;  %v20227_v17 = vld [vmem:[%s28767_s2 + $0xbc8] ss:$16 sps:$4 sm:$0xff]  }
 0x158   : > { %9184 = vmatprep.subr.bf16.mxu0 %v20142_v18  ;;  %10086 = vmatprep.subr.bf16.mxu1 %v20145_v20  ;;  %v20232_v18 = vld [vmem:[%s28767_s2 + $0xbe4] ss:$16 sps:$4 sm:$0xff]   ;;  %v20230_v20 = vld [vmem:[%s28767_s2 + $0xbe0] ss:$16 sps:$4 sm:$0xff]  }
 0x15a   : > { %9176 = vmatmul.mubr.bf16.vlgmr.msra.gmra.mrb[0].mxu0 %v473_v22  ;;  %10078 = vmatmul.mubr.bf16.vlgmr.msra.gmra.mrb[0].mxu1 %v473_v22  ;;  %v20238_v22 = vld [vmem:[%s28767_s2 + $0xc04] ss:$16 sps:$4 sm:$0xff]  }
 0x15b   : > { %9185 = vmatpush1.bf16.msra.mxu0 %v20140_v23  ;;  %10087 = vmatpush1.bf16.msra.mxu1 %v20143_v24  ;;  %v431_v23 = vld [vmem:[%s28768_s0 + $0x50] sm:$0xff]  ;;  %v20241_v24 = vld [vmem:[%s28767_s2 + $0xc0c] ss:$16 sps:$4 sm:$0xff]  }
 0x15c   : > { %9186 = vmatprep.subr.bf16.mxu0 %v20148_v25  ;;  %10088 = vmatprep.subr.bf16.mxu1 %v20151_v26  ;;  %v434_v25 = vld [vmem:[%s28768_s0 + $0x68] sm:$0xff]  ;;  %v475_v26 = vpack.c.bf16 %v431_v23, %v431_v23 }
 0x15d   : > { %9216 = vmatprep.mubr.bf16.mxu0 %v476_v27  ;;  %10118 = vmatprep.mubr.bf16.mxu1 %v476_v27  ;;  %v20236_v27 = vld [vmem:[%s28767_s2 + $0xc00] ss:$16 sps:$4 sm:$0xff]   ;;  %v20331_v23 = vld [vmem:[%s28767_s2 + $0xdec] ss:$16 sps:$4 sm:$0xff]  }
 0x15f   : > { %9187 = vmatpush1.bf16.msra.mxu0 %v20146_v28  ;;  %10089 = vmatpush1.bf16.msra.mxu1 %v20149_v29  ;;  %v20239_v28 = vld [vmem:[%s28767_s2 + $0xc08] ss:$16 sps:$4 sm:$0xff]   ;;  %v20244_v29 = vld [vmem:[%s28767_s2 + $0xc24] ss:$16 sps:$4 sm:$0xff]  }
 0x160   : > { %9188 = vmatprep.subr.bf16.mxu0 %v20154_v30  ;;  %10090 = vmatprep.subr.bf16.mxu1 %v20157_v31  ;;  %v20247_v30 = vld [vmem:[%s28767_s2 + $0xc2c] ss:$16 sps:$4 sm:$0xff]   ;;  %v478_v31 = vpack.c.bf16 %v434_v25, %v434_v25  ;;  %v20329_v25 = vld [vmem:[%s28767_s2 + $0xde8] ss:$16 sps:$4 sm:$0xff]  }
 0x163   : > { %9189 = vmatpush1.bf16.msra.mxu0 %v20152_v32  ;;  %10091 = vmatpush1.bf16.msra.mxu1 %v20155_v33  ;;  %v20242_v32 = vld [vmem:[%s28767_s2 + $0xc20] ss:$16 sps:$4 sm:$0xff]   ;;  %v20245_v33 = vld [vmem:[%s28767_s2 + $0xc28] ss:$16 sps:$4 sm:$0xff]  }
 0x164   : > { %9190 = vmatprep.subr.bf16.mxu0 %v20160_v34  ;;  %10092 = vmatprep.subr.bf16.mxu1 %v20163_v35  ;;  %v20250_v34 = vld [vmem:[%s28767_s2 + $0xc44] ss:$16 sps:$4 sm:$0xff]   ;;  %v20253_v35 = vld [vmem:[%s28767_s2 + $0xc4c] ss:$16 sps:$4 sm:$0xff]  }
 0x167   : > { %9191 = vmatpush1.bf16.msra.mxu0 %v20158_v36  ;;  %10093 = vmatpush1.bf16.msra.mxu1 %v20161_v37  ;;  %v20248_v36 = vld [vmem:[%s28767_s2 + $0xc40] ss:$16 sps:$4 sm:$0xff]   ;;  %v20251_v37 = vld [vmem:[%s28767_s2 + $0xc48] ss:$16 sps:$4 sm:$0xff]  }
 0x168   : > { %9192 = vmatprep.subr.bf16.mxu0 %v20166_v38  ;;  %10094 = vmatprep.subr.bf16.mxu1 %v20169_v39  ;;  %v20256_v38 = vld [vmem:[%s28767_s2 + $0xc64] ss:$16 sps:$4 sm:$0xff]   ;;  %v20259_v39 = vld [vmem:[%s28767_s2 + $0xc6c] ss:$16 sps:$4 sm:$0xff]  }
 0x16b   : > { %9193 = vmatpush1.bf16.msra.mxu0 %v20164_v40  ;;  %10095 = vmatpush1.bf16.msra.mxu1 %v20167_v41  ;;  %v20254_v40 = vld [vmem:[%s28767_s2 + $0xc60] ss:$16 sps:$4 sm:$0xff]   ;;  %v20257_v41 = vld [vmem:[%s28767_s2 + $0xc68] ss:$16 sps:$4 sm:$0xff]  }
 0x16c   : > { %9194 = vmatprep.subr.bf16.mxu0 %v20172_v42  ;;  %10096 = vmatprep.subr.bf16.mxu1 %v20175_v43  ;;  %v20262_v42 = vld [vmem:[%s28767_s2 + $0xc84] ss:$16 sps:$4 sm:$0xff]   ;;  %v20265_v43 = vld [vmem:[%s28767_s2 + $0xc8c] ss:$16 sps:$4 sm:$0xff]  }
 0x16f   : > { %9195 = vmatpush1.bf16.msra.mxu0 %v20170_v44  ;;  %10097 = vmatpush1.bf16.msra.mxu1 %v20173_v45  ;;  %v20260_v44 = vld [vmem:[%s28767_s2 + $0xc80] ss:$16 sps:$4 sm:$0xff]   ;;  %v20263_v45 = vld [vmem:[%s28767_s2 + $0xc88] ss:$16 sps:$4 sm:$0xff]  }
 0x170   : > { %9196 = vmatprep.subr.bf16.mxu0 %v20178_v46  ;;  %10098 = vmatprep.subr.bf16.mxu1 %v20181_v47  ;;  %v20268_v46 = vld [vmem:[%s28767_s2 + $0xca4] ss:$16 sps:$4 sm:$0xff]   ;;  %v20271_v47 = vld [vmem:[%s28767_s2 + $0xcac] ss:$16 sps:$4 sm:$0xff]  }
 0x173   : > { %9197 = vmatpush1.bf16.msra.mxu0 %v20176_v48  ;;  %10099 = vmatpush1.bf16.msra.mxu1 %v20179_v49  ;;  %v20266_v48 = vld [vmem:[%s28767_s2 + $0xca0] ss:$16 sps:$4 sm:$0xff]   ;;  %v20269_v49 = vld [vmem:[%s28767_s2 + $0xca8] ss:$16 sps:$4 sm:$0xff]  }
 0x174   : > { %9198 = vmatprep.subr.bf16.mxu0 %v20184_v50  ;;  %10100 = vmatprep.subr.bf16.mxu1 %v20187_v51  ;;  %v20274_v50 = vld [vmem:[%s28767_s2 + $0xcc4] ss:$16 sps:$4 sm:$0xff]   ;;  %v20277_v51 = vld [vmem:[%s28767_s2 + $0xccc] ss:$16 sps:$4 sm:$0xff]  }
 0x177   : > { %9199 = vmatpush1.bf16.msra.mxu0 %v20182_v52  ;;  %10101 = vmatpush1.bf16.msra.mxu1 %v20185_v53  ;;  %v20272_v52 = vld [vmem:[%s28767_s2 + $0xcc0] ss:$16 sps:$4 sm:$0xff]   ;;  %v20275_v53 = vld [vmem:[%s28767_s2 + $0xcc8] ss:$16 sps:$4 sm:$0xff]  }
 0x178   : > { %9200 = vmatprep.subr.bf16.mxu0 %v20190_v54  ;;  %10102 = vmatprep.subr.bf16.mxu1 %v20193_v55  ;;  %v20280_v54 = vld [vmem:[%s28767_s2 + $0xce4] ss:$16 sps:$4 sm:$0xff]   ;;  %v20283_v55 = vld [vmem:[%s28767_s2 + $0xcec] ss:$16 sps:$4 sm:$0xff]  }
 0x17b   : > { %9201 = vmatpush1.bf16.msra.mxu0 %v20188_v56  ;;  %10103 = vmatpush1.bf16.msra.mxu1 %v20191_v57  ;;  %v20278_v56 = vld [vmem:[%s28767_s2 + $0xce0] ss:$16 sps:$4 sm:$0xff]   ;;  %v20281_v57 = vld [vmem:[%s28767_s2 + $0xce8] ss:$16 sps:$4 sm:$0xff]  }
 0x17c   : > { %9202 = vmatprep.subr.bf16.mxu0 %v20196_v58  ;;  %10104 = vmatprep.subr.bf16.mxu1 %v20199_v59  ;;  %v20286_v58 = vld [vmem:[%s28767_s2 + $0xd04] ss:$16 sps:$4 sm:$0xff]   ;;  %v20289_v59 = vld [vmem:[%s28767_s2 + $0xd0c] ss:$16 sps:$4 sm:$0xff]  }
 0x17f   : > { %9203 = vmatpush1.bf16.msra.mxu0 %v20194_v60  ;;  %10105 = vmatpush1.bf16.msra.mxu1 %v20197_v61  ;;  %v20284_v60 = vld [vmem:[%s28767_s2 + $0xd00] ss:$16 sps:$4 sm:$0xff]   ;;  %v20287_v61 = vld [vmem:[%s28767_s2 + $0xd08] ss:$16 sps:$4 sm:$0xff]  }
 0x180   : > { %9204 = vmatprep.subr.bf16.mxu0 %v20202_v62  ;;  %10106 = vmatprep.subr.bf16.mxu1 %v20205_v63  ;;  %v20292_v62 = vld [vmem:[%s28767_s2 + $0xd24] ss:$16 sps:$4 sm:$0xff]   ;;  %v20295_v63 = vld [vmem:[%s28767_s2 + $0xd2c] ss:$16 sps:$4 sm:$0xff]  }
 0x183   : > { %9205 = vmatpush1.bf16.msra.mxu0 %v20200_v0  ;;  %10107 = vmatpush1.bf16.msra.mxu1 %v20203_v1  ;;  %v20290_v0 = vld [vmem:[%s28767_s2 + $0xd20] ss:$16 sps:$4 sm:$0xff]   ;;  %v20293_v1 = vld [vmem:[%s28767_s2 + $0xd28] ss:$16 sps:$4 sm:$0xff]  }
 0x184   : > { %9206 = vmatprep.subr.bf16.mxu0 %v20208_v2  ;;  %10108 = vmatprep.subr.bf16.mxu1 %v20211_v3  ;;  %v20298_v2 = vld [vmem:[%s28767_s2 + $0xd44] ss:$16 sps:$4 sm:$0xff]   ;;  %v20301_v3 = vld [vmem:[%s28767_s2 + $0xd4c] ss:$16 sps:$4 sm:$0xff]  }
 0x187   : > { %9207 = vmatpush1.bf16.msra.mxu0 %v20206_v4  ;;  %10109 = vmatpush1.bf16.msra.mxu1 %v20209_v5  ;;  %v20296_v4 = vld [vmem:[%s28767_s2 + $0xd40] ss:$16 sps:$4 sm:$0xff]   ;;  %v20299_v5 = vld [vmem:[%s28767_s2 + $0xd48] ss:$16 sps:$4 sm:$0xff]  }
 0x188   : > { %9208 = vmatprep.subr.bf16.mxu0 %v20214_v6  ;;  %10110 = vmatprep.subr.bf16.mxu1 %v20217_v7  ;;  %v20304_v6 = vld [vmem:[%s28767_s2 + $0xd64] ss:$16 sps:$4 sm:$0xff]   ;;  %v20307_v7 = vld [vmem:[%s28767_s2 + $0xd6c] ss:$16 sps:$4 sm:$0xff]  }
 0x18b   : > { %9209 = vmatpush1.bf16.msra.mxu0 %v20212_v8  ;;  %10111 = vmatpush1.bf16.msra.mxu1 %v20215_v9  ;;  %v20302_v8 = vld [vmem:[%s28767_s2 + $0xd60] ss:$16 sps:$4 sm:$0xff]   ;;  %v20305_v9 = vld [vmem:[%s28767_s2 + $0xd68] ss:$16 sps:$4 sm:$0xff]  }
 0x18c   : > { %9210 = vmatprep.subr.bf16.mxu0 %v20220_v10  ;;  %10112 = vmatprep.subr.bf16.mxu1 %v20223_v11  ;;  %v20310_v10 = vld [vmem:[%s28767_s2 + $0xd84] ss:$16 sps:$4 sm:$0xff]   ;;  %v20313_v11 = vld [vmem:[%s28767_s2 + $0xd8c] ss:$16 sps:$4 sm:$0xff]  }
 0x18f   : > { %9211 = vmatpush1.bf16.msra.mxu0 %v20218_v12  ;;  %10113 = vmatpush1.bf16.msra.mxu1 %v20221_v13  ;;  %v20308_v12 = vld [vmem:[%s28767_s2 + $0xd80] ss:$16 sps:$4 sm:$0xff]   ;;  %v20311_v13 = vld [vmem:[%s28767_s2 + $0xd88] ss:$16 sps:$4 sm:$0xff]  }
 0x190   : > { %9212 = vmatprep.subr.bf16.mxu0 %v20226_v14  ;;  %10114 = vmatprep.subr.bf16.mxu1 %v20229_v15  ;;  %v20316_v14 = vld [vmem:[%s28767_s2 + $0xda4] ss:$16 sps:$4 sm:$0xff]   ;;  %v20319_v15 = vld [vmem:[%s28767_s2 + $0xdac] ss:$16 sps:$4 sm:$0xff]  }
 0x193   : > { %9213 = vmatpush1.bf16.msra.mxu0 %v20224_v16  ;;  %10115 = vmatpush1.bf16.msra.mxu1 %v20227_v17  ;;  %v20314_v16 = vld [vmem:[%s28767_s2 + $0xda0] ss:$16 sps:$4 sm:$0xff]   ;;  %v20317_v17 = vld [vmem:[%s28767_s2 + $0xda8] ss:$16 sps:$4 sm:$0xff]  }
 0x194   : > { %9214 = vmatprep.subr.bf16.mxu0 %v20232_v18  ;;  %10116 = vmatprep.subr.bf16.mxu1 %v20235_v19  ;;  %v20322_v18 = vld [vmem:[%s28767_s2 + $0xdc4] ss:$16 sps:$4 sm:$0xff]   ;;  %v20325_v19 = vld [vmem:[%s28767_s2 + $0xdcc] ss:$16 sps:$4 sm:$0xff]  }
 0x197   : > { %9215 = vmatpush1.bf16.msra.mxu0 %v20230_v20  ;;  %10117 = vmatpush1.bf16.msra.mxu1 %v20233_v21  ;;  %v20320_v20 = vld [vmem:[%s28767_s2 + $0xdc0] ss:$16 sps:$4 sm:$0xff]   ;;  %v20323_v21 = vld [vmem:[%s28767_s2 + $0xdc8] ss:$16 sps:$4 sm:$0xff]  }
 0x198   : > { %9225 = vmatprep.subr.bf16.mxu0 %v20238_v22  ;;  %10127 = vmatprep.subr.bf16.mxu1 %v20241_v24  ;;  %v20328_v22 = vld [vmem:[%s28767_s2 + $0xde4] ss:$16 sps:$4 sm:$0xff]   ;;  %v20326_v24 = vld [vmem:[%s28767_s2 + $0xde0] ss:$16 sps:$4 sm:$0xff]  }
 0x19a   : > { %9217 = vmatmul.mubr.bf16.vlgmr.msra.gmra.mrb[0].mxu0 %v475_v26  ;;  %10119 = vmatmul.mubr.bf16.vlgmr.msra.gmra.mrb[0].mxu1 %v475_v26  ;;  %v20334_v26 = vld [vmem:[%s28767_s2 + $0xe04] ss:$16 sps:$4 sm:$0xff]  }
 0x19b   : > { %9226 = vmatpush1.bf16.msra.mxu0 %v20236_v27  ;;  %10128 = vmatpush1.bf16.msra.mxu1 %v20239_v28  ;;  %v433_v27 = vld [vmem:[%s28768_s0 + $0x60] sm:$0xff]  ;;  %v20337_v28 = vld [vmem:[%s28767_s2 + $0xe0c] ss:$16 sps:$4 sm:$0xff]  }
 0x19c   : > { %9227 = vmatprep.subr.bf16.mxu0 %v20244_v29  ;;  %10129 = vmatprep.subr.bf16.mxu1 %v20247_v30  ;;  %v436_v29 = vld [vmem:[%s28768_s0 + $0x78] sm:$0xff]  ;;  %v477_v30 = vpack.c.bf16 %v433_v27, %v433_v27 }
 0x19d   : > { %9257 = vmatprep.mubr.bf16.mxu0 %v478_v31  ;;  %10159 = vmatprep.mubr.bf16.mxu1 %v478_v31  ;;  %v20332_v31 = vld [vmem:[%s28767_s2 + $0xe00] ss:$16 sps:$4 sm:$0xff]   ;;  %v20427_v27 = vld [vmem:[%s28767_s2 + $0xfec] ss:$16 sps:$4 sm:$0xff]  }
 0x19f   : > { %9228 = vmatpush1.bf16.msra.mxu0 %v20242_v32  ;;  %10130 = vmatpush1.bf16.msra.mxu1 %v20245_v33  ;;  %v20335_v32 = vld [vmem:[%s28767_s2 + $0xe08] ss:$16 sps:$4 sm:$0xff]   ;;  %v20340_v33 = vld [vmem:[%s28767_s2 + $0xe24] ss:$16 sps:$4 sm:$0xff]  }
 0x1a0   : > { %9229 = vmatprep.subr.bf16.mxu0 %v20250_v34  ;;  %10131 = vmatprep.subr.bf16.mxu1 %v20253_v35  ;;  %v20343_v34 = vld [vmem:[%s28767_s2 + $0xe2c] ss:$16 sps:$4 sm:$0xff]   ;;  %v480_v35 = vpack.c.bf16 %v436_v29, %v436_v29  ;;  %v20425_v29 = vld [vmem:[%s28767_s2 + $0xfe8] ss:$16 sps:$4 sm:$0xff]  }
 0x1a3   : > { %9230 = vmatpush1.bf16.msra.mxu0 %v20248_v36  ;;  %10132 = vmatpush1.bf16.msra.mxu1 %v20251_v37  ;;  %v20338_v36 = vld [vmem:[%s28767_s2 + $0xe20] ss:$16 sps:$4 sm:$0xff]   ;;  %v20341_v37 = vld [vmem:[%s28767_s2 + $0xe28] ss:$16 sps:$4 sm:$0xff]  }
 0x1a4   : > { %9231 = vmatprep.subr.bf16.mxu0 %v20256_v38  ;;  %10133 = vmatprep.subr.bf16.mxu1 %v20259_v39  ;;  %v20346_v38 = vld [vmem:[%s28767_s2 + $0xe44] ss:$16 sps:$4 sm:$0xff]   ;;  %v20349_v39 = vld [vmem:[%s28767_s2 + $0xe4c] ss:$16 sps:$4 sm:$0xff]  }
 0x1a7   : > { %9232 = vmatpush1.bf16.msra.mxu0 %v20254_v40  ;;  %10134 = vmatpush1.bf16.msra.mxu1 %v20257_v41  ;;  %v20344_v40 = vld [vmem:[%s28767_s2 + $0xe40] ss:$16 sps:$4 sm:$0xff]   ;;  %v20347_v41 = vld [vmem:[%s28767_s2 + $0xe48] ss:$16 sps:$4 sm:$0xff]  }
 0x1a8   : > { %9233 = vmatprep.subr.bf16.mxu0 %v20262_v42  ;;  %10135 = vmatprep.subr.bf16.mxu1 %v20265_v43  ;;  %v20352_v42 = vld [vmem:[%s28767_s2 + $0xe64] ss:$16 sps:$4 sm:$0xff]   ;;  %v20355_v43 = vld [vmem:[%s28767_s2 + $0xe6c] ss:$16 sps:$4 sm:$0xff]  }
 0x1ab   : > { %9234 = vmatpush1.bf16.msra.mxu0 %v20260_v44  ;;  %10136 = vmatpush1.bf16.msra.mxu1 %v20263_v45  ;;  %v20350_v44 = vld [vmem:[%s28767_s2 + $0xe60] ss:$16 sps:$4 sm:$0xff]   ;;  %v20353_v45 = vld [vmem:[%s28767_s2 + $0xe68] ss:$16 sps:$4 sm:$0xff]  }
 0x1ac   : > { %9235 = vmatprep.subr.bf16.mxu0 %v20268_v46  ;;  %10137 = vmatprep.subr.bf16.mxu1 %v20271_v47  ;;  %v20358_v46 = vld [vmem:[%s28767_s2 + $0xe84] ss:$16 sps:$4 sm:$0xff]   ;;  %v20361_v47 = vld [vmem:[%s28767_s2 + $0xe8c] ss:$16 sps:$4 sm:$0xff]  }
 0x1af   : > { %9236 = vmatpush1.bf16.msra.mxu0 %v20266_v48  ;;  %10138 = vmatpush1.bf16.msra.mxu1 %v20269_v49  ;;  %v20356_v48 = vld [vmem:[%s28767_s2 + $0xe80] ss:$16 sps:$4 sm:$0xff]   ;;  %v20359_v49 = vld [vmem:[%s28767_s2 + $0xe88] ss:$16 sps:$4 sm:$0xff]  }
 0x1b0   : > { %9237 = vmatprep.subr.bf16.mxu0 %v20274_v50  ;;  %10139 = vmatprep.subr.bf16.mxu1 %v20277_v51  ;;  %v20364_v50 = vld [vmem:[%s28767_s2 + $0xea4] ss:$16 sps:$4 sm:$0xff]   ;;  %v20367_v51 = vld [vmem:[%s28767_s2 + $0xeac] ss:$16 sps:$4 sm:$0xff]  }
 0x1b3   : > { %9238 = vmatpush1.bf16.msra.mxu0 %v20272_v52  ;;  %10140 = vmatpush1.bf16.msra.mxu1 %v20275_v53  ;;  %v20362_v52 = vld [vmem:[%s28767_s2 + $0xea0] ss:$16 sps:$4 sm:$0xff]   ;;  %v20365_v53 = vld [vmem:[%s28767_s2 + $0xea8] ss:$16 sps:$4 sm:$0xff]  }
 0x1b4   : > { %9239 = vmatprep.subr.bf16.mxu0 %v20280_v54  ;;  %10141 = vmatprep.subr.bf16.mxu1 %v20283_v55  ;;  %v20370_v54 = vld [vmem:[%s28767_s2 + $0xec4] ss:$16 sps:$4 sm:$0xff]   ;;  %v20373_v55 = vld [vmem:[%s28767_s2 + $0xecc] ss:$16 sps:$4 sm:$0xff]  }
 0x1b7   : > { %9240 = vmatpush1.bf16.msra.mxu0 %v20278_v56  ;;  %10142 = vmatpush1.bf16.msra.mxu1 %v20281_v57  ;;  %v20368_v56 = vld [vmem:[%s28767_s2 + $0xec0] ss:$16 sps:$4 sm:$0xff]   ;;  %v20371_v57 = vld [vmem:[%s28767_s2 + $0xec8] ss:$16 sps:$4 sm:$0xff]  }
 0x1b8   : > { %9241 = vmatprep.subr.bf16.mxu0 %v20286_v58  ;;  %10143 = vmatprep.subr.bf16.mxu1 %v20289_v59  ;;  %v20376_v58 = vld [vmem:[%s28767_s2 + $0xee4] ss:$16 sps:$4 sm:$0xff]   ;;  %v20379_v59 = vld [vmem:[%s28767_s2 + $0xeec] ss:$16 sps:$4 sm:$0xff]  }
 0x1bb   : > { %9242 = vmatpush1.bf16.msra.mxu0 %v20284_v60  ;;  %10144 = vmatpush1.bf16.msra.mxu1 %v20287_v61  ;;  %v20374_v60 = vld [vmem:[%s28767_s2 + $0xee0] ss:$16 sps:$4 sm:$0xff]   ;;  %v20377_v61 = vld [vmem:[%s28767_s2 + $0xee8] ss:$16 sps:$4 sm:$0xff]  }
 0x1bc   : > { %9243 = vmatprep.subr.bf16.mxu0 %v20292_v62  ;;  %10145 = vmatprep.subr.bf16.mxu1 %v20295_v63  ;;  %v20382_v62 = vld [vmem:[%s28767_s2 + $0xf04] ss:$16 sps:$4 sm:$0xff]   ;;  %v20385_v63 = vld [vmem:[%s28767_s2 + $0xf0c] ss:$16 sps:$4 sm:$0xff]  }
 0x1bf   : > { %9244 = vmatpush1.bf16.msra.mxu0 %v20290_v0  ;;  %10146 = vmatpush1.bf16.msra.mxu1 %v20293_v1  ;;  %v20380_v0 = vld [vmem:[%s28767_s2 + $0xf00] ss:$16 sps:$4 sm:$0xff]   ;;  %v20383_v1 = vld [vmem:[%s28767_s2 + $0xf08] ss:$16 sps:$4 sm:$0xff]  }
 0x1c0   : > { %9245 = vmatprep.subr.bf16.mxu0 %v20298_v2  ;;  %10147 = vmatprep.subr.bf16.mxu1 %v20301_v3  ;;  %v20388_v2 = vld [vmem:[%s28767_s2 + $0xf24] ss:$16 sps:$4 sm:$0xff]   ;;  %v20391_v3 = vld [vmem:[%s28767_s2 + $0xf2c] ss:$16 sps:$4 sm:$0xff]  }
 0x1c3   : > { %9246 = vmatpush1.bf16.msra.mxu0 %v20296_v4  ;;  %10148 = vmatpush1.bf16.msra.mxu1 %v20299_v5  ;;  %v20386_v4 = vld [vmem:[%s28767_s2 + $0xf20] ss:$16 sps:$4 sm:$0xff]   ;;  %v20389_v5 = vld [vmem:[%s28767_s2 + $0xf28] ss:$16 sps:$4 sm:$0xff]  }
 0x1c4   : > { %9247 = vmatprep.subr.bf16.mxu0 %v20304_v6  ;;  %10149 = vmatprep.subr.bf16.mxu1 %v20307_v7  ;;  %v20394_v6 = vld [vmem:[%s28767_s2 + $0xf44] ss:$16 sps:$4 sm:$0xff]   ;;  %v20397_v7 = vld [vmem:[%s28767_s2 + $0xf4c] ss:$16 sps:$4 sm:$0xff]  }
 0x1c7   : > { %9248 = vmatpush1.bf16.msra.mxu0 %v20302_v8  ;;  %10150 = vmatpush1.bf16.msra.mxu1 %v20305_v9  ;;  %v20392_v8 = vld [vmem:[%s28767_s2 + $0xf40] ss:$16 sps:$4 sm:$0xff]   ;;  %v20395_v9 = vld [vmem:[%s28767_s2 + $0xf48] ss:$16 sps:$4 sm:$0xff]  }
 0x1c8   : > { %9249 = vmatprep.subr.bf16.mxu0 %v20310_v10  ;;  %10151 = vmatprep.subr.bf16.mxu1 %v20313_v11  ;;  %v20400_v10 = vld [vmem:[%s28767_s2 + $0xf64] ss:$16 sps:$4 sm:$0xff]   ;;  %v20403_v11 = vld [vmem:[%s28767_s2 + $0xf6c] ss:$16 sps:$4 sm:$0xff]  }
 0x1cb   : > { %9250 = vmatpush1.bf16.msra.mxu0 %v20308_v12  ;;  %10152 = vmatpush1.bf16.msra.mxu1 %v20311_v13  ;;  %v20398_v12 = vld [vmem:[%s28767_s2 + $0xf60] ss:$16 sps:$4 sm:$0xff]   ;;  %v20401_v13 = vld [vmem:[%s28767_s2 + $0xf68] ss:$16 sps:$4 sm:$0xff]  }
 0x1cc   : > { %9251 = vmatprep.subr.bf16.mxu0 %v20316_v14  ;;  %10153 = vmatprep.subr.bf16.mxu1 %v20319_v15  ;;  %v20406_v14 = vld [vmem:[%s28767_s2 + $0xf84] ss:$16 sps:$4 sm:$0xff]   ;;  %v20409_v15 = vld [vmem:[%s28767_s2 + $0xf8c] ss:$16 sps:$4 sm:$0xff]  }
 0x1cf   : > { %9252 = vmatpush1.bf16.msra.mxu0 %v20314_v16  ;;  %10154 = vmatpush1.bf16.msra.mxu1 %v20317_v17  ;;  %v20404_v16 = vld [vmem:[%s28767_s2 + $0xf80] ss:$16 sps:$4 sm:$0xff]   ;;  %v20407_v17 = vld [vmem:[%s28767_s2 + $0xf88] ss:$16 sps:$4 sm:$0xff]  }
 0x1d0   : > { %9253 = vmatprep.subr.bf16.mxu0 %v20322_v18  ;;  %10155 = vmatprep.subr.bf16.mxu1 %v20325_v19  ;;  %v20412_v18 = vld [vmem:[%s28767_s2 + $0xfa4] ss:$16 sps:$4 sm:$0xff]   ;;  %v20415_v19 = vld [vmem:[%s28767_s2 + $0xfac] ss:$16 sps:$4 sm:$0xff]  }
 0x1d3   : > { %9254 = vmatpush1.bf16.msra.mxu0 %v20320_v20  ;;  %10156 = vmatpush1.bf16.msra.mxu1 %v20323_v21  ;;  %v20410_v20 = vld [vmem:[%s28767_s2 + $0xfa0] ss:$16 sps:$4 sm:$0xff]   ;;  %v20413_v21 = vld [vmem:[%s28767_s2 + $0xfa8] ss:$16 sps:$4 sm:$0xff]  }
 0x1d4   : > { %9255 = vmatprep.subr.bf16.mxu0 %v20328_v22  ;;  %10157 = vmatprep.subr.bf16.mxu1 %v20331_v23  ;;  %v20418_v22 = vld [vmem:[%s28767_s2 + $0xfc4] ss:$16 sps:$4 sm:$0xff]   ;;  %v20421_v23 = vld [vmem:[%s28767_s2 + $0xfcc] ss:$16 sps:$4 sm:$0xff]  }
 0x1d7   : > { %9256 = vmatpush1.bf16.msra.mxu0 %v20326_v24  ;;  %10158 = vmatpush1.bf16.msra.mxu1 %v20329_v25  ;;  %v20416_v24 = vld [vmem:[%s28767_s2 + $0xfc0] ss:$16 sps:$4 sm:$0xff]   ;;  %v20419_v25 = vld [vmem:[%s28767_s2 + $0xfc8] ss:$16 sps:$4 sm:$0xff]  }
 0x1d8   : > { %9266 = vmatprep.subr.bf16.mxu0 %v20334_v26  ;;  %10168 = vmatprep.subr.bf16.mxu1 %v20337_v28  ;;  %v20424_v26 = vld [vmem:[%s28767_s2 + $0xfe4] ss:$16 sps:$4 sm:$0xff]   ;;  %v20422_v28 = vld [vmem:[%s28767_s2 + $0xfe0] ss:$16 sps:$4 sm:$0xff]  }
 0x1da   : > { %9258 = vmatmul.mubr.bf16.vlgmr.msra.gmra.mrb[0].mxu0 %v477_v30  ;;  %10160 = vmatmul.mubr.bf16.vlgmr.msra.gmra.mrb[0].mxu1 %v477_v30  ;;  %v20430_v30 = vld [vmem:[%s28767_s2 + $0x1004] ss:$16 sps:$4 sm:$0xff]  }
 0x1db   : > { %9267 = vmatpush1.bf16.msra.mxu0 %v20332_v31  ;;  %10169 = vmatpush1.bf16.msra.mxu1 %v20335_v32  ;;  %v435_v31 = vld [vmem:[%s28768_s0 + $0x70] sm:$0xff]  ;;  %v20433_v32 = vld [vmem:[%s28767_s2 + $0x100c] ss:$16 sps:$4 sm:$0xff]  }
 0x1dc   : > { %9268 = vmatprep.subr.bf16.mxu0 %v20340_v33  ;;  %10170 = vmatprep.subr.bf16.mxu1 %v20343_v34  ;;  %v438_v33 = vld [vmem:[%s28768_s0 + $0x88] sm:$0xff]  ;;  %v479_v34 = vpack.c.bf16 %v435_v31, %v435_v31 }
 0x1dd   : > { %9298 = vmatprep.mubr.bf16.mxu0 %v480_v35  ;;  %10200 = vmatprep.mubr.bf16.mxu1 %v480_v35  ;;  %v20428_v35 = vld [vmem:[%s28767_s2 + $0x1000] ss:$16 sps:$4 sm:$0xff]   ;;  %v20523_v31 = vld [vmem:[%s28767_s2 + $0x11ec] ss:$16 sps:$4 sm:$0xff]  }
 0x1df   : > { %9269 = vmatpush1.bf16.msra.mxu0 %v20338_v36  ;;  %10171 = vmatpush1.bf16.msra.mxu1 %v20341_v37  ;;  %v20431_v36 = vld [vmem:[%s28767_s2 + $0x1008] ss:$16 sps:$4 sm:$0xff]   ;;  %v20436_v37 = vld [vmem:[%s28767_s2 + $0x1024] ss:$16 sps:$4 sm:$0xff]  }
 0x1e0   : > { %9270 = vmatprep.subr.bf16.mxu0 %v20346_v38  ;;  %10172 = vmatprep.subr.bf16.mxu1 %v20349_v39  ;;  %v20439_v38 = vld [vmem:[%s28767_s2 + $0x102c] ss:$16 sps:$4 sm:$0xff]   ;;  %v482_v39 = vpack.c.bf16 %v438_v33, %v438_v33  ;;  %v20521_v33 = vld [vmem:[%s28767_s2 + $0x11e8] ss:$16 sps:$4 sm:$0xff]  }
 0x1e3   : > { %9271 = vmatpush1.bf16.msra.mxu0 %v20344_v40  ;;  %10173 = vmatpush1.bf16.msra.mxu1 %v20347_v41  ;;  %v20434_v40 = vld [vmem:[%s28767_s2 + $0x1020] ss:$16 sps:$4 sm:$0xff]   ;;  %v20437_v41 = vld [vmem:[%s28767_s2 + $0x1028] ss:$16 sps:$4 sm:$0xff]  }
 0x1e4   : > { %9272 = vmatprep.subr.bf16.mxu0 %v20352_v42  ;;  %10174 = vmatprep.subr.bf16.mxu1 %v20355_v43  ;;  %v20442_v42 = vld [vmem:[%s28767_s2 + $0x1044] ss:$16 sps:$4 sm:$0xff]   ;;  %v20445_v43 = vld [vmem:[%s28767_s2 + $0x104c] ss:$16 sps:$4 sm:$0xff]  }
 0x1e7   : > { %9273 = vmatpush1.bf16.msra.mxu0 %v20350_v44  ;;  %10175 = vmatpush1.bf16.msra.mxu1 %v20353_v45  ;;  %v20440_v44 = vld [vmem:[%s28767_s2 + $0x1040] ss:$16 sps:$4 sm:$0xff]   ;;  %v20443_v45 = vld [vmem:[%s28767_s2 + $0x1048] ss:$16 sps:$4 sm:$0xff]  }
 0x1e8   : > { %9274 = vmatprep.subr.bf16.mxu0 %v20358_v46  ;;  %10176 = vmatprep.subr.bf16.mxu1 %v20361_v47  ;;  %v20448_v46 = vld [vmem:[%s28767_s2 + $0x1064] ss:$16 sps:$4 sm:$0xff]   ;;  %v20451_v47 = vld [vmem:[%s28767_s2 + $0x106c] ss:$16 sps:$4 sm:$0xff]  }
 0x1eb   : > { %9275 = vmatpush1.bf16.msra.mxu0 %v20356_v48  ;;  %10177 = vmatpush1.bf16.msra.mxu1 %v20359_v49  ;;  %v20446_v48 = vld [vmem:[%s28767_s2 + $0x1060] ss:$16 sps:$4 sm:$0xff]   ;;  %v20449_v49 = vld [vmem:[%s28767_s2 + $0x1068] ss:$16 sps:$4 sm:$0xff]  }
 0x1ec   : > { %9276 = vmatprep.subr.bf16.mxu0 %v20364_v50  ;;  %10178 = vmatprep.subr.bf16.mxu1 %v20367_v51  ;;  %v20454_v50 = vld [vmem:[%s28767_s2 + $0x1084] ss:$16 sps:$4 sm:$0xff]   ;;  %v20457_v51 = vld [vmem:[%s28767_s2 + $0x108c] ss:$16 sps:$4 sm:$0xff]  }
 0x1ef   : > { %9277 = vmatpush1.bf16.msra.mxu0 %v20362_v52  ;;  %10179 = vmatpush1.bf16.msra.mxu1 %v20365_v53  ;;  %v20452_v52 = vld [vmem:[%s28767_s2 + $0x1080] ss:$16 sps:$4 sm:$0xff]   ;;  %v20455_v53 = vld [vmem:[%s28767_s2 + $0x1088] ss:$16 sps:$4 sm:$0xff]  }
 0x1f0   : > { %9278 = vmatprep.subr.bf16.mxu0 %v20370_v54  ;;  %10180 = vmatprep.subr.bf16.mxu1 %v20373_v55  ;;  %v20460_v54 = vld [vmem:[%s28767_s2 + $0x10a4] ss:$16 sps:$4 sm:$0xff]   ;;  %v20463_v55 = vld [vmem:[%s28767_s2 + $0x10ac] ss:$16 sps:$4 sm:$0xff]  }
 0x1f3   : > { %9279 = vmatpush1.bf16.msra.mxu0 %v20368_v56  ;;  %10181 = vmatpush1.bf16.msra.mxu1 %v20371_v57  ;;  %v20458_v56 = vld [vmem:[%s28767_s2 + $0x10a0] ss:$16 sps:$4 sm:$0xff]   ;;  %v20461_v57 = vld [vmem:[%s28767_s2 + $0x10a8] ss:$16 sps:$4 sm:$0xff]  }
 0x1f4   : > { %9280 = vmatprep.subr.bf16.mxu0 %v20376_v58  ;;  %10182 = vmatprep.subr.bf16.mxu1 %v20379_v59  ;;  %v20466_v58 = vld [vmem:[%s28767_s2 + $0x10c4] ss:$16 sps:$4 sm:$0xff]   ;;  %v20469_v59 = vld [vmem:[%s28767_s2 + $0x10cc] ss:$16 sps:$4 sm:$0xff]  }
 0x1f7   : > { %9281 = vmatpush1.bf16.msra.mxu0 %v20374_v60  ;;  %10183 = vmatpush1.bf16.msra.mxu1 %v20377_v61  ;;  %v20464_v60 = vld [vmem:[%s28767_s2 + $0x10c0] ss:$16 sps:$4 sm:$0xff]   ;;  %v20467_v61 = vld [vmem:[%s28767_s2 + $0x10c8] ss:$16 sps:$4 sm:$0xff]  }
 0x1f8   : > { %9282 = vmatprep.subr.bf16.mxu0 %v20382_v62  ;;  %10184 = vmatprep.subr.bf16.mxu1 %v20385_v63  ;;  %v20472_v62 = vld [vmem:[%s28767_s2 + $0x10e4] ss:$16 sps:$4 sm:$0xff]   ;;  %v20475_v63 = vld [vmem:[%s28767_s2 + $0x10ec] ss:$16 sps:$4 sm:$0xff]  }
 0x1fb   : > { %9283 = vmatpush1.bf16.msra.mxu0 %v20380_v0  ;;  %10185 = vmatpush1.bf16.msra.mxu1 %v20383_v1  ;;  %v20470_v0 = vld [vmem:[%s28767_s2 + $0x10e0] ss:$16 sps:$4 sm:$0xff]   ;;  %v20473_v1 = vld [vmem:[%s28767_s2 + $0x10e8] ss:$16 sps:$4 sm:$0xff]  }
 0x1fc   : > { %9284 = vmatprep.subr.bf16.mxu0 %v20388_v2  ;;  %10186 = vmatprep.subr.bf16.mxu1 %v20391_v3  ;;  %v20478_v2 = vld [vmem:[%s28767_s2 + $0x1104] ss:$16 sps:$4 sm:$0xff]   ;;  %v20481_v3 = vld [vmem:[%s28767_s2 + $0x110c] ss:$16 sps:$4 sm:$0xff]  }
 0x1ff   : > { %9285 = vmatpush1.bf16.msra.mxu0 %v20386_v4  ;;  %10187 = vmatpush1.bf16.msra.mxu1 %v20389_v5  ;;  %v20476_v4 = vld [vmem:[%s28767_s2 + $0x1100] ss:$16 sps:$4 sm:$0xff]   ;;  %v20479_v5 = vld [vmem:[%s28767_s2 + $0x1108] ss:$16 sps:$4 sm:$0xff]  }
 0x200   : > { %9286 = vmatprep.subr.bf16.mxu0 %v20394_v6  ;;  %10188 = vmatprep.subr.bf16.mxu1 %v20397_v7  ;;  %v20484_v6 = vld [vmem:[%s28767_s2 + $0x1124] ss:$16 sps:$4 sm:$0xff]   ;;  %v20487_v7 = vld [vmem:[%s28767_s2 + $0x112c] ss:$16 sps:$4 sm:$0xff]  }
 0x203   : > { %9287 = vmatpush1.bf16.msra.mxu0 %v20392_v8  ;;  %10189 = vmatpush1.bf16.msra.mxu1 %v20395_v9  ;;  %v20482_v8 = vld [vmem:[%s28767_s2 + $0x1120] ss:$16 sps:$4 sm:$0xff]   ;;  %v20485_v9 = vld [vmem:[%s28767_s2 + $0x1128] ss:$16 sps:$4 sm:$0xff]  }
 0x204   : > { %9288 = vmatprep.subr.bf16.mxu0 %v20400_v10  ;;  %10190 = vmatprep.subr.bf16.mxu1 %v20403_v11  ;;  %v20490_v10 = vld [vmem:[%s28767_s2 + $0x1144] ss:$16 sps:$4 sm:$0xff]   ;;  %v20493_v11 = vld [vmem:[%s28767_s2 + $0x114c] ss:$16 sps:$4 sm:$0xff]  }
 0x207   : > { %9289 = vmatpush1.bf16.msra.mxu0 %v20398_v12  ;;  %10191 = vmatpush1.bf16.msra.mxu1 %v20401_v13  ;;  %v20488_v12 = vld [vmem:[%s28767_s2 + $0x1140] ss:$16 sps:$4 sm:$0xff]   ;;  %v20491_v13 = vld [vmem:[%s28767_s2 + $0x1148] ss:$16 sps:$4 sm:$0xff]  }
 0x208   : > { %9290 = vmatprep.subr.bf16.mxu0 %v20406_v14  ;;  %10192 = vmatprep.subr.bf16.mxu1 %v20409_v15  ;;  %v20496_v14 = vld [vmem:[%s28767_s2 + $0x1164] ss:$16 sps:$4 sm:$0xff]   ;;  %v20499_v15 = vld [vmem:[%s28767_s2 + $0x116c] ss:$16 sps:$4 sm:$0xff]  }
 0x20b   : > { %9291 = vmatpush1.bf16.msra.mxu0 %v20404_v16  ;;  %10193 = vmatpush1.bf16.msra.mxu1 %v20407_v17  ;;  %v20494_v16 = vld [vmem:[%s28767_s2 + $0x1160] ss:$16 sps:$4 sm:$0xff]   ;;  %v20497_v17 = vld [vmem:[%s28767_s2 + $0x1168] ss:$16 sps:$4 sm:$0xff]  }
 0x20c   : > { %9292 = vmatprep.subr.bf16.mxu0 %v20412_v18  ;;  %10194 = vmatprep.subr.bf16.mxu1 %v20415_v19  ;;  %v20502_v18 = vld [vmem:[%s28767_s2 + $0x1184] ss:$16 sps:$4 sm:$0xff]   ;;  %v20505_v19 = vld [vmem:[%s28767_s2 + $0x118c] ss:$16 sps:$4 sm:$0xff]  }
 0x20f   : > { %9293 = vmatpush1.bf16.msra.mxu0 %v20410_v20  ;;  %10195 = vmatpush1.bf16.msra.mxu1 %v20413_v21  ;;  %v20500_v20 = vld [vmem:[%s28767_s2 + $0x1180] ss:$16 sps:$4 sm:$0xff]   ;;  %v20503_v21 = vld [vmem:[%s28767_s2 + $0x1188] ss:$16 sps:$4 sm:$0xff]  }
 0x210   : > { %9294 = vmatprep.subr.bf16.mxu0 %v20418_v22  ;;  %10196 = vmatprep.subr.bf16.mxu1 %v20421_v23  ;;  %v20508_v22 = vld [vmem:[%s28767_s2 + $0x11a4] ss:$16 sps:$4 sm:$0xff]   ;;  %v20511_v23 = vld [vmem:[%s28767_s2 + $0x11ac] ss:$16 sps:$4 sm:$0xff]  }
 0x213   : > { %9295 = vmatpush1.bf16.msra.mxu0 %v20416_v24  ;;  %10197 = vmatpush1.bf16.msra.mxu1 %v20419_v25  ;;  %v20506_v24 = vld [vmem:[%s28767_s2 + $0x11a0] ss:$16 sps:$4 sm:$0xff]   ;;  %v20509_v25 = vld [vmem:[%s28767_s2 + $0x11a8] ss:$16 sps:$4 sm:$0xff]  }
 0x214   : > { %9296 = vmatprep.subr.bf16.mxu0 %v20424_v26  ;;  %10198 = vmatprep.subr.bf16.mxu1 %v20427_v27  ;;  %v20514_v26 = vld [vmem:[%s28767_s2 + $0x11c4] ss:$16 sps:$4 sm:$0xff]   ;;  %v20517_v27 = vld [vmem:[%s28767_s2 + $0x11cc] ss:$16 sps:$4 sm:$0xff]  }
 0x217   : > { %9297 = vmatpush1.bf16.msra.mxu0 %v20422_v28  ;;  %10199 = vmatpush1.bf16.msra.mxu1 %v20425_v29  ;;  %v20512_v28 = vld [vmem:[%s28767_s2 + $0x11c0] ss:$16 sps:$4 sm:$0xff]   ;;  %v20515_v29 = vld [vmem:[%s28767_s2 + $0x11c8] ss:$16 sps:$4 sm:$0xff]  }
 0x218   : > { %9307 = vmatprep.subr.bf16.mxu0 %v20430_v30  ;;  %10209 = vmatprep.subr.bf16.mxu1 %v20433_v32  ;;  %v20520_v30 = vld [vmem:[%s28767_s2 + $0x11e4] ss:$16 sps:$4 sm:$0xff]   ;;  %v20518_v32 = vld [vmem:[%s28767_s2 + $0x11e0] ss:$16 sps:$4 sm:$0xff]  }
 0x21a   : > { %9299 = vmatmul.mubr.bf16.vlgmr.msra.gmra.mrb[0].mxu0 %v479_v34  ;;  %10201 = vmatmul.mubr.bf16.vlgmr.msra.gmra.mrb[0].mxu1 %v479_v34  ;;  %v20526_v34 = vld [vmem:[%s28767_s2 + $0x1204] ss:$16 sps:$4 sm:$0xff]  }
 0x21b   : > { %9308 = vmatpush1.bf16.msra.mxu0 %v20428_v35  ;;  %10210 = vmatpush1.bf16.msra.mxu1 %v20431_v36  ;;  %v437_v35 = vld [vmem:[%s28768_s0 + $0x80] sm:$0xff]  ;;  %v20529_v36 = vld [vmem:[%s28767_s2 + $0x120c] ss:$16 sps:$4 sm:$0xff]  }
 0x21c   : > { %9309 = vmatprep.subr.bf16.mxu0 %v20436_v37  ;;  %10211 = vmatprep.subr.bf16.mxu1 %v20439_v38  ;;  %v440_v37 = vld [vmem:[%s28768_s0 + $0x98] sm:$0xff]  ;;  %v481_v38 = vpack.c.bf16 %v437_v35, %v437_v35 }
 0x21d   : > { %9339 = vmatprep.mubr.bf16.mxu0 %v482_v39  ;;  %10241 = vmatprep.mubr.bf16.mxu1 %v482_v39  ;;  %v20524_v39 = vld [vmem:[%s28767_s2 + $0x1200] ss:$16 sps:$4 sm:$0xff]   ;;  %v20619_v35 = vld [vmem:[%s28767_s2 + $0x13ec] ss:$16 sps:$4 sm:$0xff]  }
 0x21f   : > { %9310 = vmatpush1.bf16.msra.mxu0 %v20434_v40  ;;  %10212 = vmatpush1.bf16.msra.mxu1 %v20437_v41  ;;  %v20527_v40 = vld [vmem:[%s28767_s2 + $0x1208] ss:$16 sps:$4 sm:$0xff]   ;;  %v20532_v41 = vld [vmem:[%s28767_s2 + $0x1224] ss:$16 sps:$4 sm:$0xff]  }
 0x220   : > { %9311 = vmatprep.subr.bf16.mxu0 %v20442_v42  ;;  %10213 = vmatprep.subr.bf16.mxu1 %v20445_v43  ;;  %v20535_v42 = vld [vmem:[%s28767_s2 + $0x122c] ss:$16 sps:$4 sm:$0xff]   ;;  %v484_v43 = vpack.c.bf16 %v440_v37, %v440_v37  ;;  %v20617_v37 = vld [vmem:[%s28767_s2 + $0x13e8] ss:$16 sps:$4 sm:$0xff]  }
 0x223   : > { %9312 = vmatpush1.bf16.msra.mxu0 %v20440_v44  ;;  %10214 = vmatpush1.bf16.msra.mxu1 %v20443_v45  ;;  %v20530_v44 = vld [vmem:[%s28767_s2 + $0x1220] ss:$16 sps:$4 sm:$0xff]   ;;  %v20533_v45 = vld [vmem:[%s28767_s2 + $0x1228] ss:$16 sps:$4 sm:$0xff]  }
 0x224   : > { %9313 = vmatprep.subr.bf16.mxu0 %v20448_v46  ;;  %10215 = vmatprep.subr.bf16.mxu1 %v20451_v47  ;;  %v20538_v46 = vld [vmem:[%s28767_s2 + $0x1244] ss:$16 sps:$4 sm:$0xff]   ;;  %v20541_v47 = vld [vmem:[%s28767_s2 + $0x124c] ss:$16 sps:$4 sm:$0xff]  }
 0x227   : > { %9314 = vmatpush1.bf16.msra.mxu0 %v20446_v48  ;;  %10216 = vmatpush1.bf16.msra.mxu1 %v20449_v49  ;;  %v20536_v48 = vld [vmem:[%s28767_s2 + $0x1240] ss:$16 sps:$4 sm:$0xff]   ;;  %v20539_v49 = vld [vmem:[%s28767_s2 + $0x1248] ss:$16 sps:$4 sm:$0xff]  }
 0x228   : > { %9315 = vmatprep.subr.bf16.mxu0 %v20454_v50  ;;  %10217 = vmatprep.subr.bf16.mxu1 %v20457_v51  ;;  %v20544_v50 = vld [vmem:[%s28767_s2 + $0x1264] ss:$16 sps:$4 sm:$0xff]   ;;  %v20547_v51 = vld [vmem:[%s28767_s2 + $0x126c] ss:$16 sps:$4 sm:$0xff]  }
 0x22b   : > { %9316 = vmatpush1.bf16.msra.mxu0 %v20452_v52  ;;  %10218 = vmatpush1.bf16.msra.mxu1 %v20455_v53  ;;  %v20542_v52 = vld [vmem:[%s28767_s2 + $0x1260] ss:$16 sps:$4 sm:$0xff]   ;;  %v20545_v53 = vld [vmem:[%s28767_s2 + $0x1268] ss:$16 sps:$4 sm:$0xff]  }
 0x22c   : > { %9317 = vmatprep.subr.bf16.mxu0 %v20460_v54  ;;  %10219 = vmatprep.subr.bf16.mxu1 %v20463_v55  ;;  %v20550_v54 = vld [vmem:[%s28767_s2 + $0x1284] ss:$16 sps:$4 sm:$0xff]   ;;  %v20553_v55 = vld [vmem:[%s28767_s2 + $0x128c] ss:$16 sps:$4 sm:$0xff]  }
 0x22f   : > { %9318 = vmatpush1.bf16.msra.mxu0 %v20458_v56  ;;  %10220 = vmatpush1.bf16.msra.mxu1 %v20461_v57  ;;  %v20548_v56 = vld [vmem:[%s28767_s2 + $0x1280] ss:$16 sps:$4 sm:$0xff]   ;;  %v20551_v57 = vld [vmem:[%s28767_s2 + $0x1288] ss:$16 sps:$4 sm:$0xff]  }
 0x230   : > { %9319 = vmatprep.subr.bf16.mxu0 %v20466_v58  ;;  %10221 = vmatprep.subr.bf16.mxu1 %v20469_v59  ;;  %v20556_v58 = vld [vmem:[%s28767_s2 + $0x12a4] ss:$16 sps:$4 sm:$0xff]   ;;  %v20559_v59 = vld [vmem:[%s28767_s2 + $0x12ac] ss:$16 sps:$4 sm:$0xff]  }
 0x233   : > { %9320 = vmatpush1.bf16.msra.mxu0 %v20464_v60  ;;  %10222 = vmatpush1.bf16.msra.mxu1 %v20467_v61  ;;  %v20554_v60 = vld [vmem:[%s28767_s2 + $0x12a0] ss:$16 sps:$4 sm:$0xff]   ;;  %v20557_v61 = vld [vmem:[%s28767_s2 + $0x12a8] ss:$16 sps:$4 sm:$0xff]  }
 0x234   : > { %9321 = vmatprep.subr.bf16.mxu0 %v20472_v62  ;;  %10223 = vmatprep.subr.bf16.mxu1 %v20475_v63  ;;  %v20562_v62 = vld [vmem:[%s28767_s2 + $0x12c4] ss:$16 sps:$4 sm:$0xff]   ;;  %v20565_v63 = vld [vmem:[%s28767_s2 + $0x12cc] ss:$16 sps:$4 sm:$0xff]  }
 0x237   : > { %9322 = vmatpush1.bf16.msra.mxu0 %v20470_v0  ;;  %10224 = vmatpush1.bf16.msra.mxu1 %v20473_v1  ;;  %v20560_v0 = vld [vmem:[%s28767_s2 + $0x12c0] ss:$16 sps:$4 sm:$0xff]   ;;  %v20563_v1 = vld [vmem:[%s28767_s2 + $0x12c8] ss:$16 sps:$4 sm:$0xff]  }
 0x238   : > { %9323 = vmatprep.subr.bf16.mxu0 %v20478_v2  ;;  %10225 = vmatprep.subr.bf16.mxu1 %v20481_v3  ;;  %v20568_v2 = vld [vmem:[%s28767_s2 + $0x12e4] ss:$16 sps:$4 sm:$0xff]   ;;  %v20571_v3 = vld [vmem:[%s28767_s2 + $0x12ec] ss:$16 sps:$4 sm:$0xff]  }
 0x23b   : > { %9324 = vmatpush1.bf16.msra.mxu0 %v20476_v4  ;;  %10226 = vmatpush1.bf16.msra.mxu1 %v20479_v5  ;;  %v20566_v4 = vld [vmem:[%s28767_s2 + $0x12e0] ss:$16 sps:$4 sm:$0xff]   ;;  %v20569_v5 = vld [vmem:[%s28767_s2 + $0x12e8] ss:$16 sps:$4 sm:$0xff]  }
 0x23c   : > { %9325 = vmatprep.subr.bf16.mxu0 %v20484_v6  ;;  %10227 = vmatprep.subr.bf16.mxu1 %v20487_v7  ;;  %v20574_v6 = vld [vmem:[%s28767_s2 + $0x1304] ss:$16 sps:$4 sm:$0xff]   ;;  %v20577_v7 = vld [vmem:[%s28767_s2 + $0x130c] ss:$16 sps:$4 sm:$0xff]  }
 0x23f   : > { %9326 = vmatpush1.bf16.msra.mxu0 %v20482_v8  ;;  %10228 = vmatpush1.bf16.msra.mxu1 %v20485_v9  ;;  %v20572_v8 = vld [vmem:[%s28767_s2 + $0x1300] ss:$16 sps:$4 sm:$0xff]   ;;  %v20575_v9 = vld [vmem:[%s28767_s2 + $0x1308] ss:$16 sps:$4 sm:$0xff]  }
 0x240   : > { %9327 = vmatprep.subr.bf16.mxu0 %v20490_v10  ;;  %10229 = vmatprep.subr.bf16.mxu1 %v20493_v11  ;;  %v20580_v10 = vld [vmem:[%s28767_s2 + $0x1324] ss:$16 sps:$4 sm:$0xff]   ;;  %v20583_v11 = vld [vmem:[%s28767_s2 + $0x132c] ss:$16 sps:$4 sm:$0xff]  }
 0x243   : > { %9328 = vmatpush1.bf16.msra.mxu0 %v20488_v12  ;;  %10230 = vmatpush1.bf16.msra.mxu1 %v20491_v13  ;;  %v20578_v12 = vld [vmem:[%s28767_s2 + $0x1320] ss:$16 sps:$4 sm:$0xff]   ;;  %v20581_v13 = vld [vmem:[%s28767_s2 + $0x1328] ss:$16 sps:$4 sm:$0xff]  }
 0x244   : > { %9329 = vmatprep.subr.bf16.mxu0 %v20496_v14  ;;  %10231 = vmatprep.subr.bf16.mxu1 %v20499_v15  ;;  %v20586_v14 = vld [vmem:[%s28767_s2 + $0x1344] ss:$16 sps:$4 sm:$0xff]   ;;  %v20589_v15 = vld [vmem:[%s28767_s2 + $0x134c] ss:$16 sps:$4 sm:$0xff]  }
 0x247   : > { %9330 = vmatpush1.bf16.msra.mxu0 %v20494_v16  ;;  %10232 = vmatpush1.bf16.msra.mxu1 %v20497_v17  ;;  %v20584_v16 = vld [vmem:[%s28767_s2 + $0x1340] ss:$16 sps:$4 sm:$0xff]   ;;  %v20587_v17 = vld [vmem:[%s28767_s2 + $0x1348] ss:$16 sps:$4 sm:$0xff]  }
 0x248   : > { %9331 = vmatprep.subr.bf16.mxu0 %v20502_v18  ;;  %10233 = vmatprep.subr.bf16.mxu1 %v20505_v19  ;;  %v20592_v18 = vld [vmem:[%s28767_s2 + $0x1364] ss:$16 sps:$4 sm:$0xff]   ;;  %v20595_v19 = vld [vmem:[%s28767_s2 + $0x136c] ss:$16 sps:$4 sm:$0xff]  }
 0x24b   : > { %9332 = vmatpush1.bf16.msra.mxu0 %v20500_v20  ;;  %10234 = vmatpush1.bf16.msra.mxu1 %v20503_v21  ;;  %v20590_v20 = vld [vmem:[%s28767_s2 + $0x1360] ss:$16 sps:$4 sm:$0xff]   ;;  %v20593_v21 = vld [vmem:[%s28767_s2 + $0x1368] ss:$16 sps:$4 sm:$0xff]  }
 0x24c   : > { %9333 = vmatprep.subr.bf16.mxu0 %v20508_v22  ;;  %10235 = vmatprep.subr.bf16.mxu1 %v20511_v23  ;;  %v20598_v22 = vld [vmem:[%s28767_s2 + $0x1384] ss:$16 sps:$4 sm:$0xff]   ;;  %v20601_v23 = vld [vmem:[%s28767_s2 + $0x138c] ss:$16 sps:$4 sm:$0xff]  }
 0x24f   : > { %9334 = vmatpush1.bf16.msra.mxu0 %v20506_v24  ;;  %10236 = vmatpush1.bf16.msra.mxu1 %v20509_v25  ;;  %v20596_v24 = vld [vmem:[%s28767_s2 + $0x1380] ss:$16 sps:$4 sm:$0xff]   ;;  %v20599_v25 = vld [vmem:[%s28767_s2 + $0x1388] ss:$16 sps:$4 sm:$0xff]  }
 0x250   : > { %9335 = vmatprep.subr.bf16.mxu0 %v20514_v26  ;;  %10237 = vmatprep.subr.bf16.mxu1 %v20517_v27  ;;  %v20604_v26 = vld [vmem:[%s28767_s2 + $0x13a4] ss:$16 sps:$4 sm:$0xff]   ;;  %v20607_v27 = vld [vmem:[%s28767_s2 + $0x13ac] ss:$16 sps:$4 sm:$0xff]  }
 0x253   : > { %9336 = vmatpush1.bf16.msra.mxu0 %v20512_v28  ;;  %10238 = vmatpush1.bf16.msra.mxu1 %v20515_v29  ;;  %v20602_v28 = vld [vmem:[%s28767_s2 + $0x13a0] ss:$16 sps:$4 sm:$0xff]   ;;  %v20605_v29 = vld [vmem:[%s28767_s2 + $0x13a8] ss:$16 sps:$4 sm:$0xff]  }
 0x254   : > { %9337 = vmatprep.subr.bf16.mxu0 %v20520_v30  ;;  %10239 = vmatprep.subr.bf16.mxu1 %v20523_v31  ;;  %v20610_v30 = vld [vmem:[%s28767_s2 + $0x13c4] ss:$16 sps:$4 sm:$0xff]   ;;  %v20613_v31 = vld [vmem:[%s28767_s2 + $0x13cc] ss:$16 sps:$4 sm:$0xff]  }
 0x257   : > { %9338 = vmatpush1.bf16.msra.mxu0 %v20518_v32  ;;  %10240 = vmatpush1.bf16.msra.mxu1 %v20521_v33  ;;  %v20608_v32 = vld [vmem:[%s28767_s2 + $0x13c0] ss:$16 sps:$4 sm:$0xff]   ;;  %v20611_v33 = vld [vmem:[%s28767_s2 + $0x13c8] ss:$16 sps:$4 sm:$0xff]  }
 0x258   : > { %9348 = vmatprep.subr.bf16.mxu0 %v20526_v34  ;;  %10250 = vmatprep.subr.bf16.mxu1 %v20529_v36  ;;  %v20616_v34 = vld [vmem:[%s28767_s2 + $0x13e4] ss:$16 sps:$4 sm:$0xff]   ;;  %v20614_v36 = vld [vmem:[%s28767_s2 + $0x13e0] ss:$16 sps:$4 sm:$0xff]  }
 0x25a   : > { %9340 = vmatmul.mubr.bf16.vlgmr.msra.gmra.mrb[0].mxu0 %v481_v38  ;;  %10242 = vmatmul.mubr.bf16.vlgmr.msra.gmra.mrb[0].mxu1 %v481_v38  ;;  %v20622_v38 = vld [vmem:[%s28767_s2 + $0x1404] ss:$16 sps:$4 sm:$0xff]  }
 0x25b   : > { %9349 = vmatpush1.bf16.msra.mxu0 %v20524_v39  ;;  %10251 = vmatpush1.bf16.msra.mxu1 %v20527_v40  ;;  %v439_v39 = vld [vmem:[%s28768_s0 + $0x90] sm:$0xff]  ;;  %v20625_v40 = vld [vmem:[%s28767_s2 + $0x140c] ss:$16 sps:$4 sm:$0xff]  }
 0x25c   : > { %9350 = vmatprep.subr.bf16.mxu0 %v20532_v41  ;;  %10252 = vmatprep.subr.bf16.mxu1 %v20535_v42  ;;  %v442_v41 = vld [vmem:[%s28768_s0 + $0xa8] sm:$0xff]  ;;  %v483_v42 = vpack.c.bf16 %v439_v39, %v439_v39 }
 0x25d   : > { %9380 = vmatprep.mubr.bf16.mxu0 %v484_v43  ;;  %10282 = vmatprep.mubr.bf16.mxu1 %v484_v43  ;;  %v20620_v43 = vld [vmem:[%s28767_s2 + $0x1400] ss:$16 sps:$4 sm:$0xff]   ;;  %v20715_v39 = vld [vmem:[%s28767_s2 + $0x15ec] ss:$16 sps:$4 sm:$0xff]  }
 0x25f   : > { %9351 = vmatpush1.bf16.msra.mxu0 %v20530_v44  ;;  %10253 = vmatpush1.bf16.msra.mxu1 %v20533_v45  ;;  %v20623_v44 = vld [vmem:[%s28767_s2 + $0x1408] ss:$16 sps:$4 sm:$0xff]   ;;  %v20628_v45 = vld [vmem:[%s28767_s2 + $0x1424] ss:$16 sps:$4 sm:$0xff]  }
 0x260   : > { %9352 = vmatprep.subr.bf16.mxu0 %v20538_v46  ;;  %10254 = vmatprep.subr.bf16.mxu1 %v20541_v47  ;;  %v20631_v46 = vld [vmem:[%s28767_s2 + $0x142c] ss:$16 sps:$4 sm:$0xff]   ;;  %v486_v47 = vpack.c.bf16 %v442_v41, %v442_v41  ;;  %v20713_v41 = vld [vmem:[%s28767_s2 + $0x15e8] ss:$16 sps:$4 sm:$0xff]  }
 0x263   : > { %9353 = vmatpush1.bf16.msra.mxu0 %v20536_v48  ;;  %10255 = vmatpush1.bf16.msra.mxu1 %v20539_v49  ;;  %v20626_v48 = vld [vmem:[%s28767_s2 + $0x1420] ss:$16 sps:$4 sm:$0xff]   ;;  %v20629_v49 = vld [vmem:[%s28767_s2 + $0x1428] ss:$16 sps:$4 sm:$0xff]  }
 0x264   : > { %9354 = vmatprep.subr.bf16.mxu0 %v20544_v50  ;;  %10256 = vmatprep.subr.bf16.mxu1 %v20547_v51  ;;  %v20634_v50 = vld [vmem:[%s28767_s2 + $0x1444] ss:$16 sps:$4 sm:$0xff]   ;;  %v20637_v51 = vld [vmem:[%s28767_s2 + $0x144c] ss:$16 sps:$4 sm:$0xff]  }
 0x267   : > { %9355 = vmatpush1.bf16.msra.mxu0 %v20542_v52  ;;  %10257 = vmatpush1.bf16.msra.mxu1 %v20545_v53  ;;  %v20632_v52 = vld [vmem:[%s28767_s2 + $0x1440] ss:$16 sps:$4 sm:$0xff]   ;;  %v20635_v53 = vld [vmem:[%s28767_s2 + $0x1448] ss:$16 sps:$4 sm:$0xff]  }
 0x268   : > { %9356 = vmatprep.subr.bf16.mxu0 %v20550_v54  ;;  %10258 = vmatprep.subr.bf16.mxu1 %v20553_v55  ;;  %v20640_v54 = vld [vmem:[%s28767_s2 + $0x1464] ss:$16 sps:$4 sm:$0xff]   ;;  %v20643_v55 = vld [vmem:[%s28767_s2 + $0x146c] ss:$16 sps:$4 sm:$0xff]  }
 0x26b   : > { %9357 = vmatpush1.bf16.msra.mxu0 %v20548_v56  ;;  %10259 = vmatpush1.bf16.msra.mxu1 %v20551_v57  ;;  %v20638_v56 = vld [vmem:[%s28767_s2 + $0x1460] ss:$16 sps:$4 sm:$0xff]   ;;  %v20641_v57 = vld [vmem:[%s28767_s2 + $0x1468] ss:$16 sps:$4 sm:$0xff]  }
 0x26c   : > { %9358 = vmatprep.subr.bf16.mxu0 %v20556_v58  ;;  %10260 = vmatprep.subr.bf16.mxu1 %v20559_v59  ;;  %v20646_v58 = vld [vmem:[%s28767_s2 + $0x1484] ss:$16 sps:$4 sm:$0xff]   ;;  %v20649_v59 = vld [vmem:[%s28767_s2 + $0x148c] ss:$16 sps:$4 sm:$0xff]  }
 0x26f   : > { %9359 = vmatpush1.bf16.msra.mxu0 %v20554_v60  ;;  %10261 = vmatpush1.bf16.msra.mxu1 %v20557_v61  ;;  %v20644_v60 = vld [vmem:[%s28767_s2 + $0x1480] ss:$16 sps:$4 sm:$0xff]   ;;  %v20647_v61 = vld [vmem:[%s28767_s2 + $0x1488] ss:$16 sps:$4 sm:$0xff]  }
 0x270   : > { %9360 = vmatprep.subr.bf16.mxu0 %v20562_v62  ;;  %10262 = vmatprep.subr.bf16.mxu1 %v20565_v63  ;;  %v20652_v62 = vld [vmem:[%s28767_s2 + $0x14a4] ss:$16 sps:$4 sm:$0xff]   ;;  %v20655_v63 = vld [vmem:[%s28767_s2 + $0x14ac] ss:$16 sps:$4 sm:$0xff]  }
 0x273   : > { %9361 = vmatpush1.bf16.msra.mxu0 %v20560_v0  ;;  %10263 = vmatpush1.bf16.msra.mxu1 %v20563_v1  ;;  %v20650_v0 = vld [vmem:[%s28767_s2 + $0x14a0] ss:$16 sps:$4 sm:$0xff]   ;;  %v20653_v1 = vld [vmem:[%s28767_s2 + $0x14a8] ss:$16 sps:$4 sm:$0xff]  }
 0x274   : > { %9362 = vmatprep.subr.bf16.mxu0 %v20568_v2  ;;  %10264 = vmatprep.subr.bf16.mxu1 %v20571_v3  ;;  %v20658_v2 = vld [vmem:[%s28767_s2 + $0x14c4] ss:$16 sps:$4 sm:$0xff]   ;;  %v20661_v3 = vld [vmem:[%s28767_s2 + $0x14cc] ss:$16 sps:$4 sm:$0xff]  }
 0x277   : > { %9363 = vmatpush1.bf16.msra.mxu0 %v20566_v4  ;;  %10265 = vmatpush1.bf16.msra.mxu1 %v20569_v5  ;;  %v20656_v4 = vld [vmem:[%s28767_s2 + $0x14c0] ss:$16 sps:$4 sm:$0xff]   ;;  %v20659_v5 = vld [vmem:[%s28767_s2 + $0x14c8] ss:$16 sps:$4 sm:$0xff]  }
 0x278   : > { %9364 = vmatprep.subr.bf16.mxu0 %v20574_v6  ;;  %10266 = vmatprep.subr.bf16.mxu1 %v20577_v7  ;;  %v20664_v6 = vld [vmem:[%s28767_s2 + $0x14e4] ss:$16 sps:$4 sm:$0xff]   ;;  %v20667_v7 = vld [vmem:[%s28767_s2 + $0x14ec] ss:$16 sps:$4 sm:$0xff]  }
 0x27b   : > { %9365 = vmatpush1.bf16.msra.mxu0 %v20572_v8  ;;  %10267 = vmatpush1.bf16.msra.mxu1 %v20575_v9  ;;  %v20662_v8 = vld [vmem:[%s28767_s2 + $0x14e0] ss:$16 sps:$4 sm:$0xff]   ;;  %v20665_v9 = vld [vmem:[%s28767_s2 + $0x14e8] ss:$16 sps:$4 sm:$0xff]  }
 0x27c   : > { %9366 = vmatprep.subr.bf16.mxu0 %v20580_v10  ;;  %10268 = vmatprep.subr.bf16.mxu1 %v20583_v11  ;;  %v20670_v10 = vld [vmem:[%s28767_s2 + $0x1504] ss:$16 sps:$4 sm:$0xff]   ;;  %v20673_v11 = vld [vmem:[%s28767_s2 + $0x150c] ss:$16 sps:$4 sm:$0xff]  }
 0x27f   : > { %9367 = vmatpush1.bf16.msra.mxu0 %v20578_v12  ;;  %10269 = vmatpush1.bf16.msra.mxu1 %v20581_v13  ;;  %v20668_v12 = vld [vmem:[%s28767_s2 + $0x1500] ss:$16 sps:$4 sm:$0xff]   ;;  %v20671_v13 = vld [vmem:[%s28767_s2 + $0x1508] ss:$16 sps:$4 sm:$0xff]  }
 0x280   : > { %9368 = vmatprep.subr.bf16.mxu0 %v20586_v14  ;;  %10270 = vmatprep.subr.bf16.mxu1 %v20589_v15  ;;  %v20676_v14 = vld [vmem:[%s28767_s2 + $0x1524] ss:$16 sps:$4 sm:$0xff]   ;;  %v20679_v15 = vld [vmem:[%s28767_s2 + $0x152c] ss:$16 sps:$4 sm:$0xff]  }
 0x283   : > { %9369 = vmatpush1.bf16.msra.mxu0 %v20584_v16  ;;  %10271 = vmatpush1.bf16.msra.mxu1 %v20587_v17  ;;  %v20674_v16 = vld [vmem:[%s28767_s2 + $0x1520] ss:$16 sps:$4 sm:$0xff]   ;;  %v20677_v17 = vld [vmem:[%s28767_s2 + $0x1528] ss:$16 sps:$4 sm:$0xff]  }
 0x284   : > { %9370 = vmatprep.subr.bf16.mxu0 %v20592_v18  ;;  %10272 = vmatprep.subr.bf16.mxu1 %v20595_v19  ;;  %v20682_v18 = vld [vmem:[%s28767_s2 + $0x1544] ss:$16 sps:$4 sm:$0xff]   ;;  %v20685_v19 = vld [vmem:[%s28767_s2 + $0x154c] ss:$16 sps:$4 sm:$0xff]  }
 0x287   : > { %9371 = vmatpush1.bf16.msra.mxu0 %v20590_v20  ;;  %10273 = vmatpush1.bf16.msra.mxu1 %v20593_v21  ;;  %v20680_v20 = vld [vmem:[%s28767_s2 + $0x1540] ss:$16 sps:$4 sm:$0xff]   ;;  %v20683_v21 = vld [vmem:[%s28767_s2 + $0x1548] ss:$16 sps:$4 sm:$0xff]  }
 0x288   : > { %9372 = vmatprep.subr.bf16.mxu0 %v20598_v22  ;;  %10274 = vmatprep.subr.bf16.mxu1 %v20601_v23  ;;  %v20688_v22 = vld [vmem:[%s28767_s2 + $0x1564] ss:$16 sps:$4 sm:$0xff]   ;;  %v20691_v23 = vld [vmem:[%s28767_s2 + $0x156c] ss:$16 sps:$4 sm:$0xff]  }
 0x28b   : > { %9373 = vmatpush1.bf16.msra.mxu0 %v20596_v24  ;;  %10275 = vmatpush1.bf16.msra.mxu1 %v20599_v25  ;;  %v20686_v24 = vld [vmem:[%s28767_s2 + $0x1560] ss:$16 sps:$4 sm:$0xff]   ;;  %v20689_v25 = vld [vmem:[%s28767_s2 + $0x1568] ss:$16 sps:$4 sm:$0xff]  }
 0x28c   : > { %9374 = vmatprep.subr.bf16.mxu0 %v20604_v26  ;;  %10276 = vmatprep.subr.bf16.mxu1 %v20607_v27  ;;  %v20694_v26 = vld [vmem:[%s28767_s2 + $0x1584] ss:$16 sps:$4 sm:$0xff]   ;;  %v20697_v27 = vld [vmem:[%s28767_s2 + $0x158c] ss:$16 sps:$4 sm:$0xff]  }
 0x28f   : > { %9375 = vmatpush1.bf16.msra.mxu0 %v20602_v28  ;;  %10277 = vmatpush1.bf16.msra.mxu1 %v20605_v29  ;;  %v20692_v28 = vld [vmem:[%s28767_s2 + $0x1580] ss:$16 sps:$4 sm:$0xff]   ;;  %v20695_v29 = vld [vmem:[%s28767_s2 + $0x1588] ss:$16 sps:$4 sm:$0xff]  }
 0x290   : > { %9376 = vmatprep.subr.bf16.mxu0 %v20610_v30  ;;  %10278 = vmatprep.subr.bf16.mxu1 %v20613_v31  ;;  %v20700_v30 = vld [vmem:[%s28767_s2 + $0x15a4] ss:$16 sps:$4 sm:$0xff]   ;;  %v20703_v31 = vld [vmem:[%s28767_s2 + $0x15ac] ss:$16 sps:$4 sm:$0xff]  }
 0x293   : > { %9377 = vmatpush1.bf16.msra.mxu0 %v20608_v32  ;;  %10279 = vmatpush1.bf16.msra.mxu1 %v20611_v33  ;;  %v20698_v32 = vld [vmem:[%s28767_s2 + $0x15a0] ss:$16 sps:$4 sm:$0xff]   ;;  %v20701_v33 = vld [vmem:[%s28767_s2 + $0x15a8] ss:$16 sps:$4 sm:$0xff]  }
 0x294   : > { %9378 = vmatprep.subr.bf16.mxu0 %v20616_v34  ;;  %10280 = vmatprep.subr.bf16.mxu1 %v20619_v35  ;;  %v20706_v34 = vld [vmem:[%s28767_s2 + $0x15c4] ss:$16 sps:$4 sm:$0xff]   ;;  %v20709_v35 = vld [vmem:[%s28767_s2 + $0x15cc] ss:$16 sps:$4 sm:$0xff]  }
 0x297   : > { %9379 = vmatpush1.bf16.msra.mxu0 %v20614_v36  ;;  %10281 = vmatpush1.bf16.msra.mxu1 %v20617_v37  ;;  %v20704_v36 = vld [vmem:[%s28767_s2 + $0x15c0] ss:$16 sps:$4 sm:$0xff]   ;;  %v20707_v37 = vld [vmem:[%s28767_s2 + $0x15c8] ss:$16 sps:$4 sm:$0xff]  }
 0x298   : > { %9389 = vmatprep.subr.bf16.mxu0 %v20622_v38  ;;  %10291 = vmatprep.subr.bf16.mxu1 %v20625_v40  ;;  %v20712_v38 = vld [vmem:[%s28767_s2 + $0x15e4] ss:$16 sps:$4 sm:$0xff]   ;;  %v20710_v40 = vld [vmem:[%s28767_s2 + $0x15e0] ss:$16 sps:$4 sm:$0xff]  }
 0x29a   : > { %9381 = vmatmul.mubr.bf16.vlgmr.msra.gmra.mrb[0].mxu0 %v483_v42  ;;  %10283 = vmatmul.mubr.bf16.vlgmr.msra.gmra.mrb[0].mxu1 %v483_v42  ;;  %v20718_v42 = vld [vmem:[%s28767_s2 + $0x1604] ss:$16 sps:$4 sm:$0xff]  }
 0x29b   : > { %9390 = vmatpush1.bf16.msra.mxu0 %v20620_v43  ;;  %10292 = vmatpush1.bf16.msra.mxu1 %v20623_v44  ;;  %v441_v43 = vld [vmem:[%s28768_s0 + $0xa0] sm:$0xff]  ;;  %v20721_v44 = vld [vmem:[%s28767_s2 + $0x160c] ss:$16 sps:$4 sm:$0xff]  }
 0x29c   : > { %9391 = vmatprep.subr.bf16.mxu0 %v20628_v45  ;;  %10293 = vmatprep.subr.bf16.mxu1 %v20631_v46  ;;  %v444_v45 = vld [vmem:[%s28768_s0 + $0xb8] sm:$0xff]  ;;  %v485_v46 = vpack.c.bf16 %v441_v43, %v441_v43 }
 0x29d   : > { %9421 = vmatprep.mubr.bf16.mxu0 %v486_v47  ;;  %10323 = vmatprep.mubr.bf16.mxu1 %v486_v47  ;;  %v20716_v47 = vld [vmem:[%s28767_s2 + $0x1600] ss:$16 sps:$4 sm:$0xff]   ;;  %v20811_v43 = vld [vmem:[%s28767_s2 + $0x17ec] ss:$16 sps:$4 sm:$0xff]  }
 0x29f   : > { %9392 = vmatpush1.bf16.msra.mxu0 %v20626_v48  ;;  %10294 = vmatpush1.bf16.msra.mxu1 %v20629_v49  ;;  %v20719_v48 = vld [vmem:[%s28767_s2 + $0x1608] ss:$16 sps:$4 sm:$0xff]   ;;  %v20724_v49 = vld [vmem:[%s28767_s2 + $0x1624] ss:$16 sps:$4 sm:$0xff]  }
 0x2a0   : > { %9393 = vmatprep.subr.bf16.mxu0 %v20634_v50  ;;  %10295 = vmatprep.subr.bf16.mxu1 %v20637_v51  ;;  %v20727_v50 = vld [vmem:[%s28767_s2 + $0x162c] ss:$16 sps:$4 sm:$0xff]   ;;  %v488_v51 = vpack.c.bf16 %v444_v45, %v444_v45  ;;  %v20809_v45 = vld [vmem:[%s28767_s2 + $0x17e8] ss:$16 sps:$4 sm:$0xff]  }
 0x2a3   : > { %9394 = vmatpush1.bf16.msra.mxu0 %v20632_v52  ;;  %10296 = vmatpush1.bf16.msra.mxu1 %v20635_v53  ;;  %v20722_v52 = vld [vmem:[%s28767_s2 + $0x1620] ss:$16 sps:$4 sm:$0xff]   ;;  %v20725_v53 = vld [vmem:[%s28767_s2 + $0x1628] ss:$16 sps:$4 sm:$0xff]  }
 0x2a4   : > { %9395 = vmatprep.subr.bf16.mxu0 %v20640_v54  ;;  %10297 = vmatprep.subr.bf16.mxu1 %v20643_v55  ;;  %v20730_v54 = vld [vmem:[%s28767_s2 + $0x1644] ss:$16 sps:$4 sm:$0xff]   ;;  %v20733_v55 = vld [vmem:[%s28767_s2 + $0x164c] ss:$16 sps:$4 sm:$0xff]  }
 0x2a7   : > { %9396 = vmatpush1.bf16.msra.mxu0 %v20638_v56  ;;  %10298 = vmatpush1.bf16.msra.mxu1 %v20641_v57  ;;  %v20728_v56 = vld [vmem:[%s28767_s2 + $0x1640] ss:$16 sps:$4 sm:$0xff]   ;;  %v20731_v57 = vld [vmem:[%s28767_s2 + $0x1648] ss:$16 sps:$4 sm:$0xff]  }
 0x2a8   : > { %9397 = vmatprep.subr.bf16.mxu0 %v20646_v58  ;;  %10299 = vmatprep.subr.bf16.mxu1 %v20649_v59  ;;  %v20736_v58 = vld [vmem:[%s28767_s2 + $0x1664] ss:$16 sps:$4 sm:$0xff]   ;;  %v20739_v59 = vld [vmem:[%s28767_s2 + $0x166c] ss:$16 sps:$4 sm:$0xff]  }
 0x2ab   : > { %9398 = vmatpush1.bf16.msra.mxu0 %v20644_v60  ;;  %10300 = vmatpush1.bf16.msra.mxu1 %v20647_v61  ;;  %v20734_v60 = vld [vmem:[%s28767_s2 + $0x1660] ss:$16 sps:$4 sm:$0xff]   ;;  %v20737_v61 = vld [vmem:[%s28767_s2 + $0x1668] ss:$16 sps:$4 sm:$0xff]  }
 0x2ac   : > { %9399 = vmatprep.subr.bf16.mxu0 %v20652_v62  ;;  %10301 = vmatprep.subr.bf16.mxu1 %v20655_v63  ;;  %v20742_v62 = vld [vmem:[%s28767_s2 + $0x1684] ss:$16 sps:$4 sm:$0xff]   ;;  %v20745_v63 = vld [vmem:[%s28767_s2 + $0x168c] ss:$16 sps:$4 sm:$0xff]  }
 0x2af   : > { %9400 = vmatpush1.bf16.msra.mxu0 %v20650_v0  ;;  %10302 = vmatpush1.bf16.msra.mxu1 %v20653_v1  ;;  %v20740_v0 = vld [vmem:[%s28767_s2 + $0x1680] ss:$16 sps:$4 sm:$0xff]   ;;  %v20743_v1 = vld [vmem:[%s28767_s2 + $0x1688] ss:$16 sps:$4 sm:$0xff]  }
 0x2b0   : > { %9401 = vmatprep.subr.bf16.mxu0 %v20658_v2  ;;  %10303 = vmatprep.subr.bf16.mxu1 %v20661_v3  ;;  %v20748_v2 = vld [vmem:[%s28767_s2 + $0x16a4] ss:$16 sps:$4 sm:$0xff]   ;;  %v20751_v3 = vld [vmem:[%s28767_s2 + $0x16ac] ss:$16 sps:$4 sm:$0xff]  }
 0x2b3   : > { %9402 = vmatpush1.bf16.msra.mxu0 %v20656_v4  ;;  %10304 = vmatpush1.bf16.msra.mxu1 %v20659_v5  ;;  %v20746_v4 = vld [vmem:[%s28767_s2 + $0x16a0] ss:$16 sps:$4 sm:$0xff]   ;;  %v20749_v5 = vld [vmem:[%s28767_s2 + $0x16a8] ss:$16 sps:$4 sm:$0xff]  }
 0x2b4   : > { %9403 = vmatprep.subr.bf16.mxu0 %v20664_v6  ;;  %10305 = vmatprep.subr.bf16.mxu1 %v20667_v7  ;;  %v20754_v6 = vld [vmem:[%s28767_s2 + $0x16c4] ss:$16 sps:$4 sm:$0xff]   ;;  %v20757_v7 = vld [vmem:[%s28767_s2 + $0x16cc] ss:$16 sps:$4 sm:$0xff]  }
 0x2b7   : > { %9404 = vmatpush1.bf16.msra.mxu0 %v20662_v8  ;;  %10306 = vmatpush1.bf16.msra.mxu1 %v20665_v9  ;;  %v20752_v8 = vld [vmem:[%s28767_s2 + $0x16c0] ss:$16 sps:$4 sm:$0xff]   ;;  %v20755_v9 = vld [vmem:[%s28767_s2 + $0x16c8] ss:$16 sps:$4 sm:$0xff]  }
 0x2b8   : > { %9405 = vmatprep.subr.bf16.mxu0 %v20670_v10  ;;  %10307 = vmatprep.subr.bf16.mxu1 %v20673_v11  ;;  %v20760_v10 = vld [vmem:[%s28767_s2 + $0x16e4] ss:$16 sps:$4 sm:$0xff]   ;;  %v20763_v11 = vld [vmem:[%s28767_s2 + $0x16ec] ss:$16 sps:$4 sm:$0xff]  }
 0x2bb   : > { %9406 = vmatpush1.bf16.msra.mxu0 %v20668_v12  ;;  %10308 = vmatpush1.bf16.msra.mxu1 %v20671_v13  ;;  %v20758_v12 = vld [vmem:[%s28767_s2 + $0x16e0] ss:$16 sps:$4 sm:$0xff]   ;;  %v20761_v13 = vld [vmem:[%s28767_s2 + $0x16e8] ss:$16 sps:$4 sm:$0xff]  }
 0x2bc   : > { %9407 = vmatprep.subr.bf16.mxu0 %v20676_v14  ;;  %10309 = vmatprep.subr.bf16.mxu1 %v20679_v15  ;;  %v20766_v14 = vld [vmem:[%s28767_s2 + $0x1704] ss:$16 sps:$4 sm:$0xff]   ;;  %v20769_v15 = vld [vmem:[%s28767_s2 + $0x170c] ss:$16 sps:$4 sm:$0xff]  }
 0x2bf   : > { %9408 = vmatpush1.bf16.msra.mxu0 %v20674_v16  ;;  %10310 = vmatpush1.bf16.msra.mxu1 %v20677_v17  ;;  %v20764_v16 = vld [vmem:[%s28767_s2 + $0x1700] ss:$16 sps:$4 sm:$0xff]   ;;  %v20767_v17 = vld [vmem:[%s28767_s2 + $0x1708] ss:$16 sps:$4 sm:$0xff]  }
 0x2c0   : > { %9409 = vmatprep.subr.bf16.mxu0 %v20682_v18  ;;  %10311 = vmatprep.subr.bf16.mxu1 %v20685_v19  ;;  %v20772_v18 = vld [vmem:[%s28767_s2 + $0x1724] ss:$16 sps:$4 sm:$0xff]   ;;  %v20775_v19 = vld [vmem:[%s28767_s2 + $0x172c] ss:$16 sps:$4 sm:$0xff]  }
 0x2c3   : > { %9410 = vmatpush1.bf16.msra.mxu0 %v20680_v20  ;;  %10312 = vmatpush1.bf16.msra.mxu1 %v20683_v21  ;;  %v20770_v20 = vld [vmem:[%s28767_s2 + $0x1720] ss:$16 sps:$4 sm:$0xff]   ;;  %v20773_v21 = vld [vmem:[%s28767_s2 + $0x1728] ss:$16 sps:$4 sm:$0xff]  }
 0x2c4   : > { %9411 = vmatprep.subr.bf16.mxu0 %v20688_v22  ;;  %10313 = vmatprep.subr.bf16.mxu1 %v20691_v23  ;;  %v20778_v22 = vld [vmem:[%s28767_s2 + $0x1744] ss:$16 sps:$4 sm:$0xff]   ;;  %v20781_v23 = vld [vmem:[%s28767_s2 + $0x174c] ss:$16 sps:$4 sm:$0xff]  }
 0x2c7   : > { %9412 = vmatpush1.bf16.msra.mxu0 %v20686_v24  ;;  %10314 = vmatpush1.bf16.msra.mxu1 %v20689_v25  ;;  %v20776_v24 = vld [vmem:[%s28767_s2 + $0x1740] ss:$16 sps:$4 sm:$0xff]   ;;  %v20779_v25 = vld [vmem:[%s28767_s2 + $0x1748] ss:$16 sps:$4 sm:$0xff]  }
 0x2c8   : > { %9413 = vmatprep.subr.bf16.mxu0 %v20694_v26  ;;  %10315 = vmatprep.subr.bf16.mxu1 %v20697_v27  ;;  %v20784_v26 = vld [vmem:[%s28767_s2 + $0x1764] ss:$16 sps:$4 sm:$0xff]   ;;  %v20787_v27 = vld [vmem:[%s28767_s2 + $0x176c] ss:$16 sps:$4 sm:$0xff]  }
 0x2cb   : > { %9414 = vmatpush1.bf16.msra.mxu0 %v20692_v28  ;;  %10316 = vmatpush1.bf16.msra.mxu1 %v20695_v29  ;;  %v20782_v28 = vld [vmem:[%s28767_s2 + $0x1760] ss:$16 sps:$4 sm:$0xff]   ;;  %v20785_v29 = vld [vmem:[%s28767_s2 + $0x1768] ss:$16 sps:$4 sm:$0xff]  }
 0x2cc   : > { %9415 = vmatprep.subr.bf16.mxu0 %v20700_v30  ;;  %10317 = vmatprep.subr.bf16.mxu1 %v20703_v31  ;;  %v20790_v30 = vld [vmem:[%s28767_s2 + $0x1784] ss:$16 sps:$4 sm:$0xff]   ;;  %v20793_v31 = vld [vmem:[%s28767_s2 + $0x178c] ss:$16 sps:$4 sm:$0xff]  }
 0x2cf   : > { %9416 = vmatpush1.bf16.msra.mxu0 %v20698_v32  ;;  %10318 = vmatpush1.bf16.msra.mxu1 %v20701_v33  ;;  %v20788_v32 = vld [vmem:[%s28767_s2 + $0x1780] ss:$16 sps:$4 sm:$0xff]   ;;  %v20791_v33 = vld [vmem:[%s28767_s2 + $0x1788] ss:$16 sps:$4 sm:$0xff]  }
 0x2d0   : > { %9417 = vmatprep.subr.bf16.mxu0 %v20706_v34  ;;  %10319 = vmatprep.subr.bf16.mxu1 %v20709_v35  ;;  %v20796_v34 = vld [vmem:[%s28767_s2 + $0x17a4] ss:$16 sps:$4 sm:$0xff]   ;;  %v20799_v35 = vld [vmem:[%s28767_s2 + $0x17ac] ss:$16 sps:$4 sm:$0xff]  }
 0x2d3   : > { %9418 = vmatpush1.bf16.msra.mxu0 %v20704_v36  ;;  %10320 = vmatpush1.bf16.msra.mxu1 %v20707_v37  ;;  %v20794_v36 = vld [vmem:[%s28767_s2 + $0x17a0] ss:$16 sps:$4 sm:$0xff]   ;;  %v20797_v37 = vld [vmem:[%s28767_s2 + $0x17a8] ss:$16 sps:$4 sm:$0xff]  }
 0x2d4   : > { %9419 = vmatprep.subr.bf16.mxu0 %v20712_v38  ;;  %10321 = vmatprep.subr.bf16.mxu1 %v20715_v39  ;;  %v20802_v38 = vld [vmem:[%s28767_s2 + $0x17c4] ss:$16 sps:$4 sm:$0xff]   ;;  %v20805_v39 = vld [vmem:[%s28767_s2 + $0x17cc] ss:$16 sps:$4 sm:$0xff]  }
 0x2d7   : > { %9420 = vmatpush1.bf16.msra.mxu0 %v20710_v40  ;;  %10322 = vmatpush1.bf16.msra.mxu1 %v20713_v41  ;;  %v20800_v40 = vld [vmem:[%s28767_s2 + $0x17c0] ss:$16 sps:$4 sm:$0xff]   ;;  %v20803_v41 = vld [vmem:[%s28767_s2 + $0x17c8] ss:$16 sps:$4 sm:$0xff]  }
 0x2d8   : > { %9430 = vmatprep.subr.bf16.mxu0 %v20718_v42  ;;  %10332 = vmatprep.subr.bf16.mxu1 %v20721_v44  ;;  %v20808_v42 = vld [vmem:[%s28767_s2 + $0x17e4] ss:$16 sps:$4 sm:$0xff]   ;;  %v20806_v44 = vld [vmem:[%s28767_s2 + $0x17e0] ss:$16 sps:$4 sm:$0xff]  }
 0x2da   : > { %9422 = vmatmul.mubr.bf16.vlgmr.msra.gmra.mrb[0].mxu0 %v485_v46  ;;  %10324 = vmatmul.mubr.bf16.vlgmr.msra.gmra.mrb[0].mxu1 %v485_v46  ;;  %v20814_v46 = vld [vmem:[%s28767_s2 + $0x1804] ss:$16 sps:$4 sm:$0xff]  }
 0x2db   : > { %9431 = vmatpush1.bf16.msra.mxu0 %v20716_v47  ;;  %10333 = vmatpush1.bf16.msra.mxu1 %v20719_v48  ;;  %v443_v47 = vld [vmem:[%s28768_s0 + $0xb0] sm:$0xff]  ;;  %v20817_v48 = vld [vmem:[%s28767_s2 + $0x180c] ss:$16 sps:$4 sm:$0xff]  }
 0x2dc   : > { %9432 = vmatprep.subr.bf16.mxu0 %v20724_v49  ;;  %10334 = vmatprep.subr.bf16.mxu1 %v20727_v50  ;;  %v446_v49 = vld [vmem:[%s28768_s0 + $0xc8] sm:$0xff]  ;;  %v487_v50 = vpack.c.bf16 %v443_v47, %v443_v47 }
 0x2dd   : > { %9462 = vmatprep.mubr.bf16.mxu0 %v488_v51  ;;  %10364 = vmatprep.mubr.bf16.mxu1 %v488_v51  ;;  %v20812_v51 = vld [vmem:[%s28767_s2 + $0x1800] ss:$16 sps:$4 sm:$0xff]   ;;  %v20907_v47 = vld [vmem:[%s28767_s2 + $0x19ec] ss:$16 sps:$4 sm:$0xff]  }
 0x2df   : > { %9433 = vmatpush1.bf16.msra.mxu0 %v20722_v52  ;;  %10335 = vmatpush1.bf16.msra.mxu1 %v20725_v53  ;;  %v20815_v52 = vld [vmem:[%s28767_s2 + $0x1808] ss:$16 sps:$4 sm:$0xff]   ;;  %v20820_v53 = vld [vmem:[%s28767_s2 + $0x1824] ss:$16 sps:$4 sm:$0xff]  }
 0x2e0   : > { %9434 = vmatprep.subr.bf16.mxu0 %v20730_v54  ;;  %10336 = vmatprep.subr.bf16.mxu1 %v20733_v55  ;;  %v20823_v54 = vld [vmem:[%s28767_s2 + $0x182c] ss:$16 sps:$4 sm:$0xff]   ;;  %v490_v55 = vpack.c.bf16 %v446_v49, %v446_v49  ;;  %v20905_v49 = vld [vmem:[%s28767_s2 + $0x19e8] ss:$16 sps:$4 sm:$0xff]  }
 0x2e3   : > { %9435 = vmatpush1.bf16.msra.mxu0 %v20728_v56  ;;  %10337 = vmatpush1.bf16.msra.mxu1 %v20731_v57  ;;  %v20818_v56 = vld [vmem:[%s28767_s2 + $0x1820] ss:$16 sps:$4 sm:$0xff]   ;;  %v20821_v57 = vld [vmem:[%s28767_s2 + $0x1828] ss:$16 sps:$4 sm:$0xff]  }
 0x2e4   : > { %9436 = vmatprep.subr.bf16.mxu0 %v20736_v58  ;;  %10338 = vmatprep.subr.bf16.mxu1 %v20739_v59  ;;  %v20826_v58 = vld [vmem:[%s28767_s2 + $0x1844] ss:$16 sps:$4 sm:$0xff]   ;;  %v20829_v59 = vld [vmem:[%s28767_s2 + $0x184c] ss:$16 sps:$4 sm:$0xff]  }
 0x2e7   : > { %9437 = vmatpush1.bf16.msra.mxu0 %v20734_v60  ;;  %10339 = vmatpush1.bf16.msra.mxu1 %v20737_v61  ;;  %v20824_v60 = vld [vmem:[%s28767_s2 + $0x1840] ss:$16 sps:$4 sm:$0xff]   ;;  %v20827_v61 = vld [vmem:[%s28767_s2 + $0x1848] ss:$16 sps:$4 sm:$0xff]  }
 0x2e8   : > { %9438 = vmatprep.subr.bf16.mxu0 %v20742_v62  ;;  %10340 = vmatprep.subr.bf16.mxu1 %v20745_v63  ;;  %v20832_v62 = vld [vmem:[%s28767_s2 + $0x1864] ss:$16 sps:$4 sm:$0xff]   ;;  %v20835_v63 = vld [vmem:[%s28767_s2 + $0x186c] ss:$16 sps:$4 sm:$0xff]  }
 0x2eb   : > { %9439 = vmatpush1.bf16.msra.mxu0 %v20740_v0  ;;  %10341 = vmatpush1.bf16.msra.mxu1 %v20743_v1  ;;  %v20830_v0 = vld [vmem:[%s28767_s2 + $0x1860] ss:$16 sps:$4 sm:$0xff]   ;;  %v20833_v1 = vld [vmem:[%s28767_s2 + $0x1868] ss:$16 sps:$4 sm:$0xff]  }
 0x2ec   : > { %9440 = vmatprep.subr.bf16.mxu0 %v20748_v2  ;;  %10342 = vmatprep.subr.bf16.mxu1 %v20751_v3  ;;  %v20838_v2 = vld [vmem:[%s28767_s2 + $0x1884] ss:$16 sps:$4 sm:$0xff]   ;;  %v20841_v3 = vld [vmem:[%s28767_s2 + $0x188c] ss:$16 sps:$4 sm:$0xff]  }
 0x2ef   : > { %9441 = vmatpush1.bf16.msra.mxu0 %v20746_v4  ;;  %10343 = vmatpush1.bf16.msra.mxu1 %v20749_v5  ;;  %v20836_v4 = vld [vmem:[%s28767_s2 + $0x1880] ss:$16 sps:$4 sm:$0xff]   ;;  %v20839_v5 = vld [vmem:[%s28767_s2 + $0x1888] ss:$16 sps:$4 sm:$0xff]  }
 0x2f0   : > { %9442 = vmatprep.subr.bf16.mxu0 %v20754_v6  ;;  %10344 = vmatprep.subr.bf16.mxu1 %v20757_v7  ;;  %v20844_v6 = vld [vmem:[%s28767_s2 + $0x18a4] ss:$16 sps:$4 sm:$0xff]   ;;  %v20847_v7 = vld [vmem:[%s28767_s2 + $0x18ac] ss:$16 sps:$4 sm:$0xff]  }
 0x2f3   : > { %9443 = vmatpush1.bf16.msra.mxu0 %v20752_v8  ;;  %10345 = vmatpush1.bf16.msra.mxu1 %v20755_v9  ;;  %v20842_v8 = vld [vmem:[%s28767_s2 + $0x18a0] ss:$16 sps:$4 sm:$0xff]   ;;  %v20845_v9 = vld [vmem:[%s28767_s2 + $0x18a8] ss:$16 sps:$4 sm:$0xff]  }
 0x2f4   : > { %9444 = vmatprep.subr.bf16.mxu0 %v20760_v10  ;;  %10346 = vmatprep.subr.bf16.mxu1 %v20763_v11  ;;  %v20850_v10 = vld [vmem:[%s28767_s2 + $0x18c4] ss:$16 sps:$4 sm:$0xff]   ;;  %v20853_v11 = vld [vmem:[%s28767_s2 + $0x18cc] ss:$16 sps:$4 sm:$0xff]  }
 0x2f7   : > { %9445 = vmatpush1.bf16.msra.mxu0 %v20758_v12  ;;  %10347 = vmatpush1.bf16.msra.mxu1 %v20761_v13  ;;  %v20848_v12 = vld [vmem:[%s28767_s2 + $0x18c0] ss:$16 sps:$4 sm:$0xff]   ;;  %v20851_v13 = vld [vmem:[%s28767_s2 + $0x18c8] ss:$16 sps:$4 sm:$0xff]  }
 0x2f8   : > { %9446 = vmatprep.subr.bf16.mxu0 %v20766_v14  ;;  %10348 = vmatprep.subr.bf16.mxu1 %v20769_v15  ;;  %v20856_v14 = vld [vmem:[%s28767_s2 + $0x18e4] ss:$16 sps:$4 sm:$0xff]   ;;  %v20859_v15 = vld [vmem:[%s28767_s2 + $0x18ec] ss:$16 sps:$4 sm:$0xff]  }
 0x2fb   : > { %9447 = vmatpush1.bf16.msra.mxu0 %v20764_v16  ;;  %10349 = vmatpush1.bf16.msra.mxu1 %v20767_v17  ;;  %v20854_v16 = vld [vmem:[%s28767_s2 + $0x18e0] ss:$16 sps:$4 sm:$0xff]   ;;  %v20857_v17 = vld [vmem:[%s28767_s2 + $0x18e8] ss:$16 sps:$4 sm:$0xff]  }
 0x2fc   : > { %9448 = vmatprep.subr.bf16.mxu0 %v20772_v18  ;;  %10350 = vmatprep.subr.bf16.mxu1 %v20775_v19  ;;  %v20862_v18 = vld [vmem:[%s28767_s2 + $0x1904] ss:$16 sps:$4 sm:$0xff]   ;;  %v20865_v19 = vld [vmem:[%s28767_s2 + $0x190c] ss:$16 sps:$4 sm:$0xff]  }
 0x2ff   : > { %9449 = vmatpush1.bf16.msra.mxu0 %v20770_v20  ;;  %10351 = vmatpush1.bf16.msra.mxu1 %v20773_v21  ;;  %v20860_v20 = vld [vmem:[%s28767_s2 + $0x1900] ss:$16 sps:$4 sm:$0xff]   ;;  %v20863_v21 = vld [vmem:[%s28767_s2 + $0x1908] ss:$16 sps:$4 sm:$0xff]  }
 0x300   : > { %9450 = vmatprep.subr.bf16.mxu0 %v20778_v22  ;;  %10352 = vmatprep.subr.bf16.mxu1 %v20781_v23  ;;  %v20868_v22 = vld [vmem:[%s28767_s2 + $0x1924] ss:$16 sps:$4 sm:$0xff]   ;;  %v20871_v23 = vld [vmem:[%s28767_s2 + $0x192c] ss:$16 sps:$4 sm:$0xff]  }
 0x303   : > { %9451 = vmatpush1.bf16.msra.mxu0 %v20776_v24  ;;  %10353 = vmatpush1.bf16.msra.mxu1 %v20779_v25  ;;  %v20866_v24 = vld [vmem:[%s28767_s2 + $0x1920] ss:$16 sps:$4 sm:$0xff]   ;;  %v20869_v25 = vld [vmem:[%s28767_s2 + $0x1928] ss:$16 sps:$4 sm:$0xff]  }
 0x304   : > { %9452 = vmatprep.subr.bf16.mxu0 %v20784_v26  ;;  %10354 = vmatprep.subr.bf16.mxu1 %v20787_v27  ;;  %v20874_v26 = vld [vmem:[%s28767_s2 + $0x1944] ss:$16 sps:$4 sm:$0xff]   ;;  %v20877_v27 = vld [vmem:[%s28767_s2 + $0x194c] ss:$16 sps:$4 sm:$0xff]  }
 0x307   : > { %9453 = vmatpush1.bf16.msra.mxu0 %v20782_v28  ;;  %10355 = vmatpush1.bf16.msra.mxu1 %v20785_v29  ;;  %v20872_v28 = vld [vmem:[%s28767_s2 + $0x1940] ss:$16 sps:$4 sm:$0xff]   ;;  %v20875_v29 = vld [vmem:[%s28767_s2 + $0x1948] ss:$16 sps:$4 sm:$0xff]  }
 0x308   : > { %9454 = vmatprep.subr.bf16.mxu0 %v20790_v30  ;;  %10356 = vmatprep.subr.bf16.mxu1 %v20793_v31  ;;  %v20880_v30 = vld [vmem:[%s28767_s2 + $0x1964] ss:$16 sps:$4 sm:$0xff]   ;;  %v20883_v31 = vld [vmem:[%s28767_s2 + $0x196c] ss:$16 sps:$4 sm:$0xff]  }
 0x30b   : > { %9455 = vmatpush1.bf16.msra.mxu0 %v20788_v32  ;;  %10357 = vmatpush1.bf16.msra.mxu1 %v20791_v33  ;;  %v20878_v32 = vld [vmem:[%s28767_s2 + $0x1960] ss:$16 sps:$4 sm:$0xff]   ;;  %v20881_v33 = vld [vmem:[%s28767_s2 + $0x1968] ss:$16 sps:$4 sm:$0xff]  }
 0x30c   : > { %9456 = vmatprep.subr.bf16.mxu0 %v20796_v34  ;;  %10358 = vmatprep.subr.bf16.mxu1 %v20799_v35  ;;  %v20886_v34 = vld [vmem:[%s28767_s2 + $0x1984] ss:$16 sps:$4 sm:$0xff]   ;;  %v20889_v35 = vld [vmem:[%s28767_s2 + $0x198c] ss:$16 sps:$4 sm:$0xff]  }
 0x30f   : > { %9457 = vmatpush1.bf16.msra.mxu0 %v20794_v36  ;;  %10359 = vmatpush1.bf16.msra.mxu1 %v20797_v37  ;;  %v20884_v36 = vld [vmem:[%s28767_s2 + $0x1980] ss:$16 sps:$4 sm:$0xff]   ;;  %v20887_v37 = vld [vmem:[%s28767_s2 + $0x1988] ss:$16 sps:$4 sm:$0xff]  }
 0x310   : > { %9458 = vmatprep.subr.bf16.mxu0 %v20802_v38  ;;  %10360 = vmatprep.subr.bf16.mxu1 %v20805_v39  ;;  %v20892_v38 = vld [vmem:[%s28767_s2 + $0x19a4] ss:$16 sps:$4 sm:$0xff]   ;;  %v20895_v39 = vld [vmem:[%s28767_s2 + $0x19ac] ss:$16 sps:$4 sm:$0xff]  }
 0x313   : > { %9459 = vmatpush1.bf16.msra.mxu0 %v20800_v40  ;;  %10361 = vmatpush1.bf16.msra.mxu1 %v20803_v41  ;;  %v20890_v40 = vld [vmem:[%s28767_s2 + $0x19a0] ss:$16 sps:$4 sm:$0xff]   ;;  %v20893_v41 = vld [vmem:[%s28767_s2 + $0x19a8] ss:$16 sps:$4 sm:$0xff]  }
 0x314   : > { %9460 = vmatprep.subr.bf16.mxu0 %v20808_v42  ;;  %10362 = vmatprep.subr.bf16.mxu1 %v20811_v43  ;;  %v20898_v42 = vld [vmem:[%s28767_s2 + $0x19c4] ss:$16 sps:$4 sm:$0xff]   ;;  %v20901_v43 = vld [vmem:[%s28767_s2 + $0x19cc] ss:$16 sps:$4 sm:$0xff]  }
 0x317   : > { %9461 = vmatpush1.bf16.msra.mxu0 %v20806_v44  ;;  %10363 = vmatpush1.bf16.msra.mxu1 %v20809_v45  ;;  %v20896_v44 = vld [vmem:[%s28767_s2 + $0x19c0] ss:$16 sps:$4 sm:$0xff]   ;;  %v20899_v45 = vld [vmem:[%s28767_s2 + $0x19c8] ss:$16 sps:$4 sm:$0xff]  }
 0x318   : > { %9471 = vmatprep.subr.bf16.mxu0 %v20814_v46  ;;  %10373 = vmatprep.subr.bf16.mxu1 %v20817_v48  ;;  %v20904_v46 = vld [vmem:[%s28767_s2 + $0x19e4] ss:$16 sps:$4 sm:$0xff]   ;;  %v20902_v48 = vld [vmem:[%s28767_s2 + $0x19e0] ss:$16 sps:$4 sm:$0xff]  }
 0x31a   : > { %9463 = vmatmul.mubr.bf16.vlgmr.msra.gmra.mrb[0].mxu0 %v487_v50  ;;  %10365 = vmatmul.mubr.bf16.vlgmr.msra.gmra.mrb[0].mxu1 %v487_v50  ;;  %v445_v50 = vld [vmem:[%s28768_s0 + $0xc0] sm:$0xff] }
 0x31b   : > { %9472 = vmatpush1.bf16.msra.mxu0 %v20812_v51  ;;  %10374 = vmatpush1.bf16.msra.mxu1 %v20815_v52  ;;  %v20910_v51 = vld [vmem:[%s28767_s2 + $0x1a04] ss:$16 sps:$4 sm:$0xff]   ;;  %v20913_v52 = vld [vmem:[%s28767_s2 + $0x1a0c] ss:$16 sps:$4 sm:$0xff]  }
 0x31c   : > { %9473 = vmatprep.subr.bf16.mxu0 %v20820_v53  ;;  %10375 = vmatprep.subr.bf16.mxu1 %v20823_v54  ;;  %v489_v53 = vpack.c.bf16 %v445_v50, %v445_v50  ;;  %v448_v54 = vld [vmem:[%s28768_s0 + $0xd8] sm:$0xff]  ;;  %v21000_v50 = vld [vmem:[%s28767_s2 + $0x1be4] ss:$16 sps:$4 sm:$0xff]  }
 0x31d   : > { %9503 = vmatprep.mubr.bf16.mxu0 %v490_v55  ;;  %10405 = vmatprep.mubr.bf16.mxu1 %v490_v55  ;;  %v20908_v55 = vld [vmem:[%s28767_s2 + $0x1a00] ss:$16 sps:$4 sm:$0xff]  }
 0x31f   : > { %9474 = vmatpush1.bf16.msra.mxu0 %v20818_v56  ;;  %10376 = vmatpush1.bf16.msra.mxu1 %v20821_v57  ;;  %v20911_v56 = vld [vmem:[%s28767_s2 + $0x1a08] ss:$16 sps:$4 sm:$0xff]   ;;  %v20916_v57 = vld [vmem:[%s28767_s2 + $0x1a24] ss:$16 sps:$4 sm:$0xff]  }
 0x320   : > { %9475 = vmatprep.subr.bf16.mxu0 %v20826_v58  ;;  %10377 = vmatprep.subr.bf16.mxu1 %v20829_v59  ;;  %v20919_v58 = vld [vmem:[%s28767_s2 + $0x1a2c] ss:$16 sps:$4 sm:$0xff]   ;;  %v492_v59 = vpack.c.bf16 %v448_v54, %v448_v54  ;;  %v447_v54 = vld [vmem:[%s28768_s0 + $0xd0] sm:$0xff] }
 0x323   : > { %9476 = vmatpush1.bf16.msra.mxu0 %v20824_v60  ;;  %10378 = vmatpush1.bf16.msra.mxu1 %v20827_v61  ;;  %v20914_v60 = vld [vmem:[%s28767_s2 + $0x1a20] ss:$16 sps:$4 sm:$0xff]   ;;  %v20917_v61 = vld [vmem:[%s28767_s2 + $0x1a28] ss:$16 sps:$4 sm:$0xff]  }
 0x324   : > { %9477 = vmatprep.subr.bf16.mxu0 %v20832_v62  ;;  %10379 = vmatprep.subr.bf16.mxu1 %v20835_v63  ;;  %v20922_v62 = vld [vmem:[%s28767_s2 + $0x1a44] ss:$16 sps:$4 sm:$0xff]   ;;  %v20925_v63 = vld [vmem:[%s28767_s2 + $0x1a4c] ss:$16 sps:$4 sm:$0xff]  }
 0x327   : > { %9478 = vmatpush1.bf16.msra.mxu0 %v20830_v0  ;;  %10380 = vmatpush1.bf16.msra.mxu1 %v20833_v1  ;;  %v20920_v0 = vld [vmem:[%s28767_s2 + $0x1a40] ss:$16 sps:$4 sm:$0xff]   ;;  %v20923_v1 = vld [vmem:[%s28767_s2 + $0x1a48] ss:$16 sps:$4 sm:$0xff]  }
 0x328   : > { %9479 = vmatprep.subr.bf16.mxu0 %v20838_v2  ;;  %10381 = vmatprep.subr.bf16.mxu1 %v20841_v3  ;;  %v20928_v2 = vld [vmem:[%s28767_s2 + $0x1a64] ss:$16 sps:$4 sm:$0xff]   ;;  %v20931_v3 = vld [vmem:[%s28767_s2 + $0x1a6c] ss:$16 sps:$4 sm:$0xff]  }
 0x32b   : > { %9480 = vmatpush1.bf16.msra.mxu0 %v20836_v4  ;;  %10382 = vmatpush1.bf16.msra.mxu1 %v20839_v5  ;;  %v20926_v4 = vld [vmem:[%s28767_s2 + $0x1a60] ss:$16 sps:$4 sm:$0xff]   ;;  %v20929_v5 = vld [vmem:[%s28767_s2 + $0x1a68] ss:$16 sps:$4 sm:$0xff]  }
 0x32c   : > { %9481 = vmatprep.subr.bf16.mxu0 %v20844_v6  ;;  %10383 = vmatprep.subr.bf16.mxu1 %v20847_v7  ;;  %v20934_v6 = vld [vmem:[%s28767_s2 + $0x1a84] ss:$16 sps:$4 sm:$0xff]   ;;  %v20937_v7 = vld [vmem:[%s28767_s2 + $0x1a8c] ss:$16 sps:$4 sm:$0xff]  }
 0x32f   : > { %9482 = vmatpush1.bf16.msra.mxu0 %v20842_v8  ;;  %10384 = vmatpush1.bf16.msra.mxu1 %v20845_v9  ;;  %v20932_v8 = vld [vmem:[%s28767_s2 + $0x1a80] ss:$16 sps:$4 sm:$0xff]   ;;  %v20935_v9 = vld [vmem:[%s28767_s2 + $0x1a88] ss:$16 sps:$4 sm:$0xff]  }
 0x330   : > { %9483 = vmatprep.subr.bf16.mxu0 %v20850_v10  ;;  %10385 = vmatprep.subr.bf16.mxu1 %v20853_v11  ;;  %v20940_v10 = vld [vmem:[%s28767_s2 + $0x1aa4] ss:$16 sps:$4 sm:$0xff]   ;;  %v20943_v11 = vld [vmem:[%s28767_s2 + $0x1aac] ss:$16 sps:$4 sm:$0xff]  }
 0x333   : > { %9484 = vmatpush1.bf16.msra.mxu0 %v20848_v12  ;;  %10386 = vmatpush1.bf16.msra.mxu1 %v20851_v13  ;;  %v20938_v12 = vld [vmem:[%s28767_s2 + $0x1aa0] ss:$16 sps:$4 sm:$0xff]   ;;  %v20941_v13 = vld [vmem:[%s28767_s2 + $0x1aa8] ss:$16 sps:$4 sm:$0xff]  }
 0x334   : > { %9485 = vmatprep.subr.bf16.mxu0 %v20856_v14  ;;  %10387 = vmatprep.subr.bf16.mxu1 %v20859_v15  ;;  %v20946_v14 = vld [vmem:[%s28767_s2 + $0x1ac4] ss:$16 sps:$4 sm:$0xff]   ;;  %v20949_v15 = vld [vmem:[%s28767_s2 + $0x1acc] ss:$16 sps:$4 sm:$0xff]  }
 0x337   : > { %9486 = vmatpush1.bf16.msra.mxu0 %v20854_v16  ;;  %10388 = vmatpush1.bf16.msra.mxu1 %v20857_v17  ;;  %v20944_v16 = vld [vmem:[%s28767_s2 + $0x1ac0] ss:$16 sps:$4 sm:$0xff]   ;;  %v20947_v17 = vld [vmem:[%s28767_s2 + $0x1ac8] ss:$16 sps:$4 sm:$0xff]  }
 0x338   : > { %9487 = vmatprep.subr.bf16.mxu0 %v20862_v18  ;;  %10389 = vmatprep.subr.bf16.mxu1 %v20865_v19  ;;  %v20952_v18 = vld [vmem:[%s28767_s2 + $0x1ae4] ss:$16 sps:$4 sm:$0xff]   ;;  %v20955_v19 = vld [vmem:[%s28767_s2 + $0x1aec] ss:$16 sps:$4 sm:$0xff]  }
 0x33b   : > { %9488 = vmatpush1.bf16.msra.mxu0 %v20860_v20  ;;  %10390 = vmatpush1.bf16.msra.mxu1 %v20863_v21  ;;  %v20950_v20 = vld [vmem:[%s28767_s2 + $0x1ae0] ss:$16 sps:$4 sm:$0xff]   ;;  %v20953_v21 = vld [vmem:[%s28767_s2 + $0x1ae8] ss:$16 sps:$4 sm:$0xff]  }
 0x33c   : > { %9489 = vmatprep.subr.bf16.mxu0 %v20868_v22  ;;  %10391 = vmatprep.subr.bf16.mxu1 %v20871_v23  ;;  %v20958_v22 = vld [vmem:[%s28767_s2 + $0x1b04] ss:$16 sps:$4 sm:$0xff]   ;;  %v20961_v23 = vld [vmem:[%s28767_s2 + $0x1b0c] ss:$16 sps:$4 sm:$0xff]  }
 0x33f   : > { %9490 = vmatpush1.bf16.msra.mxu0 %v20866_v24  ;;  %10392 = vmatpush1.bf16.msra.mxu1 %v20869_v25  ;;  %v20956_v24 = vld [vmem:[%s28767_s2 + $0x1b00] ss:$16 sps:$4 sm:$0xff]   ;;  %v20959_v25 = vld [vmem:[%s28767_s2 + $0x1b08] ss:$16 sps:$4 sm:$0xff]  }
 0x340   : > { %9491 = vmatprep.subr.bf16.mxu0 %v20874_v26  ;;  %10393 = vmatprep.subr.bf16.mxu1 %v20877_v27  ;;  %v20964_v26 = vld [vmem:[%s28767_s2 + $0x1b24] ss:$16 sps:$4 sm:$0xff]   ;;  %v20967_v27 = vld [vmem:[%s28767_s2 + $0x1b2c] ss:$16 sps:$4 sm:$0xff]  }
 0x343   : > { %9492 = vmatpush1.bf16.msra.mxu0 %v20872_v28  ;;  %10394 = vmatpush1.bf16.msra.mxu1 %v20875_v29  ;;  %v20962_v28 = vld [vmem:[%s28767_s2 + $0x1b20] ss:$16 sps:$4 sm:$0xff]   ;;  %v20965_v29 = vld [vmem:[%s28767_s2 + $0x1b28] ss:$16 sps:$4 sm:$0xff]  }
 0x344   : > { %9493 = vmatprep.subr.bf16.mxu0 %v20880_v30  ;;  %10395 = vmatprep.subr.bf16.mxu1 %v20883_v31  ;;  %v20970_v30 = vld [vmem:[%s28767_s2 + $0x1b44] ss:$16 sps:$4 sm:$0xff]   ;;  %v20973_v31 = vld [vmem:[%s28767_s2 + $0x1b4c] ss:$16 sps:$4 sm:$0xff]  }
 0x347   : > { %9494 = vmatpush1.bf16.msra.mxu0 %v20878_v32  ;;  %10396 = vmatpush1.bf16.msra.mxu1 %v20881_v33  ;;  %v20968_v32 = vld [vmem:[%s28767_s2 + $0x1b40] ss:$16 sps:$4 sm:$0xff]   ;;  %v20971_v33 = vld [vmem:[%s28767_s2 + $0x1b48] ss:$16 sps:$4 sm:$0xff]  }
 0x348   : > { %9495 = vmatprep.subr.bf16.mxu0 %v20886_v34  ;;  %10397 = vmatprep.subr.bf16.mxu1 %v20889_v35  ;;  %v20976_v34 = vld [vmem:[%s28767_s2 + $0x1b64] ss:$16 sps:$4 sm:$0xff]   ;;  %v20979_v35 = vld [vmem:[%s28767_s2 + $0x1b6c] ss:$16 sps:$4 sm:$0xff]  }
 0x34b   : > { %9496 = vmatpush1.bf16.msra.mxu0 %v20884_v36  ;;  %10398 = vmatpush1.bf16.msra.mxu1 %v20887_v37  ;;  %v20974_v36 = vld [vmem:[%s28767_s2 + $0x1b60] ss:$16 sps:$4 sm:$0xff]   ;;  %v20977_v37 = vld [vmem:[%s28767_s2 + $0x1b68] ss:$16 sps:$4 sm:$0xff]  }
 0x34c   : > { %9497 = vmatprep.subr.bf16.mxu0 %v20892_v38  ;;  %10399 = vmatprep.subr.bf16.mxu1 %v20895_v39  ;;  %v20982_v38 = vld [vmem:[%s28767_s2 + $0x1b84] ss:$16 sps:$4 sm:$0xff]   ;;  %v20985_v39 = vld [vmem:[%s28767_s2 + $0x1b8c] ss:$16 sps:$4 sm:$0xff]  }
 0x34f   : > { %9498 = vmatpush1.bf16.msra.mxu0 %v20890_v40  ;;  %10400 = vmatpush1.bf16.msra.mxu1 %v20893_v41  ;;  %v20980_v40 = vld [vmem:[%s28767_s2 + $0x1b80] ss:$16 sps:$4 sm:$0xff]   ;;  %v20983_v41 = vld [vmem:[%s28767_s2 + $0x1b88] ss:$16 sps:$4 sm:$0xff]  }
 0x350   : > { %9499 = vmatprep.subr.bf16.mxu0 %v20898_v42  ;;  %10401 = vmatprep.subr.bf16.mxu1 %v20901_v43  ;;  %v20988_v42 = vld [vmem:[%s28767_s2 + $0x1ba4] ss:$16 sps:$4 sm:$0xff]   ;;  %v20991_v43 = vld [vmem:[%s28767_s2 + $0x1bac] ss:$16 sps:$4 sm:$0xff]  }
 0x353   : > { %9500 = vmatpush1.bf16.msra.mxu0 %v20896_v44  ;;  %10402 = vmatpush1.bf16.msra.mxu1 %v20899_v45  ;;  %v20986_v44 = vld [vmem:[%s28767_s2 + $0x1ba0] ss:$16 sps:$4 sm:$0xff]   ;;  %v20989_v45 = vld [vmem:[%s28767_s2 + $0x1ba8] ss:$16 sps:$4 sm:$0xff]  }
 0x354   : > { %9501 = vmatprep.subr.bf16.mxu0 %v20904_v46  ;;  %10403 = vmatprep.subr.bf16.mxu1 %v20907_v47  ;;  %v20994_v46 = vld [vmem:[%s28767_s2 + $0x1bc4] ss:$16 sps:$4 sm:$0xff]   ;;  %v20997_v47 = vld [vmem:[%s28767_s2 + $0x1bcc] ss:$16 sps:$4 sm:$0xff]  }
 0x357   : > { %9502 = vmatpush1.bf16.msra.mxu0 %v20902_v48  ;;  %10404 = vmatpush1.bf16.msra.mxu1 %v20905_v49  ;;  %v20992_v48 = vld [vmem:[%s28767_s2 + $0x1bc0] ss:$16 sps:$4 sm:$0xff]   ;;  %v20995_v49 = vld [vmem:[%s28767_s2 + $0x1bc8] ss:$16 sps:$4 sm:$0xff]  }
 0x358   : > { %9512 = vmatprep.subr.bf16.mxu0 %v20910_v51  ;;  %10414 = vmatprep.subr.bf16.mxu1 %v20913_v52  ;;  %v21003_v51 = vld [vmem:[%s28767_s2 + $0x1bec] ss:$16 sps:$4 sm:$0xff]   ;;  %v20998_v52 = vld [vmem:[%s28767_s2 + $0x1be0] ss:$16 sps:$4 sm:$0xff]  }
 0x35a   : > { %9504 = vmatmul.mubr.bf16.vlgmr.msra.gmra.mrb[0].mxu0 %v489_v53  ;;  %10406 = vmatmul.mubr.bf16.vlgmr.msra.gmra.mrb[0].mxu1 %v489_v53  ;;  %v21001_v53 = vld [vmem:[%s28767_s2 + $0x1be8] ss:$16 sps:$4 sm:$0xff]  }
 0x35b   : > { %9513 = vmatpush1.bf16.msra.mxu0 %v20908_v55  ;;  %10415 = vmatpush1.bf16.msra.mxu1 %v20911_v56  ;;  %v21006_v55 = vld [vmem:[%s28767_s2 + $0x1c04] ss:$16 sps:$4 sm:$0xff]   ;;  %v21009_v56 = vld [vmem:[%s28767_s2 + $0x1c0c] ss:$16 sps:$4 sm:$0xff]  }
 0x35c   : > { %9514 = vmatprep.subr.bf16.mxu0 %v20916_v57  ;;  %10416 = vmatprep.subr.bf16.mxu1 %v20919_v58  ;;  %v491_v57 = vpack.c.bf16 %v447_v54, %v447_v54  ;;  %v450_v58 = vld [vmem:[%s28768_s0 + $0xe8] sm:$0xff]  ;;  %v21096_v54 = vld [vmem:[%s28767_s2 + $0x1de4] ss:$16 sps:$4 sm:$0xff]  }
 0x35d   : > { %9544 = vmatprep.mubr.bf16.mxu0 %v492_v59  ;;  %10446 = vmatprep.mubr.bf16.mxu1 %v492_v59  ;;  %v21004_v59 = vld [vmem:[%s28767_s2 + $0x1c00] ss:$16 sps:$4 sm:$0xff]  }
 0x35f   : > { %9515 = vmatpush1.bf16.msra.mxu0 %v20914_v60  ;;  %10417 = vmatpush1.bf16.msra.mxu1 %v20917_v61  ;;  %v21007_v60 = vld [vmem:[%s28767_s2 + $0x1c08] ss:$16 sps:$4 sm:$0xff]   ;;  %v21012_v61 = vld [vmem:[%s28767_s2 + $0x1c24] ss:$16 sps:$4 sm:$0xff]  }
 0x360   : > { %9516 = vmatprep.subr.bf16.mxu0 %v20922_v62  ;;  %10418 = vmatprep.subr.bf16.mxu1 %v20925_v63  ;;  %v21015_v62 = vld [vmem:[%s28767_s2 + $0x1c2c] ss:$16 sps:$4 sm:$0xff]   ;;  %v494_v63 = vpack.c.bf16 %v450_v58, %v450_v58  ;;  %v449_v58 = vld [vmem:[%s28768_s0 + $0xe0] sm:$0xff] }
 0x363   : > { %9517 = vmatpush1.bf16.msra.mxu0 %v20920_v0  ;;  %10419 = vmatpush1.bf16.msra.mxu1 %v20923_v1  ;;  %v21010_v0 = vld [vmem:[%s28767_s2 + $0x1c20] ss:$16 sps:$4 sm:$0xff]   ;;  %v21013_v1 = vld [vmem:[%s28767_s2 + $0x1c28] ss:$16 sps:$4 sm:$0xff]  }
 0x364   : > { %9518 = vmatprep.subr.bf16.mxu0 %v20928_v2  ;;  %10420 = vmatprep.subr.bf16.mxu1 %v20931_v3  ;;  %v21018_v2 = vld [vmem:[%s28767_s2 + $0x1c44] ss:$16 sps:$4 sm:$0xff]   ;;  %v21021_v3 = vld [vmem:[%s28767_s2 + $0x1c4c] ss:$16 sps:$4 sm:$0xff]  }
 0x367   : > { %9519 = vmatpush1.bf16.msra.mxu0 %v20926_v4  ;;  %10421 = vmatpush1.bf16.msra.mxu1 %v20929_v5  ;;  %v21016_v4 = vld [vmem:[%s28767_s2 + $0x1c40] ss:$16 sps:$4 sm:$0xff]   ;;  %v21019_v5 = vld [vmem:[%s28767_s2 + $0x1c48] ss:$16 sps:$4 sm:$0xff]  }
 0x368   : > { %9520 = vmatprep.subr.bf16.mxu0 %v20934_v6  ;;  %10422 = vmatprep.subr.bf16.mxu1 %v20937_v7  ;;  %v21024_v6 = vld [vmem:[%s28767_s2 + $0x1c64] ss:$16 sps:$4 sm:$0xff]   ;;  %v21027_v7 = vld [vmem:[%s28767_s2 + $0x1c6c] ss:$16 sps:$4 sm:$0xff]  }
 0x36b   : > { %9521 = vmatpush1.bf16.msra.mxu0 %v20932_v8  ;;  %10423 = vmatpush1.bf16.msra.mxu1 %v20935_v9  ;;  %v21022_v8 = vld [vmem:[%s28767_s2 + $0x1c60] ss:$16 sps:$4 sm:$0xff]   ;;  %v21025_v9 = vld [vmem:[%s28767_s2 + $0x1c68] ss:$16 sps:$4 sm:$0xff]  }
 0x36c   : > { %9522 = vmatprep.subr.bf16.mxu0 %v20940_v10  ;;  %10424 = vmatprep.subr.bf16.mxu1 %v20943_v11  ;;  %v21030_v10 = vld [vmem:[%s28767_s2 + $0x1c84] ss:$16 sps:$4 sm:$0xff]   ;;  %v21033_v11 = vld [vmem:[%s28767_s2 + $0x1c8c] ss:$16 sps:$4 sm:$0xff]  }
 0x36f   : > { %9523 = vmatpush1.bf16.msra.mxu0 %v20938_v12  ;;  %10425 = vmatpush1.bf16.msra.mxu1 %v20941_v13  ;;  %v21028_v12 = vld [vmem:[%s28767_s2 + $0x1c80] ss:$16 sps:$4 sm:$0xff]   ;;  %v21031_v13 = vld [vmem:[%s28767_s2 + $0x1c88] ss:$16 sps:$4 sm:$0xff]  }
 0x370   : > { %9524 = vmatprep.subr.bf16.mxu0 %v20946_v14  ;;  %10426 = vmatprep.subr.bf16.mxu1 %v20949_v15  ;;  %v21036_v14 = vld [vmem:[%s28767_s2 + $0x1ca4] ss:$16 sps:$4 sm:$0xff]   ;;  %v21039_v15 = vld [vmem:[%s28767_s2 + $0x1cac] ss:$16 sps:$4 sm:$0xff]  }
 0x373   : > { %9525 = vmatpush1.bf16.msra.mxu0 %v20944_v16  ;;  %10427 = vmatpush1.bf16.msra.mxu1 %v20947_v17  ;;  %v21034_v16 = vld [vmem:[%s28767_s2 + $0x1ca0] ss:$16 sps:$4 sm:$0xff]   ;;  %v21037_v17 = vld [vmem:[%s28767_s2 + $0x1ca8] ss:$16 sps:$4 sm:$0xff]  }
 0x374   : > { %9526 = vmatprep.subr.bf16.mxu0 %v20952_v18  ;;  %10428 = vmatprep.subr.bf16.mxu1 %v20955_v19  ;;  %v21042_v18 = vld [vmem:[%s28767_s2 + $0x1cc4] ss:$16 sps:$4 sm:$0xff]   ;;  %v21045_v19 = vld [vmem:[%s28767_s2 + $0x1ccc] ss:$16 sps:$4 sm:$0xff]  }
 0x377   : > { %9527 = vmatpush1.bf16.msra.mxu0 %v20950_v20  ;;  %10429 = vmatpush1.bf16.msra.mxu1 %v20953_v21  ;;  %v21040_v20 = vld [vmem:[%s28767_s2 + $0x1cc0] ss:$16 sps:$4 sm:$0xff]   ;;  %v21043_v21 = vld [vmem:[%s28767_s2 + $0x1cc8] ss:$16 sps:$4 sm:$0xff]  }
 0x378   : > { %9528 = vmatprep.subr.bf16.mxu0 %v20958_v22  ;;  %10430 = vmatprep.subr.bf16.mxu1 %v20961_v23  ;;  %v21048_v22 = vld [vmem:[%s28767_s2 + $0x1ce4] ss:$16 sps:$4 sm:$0xff]   ;;  %v21051_v23 = vld [vmem:[%s28767_s2 + $0x1cec] ss:$16 sps:$4 sm:$0xff]  }
 0x37b   : > { %9529 = vmatpush1.bf16.msra.mxu0 %v20956_v24  ;;  %10431 = vmatpush1.bf16.msra.mxu1 %v20959_v25  ;;  %v21046_v24 = vld [vmem:[%s28767_s2 + $0x1ce0] ss:$16 sps:$4 sm:$0xff]   ;;  %v21049_v25 = vld [vmem:[%s28767_s2 + $0x1ce8] ss:$16 sps:$4 sm:$0xff]  }
 0x37c   : > { %9530 = vmatprep.subr.bf16.mxu0 %v20964_v26  ;;  %10432 = vmatprep.subr.bf16.mxu1 %v20967_v27  ;;  %v21054_v26 = vld [vmem:[%s28767_s2 + $0x1d04] ss:$16 sps:$4 sm:$0xff]   ;;  %v21057_v27 = vld [vmem:[%s28767_s2 + $0x1d0c] ss:$16 sps:$4 sm:$0xff]  }
 0x37f   : > { %9531 = vmatpush1.bf16.msra.mxu0 %v20962_v28  ;;  %10433 = vmatpush1.bf16.msra.mxu1 %v20965_v29  ;;  %v21052_v28 = vld [vmem:[%s28767_s2 + $0x1d00] ss:$16 sps:$4 sm:$0xff]   ;;  %v21055_v29 = vld [vmem:[%s28767_s2 + $0x1d08] ss:$16 sps:$4 sm:$0xff]  }
 0x380   : > { %9532 = vmatprep.subr.bf16.mxu0 %v20970_v30  ;;  %10434 = vmatprep.subr.bf16.mxu1 %v20973_v31  ;;  %v21060_v30 = vld [vmem:[%s28767_s2 + $0x1d24] ss:$16 sps:$4 sm:$0xff]   ;;  %v21063_v31 = vld [vmem:[%s28767_s2 + $0x1d2c] ss:$16 sps:$4 sm:$0xff]  }
 0x383   : > { %9533 = vmatpush1.bf16.msra.mxu0 %v20968_v32  ;;  %10435 = vmatpush1.bf16.msra.mxu1 %v20971_v33  ;;  %v21058_v32 = vld [vmem:[%s28767_s2 + $0x1d20] ss:$16 sps:$4 sm:$0xff]   ;;  %v21061_v33 = vld [vmem:[%s28767_s2 + $0x1d28] ss:$16 sps:$4 sm:$0xff]  }
 0x384   : > { %9534 = vmatprep.subr.bf16.mxu0 %v20976_v34  ;;  %10436 = vmatprep.subr.bf16.mxu1 %v20979_v35  ;;  %v21066_v34 = vld [vmem:[%s28767_s2 + $0x1d44] ss:$16 sps:$4 sm:$0xff]   ;;  %v21069_v35 = vld [vmem:[%s28767_s2 + $0x1d4c] ss:$16 sps:$4 sm:$0xff]  }
 0x387   : > { %9535 = vmatpush1.bf16.msra.mxu0 %v20974_v36  ;;  %10437 = vmatpush1.bf16.msra.mxu1 %v20977_v37  ;;  %v21064_v36 = vld [vmem:[%s28767_s2 + $0x1d40] ss:$16 sps:$4 sm:$0xff]   ;;  %v21067_v37 = vld [vmem:[%s28767_s2 + $0x1d48] ss:$16 sps:$4 sm:$0xff]  }
 0x388   : > { %9536 = vmatprep.subr.bf16.mxu0 %v20982_v38  ;;  %10438 = vmatprep.subr.bf16.mxu1 %v20985_v39  ;;  %v21072_v38 = vld [vmem:[%s28767_s2 + $0x1d64] ss:$16 sps:$4 sm:$0xff]   ;;  %v21075_v39 = vld [vmem:[%s28767_s2 + $0x1d6c] ss:$16 sps:$4 sm:$0xff]  }
 0x38b   : > { %9537 = vmatpush1.bf16.msra.mxu0 %v20980_v40  ;;  %10439 = vmatpush1.bf16.msra.mxu1 %v20983_v41  ;;  %v21070_v40 = vld [vmem:[%s28767_s2 + $0x1d60] ss:$16 sps:$4 sm:$0xff]   ;;  %v21073_v41 = vld [vmem:[%s28767_s2 + $0x1d68] ss:$16 sps:$4 sm:$0xff]  }
 0x38c   : > { %9538 = vmatprep.subr.bf16.mxu0 %v20988_v42  ;;  %10440 = vmatprep.subr.bf16.mxu1 %v20991_v43  ;;  %v21078_v42 = vld [vmem:[%s28767_s2 + $0x1d84] ss:$16 sps:$4 sm:$0xff]   ;;  %v21081_v43 = vld [vmem:[%s28767_s2 + $0x1d8c] ss:$16 sps:$4 sm:$0xff]  }
 0x38f   : > { %9539 = vmatpush1.bf16.msra.mxu0 %v20986_v44  ;;  %10441 = vmatpush1.bf16.msra.mxu1 %v20989_v45  ;;  %v21076_v44 = vld [vmem:[%s28767_s2 + $0x1d80] ss:$16 sps:$4 sm:$0xff]   ;;  %v21079_v45 = vld [vmem:[%s28767_s2 + $0x1d88] ss:$16 sps:$4 sm:$0xff]  }
 0x390   : > { %9540 = vmatprep.subr.bf16.mxu0 %v20994_v46  ;;  %10442 = vmatprep.subr.bf16.mxu1 %v20997_v47  ;;  %v21084_v46 = vld [vmem:[%s28767_s2 + $0x1da4] ss:$16 sps:$4 sm:$0xff]   ;;  %v21087_v47 = vld [vmem:[%s28767_s2 + $0x1dac] ss:$16 sps:$4 sm:$0xff]  }
 0x393   : > { %9541 = vmatpush1.bf16.msra.mxu0 %v20992_v48  ;;  %10443 = vmatpush1.bf16.msra.mxu1 %v20995_v49  ;;  %v21082_v48 = vld [vmem:[%s28767_s2 + $0x1da0] ss:$16 sps:$4 sm:$0xff]   ;;  %v21085_v49 = vld [vmem:[%s28767_s2 + $0x1da8] ss:$16 sps:$4 sm:$0xff]  }
 0x394   : > { %9542 = vmatprep.subr.bf16.mxu0 %v21000_v50  ;;  %10444 = vmatprep.subr.bf16.mxu1 %v21003_v51  ;;  %v21090_v50 = vld [vmem:[%s28767_s2 + $0x1dc4] ss:$16 sps:$4 sm:$0xff]   ;;  %v21093_v51 = vld [vmem:[%s28767_s2 + $0x1dcc] ss:$16 sps:$4 sm:$0xff]  }
 0x397   : > { %9543 = vmatpush1.bf16.msra.mxu0 %v20998_v52  ;;  %10445 = vmatpush1.bf16.msra.mxu1 %v21001_v53  ;;  %v21088_v52 = vld [vmem:[%s28767_s2 + $0x1dc0] ss:$16 sps:$4 sm:$0xff]   ;;  %v21091_v53 = vld [vmem:[%s28767_s2 + $0x1dc8] ss:$16 sps:$4 sm:$0xff]  }
 0x398   : > { %9553 = vmatprep.subr.bf16.mxu0 %v21006_v55  ;;  %10455 = vmatprep.subr.bf16.mxu1 %v21009_v56  ;;  %v21099_v55 = vld [vmem:[%s28767_s2 + $0x1dec] ss:$16 sps:$4 sm:$0xff]   ;;  %v21094_v56 = vld [vmem:[%s28767_s2 + $0x1de0] ss:$16 sps:$4 sm:$0xff]  }
 0x39a   : > { %9545 = vmatmul.mubr.bf16.vlgmr.msra.gmra.mrb[0].mxu0 %v491_v57  ;;  %10447 = vmatmul.mubr.bf16.vlgmr.msra.gmra.mrb[0].mxu1 %v491_v57  ;;  %v21097_v57 = vld [vmem:[%s28767_s2 + $0x1de8] ss:$16 sps:$4 sm:$0xff]  }
 0x39b   : > { %9554 = vmatpush1.bf16.msra.mxu0 %v21004_v59  ;;  %10456 = vmatpush1.bf16.msra.mxu1 %v21007_v60  ;;  %v21102_v59 = vld [vmem:[%s28767_s2 + $0x1e04] ss:$16 sps:$4 sm:$0xff]   ;;  %v21105_v60 = vld [vmem:[%s28767_s2 + $0x1e0c] ss:$16 sps:$4 sm:$0xff]  }
 0x39c   : > { %9555 = vmatprep.subr.bf16.mxu0 %v21012_v61  ;;  %10457 = vmatprep.subr.bf16.mxu1 %v21015_v62  ;;  %v493_v61 = vpack.c.bf16 %v449_v58, %v449_v58  ;;  %v452_v62 = vld [vmem:[%s28768_s0 + $0xf8] sm:$0xff]  ;;  %v21192_v58 = vld [vmem:[%s28767_s2 + $0x1fe4] ss:$16 sps:$4 sm:$0xff]  }
 0x39d   : > { %9585 = vmatprep.mubr.bf16.mxu0 %v494_v63  ;;  %10487 = vmatprep.mubr.bf16.mxu1 %v494_v63  ;;  %v21100_v63 = vld [vmem:[%s28767_s2 + $0x1e00] ss:$16 sps:$4 sm:$0xff]  }
 0x39f   : > { %9556 = vmatpush1.bf16.msra.mxu0 %v21010_v0  ;;  %10458 = vmatpush1.bf16.msra.mxu1 %v21013_v1  ;;  %v21103_v0 = vld [vmem:[%s28767_s2 + $0x1e08] ss:$16 sps:$4 sm:$0xff]   ;;  %v21108_v1 = vld [vmem:[%s28767_s2 + $0x1e24] ss:$16 sps:$4 sm:$0xff]  }
 0x3a0   : > { %9557 = vmatprep.subr.bf16.mxu0 %v21018_v2  ;;  %10459 = vmatprep.subr.bf16.mxu1 %v21021_v3  ;;  %v21111_v2 = vld [vmem:[%s28767_s2 + $0x1e2c] ss:$16 sps:$4 sm:$0xff]   ;;  %v496_v3 = vpack.c.bf16 %v452_v62, %v452_v62  ;;  %v451_v62 = vld [vmem:[%s28768_s0 + $0xf0] sm:$0xff] }
 0x3a3   : > { %9558 = vmatpush1.bf16.msra.mxu0 %v21016_v4  ;;  %10460 = vmatpush1.bf16.msra.mxu1 %v21019_v5  ;;  %v21106_v4 = vld [vmem:[%s28767_s2 + $0x1e20] ss:$16 sps:$4 sm:$0xff]   ;;  %v21109_v5 = vld [vmem:[%s28767_s2 + $0x1e28] ss:$16 sps:$4 sm:$0xff]  }
 0x3a4   : > { %9559 = vmatprep.subr.bf16.mxu0 %v21024_v6  ;;  %10461 = vmatprep.subr.bf16.mxu1 %v21027_v7  ;;  %v21114_v6 = vld [vmem:[%s28767_s2 + $0x1e44] ss:$16 sps:$4 sm:$0xff]   ;;  %v21117_v7 = vld [vmem:[%s28767_s2 + $0x1e4c] ss:$16 sps:$4 sm:$0xff]  }
 0x3a7   : > { %9560 = vmatpush1.bf16.msra.mxu0 %v21022_v8  ;;  %10462 = vmatpush1.bf16.msra.mxu1 %v21025_v9  ;;  %v21112_v8 = vld [vmem:[%s28767_s2 + $0x1e40] ss:$16 sps:$4 sm:$0xff]   ;;  %v21115_v9 = vld [vmem:[%s28767_s2 + $0x1e48] ss:$16 sps:$4 sm:$0xff]  }
 0x3a8   : > { %9561 = vmatprep.subr.bf16.mxu0 %v21030_v10  ;;  %10463 = vmatprep.subr.bf16.mxu1 %v21033_v11  ;;  %v21120_v10 = vld [vmem:[%s28767_s2 + $0x1e64] ss:$16 sps:$4 sm:$0xff]   ;;  %v21123_v11 = vld [vmem:[%s28767_s2 + $0x1e6c] ss:$16 sps:$4 sm:$0xff]  }
 0x3ab   : > { %9562 = vmatpush1.bf16.msra.mxu0 %v21028_v12  ;;  %10464 = vmatpush1.bf16.msra.mxu1 %v21031_v13  ;;  %v21118_v12 = vld [vmem:[%s28767_s2 + $0x1e60] ss:$16 sps:$4 sm:$0xff]   ;;  %v21121_v13 = vld [vmem:[%s28767_s2 + $0x1e68] ss:$16 sps:$4 sm:$0xff]  }
 0x3ac   : > { %9563 = vmatprep.subr.bf16.mxu0 %v21036_v14  ;;  %10465 = vmatprep.subr.bf16.mxu1 %v21039_v15  ;;  %v21126_v14 = vld [vmem:[%s28767_s2 + $0x1e84] ss:$16 sps:$4 sm:$0xff]   ;;  %v21129_v15 = vld [vmem:[%s28767_s2 + $0x1e8c] ss:$16 sps:$4 sm:$0xff]  }
 0x3af   : > { %9564 = vmatpush1.bf16.msra.mxu0 %v21034_v16  ;;  %10466 = vmatpush1.bf16.msra.mxu1 %v21037_v17  ;;  %v21124_v16 = vld [vmem:[%s28767_s2 + $0x1e80] ss:$16 sps:$4 sm:$0xff]   ;;  %v21127_v17 = vld [vmem:[%s28767_s2 + $0x1e88] ss:$16 sps:$4 sm:$0xff]  }
 0x3b0   : > { %9565 = vmatprep.subr.bf16.mxu0 %v21042_v18  ;;  %10467 = vmatprep.subr.bf16.mxu1 %v21045_v19  ;;  %v21132_v18 = vld [vmem:[%s28767_s2 + $0x1ea4] ss:$16 sps:$4 sm:$0xff]   ;;  %v21135_v19 = vld [vmem:[%s28767_s2 + $0x1eac] ss:$16 sps:$4 sm:$0xff]  }
 0x3b3   : > { %9566 = vmatpush1.bf16.msra.mxu0 %v21040_v20  ;;  %10468 = vmatpush1.bf16.msra.mxu1 %v21043_v21  ;;  %v21130_v20 = vld [vmem:[%s28767_s2 + $0x1ea0] ss:$16 sps:$4 sm:$0xff]   ;;  %v21133_v21 = vld [vmem:[%s28767_s2 + $0x1ea8] ss:$16 sps:$4 sm:$0xff]  }
 0x3b4   : > { %9567 = vmatprep.subr.bf16.mxu0 %v21048_v22  ;;  %10469 = vmatprep.subr.bf16.mxu1 %v21051_v23  ;;  %v21138_v22 = vld [vmem:[%s28767_s2 + $0x1ec4] ss:$16 sps:$4 sm:$0xff]   ;;  %v21141_v23 = vld [vmem:[%s28767_s2 + $0x1ecc] ss:$16 sps:$4 sm:$0xff]  }
 0x3b7   : > { %9568 = vmatpush1.bf16.msra.mxu0 %v21046_v24  ;;  %10470 = vmatpush1.bf16.msra.mxu1 %v21049_v25  ;;  %v21136_v24 = vld [vmem:[%s28767_s2 + $0x1ec0] ss:$16 sps:$4 sm:$0xff]   ;;  %v21139_v25 = vld [vmem:[%s28767_s2 + $0x1ec8] ss:$16 sps:$4 sm:$0xff]  }
 0x3b8   : > { %9569 = vmatprep.subr.bf16.mxu0 %v21054_v26  ;;  %10471 = vmatprep.subr.bf16.mxu1 %v21057_v27  ;;  %v21144_v26 = vld [vmem:[%s28767_s2 + $0x1ee4] ss:$16 sps:$4 sm:$0xff]   ;;  %v21147_v27 = vld [vmem:[%s28767_s2 + $0x1eec] ss:$16 sps:$4 sm:$0xff]  }
 0x3bb   : > { %9570 = vmatpush1.bf16.msra.mxu0 %v21052_v28  ;;  %10472 = vmatpush1.bf16.msra.mxu1 %v21055_v29  ;;  %v21142_v28 = vld [vmem:[%s28767_s2 + $0x1ee0] ss:$16 sps:$4 sm:$0xff]   ;;  %v21145_v29 = vld [vmem:[%s28767_s2 + $0x1ee8] ss:$16 sps:$4 sm:$0xff]  }
 0x3bc   : > { %9571 = vmatprep.subr.bf16.mxu0 %v21060_v30  ;;  %10473 = vmatprep.subr.bf16.mxu1 %v21063_v31  ;;  %v21150_v30 = vld [vmem:[%s28767_s2 + $0x1f04] ss:$16 sps:$4 sm:$0xff]   ;;  %v21153_v31 = vld [vmem:[%s28767_s2 + $0x1f0c] ss:$16 sps:$4 sm:$0xff]  }
 0x3bf   : > { %9572 = vmatpush1.bf16.msra.mxu0 %v21058_v32  ;;  %10474 = vmatpush1.bf16.msra.mxu1 %v21061_v33  ;;  %v21148_v32 = vld [vmem:[%s28767_s2 + $0x1f00] ss:$16 sps:$4 sm:$0xff]   ;;  %v21151_v33 = vld [vmem:[%s28767_s2 + $0x1f08] ss:$16 sps:$4 sm:$0xff]  }
 0x3c0   : > { %9573 = vmatprep.subr.bf16.mxu0 %v21066_v34  ;;  %10475 = vmatprep.subr.bf16.mxu1 %v21069_v35  ;;  %v21156_v34 = vld [vmem:[%s28767_s2 + $0x1f24] ss:$16 sps:$4 sm:$0xff]   ;;  %v21159_v35 = vld [vmem:[%s28767_s2 + $0x1f2c] ss:$16 sps:$4 sm:$0xff]  }
 0x3c3   : > { %9574 = vmatpush1.bf16.msra.mxu0 %v21064_v36  ;;  %10476 = vmatpush1.bf16.msra.mxu1 %v21067_v37  ;;  %v21154_v36 = vld [vmem:[%s28767_s2 + $0x1f20] ss:$16 sps:$4 sm:$0xff]   ;;  %v21157_v37 = vld [vmem:[%s28767_s2 + $0x1f28] ss:$16 sps:$4 sm:$0xff]  }
 0x3c4   : > { %9575 = vmatprep.subr.bf16.mxu0 %v21072_v38  ;;  %10477 = vmatprep.subr.bf16.mxu1 %v21075_v39  ;;  %v21162_v38 = vld [vmem:[%s28767_s2 + $0x1f44] ss:$16 sps:$4 sm:$0xff]   ;;  %v21165_v39 = vld [vmem:[%s28767_s2 + $0x1f4c] ss:$16 sps:$4 sm:$0xff]  }
 0x3c7   : > { %9576 = vmatpush1.bf16.msra.mxu0 %v21070_v40  ;;  %10478 = vmatpush1.bf16.msra.mxu1 %v21073_v41  ;;  %v21160_v40 = vld [vmem:[%s28767_s2 + $0x1f40] ss:$16 sps:$4 sm:$0xff]   ;;  %v21163_v41 = vld [vmem:[%s28767_s2 + $0x1f48] ss:$16 sps:$4 sm:$0xff]  }
 0x3c8   : > { %9577 = vmatprep.subr.bf16.mxu0 %v21078_v42  ;;  %10479 = vmatprep.subr.bf16.mxu1 %v21081_v43  ;;  %v21168_v42 = vld [vmem:[%s28767_s2 + $0x1f64] ss:$16 sps:$4 sm:$0xff]   ;;  %v21171_v43 = vld [vmem:[%s28767_s2 + $0x1f6c] ss:$16 sps:$4 sm:$0xff]  }
 0x3cb   : > { %9578 = vmatpush1.bf16.msra.mxu0 %v21076_v44  ;;  %10480 = vmatpush1.bf16.msra.mxu1 %v21079_v45  ;;  %v21166_v44 = vld [vmem:[%s28767_s2 + $0x1f60] ss:$16 sps:$4 sm:$0xff]   ;;  %v21169_v45 = vld [vmem:[%s28767_s2 + $0x1f68] ss:$16 sps:$4 sm:$0xff]  }
 0x3cc   : > { %9579 = vmatprep.subr.bf16.mxu0 %v21084_v46  ;;  %10481 = vmatprep.subr.bf16.mxu1 %v21087_v47  ;;  %v21174_v46 = vld [vmem:[%s28767_s2 + $0x1f84] ss:$16 sps:$4 sm:$0xff]   ;;  %v21177_v47 = vld [vmem:[%s28767_s2 + $0x1f8c] ss:$16 sps:$4 sm:$0xff]  }
 0x3cf   : > { %9580 = vmatpush1.bf16.msra.mxu0 %v21082_v48  ;;  %10482 = vmatpush1.bf16.msra.mxu1 %v21085_v49  ;;  %v21172_v48 = vld [vmem:[%s28767_s2 + $0x1f80] ss:$16 sps:$4 sm:$0xff]   ;;  %v21175_v49 = vld [vmem:[%s28767_s2 + $0x1f88] ss:$16 sps:$4 sm:$0xff]  }
 0x3d0   : > { %9581 = vmatprep.subr.bf16.mxu0 %v21090_v50  ;;  %10483 = vmatprep.subr.bf16.mxu1 %v21093_v51  ;;  %v21180_v50 = vld [vmem:[%s28767_s2 + $0x1fa4] ss:$16 sps:$4 sm:$0xff]   ;;  %v21183_v51 = vld [vmem:[%s28767_s2 + $0x1fac] ss:$16 sps:$4 sm:$0xff]  }
 0x3d3   : > { %9582 = vmatpush1.bf16.msra.mxu0 %v21088_v52  ;;  %10484 = vmatpush1.bf16.msra.mxu1 %v21091_v53  ;;  %v21178_v52 = vld [vmem:[%s28767_s2 + $0x1fa0] ss:$16 sps:$4 sm:$0xff]   ;;  %v21181_v53 = vld [vmem:[%s28767_s2 + $0x1fa8] ss:$16 sps:$4 sm:$0xff]  }
 0x3d4   : > { %9583 = vmatprep.subr.bf16.mxu0 %v21096_v54  ;;  %10485 = vmatprep.subr.bf16.mxu1 %v21099_v55  ;;  %v21186_v54 = vld [vmem:[%s28767_s2 + $0x1fc4] ss:$16 sps:$4 sm:$0xff]   ;;  %v21189_v55 = vld [vmem:[%s28767_s2 + $0x1fcc] ss:$16 sps:$4 sm:$0xff]  }
 0x3d7   : > { %9584 = vmatpush1.bf16.msra.mxu0 %v21094_v56  ;;  %10486 = vmatpush1.bf16.msra.mxu1 %v21097_v57  ;;  %v21184_v56 = vld [vmem:[%s28767_s2 + $0x1fc0] ss:$16 sps:$4 sm:$0xff]   ;;  %v21187_v57 = vld [vmem:[%s28767_s2 + $0x1fc8] ss:$16 sps:$4 sm:$0xff]  }
 0x3d8   : > { %9594 = vmatprep.subr.bf16.mxu0 %v21102_v59  ;;  %10496 = vmatprep.subr.bf16.mxu1 %v21105_v60  ;;  %v21195_v59 = vld [vmem:[%s28767_s2 + $0x1fec] ss:$16 sps:$4 sm:$0xff]   ;;  %v21190_v60 = vld [vmem:[%s28767_s2 + $0x1fe0] ss:$16 sps:$4 sm:$0xff]  }
 0x3da   : > { %9586 = vmatmul.mubr.bf16.vlgmr.msra.gmra.mrb[0].mxu0 %v493_v61  ;;  %10488 = vmatmul.mubr.bf16.vlgmr.msra.gmra.mrb[0].mxu1 %v493_v61  ;;  %v21193_v61 = vld [vmem:[%s28767_s2 + $0x1fe8] ss:$16 sps:$4 sm:$0xff]  }
 0x3db   : > { %9595 = vmatpush1.bf16.msra.mxu0 %v21100_v63  ;;  %10497 = vmatpush1.bf16.msra.mxu1 %v21103_v0  ;;  %v21198_v63 = vld [vmem:[%s28767_s2 + $0x2004] ss:$16 sps:$4 sm:$0xff]   ;;  %v21201_v0 = vld [vmem:[%s28767_s2 + $0x200c] ss:$16 sps:$4 sm:$0xff]  }
 0x3dc   : > { %9596 = vmatprep.subr.bf16.mxu0 %v21108_v1  ;;  %10498 = vmatprep.subr.bf16.mxu1 %v21111_v2  ;;  %v495_v1 = vpack.c.bf16 %v451_v62, %v451_v62  ;;  %v454_v2 = vld [vmem:[%s28768_s0 + $0x108] sm:$0xff]  ;;  %v21288_v62 = vld [vmem:[%s28767_s2 + $0x21e4] ss:$16 sps:$4 sm:$0xff]  }
 0x3dd   : > { %9626 = vmatprep.mubr.bf16.mxu0 %v496_v3  ;;  %10528 = vmatprep.mubr.bf16.mxu1 %v496_v3  ;;  %v21196_v3 = vld [vmem:[%s28767_s2 + $0x2000] ss:$16 sps:$4 sm:$0xff]  }
 0x3df   : > { %9597 = vmatpush1.bf16.msra.mxu0 %v21106_v4  ;;  %10499 = vmatpush1.bf16.msra.mxu1 %v21109_v5  ;;  %v21199_v4 = vld [vmem:[%s28767_s2 + $0x2008] ss:$16 sps:$4 sm:$0xff]   ;;  %v21204_v5 = vld [vmem:[%s28767_s2 + $0x2024] ss:$16 sps:$4 sm:$0xff]  }
 0x3e0   : > { %9598 = vmatprep.subr.bf16.mxu0 %v21114_v6  ;;  %10500 = vmatprep.subr.bf16.mxu1 %v21117_v7  ;;  %v21207_v6 = vld [vmem:[%s28767_s2 + $0x202c] ss:$16 sps:$4 sm:$0xff]   ;;  %v498_v7 = vpack.c.bf16 %v454_v2, %v454_v2  ;;  %v453_v2 = vld [vmem:[%s28768_s0 + $0x100] sm:$0xff] }
 0x3e3   : > { %9599 = vmatpush1.bf16.msra.mxu0 %v21112_v8  ;;  %10501 = vmatpush1.bf16.msra.mxu1 %v21115_v9  ;;  %v21202_v8 = vld [vmem:[%s28767_s2 + $0x2020] ss:$16 sps:$4 sm:$0xff]   ;;  %v21205_v9 = vld [vmem:[%s28767_s2 + $0x2028] ss:$16 sps:$4 sm:$0xff]  }
 0x3e4   : > { %9600 = vmatprep.subr.bf16.mxu0 %v21120_v10  ;;  %10502 = vmatprep.subr.bf16.mxu1 %v21123_v11  ;;  %v21210_v10 = vld [vmem:[%s28767_s2 + $0x2044] ss:$16 sps:$4 sm:$0xff]   ;;  %v21213_v11 = vld [vmem:[%s28767_s2 + $0x204c] ss:$16 sps:$4 sm:$0xff]  }
 0x3e7   : > { %9601 = vmatpush1.bf16.msra.mxu0 %v21118_v12  ;;  %10503 = vmatpush1.bf16.msra.mxu1 %v21121_v13  ;;  %v21208_v12 = vld [vmem:[%s28767_s2 + $0x2040] ss:$16 sps:$4 sm:$0xff]   ;;  %v21211_v13 = vld [vmem:[%s28767_s2 + $0x2048] ss:$16 sps:$4 sm:$0xff]  }
 0x3e8   : > { %9602 = vmatprep.subr.bf16.mxu0 %v21126_v14  ;;  %10504 = vmatprep.subr.bf16.mxu1 %v21129_v15  ;;  %v21216_v14 = vld [vmem:[%s28767_s2 + $0x2064] ss:$16 sps:$4 sm:$0xff]   ;;  %v21219_v15 = vld [vmem:[%s28767_s2 + $0x206c] ss:$16 sps:$4 sm:$0xff]  }
 0x3eb   : > { %9603 = vmatpush1.bf16.msra.mxu0 %v21124_v16  ;;  %10505 = vmatpush1.bf16.msra.mxu1 %v21127_v17  ;;  %v21214_v16 = vld [vmem:[%s28767_s2 + $0x2060] ss:$16 sps:$4 sm:$0xff]   ;;  %v21217_v17 = vld [vmem:[%s28767_s2 + $0x2068] ss:$16 sps:$4 sm:$0xff]  }
 0x3ec   : > { %9604 = vmatprep.subr.bf16.mxu0 %v21132_v18  ;;  %10506 = vmatprep.subr.bf16.mxu1 %v21135_v19  ;;  %v21222_v18 = vld [vmem:[%s28767_s2 + $0x2084] ss:$16 sps:$4 sm:$0xff]   ;;  %v21225_v19 = vld [vmem:[%s28767_s2 + $0x208c] ss:$16 sps:$4 sm:$0xff]  }
 0x3ef   : > { %9605 = vmatpush1.bf16.msra.mxu0 %v21130_v20  ;;  %10507 = vmatpush1.bf16.msra.mxu1 %v21133_v21  ;;  %v21220_v20 = vld [vmem:[%s28767_s2 + $0x2080] ss:$16 sps:$4 sm:$0xff]   ;;  %v21223_v21 = vld [vmem:[%s28767_s2 + $0x2088] ss:$16 sps:$4 sm:$0xff]  }
 0x3f0   : > { %9606 = vmatprep.subr.bf16.mxu0 %v21138_v22  ;;  %10508 = vmatprep.subr.bf16.mxu1 %v21141_v23  ;;  %v21228_v22 = vld [vmem:[%s28767_s2 + $0x20a4] ss:$16 sps:$4 sm:$0xff]   ;;  %v21231_v23 = vld [vmem:[%s28767_s2 + $0x20ac] ss:$16 sps:$4 sm:$0xff]  }
 0x3f3   : > { %9607 = vmatpush1.bf16.msra.mxu0 %v21136_v24  ;;  %10509 = vmatpush1.bf16.msra.mxu1 %v21139_v25  ;;  %v21226_v24 = vld [vmem:[%s28767_s2 + $0x20a0] ss:$16 sps:$4 sm:$0xff]   ;;  %v21229_v25 = vld [vmem:[%s28767_s2 + $0x20a8] ss:$16 sps:$4 sm:$0xff]  }
 0x3f4   : > { %9608 = vmatprep.subr.bf16.mxu0 %v21144_v26  ;;  %10510 = vmatprep.subr.bf16.mxu1 %v21147_v27  ;;  %v21234_v26 = vld [vmem:[%s28767_s2 + $0x20c4] ss:$16 sps:$4 sm:$0xff]   ;;  %v21237_v27 = vld [vmem:[%s28767_s2 + $0x20cc] ss:$16 sps:$4 sm:$0xff]  }
 0x3f7   : > { %9609 = vmatpush1.bf16.msra.mxu0 %v21142_v28  ;;  %10511 = vmatpush1.bf16.msra.mxu1 %v21145_v29  ;;  %v21232_v28 = vld [vmem:[%s28767_s2 + $0x20c0] ss:$16 sps:$4 sm:$0xff]   ;;  %v21235_v29 = vld [vmem:[%s28767_s2 + $0x20c8] ss:$16 sps:$4 sm:$0xff]  }
 0x3f8   : > { %9610 = vmatprep.subr.bf16.mxu0 %v21150_v30  ;;  %10512 = vmatprep.subr.bf16.mxu1 %v21153_v31  ;;  %v21240_v30 = vld [vmem:[%s28767_s2 + $0x20e4] ss:$16 sps:$4 sm:$0xff]   ;;  %v21243_v31 = vld [vmem:[%s28767_s2 + $0x20ec] ss:$16 sps:$4 sm:$0xff]  }
 0x3fb   : > { %9611 = vmatpush1.bf16.msra.mxu0 %v21148_v32  ;;  %10513 = vmatpush1.bf16.msra.mxu1 %v21151_v33  ;;  %v21238_v32 = vld [vmem:[%s28767_s2 + $0x20e0] ss:$16 sps:$4 sm:$0xff]   ;;  %v21241_v33 = vld [vmem:[%s28767_s2 + $0x20e8] ss:$16 sps:$4 sm:$0xff]  }
 0x3fc   : > { %9612 = vmatprep.subr.bf16.mxu0 %v21156_v34  ;;  %10514 = vmatprep.subr.bf16.mxu1 %v21159_v35  ;;  %v21246_v34 = vld [vmem:[%s28767_s2 + $0x2104] ss:$16 sps:$4 sm:$0xff]   ;;  %v21249_v35 = vld [vmem:[%s28767_s2 + $0x210c] ss:$16 sps:$4 sm:$0xff]  }
 0x3ff   : > { %9613 = vmatpush1.bf16.msra.mxu0 %v21154_v36  ;;  %10515 = vmatpush1.bf16.msra.mxu1 %v21157_v37  ;;  %v21244_v36 = vld [vmem:[%s28767_s2 + $0x2100] ss:$16 sps:$4 sm:$0xff]   ;;  %v21247_v37 = vld [vmem:[%s28767_s2 + $0x2108] ss:$16 sps:$4 sm:$0xff]  }
 0x400   : > { %9614 = vmatprep.subr.bf16.mxu0 %v21162_v38  ;;  %10516 = vmatprep.subr.bf16.mxu1 %v21165_v39  ;;  %v21252_v38 = vld [vmem:[%s28767_s2 + $0x2124] ss:$16 sps:$4 sm:$0xff]   ;;  %v21255_v39 = vld [vmem:[%s28767_s2 + $0x212c] ss:$16 sps:$4 sm:$0xff]  }
 0x403   : > { %9615 = vmatpush1.bf16.msra.mxu0 %v21160_v40  ;;  %10517 = vmatpush1.bf16.msra.mxu1 %v21163_v41  ;;  %v21250_v40 = vld [vmem:[%s28767_s2 + $0x2120] ss:$16 sps:$4 sm:$0xff]   ;;  %v21253_v41 = vld [vmem:[%s28767_s2 + $0x2128] ss:$16 sps:$4 sm:$0xff]  }
 0x404   : > { %9616 = vmatprep.subr.bf16.mxu0 %v21168_v42  ;;  %10518 = vmatprep.subr.bf16.mxu1 %v21171_v43  ;;  %v21258_v42 = vld [vmem:[%s28767_s2 + $0x2144] ss:$16 sps:$4 sm:$0xff]   ;;  %v21261_v43 = vld [vmem:[%s28767_s2 + $0x214c] ss:$16 sps:$4 sm:$0xff]  }
 0x407   : > { %9617 = vmatpush1.bf16.msra.mxu0 %v21166_v44  ;;  %10519 = vmatpush1.bf16.msra.mxu1 %v21169_v45  ;;  %v21256_v44 = vld [vmem:[%s28767_s2 + $0x2140] ss:$16 sps:$4 sm:$0xff]   ;;  %v21259_v45 = vld [vmem:[%s28767_s2 + $0x2148] ss:$16 sps:$4 sm:$0xff]  }
 0x408   : > { %9618 = vmatprep.subr.bf16.mxu0 %v21174_v46  ;;  %10520 = vmatprep.subr.bf16.mxu1 %v21177_v47  ;;  %v21264_v46 = vld [vmem:[%s28767_s2 + $0x2164] ss:$16 sps:$4 sm:$0xff]   ;;  %v21267_v47 = vld [vmem:[%s28767_s2 + $0x216c] ss:$16 sps:$4 sm:$0xff]  }
 0x40b   : > { %9619 = vmatpush1.bf16.msra.mxu0 %v21172_v48  ;;  %10521 = vmatpush1.bf16.msra.mxu1 %v21175_v49  ;;  %v21262_v48 = vld [vmem:[%s28767_s2 + $0x2160] ss:$16 sps:$4 sm:$0xff]   ;;  %v21265_v49 = vld [vmem:[%s28767_s2 + $0x2168] ss:$16 sps:$4 sm:$0xff]  }
 0x40c   : > { %9620 = vmatprep.subr.bf16.mxu0 %v21180_v50  ;;  %10522 = vmatprep.subr.bf16.mxu1 %v21183_v51  ;;  %v21270_v50 = vld [vmem:[%s28767_s2 + $0x2184] ss:$16 sps:$4 sm:$0xff]   ;;  %v21273_v51 = vld [vmem:[%s28767_s2 + $0x218c] ss:$16 sps:$4 sm:$0xff]  }
 0x40f   : > { %9621 = vmatpush1.bf16.msra.mxu0 %v21178_v52  ;;  %10523 = vmatpush1.bf16.msra.mxu1 %v21181_v53  ;;  %v21268_v52 = vld [vmem:[%s28767_s2 + $0x2180] ss:$16 sps:$4 sm:$0xff]   ;;  %v21271_v53 = vld [vmem:[%s28767_s2 + $0x2188] ss:$16 sps:$4 sm:$0xff]  }
 0x410   : > { %9622 = vmatprep.subr.bf16.mxu0 %v21186_v54  ;;  %10524 = vmatprep.subr.bf16.mxu1 %v21189_v55  ;;  %v21276_v54 = vld [vmem:[%s28767_s2 + $0x21a4] ss:$16 sps:$4 sm:$0xff]   ;;  %v21279_v55 = vld [vmem:[%s28767_s2 + $0x21ac] ss:$16 sps:$4 sm:$0xff]  }
 0x413   : > { %9623 = vmatpush1.bf16.msra.mxu0 %v21184_v56  ;;  %10525 = vmatpush1.bf16.msra.mxu1 %v21187_v57  ;;  %v21274_v56 = vld [vmem:[%s28767_s2 + $0x21a0] ss:$16 sps:$4 sm:$0xff]   ;;  %v21277_v57 = vld [vmem:[%s28767_s2 + $0x21a8] ss:$16 sps:$4 sm:$0xff]  }
 0x414   : > { %9624 = vmatprep.subr.bf16.mxu0 %v21192_v58  ;;  %10526 = vmatprep.subr.bf16.mxu1 %v21195_v59  ;;  %v21282_v58 = vld [vmem:[%s28767_s2 + $0x21c4] ss:$16 sps:$4 sm:$0xff]   ;;  %v21285_v59 = vld [vmem:[%s28767_s2 + $0x21cc] ss:$16 sps:$4 sm:$0xff]  }
 0x417   : > { %9625 = vmatpush1.bf16.msra.mxu0 %v21190_v60  ;;  %10527 = vmatpush1.bf16.msra.mxu1 %v21193_v61  ;;  %v21280_v60 = vld [vmem:[%s28767_s2 + $0x21c0] ss:$16 sps:$4 sm:$0xff]   ;;  %v21283_v61 = vld [vmem:[%s28767_s2 + $0x21c8] ss:$16 sps:$4 sm:$0xff]  }
 0x418   : > { %9635 = vmatprep.subr.bf16.mxu0 %v21198_v63  ;;  %10537 = vmatprep.subr.bf16.mxu1 %v21201_v0  ;;  %v21291_v63 = vld [vmem:[%s28767_s2 + $0x21ec] ss:$16 sps:$4 sm:$0xff]   ;;  %v21286_v0 = vld [vmem:[%s28767_s2 + $0x21e0] ss:$16 sps:$4 sm:$0xff]  }
 0x41a   : > { %9627 = vmatmul.mubr.bf16.vlgmr.msra.gmra.mrb[0].mxu0 %v495_v1  ;;  %10529 = vmatmul.mubr.bf16.vlgmr.msra.gmra.mrb[0].mxu1 %v495_v1  ;;  %v21289_v1 = vld [vmem:[%s28767_s2 + $0x21e8] ss:$16 sps:$4 sm:$0xff]  }
 0x41b   : > { %9636 = vmatpush1.bf16.msra.mxu0 %v21196_v3  ;;  %10538 = vmatpush1.bf16.msra.mxu1 %v21199_v4  ;;  %v21294_v3 = vld [vmem:[%s28767_s2 + $0x2204] ss:$16 sps:$4 sm:$0xff]   ;;  %v21297_v4 = vld [vmem:[%s28767_s2 + $0x220c] ss:$16 sps:$4 sm:$0xff]  }
 0x41c   : > { %9637 = vmatprep.subr.bf16.mxu0 %v21204_v5  ;;  %10539 = vmatprep.subr.bf16.mxu1 %v21207_v6  ;;  %v497_v5 = vpack.c.bf16 %v453_v2, %v453_v2  ;;  %v456_v6 = vld [vmem:[%s28768_s0 + $0x118] sm:$0xff]  ;;  %v21384_v2 = vld [vmem:[%s28767_s2 + $0x23e4] ss:$16 sps:$4 sm:$0xff]  }
 0x41d   : > { %9667 = vmatprep.mubr.bf16.mxu0 %v498_v7  ;;  %10569 = vmatprep.mubr.bf16.mxu1 %v498_v7  ;;  %v21292_v7 = vld [vmem:[%s28767_s2 + $0x2200] ss:$16 sps:$4 sm:$0xff]  }
 0x41f   : > { %9638 = vmatpush1.bf16.msra.mxu0 %v21202_v8  ;;  %10540 = vmatpush1.bf16.msra.mxu1 %v21205_v9  ;;  %v21295_v8 = vld [vmem:[%s28767_s2 + $0x2208] ss:$16 sps:$4 sm:$0xff]   ;;  %v21300_v9 = vld [vmem:[%s28767_s2 + $0x2224] ss:$16 sps:$4 sm:$0xff]  }
 0x420   : > { %9639 = vmatprep.subr.bf16.mxu0 %v21210_v10  ;;  %10541 = vmatprep.subr.bf16.mxu1 %v21213_v11  ;;  %v21303_v10 = vld [vmem:[%s28767_s2 + $0x222c] ss:$16 sps:$4 sm:$0xff]   ;;  %v500_v11 = vpack.c.bf16 %v456_v6, %v456_v6  ;;  %v455_v6 = vld [vmem:[%s28768_s0 + $0x110] sm:$0xff] }
 0x423   : > { %9640 = vmatpush1.bf16.msra.mxu0 %v21208_v12  ;;  %10542 = vmatpush1.bf16.msra.mxu1 %v21211_v13  ;;  %v21298_v12 = vld [vmem:[%s28767_s2 + $0x2220] ss:$16 sps:$4 sm:$0xff]   ;;  %v21301_v13 = vld [vmem:[%s28767_s2 + $0x2228] ss:$16 sps:$4 sm:$0xff]  }
 0x424   : > { %9641 = vmatprep.subr.bf16.mxu0 %v21216_v14  ;;  %10543 = vmatprep.subr.bf16.mxu1 %v21219_v15  ;;  %v21306_v14 = vld [vmem:[%s28767_s2 + $0x2244] ss:$16 sps:$4 sm:$0xff]   ;;  %v21309_v15 = vld [vmem:[%s28767_s2 + $0x224c] ss:$16 sps:$4 sm:$0xff]  }
 0x427   : > { %9642 = vmatpush1.bf16.msra.mxu0 %v21214_v16  ;;  %10544 = vmatpush1.bf16.msra.mxu1 %v21217_v17  ;;  %v21304_v16 = vld [vmem:[%s28767_s2 + $0x2240] ss:$16 sps:$4 sm:$0xff]   ;;  %v21307_v17 = vld [vmem:[%s28767_s2 + $0x2248] ss:$16 sps:$4 sm:$0xff]  }
 0x428   : > { %9643 = vmatprep.subr.bf16.mxu0 %v21222_v18  ;;  %10545 = vmatprep.subr.bf16.mxu1 %v21225_v19  ;;  %v21312_v18 = vld [vmem:[%s28767_s2 + $0x2264] ss:$16 sps:$4 sm:$0xff]   ;;  %v21315_v19 = vld [vmem:[%s28767_s2 + $0x226c] ss:$16 sps:$4 sm:$0xff]  }
 0x42b   : > { %9644 = vmatpush1.bf16.msra.mxu0 %v21220_v20  ;;  %10546 = vmatpush1.bf16.msra.mxu1 %v21223_v21  ;;  %v21310_v20 = vld [vmem:[%s28767_s2 + $0x2260] ss:$16 sps:$4 sm:$0xff]   ;;  %v21313_v21 = vld [vmem:[%s28767_s2 + $0x2268] ss:$16 sps:$4 sm:$0xff]  }
 0x42c   : > { %9645 = vmatprep.subr.bf16.mxu0 %v21228_v22  ;;  %10547 = vmatprep.subr.bf16.mxu1 %v21231_v23  ;;  %v21318_v22 = vld [vmem:[%s28767_s2 + $0x2284] ss:$16 sps:$4 sm:$0xff]   ;;  %v21321_v23 = vld [vmem:[%s28767_s2 + $0x228c] ss:$16 sps:$4 sm:$0xff]  }
 0x42f   : > { %9646 = vmatpush1.bf16.msra.mxu0 %v21226_v24  ;;  %10548 = vmatpush1.bf16.msra.mxu1 %v21229_v25  ;;  %v21316_v24 = vld [vmem:[%s28767_s2 + $0x2280] ss:$16 sps:$4 sm:$0xff]   ;;  %v21319_v25 = vld [vmem:[%s28767_s2 + $0x2288] ss:$16 sps:$4 sm:$0xff]  }
 0x430   : > { %9647 = vmatprep.subr.bf16.mxu0 %v21234_v26  ;;  %10549 = vmatprep.subr.bf16.mxu1 %v21237_v27  ;;  %v21324_v26 = vld [vmem:[%s28767_s2 + $0x22a4] ss:$16 sps:$4 sm:$0xff]   ;;  %v21327_v27 = vld [vmem:[%s28767_s2 + $0x22ac] ss:$16 sps:$4 sm:$0xff]  }
 0x433   : > { %9648 = vmatpush1.bf16.msra.mxu0 %v21232_v28  ;;  %10550 = vmatpush1.bf16.msra.mxu1 %v21235_v29  ;;  %v21322_v28 = vld [vmem:[%s28767_s2 + $0x22a0] ss:$16 sps:$4 sm:$0xff]   ;;  %v21325_v29 = vld [vmem:[%s28767_s2 + $0x22a8] ss:$16 sps:$4 sm:$0xff]  }
 0x434   : > { %9649 = vmatprep.subr.bf16.mxu0 %v21240_v30  ;;  %10551 = vmatprep.subr.bf16.mxu1 %v21243_v31  ;;  %v21330_v30 = vld [vmem:[%s28767_s2 + $0x22c4] ss:$16 sps:$4 sm:$0xff]   ;;  %v21333_v31 = vld [vmem:[%s28767_s2 + $0x22cc] ss:$16 sps:$4 sm:$0xff]  }
 0x437   : > { %9650 = vmatpush1.bf16.msra.mxu0 %v21238_v32  ;;  %10552 = vmatpush1.bf16.msra.mxu1 %v21241_v33  ;;  %v21328_v32 = vld [vmem:[%s28767_s2 + $0x22c0] ss:$16 sps:$4 sm:$0xff]   ;;  %v21331_v33 = vld [vmem:[%s28767_s2 + $0x22c8] ss:$16 sps:$4 sm:$0xff]  }
 0x438   : > { %9651 = vmatprep.subr.bf16.mxu0 %v21246_v34  ;;  %10553 = vmatprep.subr.bf16.mxu1 %v21249_v35  ;;  %v21336_v34 = vld [vmem:[%s28767_s2 + $0x22e4] ss:$16 sps:$4 sm:$0xff]   ;;  %v21339_v35 = vld [vmem:[%s28767_s2 + $0x22ec] ss:$16 sps:$4 sm:$0xff]  }
 0x43b   : > { %9652 = vmatpush1.bf16.msra.mxu0 %v21244_v36  ;;  %10554 = vmatpush1.bf16.msra.mxu1 %v21247_v37  ;;  %v21334_v36 = vld [vmem:[%s28767_s2 + $0x22e0] ss:$16 sps:$4 sm:$0xff]   ;;  %v21337_v37 = vld [vmem:[%s28767_s2 + $0x22e8] ss:$16 sps:$4 sm:$0xff]  }
 0x43c   : > { %9653 = vmatprep.subr.bf16.mxu0 %v21252_v38  ;;  %10555 = vmatprep.subr.bf16.mxu1 %v21255_v39  ;;  %v21342_v38 = vld [vmem:[%s28767_s2 + $0x2304] ss:$16 sps:$4 sm:$0xff]   ;;  %v21345_v39 = vld [vmem:[%s28767_s2 + $0x230c] ss:$16 sps:$4 sm:$0xff]  }
 0x43f   : > { %9654 = vmatpush1.bf16.msra.mxu0 %v21250_v40  ;;  %10556 = vmatpush1.bf16.msra.mxu1 %v21253_v41  ;;  %v21340_v40 = vld [vmem:[%s28767_s2 + $0x2300] ss:$16 sps:$4 sm:$0xff]   ;;  %v21343_v41 = vld [vmem:[%s28767_s2 + $0x2308] ss:$16 sps:$4 sm:$0xff]  }
 0x440   : > { %9655 = vmatprep.subr.bf16.mxu0 %v21258_v42  ;;  %10557 = vmatprep.subr.bf16.mxu1 %v21261_v43  ;;  %v21348_v42 = vld [vmem:[%s28767_s2 + $0x2324] ss:$16 sps:$4 sm:$0xff]   ;;  %v21351_v43 = vld [vmem:[%s28767_s2 + $0x232c] ss:$16 sps:$4 sm:$0xff]  }
 0x443   : > { %9656 = vmatpush1.bf16.msra.mxu0 %v21256_v44  ;;  %10558 = vmatpush1.bf16.msra.mxu1 %v21259_v45  ;;  %v21346_v44 = vld [vmem:[%s28767_s2 + $0x2320] ss:$16 sps:$4 sm:$0xff]   ;;  %v21349_v45 = vld [vmem:[%s28767_s2 + $0x2328] ss:$16 sps:$4 sm:$0xff]  }
 0x444   : > { %9657 = vmatprep.subr.bf16.mxu0 %v21264_v46  ;;  %10559 = vmatprep.subr.bf16.mxu1 %v21267_v47  ;;  %v21354_v46 = vld [vmem:[%s28767_s2 + $0x2344] ss:$16 sps:$4 sm:$0xff]   ;;  %v21357_v47 = vld [vmem:[%s28767_s2 + $0x234c] ss:$16 sps:$4 sm:$0xff]  }
 0x447   : > { %9658 = vmatpush1.bf16.msra.mxu0 %v21262_v48  ;;  %10560 = vmatpush1.bf16.msra.mxu1 %v21265_v49  ;;  %v21352_v48 = vld [vmem:[%s28767_s2 + $0x2340] ss:$16 sps:$4 sm:$0xff]   ;;  %v21355_v49 = vld [vmem:[%s28767_s2 + $0x2348] ss:$16 sps:$4 sm:$0xff]  }
 0x448   : > { %9659 = vmatprep.subr.bf16.mxu0 %v21270_v50  ;;  %10561 = vmatprep.subr.bf16.mxu1 %v21273_v51  ;;  %v21360_v50 = vld [vmem:[%s28767_s2 + $0x2364] ss:$16 sps:$4 sm:$0xff]   ;;  %v21363_v51 = vld [vmem:[%s28767_s2 + $0x236c] ss:$16 sps:$4 sm:$0xff]  }
 0x44b   : > { %9660 = vmatpush1.bf16.msra.mxu0 %v21268_v52  ;;  %10562 = vmatpush1.bf16.msra.mxu1 %v21271_v53  ;;  %v21358_v52 = vld [vmem:[%s28767_s2 + $0x2360] ss:$16 sps:$4 sm:$0xff]   ;;  %v21361_v53 = vld [vmem:[%s28767_s2 + $0x2368] ss:$16 sps:$4 sm:$0xff]  }
 0x44c   : > { %9661 = vmatprep.subr.bf16.mxu0 %v21276_v54  ;;  %10563 = vmatprep.subr.bf16.mxu1 %v21279_v55  ;;  %v21366_v54 = vld [vmem:[%s28767_s2 + $0x2384] ss:$16 sps:$4 sm:$0xff]   ;;  %v21369_v55 = vld [vmem:[%s28767_s2 + $0x238c] ss:$16 sps:$4 sm:$0xff]  }
 0x44f   : > { %9662 = vmatpush1.bf16.msra.mxu0 %v21274_v56  ;;  %10564 = vmatpush1.bf16.msra.mxu1 %v21277_v57  ;;  %v21364_v56 = vld [vmem:[%s28767_s2 + $0x2380] ss:$16 sps:$4 sm:$0xff]   ;;  %v21367_v57 = vld [vmem:[%s28767_s2 + $0x2388] ss:$16 sps:$4 sm:$0xff]  }
 0x450   : > { %9663 = vmatprep.subr.bf16.mxu0 %v21282_v58  ;;  %10565 = vmatprep.subr.bf16.mxu1 %v21285_v59  ;;  %v21372_v58 = vld [vmem:[%s28767_s2 + $0x23a4] ss:$16 sps:$4 sm:$0xff]   ;;  %v21375_v59 = vld [vmem:[%s28767_s2 + $0x23ac] ss:$16 sps:$4 sm:$0xff]  }
 0x453   : > { %9664 = vmatpush1.bf16.msra.mxu0 %v21280_v60  ;;  %10566 = vmatpush1.bf16.msra.mxu1 %v21283_v61  ;;  %v21370_v60 = vld [vmem:[%s28767_s2 + $0x23a0] ss:$16 sps:$4 sm:$0xff]   ;;  %v21373_v61 = vld [vmem:[%s28767_s2 + $0x23a8] ss:$16 sps:$4 sm:$0xff]  }
 0x454   : > { %9665 = vmatprep.subr.bf16.mxu0 %v21288_v62  ;;  %10567 = vmatprep.subr.bf16.mxu1 %v21291_v63  ;;  %v21378_v62 = vld [vmem:[%s28767_s2 + $0x23c4] ss:$16 sps:$4 sm:$0xff]   ;;  %v21381_v63 = vld [vmem:[%s28767_s2 + $0x23cc] ss:$16 sps:$4 sm:$0xff]  }
 0x457   : > { %9666 = vmatpush1.bf16.msra.mxu0 %v21286_v0  ;;  %10568 = vmatpush1.bf16.msra.mxu1 %v21289_v1  ;;  %v21376_v0 = vld [vmem:[%s28767_s2 + $0x23c0] ss:$16 sps:$4 sm:$0xff]   ;;  %v21379_v1 = vld [vmem:[%s28767_s2 + $0x23c8] ss:$16 sps:$4 sm:$0xff]  }
 0x458   : > { %9676 = vmatprep.subr.bf16.mxu0 %v21294_v3  ;;  %10578 = vmatprep.subr.bf16.mxu1 %v21297_v4  ;;  %v21387_v3 = vld [vmem:[%s28767_s2 + $0x23ec] ss:$16 sps:$4 sm:$0xff]   ;;  %v21382_v4 = vld [vmem:[%s28767_s2 + $0x23e0] ss:$16 sps:$4 sm:$0xff]  }
 0x45a   : > { %9668 = vmatmul.mubr.bf16.vlgmr.msra.gmra.mrb[0].mxu0 %v497_v5  ;;  %10570 = vmatmul.mubr.bf16.vlgmr.msra.gmra.mrb[0].mxu1 %v497_v5  ;;  %v21385_v5 = vld [vmem:[%s28767_s2 + $0x23e8] ss:$16 sps:$4 sm:$0xff]  }
 0x45b   : > { %9677 = vmatpush1.bf16.msra.mxu0 %v21292_v7  ;;  %10579 = vmatpush1.bf16.msra.mxu1 %v21295_v8  ;;  %v21390_v7 = vld [vmem:[%s28767_s2 + $0x2404] ss:$16 sps:$4 sm:$0xff]   ;;  %v21393_v8 = vld [vmem:[%s28767_s2 + $0x240c] ss:$16 sps:$4 sm:$0xff]  }
 0x45c   : > { %9678 = vmatprep.subr.bf16.mxu0 %v21300_v9  ;;  %10580 = vmatprep.subr.bf16.mxu1 %v21303_v10  ;;  %v499_v9 = vpack.c.bf16 %v455_v6, %v455_v6  ;;  %v458_v10 = vld [vmem:[%s28768_s0 + $0x128] sm:$0xff]  ;;  %v21480_v6 = vld [vmem:[%s28767_s2 + $0x25e4] ss:$16 sps:$4 sm:$0xff]  }
 0x45d   : > { %9708 = vmatprep.mubr.bf16.mxu0 %v500_v11  ;;  %10610 = vmatprep.mubr.bf16.mxu1 %v500_v11  ;;  %v21388_v11 = vld [vmem:[%s28767_s2 + $0x2400] ss:$16 sps:$4 sm:$0xff]  }
 0x45f   : > { %9679 = vmatpush1.bf16.msra.mxu0 %v21298_v12  ;;  %10581 = vmatpush1.bf16.msra.mxu1 %v21301_v13  ;;  %v21391_v12 = vld [vmem:[%s28767_s2 + $0x2408] ss:$16 sps:$4 sm:$0xff]   ;;  %v21396_v13 = vld [vmem:[%s28767_s2 + $0x2424] ss:$16 sps:$4 sm:$0xff]  }
 0x460   : > { %9680 = vmatprep.subr.bf16.mxu0 %v21306_v14  ;;  %10582 = vmatprep.subr.bf16.mxu1 %v21309_v15  ;;  %v21399_v14 = vld [vmem:[%s28767_s2 + $0x242c] ss:$16 sps:$4 sm:$0xff]   ;;  %v502_v15 = vpack.c.bf16 %v458_v10, %v458_v10  ;;  %v457_v10 = vld [vmem:[%s28768_s0 + $0x120] sm:$0xff] }
 0x463   : > { %9681 = vmatpush1.bf16.msra.mxu0 %v21304_v16  ;;  %10583 = vmatpush1.bf16.msra.mxu1 %v21307_v17  ;;  %v21394_v16 = vld [vmem:[%s28767_s2 + $0x2420] ss:$16 sps:$4 sm:$0xff]   ;;  %v21397_v17 = vld [vmem:[%s28767_s2 + $0x2428] ss:$16 sps:$4 sm:$0xff]  }
 0x464   : > { %9682 = vmatprep.subr.bf16.mxu0 %v21312_v18  ;;  %10584 = vmatprep.subr.bf16.mxu1 %v21315_v19  ;;  %v21402_v18 = vld [vmem:[%s28767_s2 + $0x2444] ss:$16 sps:$4 sm:$0xff]   ;;  %v21405_v19 = vld [vmem:[%s28767_s2 + $0x244c] ss:$16 sps:$4 sm:$0xff]  }
 0x467   : > { %9683 = vmatpush1.bf16.msra.mxu0 %v21310_v20  ;;  %10585 = vmatpush1.bf16.msra.mxu1 %v21313_v21  ;;  %v21400_v20 = vld [vmem:[%s28767_s2 + $0x2440] ss:$16 sps:$4 sm:$0xff]   ;;  %v21403_v21 = vld [vmem:[%s28767_s2 + $0x2448] ss:$16 sps:$4 sm:$0xff]  }
 0x468   : > { %9684 = vmatprep.subr.bf16.mxu0 %v21318_v22  ;;  %10586 = vmatprep.subr.bf16.mxu1 %v21321_v23  ;;  %v21408_v22 = vld [vmem:[%s28767_s2 + $0x2464] ss:$16 sps:$4 sm:$0xff]   ;;  %v21411_v23 = vld [vmem:[%s28767_s2 + $0x246c] ss:$16 sps:$4 sm:$0xff]  }
 0x46b   : > { %9685 = vmatpush1.bf16.msra.mxu0 %v21316_v24  ;;  %10587 = vmatpush1.bf16.msra.mxu1 %v21319_v25  ;;  %v21406_v24 = vld [vmem:[%s28767_s2 + $0x2460] ss:$16 sps:$4 sm:$0xff]   ;;  %v21409_v25 = vld [vmem:[%s28767_s2 + $0x2468] ss:$16 sps:$4 sm:$0xff]  }
 0x46c   : > { %9686 = vmatprep.subr.bf16.mxu0 %v21324_v26  ;;  %10588 = vmatprep.subr.bf16.mxu1 %v21327_v27  ;;  %v21414_v26 = vld [vmem:[%s28767_s2 + $0x2484] ss:$16 sps:$4 sm:$0xff]   ;;  %v21417_v27 = vld [vmem:[%s28767_s2 + $0x248c] ss:$16 sps:$4 sm:$0xff]  }
 0x46f   : > { %9687 = vmatpush1.bf16.msra.mxu0 %v21322_v28  ;;  %10589 = vmatpush1.bf16.msra.mxu1 %v21325_v29  ;;  %v21412_v28 = vld [vmem:[%s28767_s2 + $0x2480] ss:$16 sps:$4 sm:$0xff]   ;;  %v21415_v29 = vld [vmem:[%s28767_s2 + $0x2488] ss:$16 sps:$4 sm:$0xff]  }
 0x470   : > { %9688 = vmatprep.subr.bf16.mxu0 %v21330_v30  ;;  %10590 = vmatprep.subr.bf16.mxu1 %v21333_v31  ;;  %v21420_v30 = vld [vmem:[%s28767_s2 + $0x24a4] ss:$16 sps:$4 sm:$0xff]   ;;  %v21423_v31 = vld [vmem:[%s28767_s2 + $0x24ac] ss:$16 sps:$4 sm:$0xff]  }
 0x473   : > { %9689 = vmatpush1.bf16.msra.mxu0 %v21328_v32  ;;  %10591 = vmatpush1.bf16.msra.mxu1 %v21331_v33  ;;  %v21418_v32 = vld [vmem:[%s28767_s2 + $0x24a0] ss:$16 sps:$4 sm:$0xff]   ;;  %v21421_v33 = vld [vmem:[%s28767_s2 + $0x24a8] ss:$16 sps:$4 sm:$0xff]  }
 0x474   : > { %9690 = vmatprep.subr.bf16.mxu0 %v21336_v34  ;;  %10592 = vmatprep.subr.bf16.mxu1 %v21339_v35  ;;  %v21426_v34 = vld [vmem:[%s28767_s2 + $0x24c4] ss:$16 sps:$4 sm:$0xff]   ;;  %v21429_v35 = vld [vmem:[%s28767_s2 + $0x24cc] ss:$16 sps:$4 sm:$0xff]  }
 0x477   : > { %9691 = vmatpush1.bf16.msra.mxu0 %v21334_v36  ;;  %10593 = vmatpush1.bf16.msra.mxu1 %v21337_v37  ;;  %v21424_v36 = vld [vmem:[%s28767_s2 + $0x24c0] ss:$16 sps:$4 sm:$0xff]   ;;  %v21427_v37 = vld [vmem:[%s28767_s2 + $0x24c8] ss:$16 sps:$4 sm:$0xff]  }
 0x478   : > { %9692 = vmatprep.subr.bf16.mxu0 %v21342_v38  ;;  %10594 = vmatprep.subr.bf16.mxu1 %v21345_v39  ;;  %v21432_v38 = vld [vmem:[%s28767_s2 + $0x24e4] ss:$16 sps:$4 sm:$0xff]   ;;  %v21435_v39 = vld [vmem:[%s28767_s2 + $0x24ec] ss:$16 sps:$4 sm:$0xff]  }
 0x47b   : > { %9693 = vmatpush1.bf16.msra.mxu0 %v21340_v40  ;;  %10595 = vmatpush1.bf16.msra.mxu1 %v21343_v41  ;;  %v21430_v40 = vld [vmem:[%s28767_s2 + $0x24e0] ss:$16 sps:$4 sm:$0xff]   ;;  %v21433_v41 = vld [vmem:[%s28767_s2 + $0x24e8] ss:$16 sps:$4 sm:$0xff]  }
 0x47c   : > { %9694 = vmatprep.subr.bf16.mxu0 %v21348_v42  ;;  %10596 = vmatprep.subr.bf16.mxu1 %v21351_v43  ;;  %v21438_v42 = vld [vmem:[%s28767_s2 + $0x2504] ss:$16 sps:$4 sm:$0xff]   ;;  %v21441_v43 = vld [vmem:[%s28767_s2 + $0x250c] ss:$16 sps:$4 sm:$0xff]  }
 0x47f   : > { %9695 = vmatpush1.bf16.msra.mxu0 %v21346_v44  ;;  %10597 = vmatpush1.bf16.msra.mxu1 %v21349_v45  ;;  %v21436_v44 = vld [vmem:[%s28767_s2 + $0x2500] ss:$16 sps:$4 sm:$0xff]   ;;  %v21439_v45 = vld [vmem:[%s28767_s2 + $0x2508] ss:$16 sps:$4 sm:$0xff]  }
 0x480   : > { %9696 = vmatprep.subr.bf16.mxu0 %v21354_v46  ;;  %10598 = vmatprep.subr.bf16.mxu1 %v21357_v47  ;;  %v21444_v46 = vld [vmem:[%s28767_s2 + $0x2524] ss:$16 sps:$4 sm:$0xff]   ;;  %v21447_v47 = vld [vmem:[%s28767_s2 + $0x252c] ss:$16 sps:$4 sm:$0xff]  }
 0x483   : > { %9697 = vmatpush1.bf16.msra.mxu0 %v21352_v48  ;;  %10599 = vmatpush1.bf16.msra.mxu1 %v21355_v49  ;;  %v21442_v48 = vld [vmem:[%s28767_s2 + $0x2520] ss:$16 sps:$4 sm:$0xff]   ;;  %v21445_v49 = vld [vmem:[%s28767_s2 + $0x2528] ss:$16 sps:$4 sm:$0xff]  }
 0x484   : > { %9698 = vmatprep.subr.bf16.mxu0 %v21360_v50  ;;  %10600 = vmatprep.subr.bf16.mxu1 %v21363_v51  ;;  %v21450_v50 = vld [vmem:[%s28767_s2 + $0x2544] ss:$16 sps:$4 sm:$0xff]   ;;  %v21453_v51 = vld [vmem:[%s28767_s2 + $0x254c] ss:$16 sps:$4 sm:$0xff]  }
 0x487   : > { %9699 = vmatpush1.bf16.msra.mxu0 %v21358_v52  ;;  %10601 = vmatpush1.bf16.msra.mxu1 %v21361_v53  ;;  %v21448_v52 = vld [vmem:[%s28767_s2 + $0x2540] ss:$16 sps:$4 sm:$0xff]   ;;  %v21451_v53 = vld [vmem:[%s28767_s2 + $0x2548] ss:$16 sps:$4 sm:$0xff]  }
 0x488   : > { %9700 = vmatprep.subr.bf16.mxu0 %v21366_v54  ;;  %10602 = vmatprep.subr.bf16.mxu1 %v21369_v55  ;;  %v21456_v54 = vld [vmem:[%s28767_s2 + $0x2564] ss:$16 sps:$4 sm:$0xff]   ;;  %v21459_v55 = vld [vmem:[%s28767_s2 + $0x256c] ss:$16 sps:$4 sm:$0xff]  }
 0x48b   : > { %9701 = vmatpush1.bf16.msra.mxu0 %v21364_v56  ;;  %10603 = vmatpush1.bf16.msra.mxu1 %v21367_v57  ;;  %v21454_v56 = vld [vmem:[%s28767_s2 + $0x2560] ss:$16 sps:$4 sm:$0xff]   ;;  %v21457_v57 = vld [vmem:[%s28767_s2 + $0x2568] ss:$16 sps:$4 sm:$0xff]  }
 0x48c   : > { %9702 = vmatprep.subr.bf16.mxu0 %v21372_v58  ;;  %10604 = vmatprep.subr.bf16.mxu1 %v21375_v59  ;;  %v21462_v58 = vld [vmem:[%s28767_s2 + $0x2584] ss:$16 sps:$4 sm:$0xff]   ;;  %v21465_v59 = vld [vmem:[%s28767_s2 + $0x258c] ss:$16 sps:$4 sm:$0xff]  }
 0x48f   : > { %9703 = vmatpush1.bf16.msra.mxu0 %v21370_v60  ;;  %10605 = vmatpush1.bf16.msra.mxu1 %v21373_v61  ;;  %v21460_v60 = vld [vmem:[%s28767_s2 + $0x2580] ss:$16 sps:$4 sm:$0xff]   ;;  %v21463_v61 = vld [vmem:[%s28767_s2 + $0x2588] ss:$16 sps:$4 sm:$0xff]  }
 0x490   : > { %9704 = vmatprep.subr.bf16.mxu0 %v21378_v62  ;;  %10606 = vmatprep.subr.bf16.mxu1 %v21381_v63  ;;  %v21468_v62 = vld [vmem:[%s28767_s2 + $0x25a4] ss:$16 sps:$4 sm:$0xff]   ;;  %v21471_v63 = vld [vmem:[%s28767_s2 + $0x25ac] ss:$16 sps:$4 sm:$0xff]  }
 0x493   : > { %9705 = vmatpush1.bf16.msra.mxu0 %v21376_v0  ;;  %10607 = vmatpush1.bf16.msra.mxu1 %v21379_v1  ;;  %v21466_v0 = vld [vmem:[%s28767_s2 + $0x25a0] ss:$16 sps:$4 sm:$0xff]   ;;  %v21469_v1 = vld [vmem:[%s28767_s2 + $0x25a8] ss:$16 sps:$4 sm:$0xff]  }
 0x494   : > { %9706 = vmatprep.subr.bf16.mxu0 %v21384_v2  ;;  %10608 = vmatprep.subr.bf16.mxu1 %v21387_v3  ;;  %v21474_v2 = vld [vmem:[%s28767_s2 + $0x25c4] ss:$16 sps:$4 sm:$0xff]   ;;  %v21477_v3 = vld [vmem:[%s28767_s2 + $0x25cc] ss:$16 sps:$4 sm:$0xff]  }
 0x497   : > { %9707 = vmatpush1.bf16.msra.mxu0 %v21382_v4  ;;  %10609 = vmatpush1.bf16.msra.mxu1 %v21385_v5  ;;  %v21472_v4 = vld [vmem:[%s28767_s2 + $0x25c0] ss:$16 sps:$4 sm:$0xff]   ;;  %v21475_v5 = vld [vmem:[%s28767_s2 + $0x25c8] ss:$16 sps:$4 sm:$0xff]  }
 0x498   : > { %9717 = vmatprep.subr.bf16.mxu0 %v21390_v7  ;;  %10619 = vmatprep.subr.bf16.mxu1 %v21393_v8  ;;  %v21483_v7 = vld [vmem:[%s28767_s2 + $0x25ec] ss:$16 sps:$4 sm:$0xff]   ;;  %v21478_v8 = vld [vmem:[%s28767_s2 + $0x25e0] ss:$16 sps:$4 sm:$0xff]  }
 0x49a   : > { %9709 = vmatmul.mubr.bf16.vlgmr.msra.gmra.mrb[0].mxu0 %v499_v9  ;;  %10611 = vmatmul.mubr.bf16.vlgmr.msra.gmra.mrb[0].mxu1 %v499_v9  ;;  %v21481_v9 = vld [vmem:[%s28767_s2 + $0x25e8] ss:$16 sps:$4 sm:$0xff]  }
 0x49b   : > { %9718 = vmatpush1.bf16.msra.mxu0 %v21388_v11  ;;  %10620 = vmatpush1.bf16.msra.mxu1 %v21391_v12  ;;  %v21486_v11 = vld [vmem:[%s28767_s2 + $0x2604] ss:$16 sps:$4 sm:$0xff]   ;;  %v21489_v12 = vld [vmem:[%s28767_s2 + $0x260c] ss:$16 sps:$4 sm:$0xff]  }
 0x49c   : > { %9719 = vmatprep.subr.bf16.mxu0 %v21396_v13  ;;  %10621 = vmatprep.subr.bf16.mxu1 %v21399_v14  ;;  %v501_v13 = vpack.c.bf16 %v457_v10, %v457_v10  ;;  %v460_v14 = vld [vmem:[%s28768_s0 + $0x138] sm:$0xff]  ;;  %v21576_v10 = vld [vmem:[%s28767_s2 + $0x27e4] ss:$16 sps:$4 sm:$0xff]  }
 0x49d   : > { %9749 = vmatprep.mubr.bf16.mxu0 %v502_v15  ;;  %10651 = vmatprep.mubr.bf16.mxu1 %v502_v15  ;;  %v21484_v15 = vld [vmem:[%s28767_s2 + $0x2600] ss:$16 sps:$4 sm:$0xff]  }
 0x49f   : > { %9720 = vmatpush1.bf16.msra.mxu0 %v21394_v16  ;;  %10622 = vmatpush1.bf16.msra.mxu1 %v21397_v17  ;;  %v21487_v16 = vld [vmem:[%s28767_s2 + $0x2608] ss:$16 sps:$4 sm:$0xff]   ;;  %v21492_v17 = vld [vmem:[%s28767_s2 + $0x2624] ss:$16 sps:$4 sm:$0xff]  }
 0x4a0   : > { %9721 = vmatprep.subr.bf16.mxu0 %v21402_v18  ;;  %10623 = vmatprep.subr.bf16.mxu1 %v21405_v19  ;;  %v21495_v18 = vld [vmem:[%s28767_s2 + $0x262c] ss:$16 sps:$4 sm:$0xff]   ;;  %v504_v19 = vpack.c.bf16 %v460_v14, %v460_v14  ;;  %v459_v14 = vld [vmem:[%s28768_s0 + $0x130] sm:$0xff] }
 0x4a3   : > { %9722 = vmatpush1.bf16.msra.mxu0 %v21400_v20  ;;  %10624 = vmatpush1.bf16.msra.mxu1 %v21403_v21  ;;  %v21490_v20 = vld [vmem:[%s28767_s2 + $0x2620] ss:$16 sps:$4 sm:$0xff]   ;;  %v21493_v21 = vld [vmem:[%s28767_s2 + $0x2628] ss:$16 sps:$4 sm:$0xff]  }
 0x4a4   : > { %9723 = vmatprep.subr.bf16.mxu0 %v21408_v22  ;;  %10625 = vmatprep.subr.bf16.mxu1 %v21411_v23  ;;  %v21498_v22 = vld [vmem:[%s28767_s2 + $0x2644] ss:$16 sps:$4 sm:$0xff]   ;;  %v21501_v23 = vld [vmem:[%s28767_s2 + $0x264c] ss:$16 sps:$4 sm:$0xff]  }
 0x4a7   : > { %9724 = vmatpush1.bf16.msra.mxu0 %v21406_v24  ;;  %10626 = vmatpush1.bf16.msra.mxu1 %v21409_v25  ;;  %v21496_v24 = vld [vmem:[%s28767_s2 + $0x2640] ss:$16 sps:$4 sm:$0xff]   ;;  %v21499_v25 = vld [vmem:[%s28767_s2 + $0x2648] ss:$16 sps:$4 sm:$0xff]  }
 0x4a8   : > { %9725 = vmatprep.subr.bf16.mxu0 %v21414_v26  ;;  %10627 = vmatprep.subr.bf16.mxu1 %v21417_v27  ;;  %v21504_v26 = vld [vmem:[%s28767_s2 + $0x2664] ss:$16 sps:$4 sm:$0xff]   ;;  %v21507_v27 = vld [vmem:[%s28767_s2 + $0x266c] ss:$16 sps:$4 sm:$0xff]  }
 0x4ab   : > { %9726 = vmatpush1.bf16.msra.mxu0 %v21412_v28  ;;  %10628 = vmatpush1.bf16.msra.mxu1 %v21415_v29  ;;  %v21502_v28 = vld [vmem:[%s28767_s2 + $0x2660] ss:$16 sps:$4 sm:$0xff]   ;;  %v21505_v29 = vld [vmem:[%s28767_s2 + $0x2668] ss:$16 sps:$4 sm:$0xff]  }
 0x4ac   : > { %9727 = vmatprep.subr.bf16.mxu0 %v21420_v30  ;;  %10629 = vmatprep.subr.bf16.mxu1 %v21423_v31  ;;  %v21510_v30 = vld [vmem:[%s28767_s2 + $0x2684] ss:$16 sps:$4 sm:$0xff]   ;;  %v21513_v31 = vld [vmem:[%s28767_s2 + $0x268c] ss:$16 sps:$4 sm:$0xff]  }
 0x4af   : > { %9728 = vmatpush1.bf16.msra.mxu0 %v21418_v32  ;;  %10630 = vmatpush1.bf16.msra.mxu1 %v21421_v33  ;;  %v21508_v32 = vld [vmem:[%s28767_s2 + $0x2680] ss:$16 sps:$4 sm:$0xff]   ;;  %v21511_v33 = vld [vmem:[%s28767_s2 + $0x2688] ss:$16 sps:$4 sm:$0xff]  }
 0x4b0   : > { %9729 = vmatprep.subr.bf16.mxu0 %v21426_v34  ;;  %10631 = vmatprep.subr.bf16.mxu1 %v21429_v35  ;;  %v21516_v34 = vld [vmem:[%s28767_s2 + $0x26a4] ss:$16 sps:$4 sm:$0xff]   ;;  %v21519_v35 = vld [vmem:[%s28767_s2 + $0x26ac] ss:$16 sps:$4 sm:$0xff]  }
 0x4b3   : > { %9730 = vmatpush1.bf16.msra.mxu0 %v21424_v36  ;;  %10632 = vmatpush1.bf16.msra.mxu1 %v21427_v37  ;;  %v21514_v36 = vld [vmem:[%s28767_s2 + $0x26a0] ss:$16 sps:$4 sm:$0xff]   ;;  %v21517_v37 = vld [vmem:[%s28767_s2 + $0x26a8] ss:$16 sps:$4 sm:$0xff]  }
 0x4b4   : > { %9731 = vmatprep.subr.bf16.mxu0 %v21432_v38  ;;  %10633 = vmatprep.subr.bf16.mxu1 %v21435_v39  ;;  %v21522_v38 = vld [vmem:[%s28767_s2 + $0x26c4] ss:$16 sps:$4 sm:$0xff]   ;;  %v21525_v39 = vld [vmem:[%s28767_s2 + $0x26cc] ss:$16 sps:$4 sm:$0xff]  }
 0x4b7   : > { %9732 = vmatpush1.bf16.msra.mxu0 %v21430_v40  ;;  %10634 = vmatpush1.bf16.msra.mxu1 %v21433_v41  ;;  %v21520_v40 = vld [vmem:[%s28767_s2 + $0x26c0] ss:$16 sps:$4 sm:$0xff]   ;;  %v21523_v41 = vld [vmem:[%s28767_s2 + $0x26c8] ss:$16 sps:$4 sm:$0xff]  }
 0x4b8   : > { %9733 = vmatprep.subr.bf16.mxu0 %v21438_v42  ;;  %10635 = vmatprep.subr.bf16.mxu1 %v21441_v43  ;;  %v21528_v42 = vld [vmem:[%s28767_s2 + $0x26e4] ss:$16 sps:$4 sm:$0xff]   ;;  %v21531_v43 = vld [vmem:[%s28767_s2 + $0x26ec] ss:$16 sps:$4 sm:$0xff]  }
 0x4bb   : > { %9734 = vmatpush1.bf16.msra.mxu0 %v21436_v44  ;;  %10636 = vmatpush1.bf16.msra.mxu1 %v21439_v45  ;;  %v21526_v44 = vld [vmem:[%s28767_s2 + $0x26e0] ss:$16 sps:$4 sm:$0xff]   ;;  %v21529_v45 = vld [vmem:[%s28767_s2 + $0x26e8] ss:$16 sps:$4 sm:$0xff]  }
 0x4bc   : > { %9735 = vmatprep.subr.bf16.mxu0 %v21444_v46  ;;  %10637 = vmatprep.subr.bf16.mxu1 %v21447_v47  ;;  %v21534_v46 = vld [vmem:[%s28767_s2 + $0x2704] ss:$16 sps:$4 sm:$0xff]   ;;  %v21537_v47 = vld [vmem:[%s28767_s2 + $0x270c] ss:$16 sps:$4 sm:$0xff]  }
 0x4bf   : > { %9736 = vmatpush1.bf16.msra.mxu0 %v21442_v48  ;;  %10638 = vmatpush1.bf16.msra.mxu1 %v21445_v49  ;;  %v21532_v48 = vld [vmem:[%s28767_s2 + $0x2700] ss:$16 sps:$4 sm:$0xff]   ;;  %v21535_v49 = vld [vmem:[%s28767_s2 + $0x2708] ss:$16 sps:$4 sm:$0xff]  }
 0x4c0   : > { %9737 = vmatprep.subr.bf16.mxu0 %v21450_v50  ;;  %10639 = vmatprep.subr.bf16.mxu1 %v21453_v51  ;;  %v21540_v50 = vld [vmem:[%s28767_s2 + $0x2724] ss:$16 sps:$4 sm:$0xff]   ;;  %v21543_v51 = vld [vmem:[%s28767_s2 + $0x272c] ss:$16 sps:$4 sm:$0xff]  }
 0x4c3   : > { %9738 = vmatpush1.bf16.msra.mxu0 %v21448_v52  ;;  %10640 = vmatpush1.bf16.msra.mxu1 %v21451_v53  ;;  %v21538_v52 = vld [vmem:[%s28767_s2 + $0x2720] ss:$16 sps:$4 sm:$0xff]   ;;  %v21541_v53 = vld [vmem:[%s28767_s2 + $0x2728] ss:$16 sps:$4 sm:$0xff]  }
 0x4c4   : > { %9739 = vmatprep.subr.bf16.mxu0 %v21456_v54  ;;  %10641 = vmatprep.subr.bf16.mxu1 %v21459_v55  ;;  %v21546_v54 = vld [vmem:[%s28767_s2 + $0x2744] ss:$16 sps:$4 sm:$0xff]   ;;  %v21549_v55 = vld [vmem:[%s28767_s2 + $0x274c] ss:$16 sps:$4 sm:$0xff]  }
 0x4c7   : > { %9740 = vmatpush1.bf16.msra.mxu0 %v21454_v56  ;;  %10642 = vmatpush1.bf16.msra.mxu1 %v21457_v57  ;;  %v21544_v56 = vld [vmem:[%s28767_s2 + $0x2740] ss:$16 sps:$4 sm:$0xff]   ;;  %v21547_v57 = vld [vmem:[%s28767_s2 + $0x2748] ss:$16 sps:$4 sm:$0xff]  }
 0x4c8   : > { %9741 = vmatprep.subr.bf16.mxu0 %v21462_v58  ;;  %10643 = vmatprep.subr.bf16.mxu1 %v21465_v59  ;;  %v21552_v58 = vld [vmem:[%s28767_s2 + $0x2764] ss:$16 sps:$4 sm:$0xff]   ;;  %v21555_v59 = vld [vmem:[%s28767_s2 + $0x276c] ss:$16 sps:$4 sm:$0xff]  }
 0x4cb   : > { %9742 = vmatpush1.bf16.msra.mxu0 %v21460_v60  ;;  %10644 = vmatpush1.bf16.msra.mxu1 %v21463_v61  ;;  %v21550_v60 = vld [vmem:[%s28767_s2 + $0x2760] ss:$16 sps:$4 sm:$0xff]   ;;  %v21553_v61 = vld [vmem:[%s28767_s2 + $0x2768] ss:$16 sps:$4 sm:$0xff]  }
 0x4cc   : > { %9743 = vmatprep.subr.bf16.mxu0 %v21468_v62  ;;  %10645 = vmatprep.subr.bf16.mxu1 %v21471_v63  ;;  %v21558_v62 = vld [vmem:[%s28767_s2 + $0x2784] ss:$16 sps:$4 sm:$0xff]   ;;  %v21561_v63 = vld [vmem:[%s28767_s2 + $0x278c] ss:$16 sps:$4 sm:$0xff]  }
 0x4cf   : > { %9744 = vmatpush1.bf16.msra.mxu0 %v21466_v0  ;;  %10646 = vmatpush1.bf16.msra.mxu1 %v21469_v1  ;;  %v21556_v0 = vld [vmem:[%s28767_s2 + $0x2780] ss:$16 sps:$4 sm:$0xff]   ;;  %v21559_v1 = vld [vmem:[%s28767_s2 + $0x2788] ss:$16 sps:$4 sm:$0xff]  }
 0x4d0   : > { %9745 = vmatprep.subr.bf16.mxu0 %v21474_v2  ;;  %10647 = vmatprep.subr.bf16.mxu1 %v21477_v3  ;;  %v21564_v2 = vld [vmem:[%s28767_s2 + $0x27a4] ss:$16 sps:$4 sm:$0xff]   ;;  %v21567_v3 = vld [vmem:[%s28767_s2 + $0x27ac] ss:$16 sps:$4 sm:$0xff]  }
 0x4d3   : > { %9746 = vmatpush1.bf16.msra.mxu0 %v21472_v4  ;;  %10648 = vmatpush1.bf16.msra.mxu1 %v21475_v5  ;;  %v21562_v4 = vld [vmem:[%s28767_s2 + $0x27a0] ss:$16 sps:$4 sm:$0xff]   ;;  %v21565_v5 = vld [vmem:[%s28767_s2 + $0x27a8] ss:$16 sps:$4 sm:$0xff]  }
 0x4d4   : > { %9747 = vmatprep.subr.bf16.mxu0 %v21480_v6  ;;  %10649 = vmatprep.subr.bf16.mxu1 %v21483_v7  ;;  %v21570_v6 = vld [vmem:[%s28767_s2 + $0x27c4] ss:$16 sps:$4 sm:$0xff]   ;;  %v21573_v7 = vld [vmem:[%s28767_s2 + $0x27cc] ss:$16 sps:$4 sm:$0xff]  }
 0x4d7   : > { %9748 = vmatpush1.bf16.msra.mxu0 %v21478_v8  ;;  %10650 = vmatpush1.bf16.msra.mxu1 %v21481_v9  ;;  %v21568_v8 = vld [vmem:[%s28767_s2 + $0x27c0] ss:$16 sps:$4 sm:$0xff]   ;;  %v21571_v9 = vld [vmem:[%s28767_s2 + $0x27c8] ss:$16 sps:$4 sm:$0xff]  }
 0x4d8   : > { %9758 = vmatprep.subr.bf16.mxu0 %v21486_v11  ;;  %10660 = vmatprep.subr.bf16.mxu1 %v21489_v12  ;;  %v21579_v11 = vld [vmem:[%s28767_s2 + $0x27ec] ss:$16 sps:$4 sm:$0xff]   ;;  %v21574_v12 = vld [vmem:[%s28767_s2 + $0x27e0] ss:$16 sps:$4 sm:$0xff]  }
 0x4da   : > { %9750 = vmatmul.mubr.bf16.vlgmr.msra.gmra.mrb[0].mxu0 %v501_v13  ;;  %10652 = vmatmul.mubr.bf16.vlgmr.msra.gmra.mrb[0].mxu1 %v501_v13  ;;  %v21577_v13 = vld [vmem:[%s28767_s2 + $0x27e8] ss:$16 sps:$4 sm:$0xff]  }
 0x4db   : > { %9759 = vmatpush1.bf16.msra.mxu0 %v21484_v15  ;;  %10661 = vmatpush1.bf16.msra.mxu1 %v21487_v16  ;;  %v21582_v15 = vld [vmem:[%s28767_s2 + $0x2804] ss:$16 sps:$4 sm:$0xff]   ;;  %v21585_v16 = vld [vmem:[%s28767_s2 + $0x280c] ss:$16 sps:$4 sm:$0xff]  }
 0x4dc   : > { %9760 = vmatprep.subr.bf16.mxu0 %v21492_v17  ;;  %10662 = vmatprep.subr.bf16.mxu1 %v21495_v18  ;;  %v503_v17 = vpack.c.bf16 %v459_v14, %v459_v14  ;;  %v462_v18 = vld [vmem:[%s28768_s0 + $0x148] sm:$0xff]  ;;  %v21672_v14 = vld [vmem:[%s28767_s2 + $0x29e4] ss:$16 sps:$4 sm:$0xff]  }
 0x4dd   : > { %9790 = vmatprep.mubr.bf16.mxu0 %v504_v19  ;;  %10692 = vmatprep.mubr.bf16.mxu1 %v504_v19  ;;  %v21580_v19 = vld [vmem:[%s28767_s2 + $0x2800] ss:$16 sps:$4 sm:$0xff]  }
 0x4df   : > { %9761 = vmatpush1.bf16.msra.mxu0 %v21490_v20  ;;  %10663 = vmatpush1.bf16.msra.mxu1 %v21493_v21  ;;  %v21583_v20 = vld [vmem:[%s28767_s2 + $0x2808] ss:$16 sps:$4 sm:$0xff]   ;;  %v21588_v21 = vld [vmem:[%s28767_s2 + $0x2824] ss:$16 sps:$4 sm:$0xff]  }
 0x4e0   : > { %9762 = vmatprep.subr.bf16.mxu0 %v21498_v22  ;;  %10664 = vmatprep.subr.bf16.mxu1 %v21501_v23  ;;  %v21591_v22 = vld [vmem:[%s28767_s2 + $0x282c] ss:$16 sps:$4 sm:$0xff]   ;;  %v506_v23 = vpack.c.bf16 %v462_v18, %v462_v18  ;;  %v461_v18 = vld [vmem:[%s28768_s0 + $0x140] sm:$0xff] }
 0x4e3   : > { %9763 = vmatpush1.bf16.msra.mxu0 %v21496_v24  ;;  %10665 = vmatpush1.bf16.msra.mxu1 %v21499_v25  ;;  %v21586_v24 = vld [vmem:[%s28767_s2 + $0x2820] ss:$16 sps:$4 sm:$0xff]   ;;  %v21589_v25 = vld [vmem:[%s28767_s2 + $0x2828] ss:$16 sps:$4 sm:$0xff]  }
 0x4e4   : > { %9764 = vmatprep.subr.bf16.mxu0 %v21504_v26  ;;  %10666 = vmatprep.subr.bf16.mxu1 %v21507_v27  ;;  %v21594_v26 = vld [vmem:[%s28767_s2 + $0x2844] ss:$16 sps:$4 sm:$0xff]   ;;  %v21597_v27 = vld [vmem:[%s28767_s2 + $0x284c] ss:$16 sps:$4 sm:$0xff]  }
 0x4e7   : > { %9765 = vmatpush1.bf16.msra.mxu0 %v21502_v28  ;;  %10667 = vmatpush1.bf16.msra.mxu1 %v21505_v29  ;;  %v21592_v28 = vld [vmem:[%s28767_s2 + $0x2840] ss:$16 sps:$4 sm:$0xff]   ;;  %v21595_v29 = vld [vmem:[%s28767_s2 + $0x2848] ss:$16 sps:$4 sm:$0xff]  }
 0x4e8   : > { %9766 = vmatprep.subr.bf16.mxu0 %v21510_v30  ;;  %10668 = vmatprep.subr.bf16.mxu1 %v21513_v31  ;;  %v21600_v30 = vld [vmem:[%s28767_s2 + $0x2864] ss:$16 sps:$4 sm:$0xff]   ;;  %v21603_v31 = vld [vmem:[%s28767_s2 + $0x286c] ss:$16 sps:$4 sm:$0xff]  }
 0x4eb   : > { %9767 = vmatpush1.bf16.msra.mxu0 %v21508_v32  ;;  %10669 = vmatpush1.bf16.msra.mxu1 %v21511_v33  ;;  %v21598_v32 = vld [vmem:[%s28767_s2 + $0x2860] ss:$16 sps:$4 sm:$0xff]   ;;  %v21601_v33 = vld [vmem:[%s28767_s2 + $0x2868] ss:$16 sps:$4 sm:$0xff]  }
 0x4ec   : > { %9768 = vmatprep.subr.bf16.mxu0 %v21516_v34  ;;  %10670 = vmatprep.subr.bf16.mxu1 %v21519_v35  ;;  %v21606_v34 = vld [vmem:[%s28767_s2 + $0x2884] ss:$16 sps:$4 sm:$0xff]   ;;  %v21609_v35 = vld [vmem:[%s28767_s2 + $0x288c] ss:$16 sps:$4 sm:$0xff]  }
 0x4ef   : > { %9769 = vmatpush1.bf16.msra.mxu0 %v21514_v36  ;;  %10671 = vmatpush1.bf16.msra.mxu1 %v21517_v37  ;;  %v21604_v36 = vld [vmem:[%s28767_s2 + $0x2880] ss:$16 sps:$4 sm:$0xff]   ;;  %v21607_v37 = vld [vmem:[%s28767_s2 + $0x2888] ss:$16 sps:$4 sm:$0xff]  }
 0x4f0   : > { %9770 = vmatprep.subr.bf16.mxu0 %v21522_v38  ;;  %10672 = vmatprep.subr.bf16.mxu1 %v21525_v39  ;;  %v21612_v38 = vld [vmem:[%s28767_s2 + $0x28a4] ss:$16 sps:$4 sm:$0xff]   ;;  %v21615_v39 = vld [vmem:[%s28767_s2 + $0x28ac] ss:$16 sps:$4 sm:$0xff]  }
 0x4f3   : > { %9771 = vmatpush1.bf16.msra.mxu0 %v21520_v40  ;;  %10673 = vmatpush1.bf16.msra.mxu1 %v21523_v41  ;;  %v21610_v40 = vld [vmem:[%s28767_s2 + $0x28a0] ss:$16 sps:$4 sm:$0xff]   ;;  %v21613_v41 = vld [vmem:[%s28767_s2 + $0x28a8] ss:$16 sps:$4 sm:$0xff]  }
 0x4f4   : > { %9772 = vmatprep.subr.bf16.mxu0 %v21528_v42  ;;  %10674 = vmatprep.subr.bf16.mxu1 %v21531_v43  ;;  %v21618_v42 = vld [vmem:[%s28767_s2 + $0x28c4] ss:$16 sps:$4 sm:$0xff]   ;;  %v21621_v43 = vld [vmem:[%s28767_s2 + $0x28cc] ss:$16 sps:$4 sm:$0xff]  }
 0x4f7   : > { %9773 = vmatpush1.bf16.msra.mxu0 %v21526_v44  ;;  %10675 = vmatpush1.bf16.msra.mxu1 %v21529_v45  ;;  %v21616_v44 = vld [vmem:[%s28767_s2 + $0x28c0] ss:$16 sps:$4 sm:$0xff]   ;;  %v21619_v45 = vld [vmem:[%s28767_s2 + $0x28c8] ss:$16 sps:$4 sm:$0xff]  }
 0x4f8   : > { %9774 = vmatprep.subr.bf16.mxu0 %v21534_v46  ;;  %10676 = vmatprep.subr.bf16.mxu1 %v21537_v47  ;;  %v21624_v46 = vld [vmem:[%s28767_s2 + $0x28e4] ss:$16 sps:$4 sm:$0xff]   ;;  %v21627_v47 = vld [vmem:[%s28767_s2 + $0x28ec] ss:$16 sps:$4 sm:$0xff]  }
 0x4fb   : > { %9775 = vmatpush1.bf16.msra.mxu0 %v21532_v48  ;;  %10677 = vmatpush1.bf16.msra.mxu1 %v21535_v49  ;;  %v21622_v48 = vld [vmem:[%s28767_s2 + $0x28e0] ss:$16 sps:$4 sm:$0xff]   ;;  %v21625_v49 = vld [vmem:[%s28767_s2 + $0x28e8] ss:$16 sps:$4 sm:$0xff]  }
 0x4fc   : > { %9776 = vmatprep.subr.bf16.mxu0 %v21540_v50  ;;  %10678 = vmatprep.subr.bf16.mxu1 %v21543_v51  ;;  %v21630_v50 = vld [vmem:[%s28767_s2 + $0x2904] ss:$16 sps:$4 sm:$0xff]   ;;  %v21633_v51 = vld [vmem:[%s28767_s2 + $0x290c] ss:$16 sps:$4 sm:$0xff]  }
 0x4ff   : > { %9777 = vmatpush1.bf16.msra.mxu0 %v21538_v52  ;;  %10679 = vmatpush1.bf16.msra.mxu1 %v21541_v53  ;;  %v21628_v52 = vld [vmem:[%s28767_s2 + $0x2900] ss:$16 sps:$4 sm:$0xff]   ;;  %v21631_v53 = vld [vmem:[%s28767_s2 + $0x2908] ss:$16 sps:$4 sm:$0xff]  }
 0x500   : > { %9778 = vmatprep.subr.bf16.mxu0 %v21546_v54  ;;  %10680 = vmatprep.subr.bf16.mxu1 %v21549_v55  ;;  %v21636_v54 = vld [vmem:[%s28767_s2 + $0x2924] ss:$16 sps:$4 sm:$0xff]   ;;  %v21639_v55 = vld [vmem:[%s28767_s2 + $0x292c] ss:$16 sps:$4 sm:$0xff]  }
 0x503   : > { %9779 = vmatpush1.bf16.msra.mxu0 %v21544_v56  ;;  %10681 = vmatpush1.bf16.msra.mxu1 %v21547_v57  ;;  %v21634_v56 = vld [vmem:[%s28767_s2 + $0x2920] ss:$16 sps:$4 sm:$0xff]   ;;  %v21637_v57 = vld [vmem:[%s28767_s2 + $0x2928] ss:$16 sps:$4 sm:$0xff]  }
 0x504   : > { %9780 = vmatprep.subr.bf16.mxu0 %v21552_v58  ;;  %10682 = vmatprep.subr.bf16.mxu1 %v21555_v59  ;;  %v21642_v58 = vld [vmem:[%s28767_s2 + $0x2944] ss:$16 sps:$4 sm:$0xff]   ;;  %v21645_v59 = vld [vmem:[%s28767_s2 + $0x294c] ss:$16 sps:$4 sm:$0xff]  }
 0x507   : > { %9781 = vmatpush1.bf16.msra.mxu0 %v21550_v60  ;;  %10683 = vmatpush1.bf16.msra.mxu1 %v21553_v61  ;;  %v21640_v60 = vld [vmem:[%s28767_s2 + $0x2940] ss:$16 sps:$4 sm:$0xff]   ;;  %v21643_v61 = vld [vmem:[%s28767_s2 + $0x2948] ss:$16 sps:$4 sm:$0xff]  }
 0x508   : > { %9782 = vmatprep.subr.bf16.mxu0 %v21558_v62  ;;  %10684 = vmatprep.subr.bf16.mxu1 %v21561_v63  ;;  %v21648_v62 = vld [vmem:[%s28767_s2 + $0x2964] ss:$16 sps:$4 sm:$0xff]   ;;  %v21651_v63 = vld [vmem:[%s28767_s2 + $0x296c] ss:$16 sps:$4 sm:$0xff]  }
 0x50b   : > { %9783 = vmatpush1.bf16.msra.mxu0 %v21556_v0  ;;  %10685 = vmatpush1.bf16.msra.mxu1 %v21559_v1  ;;  %v21646_v0 = vld [vmem:[%s28767_s2 + $0x2960] ss:$16 sps:$4 sm:$0xff]   ;;  %v21649_v1 = vld [vmem:[%s28767_s2 + $0x2968] ss:$16 sps:$4 sm:$0xff]  }
 0x50c   : > { %9784 = vmatprep.subr.bf16.mxu0 %v21564_v2  ;;  %10686 = vmatprep.subr.bf16.mxu1 %v21567_v3  ;;  %v21654_v2 = vld [vmem:[%s28767_s2 + $0x2984] ss:$16 sps:$4 sm:$0xff]   ;;  %v21657_v3 = vld [vmem:[%s28767_s2 + $0x298c] ss:$16 sps:$4 sm:$0xff]  }
 0x50f   : > { %9785 = vmatpush1.bf16.msra.mxu0 %v21562_v4  ;;  %10687 = vmatpush1.bf16.msra.mxu1 %v21565_v5  ;;  %v21652_v4 = vld [vmem:[%s28767_s2 + $0x2980] ss:$16 sps:$4 sm:$0xff]   ;;  %v21655_v5 = vld [vmem:[%s28767_s2 + $0x2988] ss:$16 sps:$4 sm:$0xff]  }
 0x510   : > { %9786 = vmatprep.subr.bf16.mxu0 %v21570_v6  ;;  %10688 = vmatprep.subr.bf16.mxu1 %v21573_v7  ;;  %v21660_v6 = vld [vmem:[%s28767_s2 + $0x29a4] ss:$16 sps:$4 sm:$0xff]   ;;  %v21663_v7 = vld [vmem:[%s28767_s2 + $0x29ac] ss:$16 sps:$4 sm:$0xff]  }
 0x513   : > { %9787 = vmatpush1.bf16.msra.mxu0 %v21568_v8  ;;  %10689 = vmatpush1.bf16.msra.mxu1 %v21571_v9  ;;  %v21658_v8 = vld [vmem:[%s28767_s2 + $0x29a0] ss:$16 sps:$4 sm:$0xff]   ;;  %v21661_v9 = vld [vmem:[%s28767_s2 + $0x29a8] ss:$16 sps:$4 sm:$0xff]  }
 0x514   : > { %9788 = vmatprep.subr.bf16.mxu0 %v21576_v10  ;;  %10690 = vmatprep.subr.bf16.mxu1 %v21579_v11  ;;  %v21666_v10 = vld [vmem:[%s28767_s2 + $0x29c4] ss:$16 sps:$4 sm:$0xff]   ;;  %v21669_v11 = vld [vmem:[%s28767_s2 + $0x29cc] ss:$16 sps:$4 sm:$0xff]  }
 0x517   : > { %9789 = vmatpush1.bf16.msra.mxu0 %v21574_v12  ;;  %10691 = vmatpush1.bf16.msra.mxu1 %v21577_v13  ;;  %v21664_v12 = vld [vmem:[%s28767_s2 + $0x29c0] ss:$16 sps:$4 sm:$0xff]   ;;  %v21667_v13 = vld [vmem:[%s28767_s2 + $0x29c8] ss:$16 sps:$4 sm:$0xff]  }
 0x518   : > { %9799 = vmatprep.subr.bf16.mxu0 %v21582_v15  ;;  %10701 = vmatprep.subr.bf16.mxu1 %v21585_v16  ;;  %v21675_v15 = vld [vmem:[%s28767_s2 + $0x29ec] ss:$16 sps:$4 sm:$0xff]   ;;  %v21670_v16 = vld [vmem:[%s28767_s2 + $0x29e0] ss:$16 sps:$4 sm:$0xff]  }
 0x51a   : > { %9791 = vmatmul.mubr.bf16.vlgmr.msra.gmra.mrb[0].mxu0 %v503_v17  ;;  %10693 = vmatmul.mubr.bf16.vlgmr.msra.gmra.mrb[0].mxu1 %v503_v17  ;;  %v21673_v17 = vld [vmem:[%s28767_s2 + $0x29e8] ss:$16 sps:$4 sm:$0xff]  }
 0x51b   : > { %9800 = vmatpush1.bf16.msra.mxu0 %v21580_v19  ;;  %10702 = vmatpush1.bf16.msra.mxu1 %v21583_v20  ;;  %v21678_v19 = vld [vmem:[%s28767_s2 + $0x2a04] ss:$16 sps:$4 sm:$0xff]   ;;  %v21681_v20 = vld [vmem:[%s28767_s2 + $0x2a0c] ss:$16 sps:$4 sm:$0xff]  }
 0x51c   : > { %9801 = vmatprep.subr.bf16.mxu0 %v21588_v21  ;;  %10703 = vmatprep.subr.bf16.mxu1 %v21591_v22  ;;  %v505_v21 = vpack.c.bf16 %v461_v18, %v461_v18  ;;  %v464_v22 = vld [vmem:[%s28768_s0 + $0x158] sm:$0xff]  ;;  %v21768_v18 = vld [vmem:[%s28767_s2 + $0x2be4] ss:$16 sps:$4 sm:$0xff]  }
 0x51d   : > { %9831 = vmatprep.mubr.bf16.mxu0 %v506_v23  ;;  %10733 = vmatprep.mubr.bf16.mxu1 %v506_v23  ;;  %v21676_v23 = vld [vmem:[%s28767_s2 + $0x2a00] ss:$16 sps:$4 sm:$0xff]  }
 0x51f   : > { %9802 = vmatpush1.bf16.msra.mxu0 %v21586_v24  ;;  %10704 = vmatpush1.bf16.msra.mxu1 %v21589_v25  ;;  %v21679_v24 = vld [vmem:[%s28767_s2 + $0x2a08] ss:$16 sps:$4 sm:$0xff]   ;;  %v21684_v25 = vld [vmem:[%s28767_s2 + $0x2a24] ss:$16 sps:$4 sm:$0xff]  }
 0x520   : > { %9803 = vmatprep.subr.bf16.mxu0 %v21594_v26  ;;  %10705 = vmatprep.subr.bf16.mxu1 %v21597_v27  ;;  %v21687_v26 = vld [vmem:[%s28767_s2 + $0x2a2c] ss:$16 sps:$4 sm:$0xff]   ;;  %v508_v27 = vpack.c.bf16 %v464_v22, %v464_v22  ;;  %v21766_v22 = vld [vmem:[%s28767_s2 + $0x2be0] ss:$16 sps:$4 sm:$0xff]  }
 0x523   : > { %9804 = vmatpush1.bf16.msra.mxu0 %v21592_v28  ;;  %10706 = vmatpush1.bf16.msra.mxu1 %v21595_v29  ;;  %v21682_v28 = vld [vmem:[%s28767_s2 + $0x2a20] ss:$16 sps:$4 sm:$0xff]   ;;  %v21685_v29 = vld [vmem:[%s28767_s2 + $0x2a28] ss:$16 sps:$4 sm:$0xff]  }
 0x524   : > { %9805 = vmatprep.subr.bf16.mxu0 %v21600_v30  ;;  %10707 = vmatprep.subr.bf16.mxu1 %v21603_v31  ;;  %v21690_v30 = vld [vmem:[%s28767_s2 + $0x2a44] ss:$16 sps:$4 sm:$0xff]   ;;  %v21693_v31 = vld [vmem:[%s28767_s2 + $0x2a4c] ss:$16 sps:$4 sm:$0xff]  }
 0x527   : > { %9806 = vmatpush1.bf16.msra.mxu0 %v21598_v32  ;;  %10708 = vmatpush1.bf16.msra.mxu1 %v21601_v33  ;;  %v21688_v32 = vld [vmem:[%s28767_s2 + $0x2a40] ss:$16 sps:$4 sm:$0xff]   ;;  %v21691_v33 = vld [vmem:[%s28767_s2 + $0x2a48] ss:$16 sps:$4 sm:$0xff]  }
 0x528   : > { %9807 = vmatprep.subr.bf16.mxu0 %v21606_v34  ;;  %10709 = vmatprep.subr.bf16.mxu1 %v21609_v35  ;;  %v21696_v34 = vld [vmem:[%s28767_s2 + $0x2a64] ss:$16 sps:$4 sm:$0xff]   ;;  %v21699_v35 = vld [vmem:[%s28767_s2 + $0x2a6c] ss:$16 sps:$4 sm:$0xff]  }
 0x52b   : > { %9808 = vmatpush1.bf16.msra.mxu0 %v21604_v36  ;;  %10710 = vmatpush1.bf16.msra.mxu1 %v21607_v37  ;;  %v21694_v36 = vld [vmem:[%s28767_s2 + $0x2a60] ss:$16 sps:$4 sm:$0xff]   ;;  %v21697_v37 = vld [vmem:[%s28767_s2 + $0x2a68] ss:$16 sps:$4 sm:$0xff]  }
 0x52c   : > { %9809 = vmatprep.subr.bf16.mxu0 %v21612_v38  ;;  %10711 = vmatprep.subr.bf16.mxu1 %v21615_v39  ;;  %v21702_v38 = vld [vmem:[%s28767_s2 + $0x2a84] ss:$16 sps:$4 sm:$0xff]   ;;  %v21705_v39 = vld [vmem:[%s28767_s2 + $0x2a8c] ss:$16 sps:$4 sm:$0xff]  }
 0x52f   : > { %9810 = vmatpush1.bf16.msra.mxu0 %v21610_v40  ;;  %10712 = vmatpush1.bf16.msra.mxu1 %v21613_v41  ;;  %v21700_v40 = vld [vmem:[%s28767_s2 + $0x2a80] ss:$16 sps:$4 sm:$0xff]   ;;  %v21703_v41 = vld [vmem:[%s28767_s2 + $0x2a88] ss:$16 sps:$4 sm:$0xff]  }
 0x530   : > { %9811 = vmatprep.subr.bf16.mxu0 %v21618_v42  ;;  %10713 = vmatprep.subr.bf16.mxu1 %v21621_v43  ;;  %v21708_v42 = vld [vmem:[%s28767_s2 + $0x2aa4] ss:$16 sps:$4 sm:$0xff]   ;;  %v21711_v43 = vld [vmem:[%s28767_s2 + $0x2aac] ss:$16 sps:$4 sm:$0xff]  }
 0x533   : > { %9812 = vmatpush1.bf16.msra.mxu0 %v21616_v44  ;;  %10714 = vmatpush1.bf16.msra.mxu1 %v21619_v45  ;;  %v21706_v44 = vld [vmem:[%s28767_s2 + $0x2aa0] ss:$16 sps:$4 sm:$0xff]   ;;  %v21709_v45 = vld [vmem:[%s28767_s2 + $0x2aa8] ss:$16 sps:$4 sm:$0xff]  }
 0x534   : > { %9813 = vmatprep.subr.bf16.mxu0 %v21624_v46  ;;  %10715 = vmatprep.subr.bf16.mxu1 %v21627_v47  ;;  %v21714_v46 = vld [vmem:[%s28767_s2 + $0x2ac4] ss:$16 sps:$4 sm:$0xff]   ;;  %v21717_v47 = vld [vmem:[%s28767_s2 + $0x2acc] ss:$16 sps:$4 sm:$0xff]  }
 0x537   : > { %9814 = vmatpush1.bf16.msra.mxu0 %v21622_v48  ;;  %10716 = vmatpush1.bf16.msra.mxu1 %v21625_v49  ;;  %v21712_v48 = vld [vmem:[%s28767_s2 + $0x2ac0] ss:$16 sps:$4 sm:$0xff]   ;;  %v21715_v49 = vld [vmem:[%s28767_s2 + $0x2ac8] ss:$16 sps:$4 sm:$0xff]  }
 0x538   : > { %9815 = vmatprep.subr.bf16.mxu0 %v21630_v50  ;;  %10717 = vmatprep.subr.bf16.mxu1 %v21633_v51  ;;  %v21720_v50 = vld [vmem:[%s28767_s2 + $0x2ae4] ss:$16 sps:$4 sm:$0xff]   ;;  %v21723_v51 = vld [vmem:[%s28767_s2 + $0x2aec] ss:$16 sps:$4 sm:$0xff]  }
 0x53b   : > { %9816 = vmatpush1.bf16.msra.mxu0 %v21628_v52  ;;  %10718 = vmatpush1.bf16.msra.mxu1 %v21631_v53  ;;  %v21718_v52 = vld [vmem:[%s28767_s2 + $0x2ae0] ss:$16 sps:$4 sm:$0xff]   ;;  %v21721_v53 = vld [vmem:[%s28767_s2 + $0x2ae8] ss:$16 sps:$4 sm:$0xff]  }
 0x53c   : > { %9817 = vmatprep.subr.bf16.mxu0 %v21636_v54  ;;  %10719 = vmatprep.subr.bf16.mxu1 %v21639_v55  ;;  %v21726_v54 = vld [vmem:[%s28767_s2 + $0x2b04] ss:$16 sps:$4 sm:$0xff]   ;;  %v21729_v55 = vld [vmem:[%s28767_s2 + $0x2b0c] ss:$16 sps:$4 sm:$0xff]  }
 0x53f   : > { %9818 = vmatpush1.bf16.msra.mxu0 %v21634_v56  ;;  %10720 = vmatpush1.bf16.msra.mxu1 %v21637_v57  ;;  %v21724_v56 = vld [vmem:[%s28767_s2 + $0x2b00] ss:$16 sps:$4 sm:$0xff]   ;;  %v21727_v57 = vld [vmem:[%s28767_s2 + $0x2b08] ss:$16 sps:$4 sm:$0xff]  }
 0x540   : > { %9819 = vmatprep.subr.bf16.mxu0 %v21642_v58  ;;  %10721 = vmatprep.subr.bf16.mxu1 %v21645_v59  ;;  %v21732_v58 = vld [vmem:[%s28767_s2 + $0x2b24] ss:$16 sps:$4 sm:$0xff]   ;;  %v21735_v59 = vld [vmem:[%s28767_s2 + $0x2b2c] ss:$16 sps:$4 sm:$0xff]  }
 0x543   : > { %9820 = vmatpush1.bf16.msra.mxu0 %v21640_v60  ;;  %10722 = vmatpush1.bf16.msra.mxu1 %v21643_v61  ;;  %v21730_v60 = vld [vmem:[%s28767_s2 + $0x2b20] ss:$16 sps:$4 sm:$0xff]   ;;  %v21733_v61 = vld [vmem:[%s28767_s2 + $0x2b28] ss:$16 sps:$4 sm:$0xff]  }
 0x544   : > { %9821 = vmatprep.subr.bf16.mxu0 %v21648_v62  ;;  %10723 = vmatprep.subr.bf16.mxu1 %v21651_v63  ;;  %v21738_v62 = vld [vmem:[%s28767_s2 + $0x2b44] ss:$16 sps:$4 sm:$0xff]   ;;  %v21741_v63 = vld [vmem:[%s28767_s2 + $0x2b4c] ss:$16 sps:$4 sm:$0xff]  }
 0x547   : > { %9822 = vmatpush1.bf16.msra.mxu0 %v21646_v0  ;;  %10724 = vmatpush1.bf16.msra.mxu1 %v21649_v1  ;;  %v21736_v0 = vld [vmem:[%s28767_s2 + $0x2b40] ss:$16 sps:$4 sm:$0xff]   ;;  %v21739_v1 = vld [vmem:[%s28767_s2 + $0x2b48] ss:$16 sps:$4 sm:$0xff]  }
 0x548   : > { %9823 = vmatprep.subr.bf16.mxu0 %v21654_v2  ;;  %10725 = vmatprep.subr.bf16.mxu1 %v21657_v3  ;;  %v21744_v2 = vld [vmem:[%s28767_s2 + $0x2b64] ss:$16 sps:$4 sm:$0xff]   ;;  %v21747_v3 = vld [vmem:[%s28767_s2 + $0x2b6c] ss:$16 sps:$4 sm:$0xff]  }
 0x54b   : > { %9824 = vmatpush1.bf16.msra.mxu0 %v21652_v4  ;;  %10726 = vmatpush1.bf16.msra.mxu1 %v21655_v5  ;;  %v21742_v4 = vld [vmem:[%s28767_s2 + $0x2b60] ss:$16 sps:$4 sm:$0xff]   ;;  %v21745_v5 = vld [vmem:[%s28767_s2 + $0x2b68] ss:$16 sps:$4 sm:$0xff]  }
 0x54c   : > { %9825 = vmatprep.subr.bf16.mxu0 %v21660_v6  ;;  %10727 = vmatprep.subr.bf16.mxu1 %v21663_v7  ;;  %v21750_v6 = vld [vmem:[%s28767_s2 + $0x2b84] ss:$16 sps:$4 sm:$0xff]   ;;  %v21753_v7 = vld [vmem:[%s28767_s2 + $0x2b8c] ss:$16 sps:$4 sm:$0xff]  }
 0x54f   : > { %9826 = vmatpush1.bf16.msra.mxu0 %v21658_v8  ;;  %10728 = vmatpush1.bf16.msra.mxu1 %v21661_v9  ;;  %v21748_v8 = vld [vmem:[%s28767_s2 + $0x2b80] ss:$16 sps:$4 sm:$0xff]   ;;  %v21751_v9 = vld [vmem:[%s28767_s2 + $0x2b88] ss:$16 sps:$4 sm:$0xff]  }
 0x550   : > { %9827 = vmatprep.subr.bf16.mxu0 %v21666_v10  ;;  %10729 = vmatprep.subr.bf16.mxu1 %v21669_v11  ;;  %v21756_v10 = vld [vmem:[%s28767_s2 + $0x2ba4] ss:$16 sps:$4 sm:$0xff]   ;;  %v21759_v11 = vld [vmem:[%s28767_s2 + $0x2bac] ss:$16 sps:$4 sm:$0xff]  }
 0x553   : > { %9828 = vmatpush1.bf16.msra.mxu0 %v21664_v12  ;;  %10730 = vmatpush1.bf16.msra.mxu1 %v21667_v13  ;;  %v21754_v12 = vld [vmem:[%s28767_s2 + $0x2ba0] ss:$16 sps:$4 sm:$0xff]   ;;  %v21757_v13 = vld [vmem:[%s28767_s2 + $0x2ba8] ss:$16 sps:$4 sm:$0xff]  }
 0x554   : > { %9829 = vmatprep.subr.bf16.mxu0 %v21672_v14  ;;  %10731 = vmatprep.subr.bf16.mxu1 %v21675_v15  ;;  %v21762_v14 = vld [vmem:[%s28767_s2 + $0x2bc4] ss:$16 sps:$4 sm:$0xff]   ;;  %v21765_v15 = vld [vmem:[%s28767_s2 + $0x2bcc] ss:$16 sps:$4 sm:$0xff]  }
 0x557   : > { %9830 = vmatpush1.bf16.msra.mxu0 %v21670_v16  ;;  %10732 = vmatpush1.bf16.msra.mxu1 %v21673_v17  ;;  %v21760_v16 = vld [vmem:[%s28767_s2 + $0x2bc0] ss:$16 sps:$4 sm:$0xff]   ;;  %v21763_v17 = vld [vmem:[%s28767_s2 + $0x2bc8] ss:$16 sps:$4 sm:$0xff]  }
 0x558   : > { %9840 = vmatprep.subr.bf16.mxu0 %v21678_v19  ;;  %10742 = vmatprep.subr.bf16.mxu1 %v21681_v20  ;;  %v21771_v19 = vld [vmem:[%s28767_s2 + $0x2bec] ss:$16 sps:$4 sm:$0xff]   ;;  %v10803_v20 = vld [vmem:[%s28754_s4 + $0x80] sm:$0xff] }
 0x55a   : > { %9832 = vmatmul.mubr.bf16.vlgmr.msra.gmra.mrb[0].mxu0 %v505_v21  ;;  %10734 = vmatmul.mubr.bf16.vlgmr.msra.gmra.mrb[0].mxu1 %v505_v21  ;;  %v10804_v21 = vld [vmem:[%s28754_s4 + $0x88] sm:$0xff] }
 0x55b   : > { %9841 = vmatpush1.bf16.msra.mxu0 %v21676_v23  ;;  %10743 = vmatpush1.bf16.msra.mxu1 %v21679_v24  ;;  %v21769_v23 = vld [vmem:[%s28767_s2 + $0x2be8] ss:$16 sps:$4 sm:$0xff]   ;;  %v463_v24 = vld [vmem:[%s28768_s0 + $0x150] sm:$0xff]  ;;  %s27628_s0 = scalar_lea.vmem %s28758_s8, %s19272_s24  ;;  %s415_s24 = smul.u32 22, %s23014_s21 }
 0x55c   : > { %9842 = vmatprep.subr.bf16.mxu0 %v21684_v25  ;;  %10744 = vmatprep.subr.bf16.mxu1 %v21687_v26  ;;  %v10819_v25 = vld [vmem:[%s28754_s4 + $0x100] sm:$0xff]  ;;  %v10820_v26 = vld [vmem:[%s28754_s4 + $0x108] sm:$0xff] }
 0x55d   : > { %9872 = vmatprep.mubr.bf16.mxu0 %v508_v27  ;;  %10774 = vmatprep.mubr.bf16.mxu1 %v508_v27  ;;  %v19309_v27 = vpack.c.bf16 %v10804_v21, %v10803_v20  ;;  %v10799_v21 = vld [vmem:[%s28754_s4 + $0x60] sm:$0xff]  ;;  %p416_p11 = scmp.lt.s32.totalorder %s415_s24, 43 }
 0x55f   : > { %9843 = vmatpush1.bf16.msra.mxu0 %v21682_v28  ;;  %10745 = vmatpush1.bf16.msra.mxu1 %v21685_v29  ;;  %v10787_v28 = vld [vmem:[%s28754_s4] sm:$0xff]  ;;  %v10788_v29 = vld [vmem:[%s28754_s4 + $0x8] sm:$0xff]  ;;  %s28777_s24 = smov (!%p416_p11, %s415_s24), 43 }
 0x560   : > { %9844 = vmatprep.subr.bf16.mxu0 %v21690_v30  ;;  %10746 = vmatprep.subr.bf16.mxu1 %v21693_v31  ;;  %v10805_v30 = vld [vmem:[%s28754_s4 + $0x90] sm:$0xff]  ;;  %v10806_v31 = vld [vmem:[%s28754_s4 + $0x98] sm:$0xff] }
 0x563   : > { %9845 = vmatpush1.bf16.msra.mxu0 %v21688_v32  ;;  %10747 = vmatpush1.bf16.msra.mxu1 %v21691_v33  ;;  %v507_v32 = vpack.c.bf16 %v463_v24, %v463_v24  ;;  %v19342_v33 = vpack.c.bf16 %v10820_v26, %v10819_v25  ;;  %v10834_v25 = vld [vmem:[%s28754_s4 + $0x178] sm:$0xff] }
 0x564   : > { %9846 = vmatprep.subr.bf16.mxu0 %v21696_v34  ;;  %10748 = vmatprep.subr.bf16.mxu1 %v21699_v35  ;;  %v19311_v34 = vpack.c.bf16 %v10788_v29, %v10787_v28  ;;  %v10821_v35 = vld [vmem:[%s28754_s4 + $0x110] sm:$0xff]  ;;  %v10818_v28 = vld [vmem:[%s28754_s4 + $0xf8] sm:$0xff] }
 0x567   : > { %9847 = vmatpush1.bf16.msra.mxu0 %v21694_v36  ;;  %10749 = vmatpush1.bf16.msra.mxu1 %v21697_v37  ;;  %v22928_v36 = vmov 0.0|0.0   ;;  %v10822_v37 = vld [vmem:[%s28754_s4 + $0x118] sm:$0xff] }
 0x568   : > { %9848 = vmatprep.subr.bf16.mxu0 %v21702_v38  ;;  %10750 = vmatprep.subr.bf16.mxu1 %v21705_v39  ;;  %v19313_v38 = vpack.c.bf16 %v10806_v31, %v10805_v30  ;;  %v10789_v39 = vld [vmem:[%s28754_s4 + $0x10] sm:$0xff]  ;;  %v10802_v31 = vld [vmem:[%s28754_s4 + $0x78] sm:$0xff] }
 0x569   : > { %v10801_v30 = vld [vmem:[%s28754_s4 + $0x70] sm:$0xff] }
 0x56b   : > { %9849 = vmatpush1.bf16.msra.mxu0 %v21700_v40  ;;  %10751 = vmatpush1.bf16.msra.mxu1 %v21703_v41  ;;  %v10790_v40 = vld [vmem:[%s28754_s4 + $0x18] sm:$0xff]  ;;  %v10807_v41 = vld [vmem:[%s28754_s4 + $0xa0] sm:$0xff] }
 0x56c   : > { %9850 = vmatprep.subr.bf16.mxu0 %v21708_v42  ;;  %10752 = vmatprep.subr.bf16.mxu1 %v21711_v43  ;;  %v10808_v42 = vld [vmem:[%s28754_s4 + $0xa8] sm:$0xff]  ;;  %v19345_v43 = vpack.c.bf16 %v10822_v37, %v10821_v35  ;;  %v1919_v37 = vlaneseq }
 0x56f   : > { %9851 = vmatpush1.bf16.msra.mxu0 %v21706_v44  ;;  %10753 = vmatpush1.bf16.msra.mxu1 %v21709_v45  ;;  %v19315_v44 = vpack.c.bf16 %v10790_v40, %v10789_v39  ;;  %v10823_v45 = vld [vmem:[%s28754_s4 + $0x120] sm:$0xff] }
 0x570   : > { %9852 = vmatprep.subr.bf16.mxu0 %v21714_v46  ;;  %10754 = vmatprep.subr.bf16.mxu1 %v21717_v47  ;;  %v10824_v46 = vld [vmem:[%s28754_s4 + $0x128] sm:$0xff]  ;;  %v19317_v47 = vpack.c.bf16 %v10808_v42, %v10807_v41 }
 0x573   : > { %9853 = vmatpush1.bf16.msra.mxu0 %v21712_v48  ;;  %10755 = vmatpush1.bf16.msra.mxu1 %v21715_v49  ;;  %v10791_v48 = vld [vmem:[%s28754_s4 + $0x20] sm:$0xff]  ;;  %v10792_v49 = vld [vmem:[%s28754_s4 + $0x28] sm:$0xff] }
 0x574   : > { %9854 = vmatprep.subr.bf16.mxu0 %v21720_v50  ;;  %10756 = vmatprep.subr.bf16.mxu1 %v21723_v51  ;;  %v10809_v50 = vld [vmem:[%s28754_s4 + $0xb0] sm:$0xff]  ;;  %v10810_v51 = vld [vmem:[%s28754_s4 + $0xb8] sm:$0xff] }
 0x577   : > { %9855 = vmatpush1.bf16.msra.mxu0 %v21718_v52  ;;  %10757 = vmatpush1.bf16.msra.mxu1 %v21721_v53  ;;  %v19348_v52 = vpack.c.bf16 %v10824_v46, %v10823_v45  ;;  %v19319_v53 = vpack.c.bf16 %v10792_v49, %v10791_v48 }
 0x578   : > { %9856 = vmatprep.subr.bf16.mxu0 %v21726_v54  ;;  %10758 = vmatprep.subr.bf16.mxu1 %v21729_v55  ;;  %v10825_v54 = vld [vmem:[%s28754_s4 + $0x130] sm:$0xff]  ;;  %v10826_v55 = vld [vmem:[%s28754_s4 + $0x138] sm:$0xff] }
 0x57b   : > { %9857 = vmatpush1.bf16.msra.mxu0 %v21724_v56  ;;  %10759 = vmatpush1.bf16.msra.mxu1 %v21727_v57  ;;  %v19321_v56 = vpack.c.bf16 %v10810_v51, %v10809_v50  ;;  %v10793_v57 = vld [vmem:[%s28754_s4 + $0x30] sm:$0xff] }
 0x57c   : > { %9858 = vmatprep.subr.bf16.mxu0 %v21732_v58  ;;  %10760 = vmatprep.subr.bf16.mxu1 %v21735_v59  ;;  %v10794_v58 = vld [vmem:[%s28754_s4 + $0x38] sm:$0xff]  ;;  %v10811_v59 = vld [vmem:[%s28754_s4 + $0xc0] sm:$0xff] }
 0x57f   : > { %9859 = vmatpush1.bf16.msra.mxu0 %v21730_v60  ;;  %10761 = vmatpush1.bf16.msra.mxu1 %v21733_v61  ;;  %v10812_v60 = vld [vmem:[%s28754_s4 + $0xc8] sm:$0xff]  ;;  %v19351_v61 = vpack.c.bf16 %v10826_v55, %v10825_v54 }
 0x580   : > { %9860 = vmatprep.subr.bf16.mxu0 %v21738_v62  ;;  %10762 = vmatprep.subr.bf16.mxu1 %v21741_v63  ;;  %v19323_v62 = vpack.c.bf16 %v10794_v58, %v10793_v57  ;;  %v10827_v63 = vld [vmem:[%s28754_s4 + $0x140] sm:$0xff] }
 0x583   : > { %9861 = vmatpush1.bf16.msra.mxu0 %v21736_v0  ;;  %10763 = vmatpush1.bf16.msra.mxu1 %v21739_v1  ;;  %v10828_v0 = vld [vmem:[%s28754_s4 + $0x148] sm:$0xff]  ;;  %v19325_v1 = vpack.c.bf16 %v10812_v60, %v10811_v59 }
 0x584   : > { %9862 = vmatprep.subr.bf16.mxu0 %v21744_v2  ;;  %10764 = vmatprep.subr.bf16.mxu1 %v21747_v3  ;;  %v10795_v2 = vld [vmem:[%s28754_s4 + $0x40] sm:$0xff]  ;;  %v10796_v3 = vld [vmem:[%s28754_s4 + $0x48] sm:$0xff] }
 0x587   : > { %9863 = vmatpush1.bf16.msra.mxu0 %v21742_v4  ;;  %10765 = vmatpush1.bf16.msra.mxu1 %v21745_v5  ;;  %v10813_v4 = vld [vmem:[%s28754_s4 + $0xd0] sm:$0xff]  ;;  %v10814_v5 = vld [vmem:[%s28754_s4 + $0xd8] sm:$0xff] }
 0x588   : > { %9864 = vmatprep.subr.bf16.mxu0 %v21750_v6  ;;  %10766 = vmatprep.subr.bf16.mxu1 %v21753_v7  ;;  %v19354_v6 = vpack.c.bf16 %v10828_v0, %v10827_v63  ;;  %v19327_v7 = vpack.c.bf16 %v10796_v3, %v10795_v2  ;;  %v11001_v63 = vld [vmem:[%s28756_s6 + $0x8] sm:$0xff]  ;;  %v11007_v3 = vld [vmem:[%s28756_s6 + $0x38] sm:$0xff] }
 0x589   : > { %v11005_v0 = vld [vmem:[%s28756_s6 + $0x28] sm:$0xff] }
 0x58a   : > { %v19368_v2 = vpack.c.bf16 %v11005_v0, %v11001_v63  ;;  %v21813_v63 = vld [vmem:[%s27628_s0 + $0xc8] ss:$16 sps:$4 sm:$0xff]   ;;  %v21816_v0 = vld [vmem:[%s27628_s0 + $0xe4] ss:$16 sps:$4 sm:$0xff]  }
 0x58b   : > { %9865 = vmatpush1.bf16.msra.mxu0 %v21748_v8  ;;  %10767 = vmatpush1.bf16.msra.mxu1 %v21751_v9  ;;  %v10829_v8 = vld [vmem:[%s28754_s4 + $0x150] sm:$0xff]  ;;  %v10830_v9 = vld [vmem:[%s28754_s4 + $0x158] sm:$0xff] }
 0x58c   : > { %9866 = vmatprep.subr.bf16.mxu0 %v21756_v10  ;;  %10768 = vmatprep.subr.bf16.mxu1 %v21759_v11  ;;  %v19329_v10 = vpack.c.bf16 %v10814_v5, %v10813_v4  ;;  %v10797_v11 = vld [vmem:[%s28754_s4 + $0x50] sm:$0xff]  ;;  %v11000_v4 = vld [vmem:[%s28756_s6] sm:$0xff] }
 0x58d   : > { %v11004_v5 = vld [vmem:[%s28756_s6 + $0x20] sm:$0xff] }
 0x58f   : > { %9867 = vmatpush1.bf16.msra.mxu0 %v21754_v12  ;;  %10769 = vmatpush1.bf16.msra.mxu1 %v21757_v13  ;;  %v10798_v12 = vld [vmem:[%s28754_s4 + $0x58] sm:$0xff]  ;;  %v10815_v13 = vld [vmem:[%s28754_s4 + $0xe0] sm:$0xff] }
 0x590   : > { %9868 = vmatprep.subr.bf16.mxu0 %v21762_v14  ;;  %10770 = vmatprep.subr.bf16.mxu1 %v21765_v15  ;;  %v10816_v14 = vld [vmem:[%s28754_s4 + $0xe8] sm:$0xff]  ;;  %v19357_v15 = vpack.c.bf16 %v10830_v9, %v10829_v8  ;;  %v11002_v8 = vld [vmem:[%s28756_s6 + $0x10] sm:$0xff] }
 0x591   : > { %v11006_v9 = vld [vmem:[%s28756_s6 + $0x30] sm:$0xff] }
 0x593   : > { %9869 = vmatpush1.bf16.msra.mxu0 %v21760_v16  ;;  %10771 = vmatpush1.bf16.msra.mxu1 %v21763_v17  ;;  %v19331_v16 = vpack.c.bf16 %v10798_v12, %v10797_v11  ;;  %v10831_v17 = vld [vmem:[%s28754_s4 + $0x160] sm:$0xff] }
 0x594   : > { %9870 = vmatprep.subr.bf16.mxu0 %v21768_v18  ;;  %10772 = vmatprep.subr.bf16.mxu1 %v21771_v19  ;;  %v10832_v18 = vld [vmem:[%s28754_s4 + $0x168] sm:$0xff]  ;;  %v19333_v19 = vpack.c.bf16 %v10816_v14, %v10815_v13  ;;  %v18368_v13 = vld [vmem:[%s28755_s5] ss:$0 sm:$0xff] }
 0x595   : > { %v19360_v20 = vpack.c.bf16 %v10832_v18, %v10831_v17 }
 0x597   : > { %9871 = vmatpush1.bf16.msra.mxu0 %v21766_v22  ;;  %10773 = vmatpush1.bf16.msra.mxu1 %v21769_v23  ;;  %v10800_v22 = vld [vmem:[%s28754_s4 + $0x68] sm:$0xff]  ;;  %v10833_v23 = vld [vmem:[%s28754_s4 + $0x170] sm:$0xff] }
 0x598   : > { %19341 = vmatprep.subr.bf16.mxu1 %v22928_v36  ;;  %19310 = vmatprep.subr.bf16.mxu0 %v19309_v27  ;;  %v19335_v24 = vpack.c.bf16 %v10800_v22, %v10799_v21  ;;  %v19363_v26 = vpack.c.bf16 %v10834_v25, %v10833_v23  ;;  %v10817_v27 = vld [vmem:[%s28754_s4 + $0xf0] sm:$0xff]  ;;  %v11009_v21 = vld [vmem:[%s28756_s6 + $0x48] sm:$0xf]  ;;  %v11011_v22 = vld [vmem:[%s28756_s6 + $0x58] sm:$0xf]  ;;  %v22929_v25 = vmov 0.0  }
 0x599   : > { %v19337_v29 = vpack.c.bf16 %v10818_v28, %v10817_v27  ;;  %v11008_v23 = vld [vmem:[%s28756_s6 + $0x40] sm:$0xf]  ;;  %v21774_v27 = vld [vmem:[%s27628_s0 + $0x4] ss:$16 sps:$4 sm:$0xff]   ;;  %v21775_v28 = vld [vmem:[%s27628_s0 + $0xc] ss:$16 sps:$4 sm:$0xff]  }
 0x59a   : > { %9873 = vmatmul.mubr.bf16.vlgmr.msra.gmra.mrb[0].mxu0 %v507_v32  ;;  %10775 = vmatmul.mubr.bf16.vlgmr.msra.gmra.mrb[0].mxu1 %v507_v32  ;;  %v10835_v32 = vld [vmem:[%s28754_s4 + $0x180] sm:$0xff] }
 0x59b   : > { %19343 = vmatpush1.bf16.msra.mxu1 %v19342_v33  ;;  %19312 = vmatpush3.bf16.msra.mxu0 %v19311_v34  ;;  %v19339_v33 = vpack.c.bf16 %v10802_v31, %v10801_v30  ;;  %v10836_v34 = vld [vmem:[%s28754_s4 + $0x188] sm:$0xff]  ;;  %v21772_v31 = vld [vmem:[%s27628_s0] ss:$16 sps:$4 sm:$0xff]  }
 0x59c   : > { %19344 = vmatprep.subr.bf16.mxu1 %v22928_v36  ;;  %19314 = vmatprep.subr.bf16.mxu0 %v19313_v38  ;;  %v19366_v35 = vpack.c.bf16 %v10836_v34, %v10835_v32  ;;  %v27556_v38 = vshrl.u32 %v1919_v37, 7  ;;  %v21777_v32 = vld [vmem:[%s27628_s0 + $0x8] ss:$16 sps:$4 sm:$0xff]   ;;  %v21780_v34 = vld [vmem:[%s27628_s0 + $0x24] ss:$16 sps:$4 sm:$0xff]  }
 0x59e   : > { %v27559_v39 = vsub.s32 0, %v27556_v38  ;;  %v27562_v40 = vsub.s32 2, %v27556_v38  ;;  %v27568_v41 = vsub.s32 1, %v27556_v38  ;;  %v27571_v42 = vsub.s32 3, %v27556_v38 }
 0x59f   : > { %19346 = vmatpush1.bf16.msra.mxu1 %v19345_v43  ;;  %19316 = vmatpush3.bf16.msra.mxu0 %v19315_v44 }
 0x5a0   : > { %19347 = vmatprep.subr.bf16.mxu1 %v22928_v36  ;;  %19318 = vmatprep.subr.bf16.mxu0 %v19317_v47 }
 0x5a3   : > { %19349 = vmatpush1.bf16.msra.mxu1 %v19348_v52  ;;  %19320 = vmatpush3.bf16.msra.mxu0 %v19319_v53 }
 0x5a4   : > { %19350 = vmatprep.subr.bf16.mxu1 %v22928_v36  ;;  %19322 = vmatprep.subr.bf16.mxu0 %v19321_v56 }
 0x5a7   : > { %19352 = vmatpush1.bf16.msra.mxu1 %v19351_v61  ;;  %19324 = vmatpush3.bf16.msra.mxu0 %v19323_v62 }
 0x5a8   : > { %19353 = vmatprep.subr.bf16.mxu1 %v22928_v36  ;;  %19326 = vmatprep.subr.bf16.mxu0 %v19325_v1  ;;  %v11003_v1 = vld [vmem:[%s28756_s6 + $0x18] sm:$0xff] }
 0x5ab   : > { %19355 = vmatpush1.bf16.msra.mxu1 %v19354_v6  ;;  %19328 = vmatpush3.bf16.msra.mxu0 %v19327_v7  ;;  %v19372_v6 = vpack.c.bf16 %v11007_v3, %v11003_v1  ;;  %v19370_v7 = vpack.c.bf16 %v11004_v5, %v11000_v4  ;;  %v21817_v1 = vld [vmem:[%s27628_s0 + $0xec] ss:$16 sps:$4 sm:$0xff]   ;;  %v21819_v3 = vld [vmem:[%s27628_s0 + $0xe8] ss:$16 sps:$4 sm:$0xff]   ;;  %v21822_v4 = vld [vmem:[%s27628_s0 + $0x104] ss:$16 sps:$4 sm:$0xff]  }
 0x5ac   : > { %19356 = vmatprep.subr.bf16.mxu1 %v22928_v36  ;;  %19330 = vmatprep.subr.bf16.mxu0 %v19329_v10  ;;  %v19374_v10 = vpack.c.bf16 %v11006_v9, %v11002_v8  ;;  %v21823_v5 = vld [vmem:[%s27628_s0 + $0x10c] ss:$16 sps:$4 sm:$0xff]   ;;  %v21828_v8 = vld [vmem:[%s27628_s0 + $0x124] ss:$16 sps:$4 sm:$0xff]  }
 0x5ad   : > { %v21829_v9 = vld [vmem:[%s27628_s0 + $0x12c] ss:$16 sps:$4 sm:$0xff]  }
 0x5af   : > { %19358 = vmatpush1.bf16.msra.mxu1 %v19357_v15  ;;  %19332 = vmatpush3.bf16.msra.mxu0 %v19331_v16 }
 0x5b0   : > { %19359 = vmatprep.subr.bf16.mxu1 %v22928_v36  ;;  %19334 = vmatprep.subr.bf16.mxu0 %v19333_v19 }
 0x5b3   : > { %19361 = vmatpush1.bf16.msra.mxu1 %v19360_v20  ;;  %19336 = vmatpush3.bf16.msra.mxu0 %v19335_v24  ;;  %v11010_v24 = vld [vmem:[%s28756_s6 + $0x50] sm:$0xf] }
 0x5b4   : > { %19362 = vmatprep.subr.bf16.mxu1 %v22928_v36  ;;  %19338 = vmatprep.subr.bf16.mxu0 %v19337_v29  ;;  %v10990_v29 = vld [vmem:[%s28769_s1] sm:$0xff] }
 0x5b7   : > { %19364 = vmatpush1.bf16.msra.mxu1 %v19363_v26  ;;  %19340 = vmatpush3.bf16.msra.mxu0 %v19339_v33 }
 0x5b8   : > { %19365 = vmatprep.subr.bf16.mxu1 %v22928_v36  ;;  %v1917_v36 = vld [vmem:[%s28753_s3] sm:$0xf]  ;;  %19369 = vmatprep.subr.bf16.mxu0 %v19368_v2 }
 0x5b9   : > { %v1922_v43 = vrot.slane %v1917_v36, %v27559_v39  ;;  %v1930_v44 = vrot.slane %v1917_v36, %v27562_v40  ;;  %v1926_v45 = vrot.slane %v1917_v36, %v27568_v41  ;;  %v1934_v46 = vrot.slane %v1917_v36, %v27571_v42  ;;  %v21778_v36 = vld [vmem:[%s27628_s0 + $0x20] ss:$16 sps:$4 sm:$0xff]  }
 0x5ba   : > { %v21814_v2 = vld [vmem:[%s27628_s0 + $0xe0] ss:$16 sps:$4 sm:$0xff]  }
 0x5bb   : > { %19367 = vmatpush1.bf16.msra.mxu1 %v19366_v35  ;;  %v21781_v35 = vld [vmem:[%s27628_s0 + $0x2c] ss:$16 sps:$4 sm:$0xff]  }
 0x5bc   : > { %19373 = vmatprep.subr.bf16.mxu1 %v19372_v6  ;;  %v21820_v6 = vld [vmem:[%s27628_s0 + $0x100] ss:$16 sps:$4 sm:$0xff]  }
 0x66d   : > { %v9874_v47 = vpop.f32.mrb[0].mxu0  ;;  %v10776_v48 = vpop.f32.mrb[0].mxu1 }
 0x66e   : > { %v19376_v49 = vadd.f32 %v9874_v47, %v1922_v43  ;;  %v19378_v50 = vadd.f32 %v10776_v48, %v1930_v44  ;;  %v9876_v51 = vpop.f32.mrb[1].mxu0  ;;  %v10778_v52 = vpop.f32.mrb[1].mxu1  ;;  %v21783_v43 = vld [vmem:[%s27628_s0 + $0x28] ss:$16 sps:$4 sm:$0xff]   ;;  %v21786_v44 = vld [vmem:[%s27628_s0 + $0x44] ss:$16 sps:$4 sm:$0xff]  }
 0x66f   : > { %v19377_v53 = vadd.f32 %v9876_v51, %v1926_v45  ;;  %v19379_v54 = vadd.f32 %v10778_v52, %v1934_v46  ;;  %v9878_v55 = vpop.f32.mrb[2].mxu0  ;;  %v10780_v56 = vpop.f32.mrb[2].mxu1  ;;  %v21787_v45 = vld [vmem:[%s27628_s0 + $0x4c] ss:$16 sps:$4 sm:$0xff]   ;;  %v21784_v46 = vld [vmem:[%s27628_s0 + $0x40] ss:$16 sps:$4 sm:$0xff]  }
 0x670   : > { %v9879_v57 = vpop.f32.mrb[3].mxu0  ;;  %v10781_v58 = vpop.f32.mrb[3].mxu1  ;;  %v10783_v61 = vmax.f32 %v19376_v49, 0.0  ;;  %v10785_v62 = vmax.f32 %v19378_v50, 0.0  ;;  %v21789_v47 = vld [vmem:[%s27628_s0 + $0x48] ss:$16 sps:$4 sm:$0xff]  }
 0x671   : > { %v10784_v59 = vmax.f32 %v19377_v53, 0.0  ;;  %v10786_v60 = vmax.f32 %v19379_v54, 0.0  ;;  %v21792_v48 = vld [vmem:[%s27628_s0 + $0x64] ss:$16 sps:$4 sm:$0xff]   ;;  %v21793_v49 = vld [vmem:[%s27628_s0 + $0x6c] ss:$16 sps:$4 sm:$0xff]  }
 0x672   : > { %v21790_v50 = vld [vmem:[%s27628_s0 + $0x60] ss:$16 sps:$4 sm:$0xff]   ;;  %v21795_v51 = vld [vmem:[%s27628_s0 + $0x68] ss:$16 sps:$4 sm:$0xff]   ;;  %v21798_v52 = vld [vmem:[%s27628_s0 + $0x84] ss:$16 sps:$4 sm:$0xff]  }
 0x673   : > { %10912 = vmatprep.mubr.f32.mxu0 %v10784_v59  ;;  %18369 = vmatprep.mubr.msk.f32.mxu1 %vm10844_vm0, %v10786_v60  ;;  %v21799_v53 = vld [vmem:[%s27628_s0 + $0x8c] ss:$16 sps:$4 sm:$0xff]   ;;  %v21796_v54 = vld [vmem:[%s27628_s0 + $0x80] ss:$16 sps:$4 sm:$0xff]   ;;  %v21801_v55 = vld [vmem:[%s27628_s0 + $0x88] ss:$16 sps:$4 sm:$0xff]  }
 0x674   : > { %10913 = vmatmul.mubr.f32.vlgmr.msra.gmra.mrb[4].mxu0 %v10783_v61  ;;  %10983 = vmatmul.mubr.f32.vlgmr.msra.gmra.mrb[4].mxu1 %v10785_v62  ;;  %v21804_v56 = vld [vmem:[%s27628_s0 + $0xa4] ss:$16 sps:$4 sm:$0xff]   ;;  %v21805_v57 = vld [vmem:[%s27628_s0 + $0xac] ss:$16 sps:$4 sm:$0xff]   ;;  %v21802_v58 = vld [vmem:[%s27628_s0 + $0xa0] ss:$16 sps:$4 sm:$0xff]  }
 0x675   : > { %19371 = vmatpush1.bf16.msra.mxu0 %v19370_v7  ;;  %19375 = vmatpush1.bf16.msra.mxu1 %v19374_v10  ;;  %v21807_v59 = vld [vmem:[%s27628_s0 + $0xa8] ss:$16 sps:$4 sm:$0xff]   ;;  %v21810_v60 = vld [vmem:[%s27628_s0 + $0xc4] ss:$16 sps:$4 sm:$0xff]   ;;  %v21811_v61 = vld [vmem:[%s27628_s0 + $0xcc] ss:$16 sps:$4 sm:$0xff]  }
 0x676   : > { %18370 = vmatprep.subr.msk.mxu0 %vm11038_vm2, %v11009_v21  ;;  %18373 = vmatprep.subr.msk.mxu1 %vm11038_vm2, %v11011_v22  ;;  %v21808_v62 = vld [vmem:[%s27628_s0 + $0xc0] ss:$16 sps:$4 sm:$0xff]   ;;  %v21825_v7 = vld [vmem:[%s27628_s0 + $0x108] ss:$16 sps:$4 sm:$0xff]   ;;  %v21847_v21 = vld [vmem:[%s27628_s0 + $0x18c] ss:$16 sps:$4 sm:$0xff]  }
 0x677   : > { %11115 = vmatprep.mubr.f32.mxu0 %v22929_v25  ;;  %11186 = vmatprep.mubr.f32.mxu1 %v22929_v25  ;;  %v21826_v10 = vld [vmem:[%s27628_s0 + $0x120] ss:$16 sps:$4 sm:$0xff]   ;;  %v21853_v25 = vld [vmem:[%s27628_s0 + $0x1ac] ss:$16 sps:$4 sm:$0xff]  }
 0x678   : > { %v21844_v22 = vld [vmem:[%s27628_s0 + $0x180] ss:$16 sps:$4 sm:$0xff]  }
 0x679   : > { %18371 = vmatpush1.msk.msra.mxu0 %vm11038_vm2, %v11008_v23  ;;  %18374 = vmatpush1.msk.msra.mxu1 %vm11038_vm2, %v11010_v24  ;;  %v21849_v23 = vld [vmem:[%s27628_s0 + $0x188] ss:$16 sps:$4 sm:$0xff]   ;;  %v21852_v24 = vld [vmem:[%s27628_s0 + $0x1a4] ss:$16 sps:$4 sm:$0xff]  }
 0x67a   : > { %15896 = vmatprep.subr.bf16.mxu1 %v21774_v27  ;;  %19080 = vmatprep.subr.msk.bf16.mxu0 %vm10844_vm0, %v21775_v28  ;;  %v21855_v27 = vld [vmem:[%s27628_s0 + $0x1a8] ss:$16 sps:$4 sm:$0xff]   ;;  %v21858_v28 = vld [vmem:[%s27628_s0 + $0x1c4] ss:$16 sps:$4 sm:$0xff]  }
 0x747   : > { %v19306_v11 = vpop.f32.mrb[4].mxu0  ;;  %v10984_v12 = vpop.f32.mrb[4].mxu1 }
 0x748   : > { %v19307_v14 = vpop.f32.mrb[5].mxu0  ;;  %v10986_v15 = vpop.f32.mrb[5].mxu1 }
 0x749   : > { %v19308_v16 = vadd.f32 %v19307_v14, %v19306_v11  ;;  %v21831_v11 = vld [vmem:[%s27628_s0 + $0x128] ss:$16 sps:$4 sm:$0xff]   ;;  %v21832_v14 = vld [vmem:[%s27628_s0 + $0x140] ss:$16 sps:$4 sm:$0xff]  }
 0x74a   : > { %v21837_v15 = vld [vmem:[%s27628_s0 + $0x148] ss:$16 sps:$4 sm:$0xff]  }
 0x74b   : > { %v10915_v17 = vadd.f32 %v19308_v16, %v18368_v13  ;;  %v21835_v13 = vld [vmem:[%s27628_s0 + $0x14c] ss:$16 sps:$4 sm:$0xff]   ;;  %v21840_v16 = vld [vmem:[%s27628_s0 + $0x164] ss:$16 sps:$4 sm:$0xff]  }
 0x74d   : > { %v10985_v18 = vadd.f32 %v10984_v12, %v10915_v17  ;;  %v21834_v12 = vld [vmem:[%s27628_s0 + $0x144] ss:$16 sps:$4 sm:$0xff]   ;;  %v21841_v17 = vld [vmem:[%s27628_s0 + $0x16c] ss:$16 sps:$4 sm:$0xff]  }
 0x74f   : > { %v10991_v19 = vmul.f32 0.5, %v10985_v18  ;;  %10989 = vst.msk [vmem:[%s27609_s16] sm:$0xff] %vm10988_vm1, %v10985_v18 }
 0x751   : > { %v10992_v20 = vmul.f32 1.442695, %v10991_v19  ;;  %v21843_v19 = vld [vmem:[%s27628_s0 + $0x168] ss:$16 sps:$4 sm:$0xff]  }
 0x753   : > { %22828 = vpow2.f32 %v10992_v20  ;;  %v21846_v20 = vld [vmem:[%s27628_s0 + $0x184] ss:$16 sps:$4 sm:$0xff]  }
 0x75d   : > { %v22829_v26 = vpop.eup %22828 }
 0x75e   : > { %10995 = vrot.lane.b32.xlu0 %v22829_v26, %s22930_s30  ;;  %v21850_v26 = vld [vmem:[%s27628_s0 + $0x1a0] ss:$16 sps:$4 sm:$0xff]   ;;  %s27872_s30 = scalar_lea.vmem %s28759_s9, %s28777_s24 }
 0x7d0   : > { %v10996_v30 = vpop.permute.xlu0 %10995 }
 0x7d1   : > { %v10998_v33 = vmul.f32 %v10996_v30, %v10990_v29  ;;  %v21859_v29 = vld [vmem:[%s27628_s0 + $0x1cc] ss:$16 sps:$4 sm:$0xff]   ;;  %v21856_v30 = vld [vmem:[%s27628_s0 + $0x1c0] ss:$16 sps:$4 sm:$0xff]  }
 0x7d3   : > { %v10999_v37 = vadd.f32 %v10998_v33, %v10985_v18  ;;  %v21838_v18 = vld [vmem:[%s27628_s0 + $0x160] ss:$16 sps:$4 sm:$0xff]   ;;  %v21865_v33 = vld [vmem:[%s27628_s0 + $0x1ec] ss:$16 sps:$4 sm:$0xff]  }
 0x7d5   : > { %18372 = vmatmul.mubr.msk.f32.vlgmr.msra.gmra.mrb[6].mxu0 %vm11034_vm3, %v10999_v37  ;;  %18375 = vmatmul.mubr.msk.f32.vlgmr.msra.gmra.mrb[6].mxu1 %vm11034_vm3, %v10999_v37  ;;  %v21870_v37 = vld [vmem:[%s27628_s0 + $0x204] ss:$16 sps:$4 sm:$0xff]  }
 0x7d6   : > { %15897 = vmatpush1.bf16.xpose.msra.mxu1 %v21772_v31  ;;  %15938 = vmatpush1.bf16.xpose.msra.mxu0 %v21777_v32  ;;  %v21861_v31 = vld [vmem:[%s27628_s0 + $0x1c8] ss:$16 sps:$4 sm:$0xff]   ;;  %v21864_v32 = vld [vmem:[%s27628_s0 + $0x1e4] ss:$16 sps:$4 sm:$0xff]  }
 0x7d7   : > { %15898 = vmatprep.subr.bf16.mxu1 %v21780_v34  ;;  %19081 = vmatprep.subr.msk.bf16.mxu0 %vm10844_vm0, %v21781_v35  ;;  %v21862_v34 = vld [vmem:[%s27628_s0 + $0x1e0] ss:$16 sps:$4 sm:$0xff]   ;;  %v21867_v35 = vld [vmem:[%s27628_s0 + $0x1e8] ss:$16 sps:$4 sm:$0xff]  }
 0x7de   : > { %15899 = vmatpush1.bf16.xpose.msra.mxu1 %v21778_v36  ;;  %15940 = vmatpush1.bf16.xpose.msra.mxu0 %v21783_v43  ;;  %v21873_v36 = vld [vmem:[%s27628_s0 + $0x404] ss:$16 sps:$4 sm:$0xff]   ;;  %v11012_v43 = vld [vmem:[%s28757_s7] sm:$0xf] }
 0x7df   : > { %15900 = vmatprep.subr.bf16.mxu1 %v21786_v44  ;;  %19082 = vmatprep.subr.msk.bf16.mxu0 %vm10844_vm0, %v21787_v45  ;;  %v11017_v44 = vrot.slane %v11012_v43, %v27559_v39  ;;  %v11025_v45 = vrot.slane %v11012_v43, %v27562_v40 }
 0x7e6   : > { %15901 = vmatpush1.bf16.xpose.msra.mxu1 %v21784_v46  ;;  %15942 = vmatpush1.bf16.xpose.msra.mxu0 %v21789_v47  ;;  %v11021_v46 = vrot.slane %v11012_v43, %v27568_v41  ;;  %v11029_v47 = vrot.slane %v11012_v43, %v27571_v42  ;;  %v21930_v43 = vld [vmem:[%s27628_s0 + $0x344] ss:$16 sps:$4 sm:$0xff]  }
 0x7e7   : > { %15902 = vmatprep.subr.bf16.mxu1 %v21792_v48  ;;  %19083 = vmatprep.subr.msk.bf16.mxu0 %vm10844_vm0, %v21793_v49 }
 0x7ee   : > { %15903 = vmatpush1.bf16.xpose.msra.mxu1 %v21790_v50  ;;  %15944 = vmatpush1.bf16.xpose.msra.mxu0 %v21795_v51 }
 0x7ef   : > { %15904 = vmatprep.subr.bf16.mxu1 %v21798_v52  ;;  %19084 = vmatprep.subr.msk.bf16.mxu0 %vm10844_vm0, %v21799_v53 }
 0x7f6   : > { %15905 = vmatpush1.bf16.xpose.msra.mxu1 %v21796_v54  ;;  %15946 = vmatpush1.bf16.xpose.msra.mxu0 %v21801_v55 }
 0x7f7   : > { %15906 = vmatprep.subr.bf16.mxu1 %v21804_v56  ;;  %19085 = vmatprep.subr.msk.bf16.mxu0 %vm10844_vm0, %v21805_v57 }
 0x7fe   : > { %15907 = vmatpush1.bf16.xpose.msra.mxu1 %v21802_v58  ;;  %15948 = vmatpush1.bf16.xpose.msra.mxu0 %v21807_v59 }
 0x7ff   : > { %15908 = vmatprep.subr.bf16.mxu1 %v21810_v60  ;;  %19086 = vmatprep.subr.msk.bf16.mxu0 %vm10844_vm0, %v21811_v61 }
 0x806   : > { %15909 = vmatpush1.bf16.xpose.msra.mxu1 %v21808_v62  ;;  %15950 = vmatpush1.bf16.xpose.msra.mxu0 %v21813_v63  ;;  %v21868_v62 = vld [vmem:[%s27628_s0 + $0x200] ss:$16 sps:$4 sm:$0xff]  }
 0x807   : > { %15910 = vmatprep.subr.bf16.mxu1 %v21816_v0  ;;  %19087 = vmatprep.subr.msk.bf16.mxu0 %vm10844_vm0, %v21817_v1  ;;  %v21871_v63 = vld [vmem:[%s27628_s0 + $0x400] ss:$16 sps:$4 sm:$0xff]  }
 0x80e   : > { %15911 = vmatpush1.bf16.xpose.msra.mxu1 %v21814_v2  ;;  %15952 = vmatpush1.bf16.xpose.msra.mxu0 %v21819_v3  ;;  %v21876_v2 = vld [vmem:[%s27628_s0 + $0x224] ss:$16 sps:$4 sm:$0xff]  }
 0x80f   : > { %15912 = vmatprep.subr.bf16.mxu1 %v21822_v4  ;;  %19088 = vmatprep.subr.msk.bf16.mxu0 %vm10844_vm0, %v21823_v5  ;;  %v21879_v3 = vld [vmem:[%s27628_s0 + $0x424] ss:$16 sps:$4 sm:$0xff]   ;;  %v21874_v4 = vld [vmem:[%s27628_s0 + $0x220] ss:$16 sps:$4 sm:$0xff]  }
 0x810   : > { %v21877_v5 = vld [vmem:[%s27628_s0 + $0x420] ss:$16 sps:$4 sm:$0xff]  }
 0x816   : > { %15913 = vmatpush1.bf16.xpose.msra.mxu1 %v21820_v6  ;;  %15954 = vmatpush1.bf16.xpose.msra.mxu0 %v21825_v7  ;;  %v21882_v6 = vld [vmem:[%s27628_s0 + $0x244] ss:$16 sps:$4 sm:$0xff]  }
 0x817   : > { %15914 = vmatprep.subr.bf16.mxu1 %v21828_v8  ;;  %19089 = vmatprep.subr.msk.bf16.mxu0 %vm10844_vm0, %v21829_v9  ;;  %v21885_v7 = vld [vmem:[%s27628_s0 + $0x444] ss:$16 sps:$4 sm:$0xff]   ;;  %v21880_v8 = vld [vmem:[%s27628_s0 + $0x240] ss:$16 sps:$4 sm:$0xff]  }
 0x818   : > { %v21883_v9 = vld [vmem:[%s27628_s0 + $0x440] ss:$16 sps:$4 sm:$0xff]  }
 0x81e   : > { %15915 = vmatpush1.bf16.xpose.msra.mxu1 %v21826_v10  ;;  %15956 = vmatpush1.bf16.xpose.msra.mxu0 %v21831_v11  ;;  %v21888_v10 = vld [vmem:[%s27628_s0 + $0x264] ss:$16 sps:$4 sm:$0xff]  }
 0x81f   : > { %15916 = vmatprep.subr.bf16.mxu1 %v21834_v12  ;;  %19090 = vmatprep.subr.msk.bf16.mxu0 %vm10844_vm0, %v21835_v13  ;;  %v21891_v11 = vld [vmem:[%s27628_s0 + $0x464] ss:$16 sps:$4 sm:$0xff]   ;;  %v21886_v12 = vld [vmem:[%s27628_s0 + $0x260] ss:$16 sps:$4 sm:$0xff]  }
 0x820   : > { %v21889_v13 = vld [vmem:[%s27628_s0 + $0x460] ss:$16 sps:$4 sm:$0xff]  }
 0x826   : > { %15917 = vmatpush1.bf16.xpose.msra.mxu1 %v21832_v14  ;;  %15958 = vmatpush1.bf16.xpose.msra.mxu0 %v21837_v15  ;;  %v21894_v14 = vld [vmem:[%s27628_s0 + $0x284] ss:$16 sps:$4 sm:$0xff]  }
 0x827   : > { %15918 = vmatprep.subr.bf16.mxu1 %v21840_v16  ;;  %19091 = vmatprep.subr.msk.bf16.mxu0 %vm10844_vm0, %v21841_v17  ;;  %v21897_v15 = vld [vmem:[%s27628_s0 + $0x484] ss:$16 sps:$4 sm:$0xff]   ;;  %v21892_v16 = vld [vmem:[%s27628_s0 + $0x280] ss:$16 sps:$4 sm:$0xff]  }
 0x828   : > { %v21895_v17 = vld [vmem:[%s27628_s0 + $0x480] ss:$16 sps:$4 sm:$0xff]  }
 0x82e   : > { %15919 = vmatpush1.bf16.xpose.msra.mxu1 %v21838_v18  ;;  %15960 = vmatpush1.bf16.xpose.msra.mxu0 %v21843_v19  ;;  %v21900_v18 = vld [vmem:[%s27628_s0 + $0x2a4] ss:$16 sps:$4 sm:$0xff]  }
 0x82f   : > { %15920 = vmatprep.subr.bf16.mxu1 %v21846_v20  ;;  %19092 = vmatprep.subr.msk.bf16.mxu0 %vm10844_vm0, %v21847_v21  ;;  %v21903_v19 = vld [vmem:[%s27628_s0 + $0x4a4] ss:$16 sps:$4 sm:$0xff]   ;;  %v21898_v20 = vld [vmem:[%s27628_s0 + $0x2a0] ss:$16 sps:$4 sm:$0xff]  }
 0x830   : > { %v21901_v21 = vld [vmem:[%s27628_s0 + $0x4a0] ss:$16 sps:$4 sm:$0xff]  }
 0x836   : > { %15921 = vmatpush1.bf16.xpose.msra.mxu1 %v21844_v22  ;;  %15962 = vmatpush1.bf16.xpose.msra.mxu0 %v21849_v23  ;;  %v21906_v22 = vld [vmem:[%s27628_s0 + $0x2c4] ss:$16 sps:$4 sm:$0xff]  }
 0x837   : > { %15922 = vmatprep.subr.bf16.mxu1 %v21852_v24  ;;  %19093 = vmatprep.subr.msk.bf16.mxu0 %vm10844_vm0, %v21853_v25  ;;  %v21909_v23 = vld [vmem:[%s27628_s0 + $0x4c4] ss:$16 sps:$4 sm:$0xff]   ;;  %v21904_v24 = vld [vmem:[%s27628_s0 + $0x2c0] ss:$16 sps:$4 sm:$0xff]  }
 0x838   : > { %v21907_v25 = vld [vmem:[%s27628_s0 + $0x4c0] ss:$16 sps:$4 sm:$0xff]  }
 0x83e   : > { %15923 = vmatpush1.bf16.xpose.msra.mxu1 %v21850_v26  ;;  %15964 = vmatpush1.bf16.xpose.msra.mxu0 %v21855_v27  ;;  %v21912_v26 = vld [vmem:[%s27628_s0 + $0x2e4] ss:$16 sps:$4 sm:$0xff]  }
 0x83f   : > { %15924 = vmatprep.subr.bf16.mxu1 %v21858_v28  ;;  %19094 = vmatprep.subr.msk.bf16.mxu0 %vm10844_vm0, %v21859_v29  ;;  %v21915_v27 = vld [vmem:[%s27628_s0 + $0x4e4] ss:$16 sps:$4 sm:$0xff]   ;;  %v21910_v28 = vld [vmem:[%s27628_s0 + $0x2e0] ss:$16 sps:$4 sm:$0xff]  }
 0x840   : > { %v21913_v29 = vld [vmem:[%s27628_s0 + $0x4e0] ss:$16 sps:$4 sm:$0xff]  }
 0x846   : > { %15925 = vmatpush1.bf16.xpose.msra.mxu1 %v21856_v30  ;;  %15966 = vmatpush1.bf16.xpose.msra.mxu0 %v21861_v31  ;;  %v21918_v30 = vld [vmem:[%s27628_s0 + $0x304] ss:$16 sps:$4 sm:$0xff]  }
 0x847   : > { %15926 = vmatprep.subr.bf16.mxu1 %v21864_v32  ;;  %19095 = vmatprep.subr.msk.bf16.mxu0 %vm10844_vm0, %v21865_v33  ;;  %v21921_v31 = vld [vmem:[%s27628_s0 + $0x504] ss:$16 sps:$4 sm:$0xff]   ;;  %v21916_v32 = vld [vmem:[%s27628_s0 + $0x300] ss:$16 sps:$4 sm:$0xff]  }
 0x848   : > { %v21919_v33 = vld [vmem:[%s27628_s0 + $0x500] ss:$16 sps:$4 sm:$0xff]  }
 0x84e   : > { %15927 = vmatpush1.bf16.xpose.msra.mxu1 %v21862_v34  ;;  %15968 = vmatpush1.bf16.xpose.msra.mxu0 %v21867_v35  ;;  %v21924_v34 = vld [vmem:[%s27628_s0 + $0x324] ss:$16 sps:$4 sm:$0xff]  }
 0x84f   : > { %15978 = vmatprep.subr.bf16.mxu1 %v21870_v37  ;;  %16060 = vmatprep.subr.bf16.mxu0 %v21873_v36  ;;  %v21927_v35 = vld [vmem:[%s27628_s0 + $0x524] ss:$16 sps:$4 sm:$0xff]   ;;  %v21922_v37 = vld [vmem:[%s27628_s0 + $0x320] ss:$16 sps:$4 sm:$0xff]  }
 0x850   : > { %v21925_v36 = vld [vmem:[%s27628_s0 + $0x520] ss:$16 sps:$4 sm:$0xff]  }
 0x8a8   : > { %v11117_v48 = vpop.f32.mrb[6].mxu0  ;;  %v11188_v49 = vpop.f32.mrb[6].mxu1 }
 0x8a9   : > { %v11118_v50 = vadd.f32 %v11117_v48, %v11017_v44  ;;  %v11189_v51 = vadd.f32 %v11188_v49, %v11025_v45  ;;  %v11119_v52 = vpop.f32.mrb[7].mxu0  ;;  %v11190_v53 = vpop.f32.mrb[7].mxu1  ;;  %v21933_v44 = vld [vmem:[%s27628_s0 + $0x544] ss:$16 sps:$4 sm:$0xff]   ;;  %v21928_v45 = vld [vmem:[%s27628_s0 + $0x340] ss:$16 sps:$4 sm:$0xff]  }
 0x8aa   : > { %v11120_v54 = vadd.f32 %v11119_v52, %v11021_v46  ;;  %v11191_v55 = vadd.f32 %v11190_v53, %v11029_v47  ;;  %v21931_v46 = vld [vmem:[%s27628_s0 + $0x540] ss:$16 sps:$4 sm:$0xff]   ;;  %v21936_v47 = vld [vmem:[%s27628_s0 + $0x364] ss:$16 sps:$4 sm:$0xff]  }
 0x8ab   : > { %v11193_v56 = vmax.f32 %v11118_v50, 0.0  ;;  %v11195_v57 = vmax.f32 %v11189_v51, 0.0  ;;  %v21939_v48 = vld [vmem:[%s27628_s0 + $0x564] ss:$16 sps:$4 sm:$0xff]   ;;  %v21934_v49 = vld [vmem:[%s27628_s0 + $0x360] ss:$16 sps:$4 sm:$0xff]  }
 0x8ac   : > { %v11194_v58 = vmax.f32 %v11120_v54, 0.0  ;;  %v11196_v59 = vmax.f32 %v11191_v55, 0.0  ;;  %v21937_v50 = vld [vmem:[%s27628_s0 + $0x560] ss:$16 sps:$4 sm:$0xff]   ;;  %v21942_v51 = vld [vmem:[%s27628_s0 + $0x384] ss:$16 sps:$4 sm:$0xff]  }
 0x8ad   : > { %v27728_v0 = vpack.c.bf16 %v11193_v56, %v11193_v56  ;;  %v27730_v1 = vpack.c.bf16 %v11195_v57, %v11195_v57  ;;  %v21945_v52 = vld [vmem:[%s27628_s0 + $0x584] ss:$16 sps:$4 sm:$0xff]   ;;  %v21940_v53 = vld [vmem:[%s27628_s0 + $0x380] ss:$16 sps:$4 sm:$0xff]  }
 0x8ae   : > { %v27722_v60 = vpack.c.bf16 %v11194_v58, %v11194_v58  ;;  %v27724_v61 = vpack.c.bf16 %v11196_v59, %v11196_v59  ;;  %v21943_v54 = vld [vmem:[%s27628_s0 + $0x580] ss:$16 sps:$4 sm:$0xff]   ;;  %v21948_v55 = vld [vmem:[%s27628_s0 + $0x3a4] ss:$16 sps:$4 sm:$0xff]  }
 0x8af   : > { %v21951_v56 = vld [vmem:[%s27628_s0 + $0x5a4] ss:$16 sps:$4 sm:$0xff]   ;;  %v21946_v57 = vld [vmem:[%s27628_s0 + $0x3a0] ss:$16 sps:$4 sm:$0xff]  }
 0x8b0   : > { %15928 = vmatprep.mubr.bf16.mxu1 %v27722_v60  ;;  %19096 = vmatprep.mubr.msk.bf16.mxu0 %vm10844_vm0, %v27724_v61  ;;  %v21949_v58 = vld [vmem:[%s27628_s0 + $0x5a0] ss:$16 sps:$4 sm:$0xff]   ;;  %v21954_v59 = vld [vmem:[%s27628_s0 + $0x3c4] ss:$16 sps:$4 sm:$0xff]  }
 0x8b1   : > { %15929 = vmatmul.mubr.bf16.vlgmr.msra.gmra.mrb[8].mxu1 %v27728_v0  ;;  %15970 = vmatmul.mubr.bf16.vlgmr.msra.gmra.mrb[8].mxu0 %v27730_v1 }
 0x8b2   : > { %15979 = vmatpush1.bf16.xpose.msra.mxu1 %v21868_v62  ;;  %16061 = vmatpush1.bf16.xpose.msra.mxu0 %v21871_v63  ;;  %v21957_v62 = vld [vmem:[%s27628_s0 + $0x5c4] ss:$16 sps:$4 sm:$0xff]   ;;  %v21952_v63 = vld [vmem:[%s27628_s0 + $0x3c0] ss:$16 sps:$4 sm:$0xff]  }
 0x8b3   : > { %16010 = vmatprep.mubr.bf16.mxu1 %v27722_v60  ;;  %16092 = vmatprep.mubr.bf16.mxu0 %v27722_v60 }
 0x8b4   : > { %15980 = vmatprep.subr.bf16.mxu1 %v21876_v2  ;;  %16062 = vmatprep.subr.bf16.mxu0 %v21879_v3  ;;  %v21955_v2 = vld [vmem:[%s27628_s0 + $0x5c0] ss:$16 sps:$4 sm:$0xff]   ;;  %v21960_v3 = vld [vmem:[%s27628_s0 + $0x3e4] ss:$16 sps:$4 sm:$0xff]  }
 0x8ba   : > { %15981 = vmatpush1.bf16.xpose.msra.mxu1 %v21874_v4  ;;  %16063 = vmatpush1.bf16.xpose.msra.mxu0 %v21877_v5  ;;  %v21963_v4 = vld [vmem:[%s27628_s0 + $0x5e4] ss:$16 sps:$4 sm:$0xff]   ;;  %v21958_v5 = vld [vmem:[%s27628_s0 + $0x3e0] ss:$16 sps:$4 sm:$0xff]  }
 0x8bb   : > { %15982 = vmatprep.subr.bf16.mxu1 %v21882_v6  ;;  %16064 = vmatprep.subr.bf16.mxu0 %v21885_v7  ;;  %v21961_v6 = vld [vmem:[%s27628_s0 + $0x5e0] ss:$16 sps:$4 sm:$0xff]   ;;  %v21964_v7 = vld [vmem:[%s27628_s0 + $0x20c] ss:$16 sps:$4 sm:$0xff]  }
 0x8c2   : > { %15983 = vmatpush1.bf16.xpose.msra.mxu1 %v21880_v8  ;;  %16065 = vmatpush1.bf16.xpose.msra.mxu0 %v21883_v9  ;;  %v21966_v8 = vld [vmem:[%s27628_s0 + $0x40c] ss:$16 sps:$4 sm:$0xff]   ;;  %v21968_v9 = vld [vmem:[%s27628_s0 + $0x208] ss:$16 sps:$4 sm:$0xff]  }
 0x8c3   : > { %15984 = vmatprep.subr.bf16.mxu1 %v21888_v10  ;;  %16066 = vmatprep.subr.bf16.mxu0 %v21891_v11  ;;  %v21969_v10 = vld [vmem:[%s27628_s0 + $0x408] ss:$16 sps:$4 sm:$0xff]   ;;  %v21970_v11 = vld [vmem:[%s27628_s0 + $0x22c] ss:$16 sps:$4 sm:$0xff]  }
 0x8ca   : > { %15985 = vmatpush1.bf16.xpose.msra.mxu1 %v21886_v12  ;;  %16067 = vmatpush1.bf16.xpose.msra.mxu0 %v21889_v13  ;;  %v21972_v12 = vld [vmem:[%s27628_s0 + $0x42c] ss:$16 sps:$4 sm:$0xff]   ;;  %v21974_v13 = vld [vmem:[%s27628_s0 + $0x228] ss:$16 sps:$4 sm:$0xff]  }
 0x8cb   : > { %15986 = vmatprep.subr.bf16.mxu1 %v21894_v14  ;;  %16068 = vmatprep.subr.bf16.mxu0 %v21897_v15  ;;  %v21975_v14 = vld [vmem:[%s27628_s0 + $0x428] ss:$16 sps:$4 sm:$0xff]   ;;  %v21976_v15 = vld [vmem:[%s27628_s0 + $0x24c] ss:$16 sps:$4 sm:$0xff]  }
 0x8d2   : > { %15987 = vmatpush1.bf16.xpose.msra.mxu1 %v21892_v16  ;;  %16069 = vmatpush1.bf16.xpose.msra.mxu0 %v21895_v17  ;;  %v21978_v16 = vld [vmem:[%s27628_s0 + $0x44c] ss:$16 sps:$4 sm:$0xff]   ;;  %v21980_v17 = vld [vmem:[%s27628_s0 + $0x248] ss:$16 sps:$4 sm:$0xff]  }
 0x8d3   : > { %15988 = vmatprep.subr.bf16.mxu1 %v21900_v18  ;;  %16070 = vmatprep.subr.bf16.mxu0 %v21903_v19  ;;  %v21981_v18 = vld [vmem:[%s27628_s0 + $0x448] ss:$16 sps:$4 sm:$0xff]   ;;  %v21982_v19 = vld [vmem:[%s27628_s0 + $0x26c] ss:$16 sps:$4 sm:$0xff]  }
 0x8da   : > { %15989 = vmatpush1.bf16.xpose.msra.mxu1 %v21898_v20  ;;  %16071 = vmatpush1.bf16.xpose.msra.mxu0 %v21901_v21  ;;  %v21984_v20 = vld [vmem:[%s27628_s0 + $0x46c] ss:$16 sps:$4 sm:$0xff]   ;;  %v21986_v21 = vld [vmem:[%s27628_s0 + $0x268] ss:$16 sps:$4 sm:$0xff]  }
 0x8db   : > { %15990 = vmatprep.subr.bf16.mxu1 %v21906_v22  ;;  %16072 = vmatprep.subr.bf16.mxu0 %v21909_v23  ;;  %v21987_v22 = vld [vmem:[%s27628_s0 + $0x468] ss:$16 sps:$4 sm:$0xff]   ;;  %v21988_v23 = vld [vmem:[%s27628_s0 + $0x28c] ss:$16 sps:$4 sm:$0xff]  }
 0x8e2   : > { %15991 = vmatpush1.bf16.xpose.msra.mxu1 %v21904_v24  ;;  %16073 = vmatpush1.bf16.xpose.msra.mxu0 %v21907_v25  ;;  %v21990_v24 = vld [vmem:[%s27628_s0 + $0x48c] ss:$16 sps:$4 sm:$0xff]   ;;  %v21992_v25 = vld [vmem:[%s27628_s0 + $0x288] ss:$16 sps:$4 sm:$0xff]  }
 0x8e3   : > { %15992 = vmatprep.subr.bf16.mxu1 %v21912_v26  ;;  %16074 = vmatprep.subr.bf16.mxu0 %v21915_v27  ;;  %v21993_v26 = vld [vmem:[%s27628_s0 + $0x488] ss:$16 sps:$4 sm:$0xff]   ;;  %v21994_v27 = vld [vmem:[%s27628_s0 + $0x2ac] ss:$16 sps:$4 sm:$0xff]  }
 0x8ea   : > { %15993 = vmatpush1.bf16.xpose.msra.mxu1 %v21910_v28  ;;  %16075 = vmatpush1.bf16.xpose.msra.mxu0 %v21913_v29  ;;  %v21996_v28 = vld [vmem:[%s27628_s0 + $0x4ac] ss:$16 sps:$4 sm:$0xff]   ;;  %v21998_v29 = vld [vmem:[%s27628_s0 + $0x2a8] ss:$16 sps:$4 sm:$0xff]  }
 0x8eb   : > { %15994 = vmatprep.subr.bf16.mxu1 %v21918_v30  ;;  %16076 = vmatprep.subr.bf16.mxu0 %v21921_v31  ;;  %v21999_v30 = vld [vmem:[%s27628_s0 + $0x4a8] ss:$16 sps:$4 sm:$0xff]   ;;  %v22000_v31 = vld [vmem:[%s27628_s0 + $0x2cc] ss:$16 sps:$4 sm:$0xff]  }
 0x8f2   : > { %15995 = vmatpush1.bf16.xpose.msra.mxu1 %v21916_v32  ;;  %16077 = vmatpush1.bf16.xpose.msra.mxu0 %v21919_v33  ;;  %v22002_v32 = vld [vmem:[%s27628_s0 + $0x4cc] ss:$16 sps:$4 sm:$0xff]   ;;  %v22004_v33 = vld [vmem:[%s27628_s0 + $0x2c8] ss:$16 sps:$4 sm:$0xff]  }
 0x8f3   : > { %15996 = vmatprep.subr.bf16.mxu1 %v21924_v34  ;;  %16078 = vmatprep.subr.bf16.mxu0 %v21927_v35  ;;  %v22005_v34 = vld [vmem:[%s27628_s0 + $0x4c8] ss:$16 sps:$4 sm:$0xff]   ;;  %v22006_v35 = vld [vmem:[%s27628_s0 + $0x2ec] ss:$16 sps:$4 sm:$0xff]  }
 0x8fa   : > { %15997 = vmatpush1.bf16.xpose.msra.mxu1 %v21922_v37  ;;  %16079 = vmatpush1.bf16.xpose.msra.mxu0 %v21925_v36  ;;  %v22008_v37 = vld [vmem:[%s27628_s0 + $0x4ec] ss:$16 sps:$4 sm:$0xff]   ;;  %v22010_v36 = vld [vmem:[%s27628_s0 + $0x2e8] ss:$16 sps:$4 sm:$0xff]  }
 0x8fb   : > { %15998 = vmatprep.subr.bf16.mxu1 %v21930_v43  ;;  %16080 = vmatprep.subr.bf16.mxu0 %v21933_v44  ;;  %v22011_v43 = vld [vmem:[%s27628_s0 + $0x4e8] ss:$16 sps:$4 sm:$0xff]   ;;  %v22012_v44 = vld [vmem:[%s27628_s0 + $0x30c] ss:$16 sps:$4 sm:$0xff]  }
 0x902   : > { %15999 = vmatpush1.bf16.xpose.msra.mxu1 %v21928_v45  ;;  %16081 = vmatpush1.bf16.xpose.msra.mxu0 %v21931_v46  ;;  %v22014_v45 = vld [vmem:[%s27628_s0 + $0x50c] ss:$16 sps:$4 sm:$0xff]   ;;  %v22016_v46 = vld [vmem:[%s27628_s0 + $0x308] ss:$16 sps:$4 sm:$0xff]  }
 0x903   : > { %16000 = vmatprep.subr.bf16.mxu1 %v21936_v47  ;;  %16082 = vmatprep.subr.bf16.mxu0 %v21939_v48  ;;  %v22017_v47 = vld [vmem:[%s27628_s0 + $0x508] ss:$16 sps:$4 sm:$0xff]   ;;  %v22018_v48 = vld [vmem:[%s27628_s0 + $0x32c] ss:$16 sps:$4 sm:$0xff]  }
 0x90a   : > { %16001 = vmatpush1.bf16.xpose.msra.mxu1 %v21934_v49  ;;  %16083 = vmatpush1.bf16.xpose.msra.mxu0 %v21937_v50  ;;  %v22020_v49 = vld [vmem:[%s27628_s0 + $0x52c] ss:$16 sps:$4 sm:$0xff]   ;;  %v22022_v50 = vld [vmem:[%s27628_s0 + $0x328] ss:$16 sps:$4 sm:$0xff]  }
 0x90b   : > { %16002 = vmatprep.subr.bf16.mxu1 %v21942_v51  ;;  %16084 = vmatprep.subr.bf16.mxu0 %v21945_v52  ;;  %v22023_v51 = vld [vmem:[%s27628_s0 + $0x528] ss:$16 sps:$4 sm:$0xff]   ;;  %v22024_v52 = vld [vmem:[%s27628_s0 + $0x34c] ss:$16 sps:$4 sm:$0xff]  }
 0x912   : > { %16003 = vmatpush1.bf16.xpose.msra.mxu1 %v21940_v53  ;;  %16085 = vmatpush1.bf16.xpose.msra.mxu0 %v21943_v54  ;;  %v22026_v53 = vld [vmem:[%s27628_s0 + $0x54c] ss:$16 sps:$4 sm:$0xff]   ;;  %v22028_v54 = vld [vmem:[%s27628_s0 + $0x348] ss:$16 sps:$4 sm:$0xff]  }
 0x913   : > { %16004 = vmatprep.subr.bf16.mxu1 %v21948_v55  ;;  %16086 = vmatprep.subr.bf16.mxu0 %v21951_v56  ;;  %v27877_v55 = vld [vmem:[%s27872_s30] sm:$0xff]  ;;  %v22029_v56 = vld [vmem:[%s27628_s0 + $0x548] ss:$16 sps:$4 sm:$0xff]  }
 0x91a   : > { %16005 = vmatpush1.bf16.xpose.msra.mxu1 %v21946_v57  ;;  %16087 = vmatpush1.bf16.xpose.msra.mxu0 %v21949_v58  ;;  %v22030_v57 = vld [vmem:[%s27628_s0 + $0x36c] ss:$16 sps:$4 sm:$0xff]  }
 0x91b   : > { %16006 = vmatprep.subr.bf16.mxu1 %v21954_v59  ;;  %16088 = vmatprep.subr.bf16.mxu0 %v21957_v62  ;;  %v22032_v58 = vld [vmem:[%s27628_s0 + $0x56c] ss:$16 sps:$4 sm:$0xff]   ;;  %v11914_v59 = vrot.slane %v27877_v55, %v27559_v39  ;;  %v11918_v62 = vrot.slane %v27877_v55, %v27568_v41 }
 0x922   : > { %16007 = vmatpush1.bf16.xpose.msra.mxu1 %v21952_v63  ;;  %16089 = vmatpush1.bf16.xpose.msra.mxu0 %v21955_v2 }
 0x923   : > { %16008 = vmatprep.subr.bf16.mxu1 %v21960_v3  ;;  %16090 = vmatprep.subr.bf16.mxu0 %v21963_v4 }
 0x92a   : > { %16009 = vmatpush1.bf16.xpose.msra.mxu1 %v21958_v5  ;;  %16091 = vmatpush1.bf16.xpose.msra.mxu0 %v21961_v6 }
 0x92b   : > { %19097 = vmatprep.subr.msk.bf16.mxu1 %vm10844_vm0, %v21964_v7  ;;  %19114 = vmatprep.subr.msk.bf16.mxu0 %vm10844_vm0, %v21966_v8 }
 0x931   : > { %16011 = vmatmul.mubr.bf16.vlgmr.msra.gmra.mrb[12].mxu1 %v27728_v0  ;;  %16093 = vmatmul.mubr.bf16.vlgmr.msra.gmra.mrb[12].mxu0 %v27728_v0 }
 0x932   : > { %16020 = vmatpush1.bf16.xpose.msra.mxu1 %v21968_v9  ;;  %19113 = vmatprep.mubr.msk.bf16.mxu1 %vm10844_vm0, %v27724_v61  ;;  %v22034_v9 = vld [vmem:[%s27628_s0 + $0x368] ss:$16 sps:$4 sm:$0xff]  }
 0x933   : > { %16102 = vmatpush1.bf16.xpose.msra.mxu0 %v21969_v10  ;;  %19130 = vmatprep.mubr.msk.bf16.mxu0 %vm10844_vm0, %v27724_v61 }
 0x934   : > { %19098 = vmatprep.subr.msk.bf16.mxu1 %vm10844_vm0, %v21970_v11  ;;  %19115 = vmatprep.subr.msk.bf16.mxu0 %vm10844_vm0, %v21972_v12 }
 0x93a   : > { %16022 = vmatpush1.bf16.xpose.msra.mxu1 %v21974_v13  ;;  %v22035_v13 = vld [vmem:[%s27628_s0 + $0x568] ss:$16 sps:$4 sm:$0xff]  }
 0x93b   : > { %16104 = vmatpush1.bf16.xpose.msra.mxu0 %v21975_v14  ;;  %19099 = vmatprep.subr.msk.bf16.mxu1 %vm10844_vm0, %v21976_v15  ;;  %v22036_v14 = vld [vmem:[%s27628_s0 + $0x38c] ss:$16 sps:$4 sm:$0xff]  }
 0x93c   : > { %19116 = vmatprep.subr.msk.bf16.mxu0 %vm10844_vm0, %v21978_v16  ;;  %v22038_v16 = vld [vmem:[%s27628_s0 + $0x58c] ss:$16 sps:$4 sm:$0xff]  }
 0x942   : > { %16024 = vmatpush1.bf16.xpose.msra.mxu1 %v21980_v17  ;;  %v22040_v17 = vld [vmem:[%s27628_s0 + $0x388] ss:$16 sps:$4 sm:$0xff]  }
 0x943   : > { %16106 = vmatpush1.bf16.xpose.msra.mxu0 %v21981_v18  ;;  %19100 = vmatprep.subr.msk.bf16.mxu1 %vm10844_vm0, %v21982_v19  ;;  %v22041_v18 = vld [vmem:[%s27628_s0 + $0x588] ss:$16 sps:$4 sm:$0xff]   ;;  %v22042_v19 = vld [vmem:[%s27628_s0 + $0x3ac] ss:$16 sps:$4 sm:$0xff]  }
 0x944   : > { %19117 = vmatprep.subr.msk.bf16.mxu0 %vm10844_vm0, %v21984_v20  ;;  %v22044_v20 = vld [vmem:[%s27628_s0 + $0x5ac] ss:$16 sps:$4 sm:$0xff]  }
 0x94a   : > { %16026 = vmatpush1.bf16.xpose.msra.mxu1 %v21986_v21  ;;  %v22046_v21 = vld [vmem:[%s27628_s0 + $0x3a8] ss:$16 sps:$4 sm:$0xff]  }
 0x94b   : > { %16108 = vmatpush1.bf16.xpose.msra.mxu0 %v21987_v22  ;;  %19101 = vmatprep.subr.msk.bf16.mxu1 %vm10844_vm0, %v21988_v23  ;;  %v22047_v22 = vld [vmem:[%s27628_s0 + $0x5a8] ss:$16 sps:$4 sm:$0xff]   ;;  %v22048_v23 = vld [vmem:[%s27628_s0 + $0x3cc] ss:$16 sps:$4 sm:$0xff]  }
 0x94c   : > { %19118 = vmatprep.subr.msk.bf16.mxu0 %vm10844_vm0, %v21990_v24  ;;  %v22050_v24 = vld [vmem:[%s27628_s0 + $0x5cc] ss:$16 sps:$4 sm:$0xff]  }
 0x952   : > { %16028 = vmatpush1.bf16.xpose.msra.mxu1 %v21992_v25  ;;  %v22052_v25 = vld [vmem:[%s27628_s0 + $0x3c8] ss:$16 sps:$4 sm:$0xff]  }
 0x953   : > { %16110 = vmatpush1.bf16.xpose.msra.mxu0 %v21993_v26  ;;  %19102 = vmatprep.subr.msk.bf16.mxu1 %vm10844_vm0, %v21994_v27  ;;  %v22053_v26 = vld [vmem:[%s27628_s0 + $0x5c8] ss:$16 sps:$4 sm:$0xff]   ;;  %v22054_v27 = vld [vmem:[%s27628_s0 + $0x3ec] ss:$16 sps:$4 sm:$0xff]  }
 0x954   : > { %19119 = vmatprep.subr.msk.bf16.mxu0 %vm10844_vm0, %v21996_v28  ;;  %v22056_v28 = vld [vmem:[%s27628_s0 + $0x5ec] ss:$16 sps:$4 sm:$0xff]  }
 0x95a   : > { %16030 = vmatpush1.bf16.xpose.msra.mxu1 %v21998_v29  ;;  %v22058_v29 = vld [vmem:[%s27628_s0 + $0x3e8] ss:$16 sps:$4 sm:$0xff]  }
 0x95b   : > { %16112 = vmatpush1.bf16.xpose.msra.mxu0 %v21999_v30  ;;  %19103 = vmatprep.subr.msk.bf16.mxu1 %vm10844_vm0, %v22000_v31  ;;  %v22059_v30 = vld [vmem:[%s27628_s0 + $0x5e8] ss:$16 sps:$4 sm:$0xff]   ;;  %v22062_v31 = vld [vmem:[%s27628_s0 + $0x604] ss:$16 sps:$4 sm:$0xff]  }
 0x95c   : > { %19120 = vmatprep.subr.msk.bf16.mxu0 %vm10844_vm0, %v22002_v32  ;;  %v22065_v32 = vld [vmem:[%s27628_s0 + $0x804] ss:$16 sps:$4 sm:$0xff]  }
 0x962   : > { %16032 = vmatpush1.bf16.xpose.msra.mxu1 %v22004_v33  ;;  %v22060_v33 = vld [vmem:[%s27628_s0 + $0x600] ss:$16 sps:$4 sm:$0xff]  }
 0x963   : > { %16114 = vmatpush1.bf16.xpose.msra.mxu0 %v22005_v34  ;;  %19104 = vmatprep.subr.msk.bf16.mxu1 %vm10844_vm0, %v22006_v35  ;;  %v22063_v34 = vld [vmem:[%s27628_s0 + $0x800] ss:$16 sps:$4 sm:$0xff]   ;;  %v22068_v35 = vld [vmem:[%s27628_s0 + $0x624] ss:$16 sps:$4 sm:$0xff]  }
 0x964   : > { %19121 = vmatprep.subr.msk.bf16.mxu0 %vm10844_vm0, %v22008_v37  ;;  %v22071_v37 = vld [vmem:[%s27628_s0 + $0x824] ss:$16 sps:$4 sm:$0xff]  }
 0x96a   : > { %16034 = vmatpush1.bf16.xpose.msra.mxu1 %v22010_v36  ;;  %v22066_v36 = vld [vmem:[%s27628_s0 + $0x620] ss:$16 sps:$4 sm:$0xff]  }
 0x96b   : > { %16116 = vmatpush1.bf16.xpose.msra.mxu0 %v22011_v43  ;;  %19105 = vmatprep.subr.msk.bf16.mxu1 %vm10844_vm0, %v22012_v44  ;;  %v22069_v43 = vld [vmem:[%s27628_s0 + $0x820] ss:$16 sps:$4 sm:$0xff]   ;;  %v22074_v44 = vld [vmem:[%s27628_s0 + $0x644] ss:$16 sps:$4 sm:$0xff]  }
 0x96c   : > { %19122 = vmatprep.subr.msk.bf16.mxu0 %vm10844_vm0, %v22014_v45  ;;  %v22077_v45 = vld [vmem:[%s27628_s0 + $0x844] ss:$16 sps:$4 sm:$0xff]  }
 0x972   : > { %16036 = vmatpush1.bf16.xpose.msra.mxu1 %v22016_v46  ;;  %v22072_v46 = vld [vmem:[%s27628_s0 + $0x640] ss:$16 sps:$4 sm:$0xff]  }
 0x973   : > { %16118 = vmatpush1.bf16.xpose.msra.mxu0 %v22017_v47  ;;  %19106 = vmatprep.subr.msk.bf16.mxu1 %vm10844_vm0, %v22018_v48  ;;  %v22075_v47 = vld [vmem:[%s27628_s0 + $0x840] ss:$16 sps:$4 sm:$0xff]   ;;  %v22080_v48 = vld [vmem:[%s27628_s0 + $0x664] ss:$16 sps:$4 sm:$0xff]  }
 0x974   : > { %19123 = vmatprep.subr.msk.bf16.mxu0 %vm10844_vm0, %v22020_v49  ;;  %v22083_v49 = vld [vmem:[%s27628_s0 + $0x864] ss:$16 sps:$4 sm:$0xff]  }
 0x97a   : > { %16038 = vmatpush1.bf16.xpose.msra.mxu1 %v22022_v50  ;;  %v22078_v50 = vld [vmem:[%s27628_s0 + $0x660] ss:$16 sps:$4 sm:$0xff]  }
 0x97b   : > { %16120 = vmatpush1.bf16.xpose.msra.mxu0 %v22023_v51  ;;  %19107 = vmatprep.subr.msk.bf16.mxu1 %vm10844_vm0, %v22024_v52  ;;  %v22081_v51 = vld [vmem:[%s27628_s0 + $0x860] ss:$16 sps:$4 sm:$0xff]   ;;  %v22086_v52 = vld [vmem:[%s27628_s0 + $0x684] ss:$16 sps:$4 sm:$0xff]  }
 0x97c   : > { %19124 = vmatprep.subr.msk.bf16.mxu0 %vm10844_vm0, %v22026_v53  ;;  %v22089_v53 = vld [vmem:[%s27628_s0 + $0x884] ss:$16 sps:$4 sm:$0xff]  }
 0x982   : > { %16040 = vmatpush1.bf16.xpose.msra.mxu1 %v22028_v54  ;;  %v22084_v54 = vld [vmem:[%s27628_s0 + $0x680] ss:$16 sps:$4 sm:$0xff]  }
 0x983   : > { %16122 = vmatpush1.bf16.xpose.msra.mxu0 %v22029_v56  ;;  %19108 = vmatprep.subr.msk.bf16.mxu1 %vm10844_vm0, %v22030_v57  ;;  %v22087_v56 = vld [vmem:[%s27628_s0 + $0x880] ss:$16 sps:$4 sm:$0xff]   ;;  %v22092_v57 = vld [vmem:[%s27628_s0 + $0x6a4] ss:$16 sps:$4 sm:$0xff]  }
 0x984   : > { %v15930_v63 = vpop.f32.mrb[8].mxu1  ;;  %v15971_v2 = vpop.f32.mrb[8].mxu0  ;;  %19125 = vmatprep.subr.msk.bf16.mxu0 %vm10844_vm0, %v22032_v58  ;;  %v22095_v58 = vld [vmem:[%s27628_s0 + $0x8a4] ss:$16 sps:$4 sm:$0xff]  }
 0x985   : > { %v15931_v3 = vadd.f32 %v15930_v63, %v11914_v59  ;;  %v15932_v4 = vpop.f32.mrb[9].mxu1  ;;  %v15973_v5 = vpop.f32.mrb[9].mxu0  ;;  %v22090_v59 = vld [vmem:[%s27628_s0 + $0x6a0] ss:$16 sps:$4 sm:$0xff]   ;;  %v22098_v63 = vld [vmem:[%s27628_s0 + $0x6c4] ss:$16 sps:$4 sm:$0xff]  }
 0x986   : > { %v15933_v6 = vadd.f32 %v15932_v4, %v11918_v62  ;;  %v15934_v7 = vpop.f32.mrb[10].mxu1  ;;  %v15975_v8 = vpop.f32.mrb[10].mxu0  ;;  %v22093_v62 = vld [vmem:[%s27628_s0 + $0x8a0] ss:$16 sps:$4 sm:$0xff]  }
 0x987   : > { %v15972_v10 = vadd.f32 %v15971_v2, %v15931_v3  ;;  %v15935_v11 = vpop.f32.mrb[11].mxu1  ;;  %v15976_v12 = vpop.f32.mrb[11].mxu0  ;;  %v22101_v2 = vld [vmem:[%s27628_s0 + $0x8c4] ss:$16 sps:$4 sm:$0xff]   ;;  %v22096_v3 = vld [vmem:[%s27628_s0 + $0x6c0] ss:$16 sps:$4 sm:$0xff]  }
 0x988   : > { %v15974_v15 = vadd.f32 %v15973_v5, %v15933_v6  ;;  %v22099_v4 = vld [vmem:[%s27628_s0 + $0x8c0] ss:$16 sps:$4 sm:$0xff]   ;;  %v22104_v5 = vld [vmem:[%s27628_s0 + $0x6e4] ss:$16 sps:$4 sm:$0xff]  }
 0x989   : > { %16798 = vst [vmem:[%s27893_s14] sm:$0xff] %v15972_v10  ;;  %v22107_v6 = vld [vmem:[%s27628_s0 + $0x8e4] ss:$16 sps:$4 sm:$0xff]   ;;  %v22102_v7 = vld [vmem:[%s27628_s0 + $0x6e0] ss:$16 sps:$4 sm:$0xff]  }
 0x98a   : > { %16799 = vst [vmem:[%s27893_s14 + $0x8] sm:$0xff] %v15974_v15  ;;  %16042 = vmatpush1.bf16.xpose.msra.mxu1 %v22034_v9  ;;  %v22105_v8 = vld [vmem:[%s27628_s0 + $0x8e0] ss:$16 sps:$4 sm:$0xff]   ;;  %v22110_v9 = vld [vmem:[%s27628_s0 + $0x704] ss:$16 sps:$4 sm:$0xff]  }
 0x98b   : > { %16124 = vmatpush1.bf16.xpose.msra.mxu0 %v22035_v13  ;;  %19109 = vmatprep.subr.msk.bf16.mxu1 %vm10844_vm0, %v22036_v14  ;;  %v22113_v10 = vld [vmem:[%s27628_s0 + $0x904] ss:$16 sps:$4 sm:$0xff]   ;;  %v22108_v11 = vld [vmem:[%s27628_s0 + $0x700] ss:$16 sps:$4 sm:$0xff]  }
 0x98c   : > { %19126 = vmatprep.subr.msk.bf16.mxu0 %vm10844_vm0, %v22038_v16  ;;  %v22111_v12 = vld [vmem:[%s27628_s0 + $0x900] ss:$16 sps:$4 sm:$0xff]   ;;  %v22116_v13 = vld [vmem:[%s27628_s0 + $0x724] ss:$16 sps:$4 sm:$0xff]  }
 0x98d   : > { %v22119_v14 = vld [vmem:[%s27628_s0 + $0x924] ss:$16 sps:$4 sm:$0xff]   ;;  %v22114_v15 = vld [vmem:[%s27628_s0 + $0x720] ss:$16 sps:$4 sm:$0xff]  }
 0x98e   : > { %v22117_v16 = vld [vmem:[%s27628_s0 + $0x920] ss:$16 sps:$4 sm:$0xff]  }
 0x992   : > { %16044 = vmatpush1.bf16.xpose.msra.mxu1 %v22040_v17  ;;  %v22122_v17 = vld [vmem:[%s27628_s0 + $0x744] ss:$16 sps:$4 sm:$0xff]  }
 0x993   : > { %16126 = vmatpush1.bf16.xpose.msra.mxu0 %v22041_v18  ;;  %19110 = vmatprep.subr.msk.bf16.mxu1 %vm10844_vm0, %v22042_v19  ;;  %v22125_v18 = vld [vmem:[%s27628_s0 + $0x944] ss:$16 sps:$4 sm:$0xff]   ;;  %v22120_v19 = vld [vmem:[%s27628_s0 + $0x740] ss:$16 sps:$4 sm:$0xff]  }
 0x994   : > { %19127 = vmatprep.subr.msk.bf16.mxu0 %vm10844_vm0, %v22044_v20  ;;  %v22123_v20 = vld [vmem:[%s27628_s0 + $0x940] ss:$16 sps:$4 sm:$0xff]  }
 0x99a   : > { %16046 = vmatpush1.bf16.xpose.msra.mxu1 %v22046_v21  ;;  %v22128_v21 = vld [vmem:[%s27628_s0 + $0x764] ss:$16 sps:$4 sm:$0xff]  }
 0x99b   : > { %16128 = vmatpush1.bf16.xpose.msra.mxu0 %v22047_v22  ;;  %19111 = vmatprep.subr.msk.bf16.mxu1 %vm10844_vm0, %v22048_v23  ;;  %v22131_v22 = vld [vmem:[%s27628_s0 + $0x964] ss:$16 sps:$4 sm:$0xff]   ;;  %v22126_v23 = vld [vmem:[%s27628_s0 + $0x760] ss:$16 sps:$4 sm:$0xff]  }
 0x99c   : > { %19128 = vmatprep.subr.msk.bf16.mxu0 %vm10844_vm0, %v22050_v24  ;;  %v22129_v24 = vld [vmem:[%s27628_s0 + $0x960] ss:$16 sps:$4 sm:$0xff]  }
 0x9a2   : > { %16048 = vmatpush1.bf16.xpose.msra.mxu1 %v22052_v25  ;;  %v22134_v25 = vld [vmem:[%s27628_s0 + $0x784] ss:$16 sps:$4 sm:$0xff]  }
 0x9a3   : > { %16130 = vmatpush1.bf16.xpose.msra.mxu0 %v22053_v26  ;;  %19112 = vmatprep.subr.msk.bf16.mxu1 %vm10844_vm0, %v22054_v27  ;;  %v22137_v26 = vld [vmem:[%s27628_s0 + $0x984] ss:$16 sps:$4 sm:$0xff]   ;;  %v22132_v27 = vld [vmem:[%s27628_s0 + $0x780] ss:$16 sps:$4 sm:$0xff]  }
 0x9a4   : > { %19129 = vmatprep.subr.msk.bf16.mxu0 %vm10844_vm0, %v22056_v28  ;;  %v22135_v28 = vld [vmem:[%s27628_s0 + $0x980] ss:$16 sps:$4 sm:$0xff]  }
 0x9aa   : > { %16050 = vmatpush1.bf16.xpose.msra.mxu1 %v22058_v29  ;;  %v22140_v29 = vld [vmem:[%s27628_s0 + $0x7a4] ss:$16 sps:$4 sm:$0xff]  }
 0x9ab   : > { %16132 = vmatpush1.bf16.xpose.msra.mxu0 %v22059_v30  ;;  %16142 = vmatprep.subr.bf16.mxu1 %v22062_v31  ;;  %v22143_v30 = vld [vmem:[%s27628_s0 + $0x9a4] ss:$16 sps:$4 sm:$0xff]   ;;  %v22138_v31 = vld [vmem:[%s27628_s0 + $0x7a0] ss:$16 sps:$4 sm:$0xff]  }
 0x9ac   : > { %16224 = vmatprep.subr.bf16.mxu0 %v22065_v32  ;;  %v22141_v32 = vld [vmem:[%s27628_s0 + $0x9a0] ss:$16 sps:$4 sm:$0xff]  }
 0x9b1   : > { %16052 = vmatmul.mubr.bf16.vlgmr.msra.gmra.mrb[12].mxu1 %v27730_v1 }
 0x9b2   : > { %16134 = vmatmul.mubr.bf16.vlgmr.msra.gmra.mrb[12].mxu0 %v27730_v1  ;;  %16143 = vmatpush1.bf16.xpose.msra.mxu1 %v22060_v33  ;;  %v22146_v33 = vld [vmem:[%s27628_s0 + $0x7c4] ss:$16 sps:$4 sm:$0xff]  }
 0x9b3   : > { %16174 = vmatprep.mubr.bf16.mxu1 %v27722_v60  ;;  %16225 = vmatpush1.bf16.xpose.msra.mxu0 %v22063_v34  ;;  %v22149_v34 = vld [vmem:[%s27628_s0 + $0x9c4] ss:$16 sps:$4 sm:$0xff]  }
 0x9b4   : > { %16256 = vmatprep.mubr.bf16.mxu0 %v27722_v60  ;;  %16144 = vmatprep.subr.bf16.mxu1 %v22068_v35  ;;  %v22144_v35 = vld [vmem:[%s27628_s0 + $0x7c0] ss:$16 sps:$4 sm:$0xff]  }
 0x9b5   : > { %16226 = vmatprep.subr.bf16.mxu0 %v22071_v37  ;;  %v22147_v37 = vld [vmem:[%s27628_s0 + $0x9c0] ss:$16 sps:$4 sm:$0xff]  }
 0x9ba   : > { %16145 = vmatpush1.bf16.xpose.msra.mxu1 %v22066_v36  ;;  %v22152_v36 = vld [vmem:[%s27628_s0 + $0x7e4] ss:$16 sps:$4 sm:$0xff]  }
 0x9bb   : > { %16227 = vmatpush1.bf16.xpose.msra.mxu0 %v22069_v43  ;;  %16146 = vmatprep.subr.bf16.mxu1 %v22074_v44  ;;  %v22155_v43 = vld [vmem:[%s27628_s0 + $0x9e4] ss:$16 sps:$4 sm:$0xff]   ;;  %v22150_v44 = vld [vmem:[%s27628_s0 + $0x7e0] ss:$16 sps:$4 sm:$0xff]  }
 0x9bc   : > { %16228 = vmatprep.subr.bf16.mxu0 %v22077_v45  ;;  %v22153_v45 = vld [vmem:[%s27628_s0 + $0x9e0] ss:$16 sps:$4 sm:$0xff]  }
 0x9c2   : > { %16147 = vmatpush1.bf16.xpose.msra.mxu1 %v22072_v46  ;;  %v22156_v46 = vld [vmem:[%s27628_s0 + $0x60c] ss:$16 sps:$4 sm:$0xff]  }
 0x9c3   : > { %16229 = vmatpush1.bf16.xpose.msra.mxu0 %v22075_v47  ;;  %16148 = vmatprep.subr.bf16.mxu1 %v22080_v48  ;;  %v22158_v47 = vld [vmem:[%s27628_s0 + $0x80c] ss:$16 sps:$4 sm:$0xff]   ;;  %v22160_v48 = vld [vmem:[%s27628_s0 + $0x608] ss:$16 sps:$4 sm:$0xff]  }
 0x9c4   : > { %16230 = vmatprep.subr.bf16.mxu0 %v22083_v49  ;;  %v22161_v49 = vld [vmem:[%s27628_s0 + $0x808] ss:$16 sps:$4 sm:$0xff]  }
 0x9ca   : > { %16149 = vmatpush1.bf16.xpose.msra.mxu1 %v22078_v50  ;;  %v22162_v50 = vld [vmem:[%s27628_s0 + $0x62c] ss:$16 sps:$4 sm:$0xff]  }
 0x9cb   : > { %16231 = vmatpush1.bf16.xpose.msra.mxu0 %v22081_v51  ;;  %16150 = vmatprep.subr.bf16.mxu1 %v22086_v52  ;;  %v22164_v51 = vld [vmem:[%s27628_s0 + $0x82c] ss:$16 sps:$4 sm:$0xff]   ;;  %v22166_v52 = vld [vmem:[%s27628_s0 + $0x628] ss:$16 sps:$4 sm:$0xff]  }
 0x9cc   : > { %16232 = vmatprep.subr.bf16.mxu0 %v22089_v53  ;;  %v22167_v53 = vld [vmem:[%s27628_s0 + $0x828] ss:$16 sps:$4 sm:$0xff]  }
 0x9d2   : > { %16151 = vmatpush1.bf16.xpose.msra.mxu1 %v22084_v54  ;;  %v22168_v54 = vld [vmem:[%s27628_s0 + $0x64c] ss:$16 sps:$4 sm:$0xff]  }
 0x9d3   : > { %16233 = vmatpush1.bf16.xpose.msra.mxu0 %v22087_v56  ;;  %16152 = vmatprep.subr.bf16.mxu1 %v22092_v57  ;;  %v22170_v56 = vld [vmem:[%s27628_s0 + $0x84c] ss:$16 sps:$4 sm:$0xff]   ;;  %v22172_v57 = vld [vmem:[%s27628_s0 + $0x648] ss:$16 sps:$4 sm:$0xff]  }
 0x9d4   : > { %16234 = vmatprep.subr.bf16.mxu0 %v22095_v58  ;;  %v22173_v58 = vld [vmem:[%s27628_s0 + $0x848] ss:$16 sps:$4 sm:$0xff]  }
 0x9da   : > { %16153 = vmatpush1.bf16.xpose.msra.mxu1 %v22090_v59  ;;  %v22174_v59 = vld [vmem:[%s27628_s0 + $0x66c] ss:$16 sps:$4 sm:$0xff]  }
 0x9db   : > { %16235 = vmatpush1.bf16.xpose.msra.mxu0 %v22093_v62  ;;  %16154 = vmatprep.subr.bf16.mxu1 %v22098_v63  ;;  %v22176_v62 = vld [vmem:[%s27628_s0 + $0x86c] ss:$16 sps:$4 sm:$0xff]   ;;  %v22178_v63 = vld [vmem:[%s27628_s0 + $0x668] ss:$16 sps:$4 sm:$0xff]  }
 0x9dc   : > { %16236 = vmatprep.subr.bf16.mxu0 %v22101_v2  ;;  %v22179_v2 = vld [vmem:[%s27628_s0 + $0x868] ss:$16 sps:$4 sm:$0xff]  }
 0x9e2   : > { %16155 = vmatpush1.bf16.xpose.msra.mxu1 %v22096_v3  ;;  %v22180_v3 = vld [vmem:[%s27628_s0 + $0x68c] ss:$16 sps:$4 sm:$0xff]  }
 0x9e3   : > { %16237 = vmatpush1.bf16.xpose.msra.mxu0 %v22099_v4  ;;  %16156 = vmatprep.subr.bf16.mxu1 %v22104_v5  ;;  %v22182_v4 = vld [vmem:[%s27628_s0 + $0x88c] ss:$16 sps:$4 sm:$0xff]   ;;  %v22184_v5 = vld [vmem:[%s27628_s0 + $0x688] ss:$16 sps:$4 sm:$0xff]  }
 0x9e4   : > { %16238 = vmatprep.subr.bf16.mxu0 %v22107_v6  ;;  %v22185_v6 = vld [vmem:[%s27628_s0 + $0x888] ss:$16 sps:$4 sm:$0xff]  }
 0x9ea   : > { %16157 = vmatpush1.bf16.xpose.msra.mxu1 %v22102_v7  ;;  %v22186_v7 = vld [vmem:[%s27628_s0 + $0x6ac] ss:$16 sps:$4 sm:$0xff]  }
 0x9eb   : > { %16239 = vmatpush1.bf16.xpose.msra.mxu0 %v22105_v8  ;;  %16158 = vmatprep.subr.bf16.mxu1 %v22110_v9  ;;  %v22188_v8 = vld [vmem:[%s27628_s0 + $0x8ac] ss:$16 sps:$4 sm:$0xff]   ;;  %v22190_v9 = vld [vmem:[%s27628_s0 + $0x6a8] ss:$16 sps:$4 sm:$0xff]  }
 0x9ec   : > { %16240 = vmatprep.subr.bf16.mxu0 %v22113_v10  ;;  %v22191_v10 = vld [vmem:[%s27628_s0 + $0x8a8] ss:$16 sps:$4 sm:$0xff]  }
 0x9f2   : > { %16159 = vmatpush1.bf16.xpose.msra.mxu1 %v22108_v11  ;;  %v22192_v11 = vld [vmem:[%s27628_s0 + $0x6cc] ss:$16 sps:$4 sm:$0xff]  }
 0x9f3   : > { %16241 = vmatpush1.bf16.xpose.msra.mxu0 %v22111_v12  ;;  %16160 = vmatprep.subr.bf16.mxu1 %v22116_v13  ;;  %v22194_v12 = vld [vmem:[%s27628_s0 + $0x8cc] ss:$16 sps:$4 sm:$0xff]   ;;  %v22196_v13 = vld [vmem:[%s27628_s0 + $0x6c8] ss:$16 sps:$4 sm:$0xff]  }
 0x9f4   : > { %16242 = vmatprep.subr.bf16.mxu0 %v22119_v14  ;;  %v22197_v14 = vld [vmem:[%s27628_s0 + $0x8c8] ss:$16 sps:$4 sm:$0xff]  }
 0x9fa   : > { %16161 = vmatpush1.bf16.xpose.msra.mxu1 %v22114_v15  ;;  %v22198_v15 = vld [vmem:[%s27628_s0 + $0x6ec] ss:$16 sps:$4 sm:$0xff]  }
 0x9fb   : > { %16243 = vmatpush1.bf16.xpose.msra.mxu0 %v22117_v16  ;;  %16162 = vmatprep.subr.bf16.mxu1 %v22122_v17  ;;  %v22200_v16 = vld [vmem:[%s27628_s0 + $0x8ec] ss:$16 sps:$4 sm:$0xff]   ;;  %v22202_v17 = vld [vmem:[%s27628_s0 + $0x6e8] ss:$16 sps:$4 sm:$0xff]  }
 0x9fc   : > { %16244 = vmatprep.subr.bf16.mxu0 %v22125_v18  ;;  %v22203_v18 = vld [vmem:[%s27628_s0 + $0x8e8] ss:$16 sps:$4 sm:$0xff]  }
 0xa02   : > { %16163 = vmatpush1.bf16.xpose.msra.mxu1 %v22120_v19  ;;  %v22204_v19 = vld [vmem:[%s27628_s0 + $0x70c] ss:$16 sps:$4 sm:$0xff]  }
 0xa03   : > { %16245 = vmatpush1.bf16.xpose.msra.mxu0 %v22123_v20  ;;  %16164 = vmatprep.subr.bf16.mxu1 %v22128_v21  ;;  %v22206_v20 = vld [vmem:[%s27628_s0 + $0x90c] ss:$16 sps:$4 sm:$0xff]   ;;  %v22208_v21 = vld [vmem:[%s27628_s0 + $0x708] ss:$16 sps:$4 sm:$0xff]  }
 0xa04   : > { %16246 = vmatprep.subr.bf16.mxu0 %v22131_v22  ;;  %v22209_v22 = vld [vmem:[%s27628_s0 + $0x908] ss:$16 sps:$4 sm:$0xff]  }
 0xa0a   : > { %16165 = vmatpush1.bf16.xpose.msra.mxu1 %v22126_v23  ;;  %v22210_v23 = vld [vmem:[%s27628_s0 + $0x72c] ss:$16 sps:$4 sm:$0xff]  }
 0xa0b   : > { %16247 = vmatpush1.bf16.xpose.msra.mxu0 %v22129_v24  ;;  %16166 = vmatprep.subr.bf16.mxu1 %v22134_v25  ;;  %v22212_v24 = vld [vmem:[%s27628_s0 + $0x92c] ss:$16 sps:$4 sm:$0xff]   ;;  %v22214_v25 = vld [vmem:[%s27628_s0 + $0x728] ss:$16 sps:$4 sm:$0xff]  }
 0xa0c   : > { %16248 = vmatprep.subr.bf16.mxu0 %v22137_v26  ;;  %v22215_v26 = vld [vmem:[%s27628_s0 + $0x928] ss:$16 sps:$4 sm:$0xff]  }
 0xa12   : > { %16167 = vmatpush1.bf16.xpose.msra.mxu1 %v22132_v27  ;;  %v22216_v27 = vld [vmem:[%s27628_s0 + $0x74c] ss:$16 sps:$4 sm:$0xff]  }
 0xa13   : > { %16249 = vmatpush1.bf16.xpose.msra.mxu0 %v22135_v28  ;;  %16168 = vmatprep.subr.bf16.mxu1 %v22140_v29  ;;  %v22218_v28 = vld [vmem:[%s27628_s0 + $0x94c] ss:$16 sps:$4 sm:$0xff]   ;;  %v22220_v29 = vld [vmem:[%s27628_s0 + $0x748] ss:$16 sps:$4 sm:$0xff]  }
 0xa14   : > { %16250 = vmatprep.subr.bf16.mxu0 %v22143_v30  ;;  %v28059_v30 = vsub.s32 4, %v27556_v38 }
 0xa1a   : > { %16169 = vmatpush1.bf16.xpose.msra.mxu1 %v22138_v31  ;;  %v22221_v31 = vld [vmem:[%s27628_s0 + $0x948] ss:$16 sps:$4 sm:$0xff]  }
 0xa1b   : > { %16251 = vmatpush1.bf16.xpose.msra.mxu0 %v22141_v32  ;;  %16170 = vmatprep.subr.bf16.mxu1 %v22146_v33  ;;  %v28063_v32 = vsub.s32 5, %v27556_v38  ;;  %v22222_v33 = vld [vmem:[%s27628_s0 + $0x76c] ss:$16 sps:$4 sm:$0xff]  }
 0xa1c   : > { %16252 = vmatprep.subr.bf16.mxu0 %v22149_v34  ;;  %v22224_v34 = vld [vmem:[%s27628_s0 + $0x96c] ss:$16 sps:$4 sm:$0xff]  }
 0xa22   : > { %16171 = vmatpush1.bf16.xpose.msra.mxu1 %v22144_v35  ;;  %v11922_v35 = vrot.slane %v27877_v55, %v27562_v40 }
 0xa23   : > { %16253 = vmatpush1.bf16.xpose.msra.mxu0 %v22147_v37  ;;  %16172 = vmatprep.subr.bf16.mxu1 %v22152_v36  ;;  %v11930_v37 = vrot.slane %v27877_v55, %v28059_v30  ;;  %v11926_v36 = vrot.slane %v27877_v55, %v27571_v42 }
 0xa24   : > { %16254 = vmatprep.subr.bf16.mxu0 %v22155_v43  ;;  %v11934_v43 = vrot.slane %v27877_v55, %v28063_v32 }
 0xa2a   : > { %16173 = vmatpush1.bf16.xpose.msra.mxu1 %v22150_v44 }
 0xa2b   : > { %16255 = vmatpush1.bf16.xpose.msra.mxu0 %v22153_v45  ;;  %19131 = vmatprep.subr.msk.bf16.mxu1 %vm10844_vm0, %v22156_v46 }
 0xa2c   : > { %19148 = vmatprep.subr.msk.bf16.mxu0 %vm10844_vm0, %v22158_v47 }
 0xa31   : > { %16175 = vmatmul.mubr.bf16.vlgmr.msra.gmra.mrb[16].mxu1 %v27728_v0 }
 0xa32   : > { %16257 = vmatmul.mubr.bf16.vlgmr.msra.gmra.mrb[16].mxu0 %v27728_v0  ;;  %16184 = vmatpush1.bf16.xpose.msra.mxu1 %v22160_v48 }
 0xa33   : > { %19147 = vmatprep.mubr.msk.bf16.mxu1 %vm10844_vm0, %v27724_v61  ;;  %16266 = vmatpush1.bf16.xpose.msra.mxu0 %v22161_v49 }
 0xa34   : > { %19164 = vmatprep.mubr.msk.bf16.mxu0 %vm10844_vm0, %v27724_v61  ;;  %19132 = vmatprep.subr.msk.bf16.mxu1 %vm10844_vm0, %v22162_v50 }
 0xa35   : > { %19149 = vmatprep.subr.msk.bf16.mxu0 %vm10844_vm0, %v22164_v51 }
 0xa3a   : > { %16186 = vmatpush1.bf16.xpose.msra.mxu1 %v22166_v52  ;;  %v22226_v52 = vld [vmem:[%s27628_s0 + $0x768] ss:$16 sps:$4 sm:$0xff]  }
 0xa3b   : > { %16268 = vmatpush1.bf16.xpose.msra.mxu0 %v22167_v53  ;;  %19133 = vmatprep.subr.msk.bf16.mxu1 %vm10844_vm0, %v22168_v54 }
 0xa3c   : > { %19150 = vmatprep.subr.msk.bf16.mxu0 %vm10844_vm0, %v22170_v56  ;;  %v22227_v56 = vld [vmem:[%s27628_s0 + $0x968] ss:$16 sps:$4 sm:$0xff]  }
 0xa42   : > { %16188 = vmatpush1.bf16.xpose.msra.mxu1 %v22172_v57  ;;  %v22228_v57 = vld [vmem:[%s27628_s0 + $0x78c] ss:$16 sps:$4 sm:$0xff]  }
 0xa43   : > { %16270 = vmatpush1.bf16.xpose.msra.mxu0 %v22173_v58  ;;  %19134 = vmatprep.subr.msk.bf16.mxu1 %vm10844_vm0, %v22174_v59  ;;  %v22230_v59 = vld [vmem:[%s27628_s0 + $0x98c] ss:$16 sps:$4 sm:$0xff]  }
 0xa44   : > { %19151 = vmatprep.subr.msk.bf16.mxu0 %vm10844_vm0, %v22176_v62  ;;  %v22232_v62 = vld [vmem:[%s27628_s0 + $0x788] ss:$16 sps:$4 sm:$0xff]  }
 0xa4a   : > { %16190 = vmatpush1.bf16.xpose.msra.mxu1 %v22178_v63  ;;  %v22233_v63 = vld [vmem:[%s27628_s0 + $0x988] ss:$16 sps:$4 sm:$0xff]  }
 0xa4b   : > { %16272 = vmatpush1.bf16.xpose.msra.mxu0 %v22179_v2  ;;  %19135 = vmatprep.subr.msk.bf16.mxu1 %vm10844_vm0, %v22180_v3  ;;  %v22234_v2 = vld [vmem:[%s27628_s0 + $0x7ac] ss:$16 sps:$4 sm:$0xff]  }
 0xa4c   : > { %19152 = vmatprep.subr.msk.bf16.mxu0 %vm10844_vm0, %v22182_v4  ;;  %v22236_v3 = vld [vmem:[%s27628_s0 + $0x9ac] ss:$16 sps:$4 sm:$0xff]   ;;  %v22238_v4 = vld [vmem:[%s27628_s0 + $0x7a8] ss:$16 sps:$4 sm:$0xff]  }
 0xa52   : > { %16192 = vmatpush1.bf16.xpose.msra.mxu1 %v22184_v5  ;;  %v22239_v5 = vld [vmem:[%s27628_s0 + $0x9a8] ss:$16 sps:$4 sm:$0xff]  }
 0xa53   : > { %16274 = vmatpush1.bf16.xpose.msra.mxu0 %v22185_v6  ;;  %19136 = vmatprep.subr.msk.bf16.mxu1 %vm10844_vm0, %v22186_v7  ;;  %v22240_v6 = vld [vmem:[%s27628_s0 + $0x7cc] ss:$16 sps:$4 sm:$0xff]  }
 0xa54   : > { %19153 = vmatprep.subr.msk.bf16.mxu0 %vm10844_vm0, %v22188_v8  ;;  %v22242_v7 = vld [vmem:[%s27628_s0 + $0x9cc] ss:$16 sps:$4 sm:$0xff]   ;;  %v22244_v8 = vld [vmem:[%s27628_s0 + $0x7c8] ss:$16 sps:$4 sm:$0xff]  }
 0xa5a   : > { %16194 = vmatpush1.bf16.xpose.msra.mxu1 %v22190_v9  ;;  %v22245_v9 = vld [vmem:[%s27628_s0 + $0x9c8] ss:$16 sps:$4 sm:$0xff]  }
 0xa5b   : > { %16276 = vmatpush1.bf16.xpose.msra.mxu0 %v22191_v10  ;;  %19137 = vmatprep.subr.msk.bf16.mxu1 %vm10844_vm0, %v22192_v11  ;;  %v22246_v10 = vld [vmem:[%s27628_s0 + $0x7ec] ss:$16 sps:$4 sm:$0xff]  }
 0xa5c   : > { %19154 = vmatprep.subr.msk.bf16.mxu0 %vm10844_vm0, %v22194_v12  ;;  %v22248_v11 = vld [vmem:[%s27628_s0 + $0x9ec] ss:$16 sps:$4 sm:$0xff]   ;;  %v22250_v12 = vld [vmem:[%s27628_s0 + $0x7e8] ss:$16 sps:$4 sm:$0xff]  }
 0xa62   : > { %16196 = vmatpush1.bf16.xpose.msra.mxu1 %v22196_v13  ;;  %v22251_v13 = vld [vmem:[%s27628_s0 + $0x9e8] ss:$16 sps:$4 sm:$0xff]  }
 0xa63   : > { %16278 = vmatpush1.bf16.xpose.msra.mxu0 %v22197_v14  ;;  %19138 = vmatprep.subr.msk.bf16.mxu1 %vm10844_vm0, %v22198_v15  ;;  %v22254_v14 = vld [vmem:[%s27628_s0 + $0xa04] ss:$16 sps:$4 sm:$0xff]  }
 0xa64   : > { %19155 = vmatprep.subr.msk.bf16.mxu0 %vm10844_vm0, %v22200_v16  ;;  %v22257_v15 = vld [vmem:[%s27628_s0 + $0xc04] ss:$16 sps:$4 sm:$0xff]   ;;  %v22252_v16 = vld [vmem:[%s27628_s0 + $0xa00] ss:$16 sps:$4 sm:$0xff]  }
 0xa6a   : > { %16198 = vmatpush1.bf16.xpose.msra.mxu1 %v22202_v17  ;;  %v22255_v17 = vld [vmem:[%s27628_s0 + $0xc00] ss:$16 sps:$4 sm:$0xff]  }
 0xa6b   : > { %16280 = vmatpush1.bf16.xpose.msra.mxu0 %v22203_v18  ;;  %19139 = vmatprep.subr.msk.bf16.mxu1 %vm10844_vm0, %v22204_v19  ;;  %v22260_v18 = vld [vmem:[%s27628_s0 + $0xa24] ss:$16 sps:$4 sm:$0xff]  }
 0xa6c   : > { %19156 = vmatprep.subr.msk.bf16.mxu0 %vm10844_vm0, %v22206_v20  ;;  %v22263_v19 = vld [vmem:[%s27628_s0 + $0xc24] ss:$16 sps:$4 sm:$0xff]   ;;  %v22258_v20 = vld [vmem:[%s27628_s0 + $0xa20] ss:$16 sps:$4 sm:$0xff]  }
 0xa72   : > { %16200 = vmatpush1.bf16.xpose.msra.mxu1 %v22208_v21  ;;  %v22261_v21 = vld [vmem:[%s27628_s0 + $0xc20] ss:$16 sps:$4 sm:$0xff]  }
 0xa73   : > { %16282 = vmatpush1.bf16.xpose.msra.mxu0 %v22209_v22  ;;  %19140 = vmatprep.subr.msk.bf16.mxu1 %vm10844_vm0, %v22210_v23  ;;  %v22266_v22 = vld [vmem:[%s27628_s0 + $0xa44] ss:$16 sps:$4 sm:$0xff]  }
 0xa74   : > { %19157 = vmatprep.subr.msk.bf16.mxu0 %vm10844_vm0, %v22212_v24  ;;  %v22269_v23 = vld [vmem:[%s27628_s0 + $0xc44] ss:$16 sps:$4 sm:$0xff]   ;;  %v22264_v24 = vld [vmem:[%s27628_s0 + $0xa40] ss:$16 sps:$4 sm:$0xff]  }
 0xa7a   : > { %16202 = vmatpush1.bf16.xpose.msra.mxu1 %v22214_v25  ;;  %v22267_v25 = vld [vmem:[%s27628_s0 + $0xc40] ss:$16 sps:$4 sm:$0xff]  }
 0xa7b   : > { %16284 = vmatpush1.bf16.xpose.msra.mxu0 %v22215_v26  ;;  %19141 = vmatprep.subr.msk.bf16.mxu1 %vm10844_vm0, %v22216_v27  ;;  %v22272_v26 = vld [vmem:[%s27628_s0 + $0xa64] ss:$16 sps:$4 sm:$0xff]  }
 0xa7c   : > { %19158 = vmatprep.subr.msk.bf16.mxu0 %vm10844_vm0, %v22218_v28  ;;  %v22275_v27 = vld [vmem:[%s27628_s0 + $0xc64] ss:$16 sps:$4 sm:$0xff]   ;;  %v22270_v28 = vld [vmem:[%s27628_s0 + $0xa60] ss:$16 sps:$4 sm:$0xff]  }
 0xa82   : > { %16204 = vmatpush1.bf16.xpose.msra.mxu1 %v22220_v29  ;;  %v22273_v29 = vld [vmem:[%s27628_s0 + $0xc60] ss:$16 sps:$4 sm:$0xff]  }
 0xa83   : > { %16286 = vmatpush1.bf16.xpose.msra.mxu0 %v22221_v31  ;;  %19142 = vmatprep.subr.msk.bf16.mxu1 %vm10844_vm0, %v22222_v33  ;;  %v22278_v31 = vld [vmem:[%s27628_s0 + $0xa84] ss:$16 sps:$4 sm:$0xff]  }
 0xa84   : > { %v16053_v44 = vpop.f32.mrb[12].mxu1  ;;  %19159 = vmatprep.subr.msk.bf16.mxu0 %vm10844_vm0, %v22224_v34  ;;  %v22281_v33 = vld [vmem:[%s27628_s0 + $0xc84] ss:$16 sps:$4 sm:$0xff]   ;;  %v22276_v34 = vld [vmem:[%s27628_s0 + $0xa80] ss:$16 sps:$4 sm:$0xff]  }
 0xa85   : > { %v19384_v45 = vadd.f32 %v16053_v44, %v11922_v35  ;;  %v16135_v46 = vpop.f32.mrb[12].mxu0  ;;  %v16055_v47 = vpop.f32.mrb[13].mxu1  ;;  %v22279_v35 = vld [vmem:[%s27628_s0 + $0xc80] ss:$16 sps:$4 sm:$0xff]  }
 0xa86   : > { %v19386_v48 = vadd.f32 %v16135_v46, %v11930_v37  ;;  %v19385_v49 = vadd.f32 %v16055_v47, %v11926_v36  ;;  %v16137_v50 = vpop.f32.mrb[13].mxu0  ;;  %v16057_v51 = vpop.f32.mrb[14].mxu1  ;;  %v22284_v37 = vld [vmem:[%s27628_s0 + $0xaa4] ss:$16 sps:$4 sm:$0xff]   ;;  %v22285_v44 = vld [vmem:[%s27628_s0 + $0xca0] ss:$16 sps:$4 sm:$0xff]  }
 0xa87   : > { %16800 = vst [vmem:[%s27893_s14 + $0x10] sm:$0xff] %v19384_v45  ;;  %v19387_v55 = vadd.f32 %v16137_v50, %v11934_v43  ;;  %v16139_v53 = vpop.f32.mrb[14].mxu0  ;;  %v16058_v54 = vpop.f32.mrb[15].mxu1  ;;  %v22287_v36 = vld [vmem:[%s27628_s0 + $0xca4] ss:$16 sps:$4 sm:$0xff]  }
 0xa88   : > { %16802 = vst [vmem:[%s27893_s14 + $0x20] sm:$0xff] %v19386_v48  ;;  %16801 = vst [vmem:[%s27893_s14 + $0x18] sm:$0xff] %v19385_v49  ;;  %v16140_v58 = vpop.f32.mrb[15].mxu0  ;;  %v22282_v43 = vld [vmem:[%s27628_s0 + $0xaa0] ss:$16 sps:$4 sm:$0xff]  }
 0xa89   : > { %16803 = vst [vmem:[%s27893_s14 + $0x28] sm:$0xff] %v19387_v55  ;;  %v22290_v45 = vld [vmem:[%s27628_s0 + $0xac4] ss:$16 sps:$4 sm:$0xff]   ;;  %v22288_v47 = vld [vmem:[%s27628_s0 + $0xac0] ss:$16 sps:$4 sm:$0xff]  }
 0xa8a   : > { %16206 = vmatpush1.bf16.xpose.msra.mxu1 %v22226_v52  ;;  %v22293_v46 = vld [vmem:[%s27628_s0 + $0xcc4] ss:$16 sps:$4 sm:$0xff]   ;;  %v22291_v48 = vld [vmem:[%s27628_s0 + $0xcc0] ss:$16 sps:$4 sm:$0xff]  }
 0xa8b   : > { %16288 = vmatpush1.bf16.xpose.msra.mxu0 %v22227_v56  ;;  %19143 = vmatprep.subr.msk.bf16.mxu1 %vm10844_vm0, %v22228_v57  ;;  %v22296_v49 = vld [vmem:[%s27628_s0 + $0xae4] ss:$16 sps:$4 sm:$0xff]   ;;  %v22294_v51 = vld [vmem:[%s27628_s0 + $0xae0] ss:$16 sps:$4 sm:$0xff]  }
 0xa8c   : > { %19160 = vmatprep.subr.msk.bf16.mxu0 %vm10844_vm0, %v22230_v59  ;;  %v22299_v50 = vld [vmem:[%s27628_s0 + $0xce4] ss:$16 sps:$4 sm:$0xff]   ;;  %v22297_v52 = vld [vmem:[%s27628_s0 + $0xce0] ss:$16 sps:$4 sm:$0xff]  }
 0xa8d   : > { %v22302_v55 = vld [vmem:[%s27628_s0 + $0xb04] ss:$16 sps:$4 sm:$0xff]   ;;  %v22300_v54 = vld [vmem:[%s27628_s0 + $0xb00] ss:$16 sps:$4 sm:$0xff]  }
 0xa8e   : > { %v22305_v53 = vld [vmem:[%s27628_s0 + $0xd04] ss:$16 sps:$4 sm:$0xff]   ;;  %v22303_v56 = vld [vmem:[%s27628_s0 + $0xd00] ss:$16 sps:$4 sm:$0xff]  }
 0xa8f   : > { %v22308_v57 = vld [vmem:[%s27628_s0 + $0xb24] ss:$16 sps:$4 sm:$0xff]   ;;  %v22306_v59 = vld [vmem:[%s27628_s0 + $0xb20] ss:$16 sps:$4 sm:$0xff]  }
 0xa90   : > { %v22311_v58 = vld [vmem:[%s27628_s0 + $0xd24] ss:$16 sps:$4 sm:$0xff]  }
 0xa92   : > { %16208 = vmatpush1.bf16.xpose.msra.mxu1 %v22232_v62  ;;  %v22309_v62 = vld [vmem:[%s27628_s0 + $0xd20] ss:$16 sps:$4 sm:$0xff]  }
 0xa93   : > { %16290 = vmatpush1.bf16.xpose.msra.mxu0 %v22233_v63  ;;  %19144 = vmatprep.subr.msk.bf16.mxu1 %vm10844_vm0, %v22234_v2  ;;  %v22314_v63 = vld [vmem:[%s27628_s0 + $0xb44] ss:$16 sps:$4 sm:$0xff]  }
 0xa94   : > { %19161 = vmatprep.subr.msk.bf16.mxu0 %vm10844_vm0, %v22236_v3  ;;  %v22317_v2 = vld [vmem:[%s27628_s0 + $0xd44] ss:$16 sps:$4 sm:$0xff]   ;;  %v22312_v3 = vld [vmem:[%s27628_s0 + $0xb40] ss:$16 sps:$4 sm:$0xff]  }
 0xa9a   : > { %16210 = vmatpush1.bf16.xpose.msra.mxu1 %v22238_v4  ;;  %v22315_v4 = vld [vmem:[%s27628_s0 + $0xd40] ss:$16 sps:$4 sm:$0xff]  }
 0xa9b   : > { %16292 = vmatpush1.bf16.xpose.msra.mxu0 %v22239_v5  ;;  %19145 = vmatprep.subr.msk.bf16.mxu1 %vm10844_vm0, %v22240_v6  ;;  %v22320_v5 = vld [vmem:[%s27628_s0 + $0xb64] ss:$16 sps:$4 sm:$0xff]  }
 0xa9c   : > { %19162 = vmatprep.subr.msk.bf16.mxu0 %vm10844_vm0, %v22242_v7  ;;  %v22323_v6 = vld [vmem:[%s27628_s0 + $0xd64] ss:$16 sps:$4 sm:$0xff]   ;;  %v22318_v7 = vld [vmem:[%s27628_s0 + $0xb60] ss:$16 sps:$4 sm:$0xff]  }
 0xaa2   : > { %16212 = vmatpush1.bf16.xpose.msra.mxu1 %v22244_v8  ;;  %v22321_v8 = vld [vmem:[%s27628_s0 + $0xd60] ss:$16 sps:$4 sm:$0xff]  }
 0xaa3   : > { %16294 = vmatpush1.bf16.xpose.msra.mxu0 %v22245_v9  ;;  %19146 = vmatprep.subr.msk.bf16.mxu1 %vm10844_vm0, %v22246_v10  ;;  %v22326_v9 = vld [vmem:[%s27628_s0 + $0xb84] ss:$16 sps:$4 sm:$0xff]  }
 0xaa4   : > { %19163 = vmatprep.subr.msk.bf16.mxu0 %vm10844_vm0, %v22248_v11  ;;  %v22329_v10 = vld [vmem:[%s27628_s0 + $0xd84] ss:$16 sps:$4 sm:$0xff]   ;;  %v22324_v11 = vld [vmem:[%s27628_s0 + $0xb80] ss:$16 sps:$4 sm:$0xff]  }
 0xaaa   : > { %16214 = vmatpush1.bf16.xpose.msra.mxu1 %v22250_v12  ;;  %v22327_v12 = vld [vmem:[%s27628_s0 + $0xd80] ss:$16 sps:$4 sm:$0xff]  }
 0xaab   : > { %16296 = vmatpush1.bf16.xpose.msra.mxu0 %v22251_v13  ;;  %16306 = vmatprep.subr.bf16.mxu1 %v22254_v14  ;;  %v22332_v13 = vld [vmem:[%s27628_s0 + $0xba4] ss:$16 sps:$4 sm:$0xff]  }
 0xaac   : > { %16388 = vmatprep.subr.bf16.mxu0 %v22257_v15  ;;  %v22335_v14 = vld [vmem:[%s27628_s0 + $0xda4] ss:$16 sps:$4 sm:$0xff]   ;;  %v22330_v15 = vld [vmem:[%s27628_s0 + $0xba0] ss:$16 sps:$4 sm:$0xff]  }
 0xab1   : > { %16216 = vmatmul.mubr.bf16.vlgmr.msra.gmra.mrb[16].mxu1 %v27730_v1 }
 0xab2   : > { %16298 = vmatmul.mubr.bf16.vlgmr.msra.gmra.mrb[16].mxu0 %v27730_v1  ;;  %16307 = vmatpush1.bf16.xpose.msra.mxu1 %v22252_v16  ;;  %v22333_v16 = vld [vmem:[%s27628_s0 + $0xda0] ss:$16 sps:$4 sm:$0xff]  }
 0xab3   : > { %16338 = vmatprep.mubr.bf16.mxu1 %v27722_v60  ;;  %16389 = vmatpush1.bf16.xpose.msra.mxu0 %v22255_v17  ;;  %v22338_v17 = vld [vmem:[%s27628_s0 + $0xbc4] ss:$16 sps:$4 sm:$0xff]  }
 0xab4   : > { %16420 = vmatprep.mubr.bf16.mxu0 %v27722_v60  ;;  %16308 = vmatprep.subr.bf16.mxu1 %v22260_v18  ;;  %v22341_v18 = vld [vmem:[%s27628_s0 + $0xdc4] ss:$16 sps:$4 sm:$0xff]  }
 0xab5   : > { %16390 = vmatprep.subr.bf16.mxu0 %v22263_v19  ;;  %v22336_v19 = vld [vmem:[%s27628_s0 + $0xbc0] ss:$16 sps:$4 sm:$0xff]  }
 0xaba   : > { %16309 = vmatpush1.bf16.xpose.msra.mxu1 %v22258_v20  ;;  %v22339_v20 = vld [vmem:[%s27628_s0 + $0xdc0] ss:$16 sps:$4 sm:$0xff]  }
 0xabb   : > { %16391 = vmatpush1.bf16.xpose.msra.mxu0 %v22261_v21  ;;  %16310 = vmatprep.subr.bf16.mxu1 %v22266_v22  ;;  %v22344_v21 = vld [vmem:[%s27628_s0 + $0xbe4] ss:$16 sps:$4 sm:$0xff]  }
 0xabc   : > { %16392 = vmatprep.subr.bf16.mxu0 %v22269_v23  ;;  %v22347_v22 = vld [vmem:[%s27628_s0 + $0xde4] ss:$16 sps:$4 sm:$0xff]   ;;  %v22342_v23 = vld [vmem:[%s27628_s0 + $0xbe0] ss:$16 sps:$4 sm:$0xff]  }
 0xac2   : > { %16311 = vmatpush1.bf16.xpose.msra.mxu1 %v22264_v24  ;;  %v22345_v24 = vld [vmem:[%s27628_s0 + $0xde0] ss:$16 sps:$4 sm:$0xff]  }
 0xac3   : > { %16393 = vmatpush1.bf16.xpose.msra.mxu0 %v22267_v25  ;;  %16312 = vmatprep.subr.bf16.mxu1 %v22272_v26  ;;  %v22348_v25 = vld [vmem:[%s27628_s0 + $0xa0c] ss:$16 sps:$4 sm:$0xff]  }
 0xac4   : > { %16394 = vmatprep.subr.bf16.mxu0 %v22275_v27  ;;  %v22350_v26 = vld [vmem:[%s27628_s0 + $0xc0c] ss:$16 sps:$4 sm:$0xff]   ;;  %v22352_v27 = vld [vmem:[%s27628_s0 + $0xa08] ss:$16 sps:$4 sm:$0xff]  }
 0xaca   : > { %16313 = vmatpush1.bf16.xpose.msra.mxu1 %v22270_v28  ;;  %v22353_v28 = vld [vmem:[%s27628_s0 + $0xc08] ss:$16 sps:$4 sm:$0xff]  }
 0xacb   : > { %16395 = vmatpush1.bf16.xpose.msra.mxu0 %v22273_v29  ;;  %16314 = vmatprep.subr.bf16.mxu1 %v22278_v31  ;;  %v22354_v29 = vld [vmem:[%s27628_s0 + $0xa2c] ss:$16 sps:$4 sm:$0xff]  }
 0xacc   : > { %16396 = vmatprep.subr.bf16.mxu0 %v22281_v33  ;;  %v22356_v31 = vld [vmem:[%s27628_s0 + $0xc2c] ss:$16 sps:$4 sm:$0xff]   ;;  %v22358_v33 = vld [vmem:[%s27628_s0 + $0xa28] ss:$16 sps:$4 sm:$0xff]  }
 0xad2   : > { %16315 = vmatpush1.bf16.xpose.msra.mxu1 %v22276_v34  ;;  %v22359_v34 = vld [vmem:[%s27628_s0 + $0xc28] ss:$16 sps:$4 sm:$0xff]  }
 0xad3   : > { %16397 = vmatpush1.bf16.xpose.msra.mxu0 %v22279_v35  ;;  %16316 = vmatprep.subr.bf16.mxu1 %v22284_v37  ;;  %v22360_v35 = vld [vmem:[%s27628_s0 + $0xa4c] ss:$16 sps:$4 sm:$0xff]  }
 0xad4   : > { %16398 = vmatprep.subr.bf16.mxu0 %v22287_v36  ;;  %v22362_v37 = vld [vmem:[%s27628_s0 + $0xc4c] ss:$16 sps:$4 sm:$0xff]   ;;  %v22364_v36 = vld [vmem:[%s27628_s0 + $0xa48] ss:$16 sps:$4 sm:$0xff]  }
 0xada   : > { %16317 = vmatpush1.bf16.xpose.msra.mxu1 %v22282_v43  ;;  %v22365_v43 = vld [vmem:[%s27628_s0 + $0xc48] ss:$16 sps:$4 sm:$0xff]  }
 0xadb   : > { %16399 = vmatpush1.bf16.xpose.msra.mxu0 %v22285_v44  ;;  %16318 = vmatprep.subr.bf16.mxu1 %v22290_v45  ;;  %v22366_v44 = vld [vmem:[%s27628_s0 + $0xa6c] ss:$16 sps:$4 sm:$0xff]  }
 0xadc   : > { %16400 = vmatprep.subr.bf16.mxu0 %v22293_v46  ;;  %v22368_v45 = vld [vmem:[%s27628_s0 + $0xc6c] ss:$16 sps:$4 sm:$0xff]   ;;  %v22370_v46 = vld [vmem:[%s27628_s0 + $0xa68] ss:$16 sps:$4 sm:$0xff]  }
 0xae2   : > { %16319 = vmatpush1.bf16.xpose.msra.mxu1 %v22288_v47  ;;  %v22371_v47 = vld [vmem:[%s27628_s0 + $0xc68] ss:$16 sps:$4 sm:$0xff]  }
 0xae3   : > { %16401 = vmatpush1.bf16.xpose.msra.mxu0 %v22291_v48  ;;  %16320 = vmatprep.subr.bf16.mxu1 %v22296_v49  ;;  %v22372_v48 = vld [vmem:[%s27628_s0 + $0xa8c] ss:$16 sps:$4 sm:$0xff]  }
 0xae4   : > { %16402 = vmatprep.subr.bf16.mxu0 %v22299_v50  ;;  %v22374_v49 = vld [vmem:[%s27628_s0 + $0xc8c] ss:$16 sps:$4 sm:$0xff]   ;;  %v22376_v50 = vld [vmem:[%s27628_s0 + $0xa88] ss:$16 sps:$4 sm:$0xff]  }
 0xaea   : > { %16321 = vmatpush1.bf16.xpose.msra.mxu1 %v22294_v51  ;;  %v22377_v51 = vld [vmem:[%s27628_s0 + $0xc88] ss:$16 sps:$4 sm:$0xff]  }
 0xaeb   : > { %16403 = vmatpush1.bf16.xpose.msra.mxu0 %v22297_v52  ;;  %16322 = vmatprep.subr.bf16.mxu1 %v22302_v55  ;;  %v22378_v52 = vld [vmem:[%s27628_s0 + $0xaac] ss:$16 sps:$4 sm:$0xff]  }
 0xaec   : > { %16404 = vmatprep.subr.bf16.mxu0 %v22305_v53  ;;  %v22380_v55 = vld [vmem:[%s27628_s0 + $0xcac] ss:$16 sps:$4 sm:$0xff]   ;;  %v22382_v53 = vld [vmem:[%s27628_s0 + $0xaa8] ss:$16 sps:$4 sm:$0xff]  }
 0xaf2   : > { %16323 = vmatpush1.bf16.xpose.msra.mxu1 %v22300_v54  ;;  %v22383_v54 = vld [vmem:[%s27628_s0 + $0xca8] ss:$16 sps:$4 sm:$0xff]  }
 0xaf3   : > { %16405 = vmatpush1.bf16.xpose.msra.mxu0 %v22303_v56  ;;  %16324 = vmatprep.subr.bf16.mxu1 %v22308_v57  ;;  %v22384_v56 = vld [vmem:[%s27628_s0 + $0xacc] ss:$16 sps:$4 sm:$0xff]  }
 0xaf4   : > { %16406 = vmatprep.subr.bf16.mxu0 %v22311_v58  ;;  %v22386_v57 = vld [vmem:[%s27628_s0 + $0xccc] ss:$16 sps:$4 sm:$0xff]   ;;  %v22388_v58 = vld [vmem:[%s27628_s0 + $0xac8] ss:$16 sps:$4 sm:$0xff]  }
 0xafa   : > { %16325 = vmatpush1.bf16.xpose.msra.mxu1 %v22306_v59  ;;  %v22389_v59 = vld [vmem:[%s27628_s0 + $0xcc8] ss:$16 sps:$4 sm:$0xff]  }
 0xafb   : > { %16407 = vmatpush1.bf16.xpose.msra.mxu0 %v22309_v62  ;;  %16326 = vmatprep.subr.bf16.mxu1 %v22314_v63  ;;  %v22390_v62 = vld [vmem:[%s27628_s0 + $0xaec] ss:$16 sps:$4 sm:$0xff]  }
 0xafc   : > { %16408 = vmatprep.subr.bf16.mxu0 %v22317_v2  ;;  %v22392_v63 = vld [vmem:[%s27628_s0 + $0xcec] ss:$16 sps:$4 sm:$0xff]   ;;  %v22394_v2 = vld [vmem:[%s27628_s0 + $0xae8] ss:$16 sps:$4 sm:$0xff]  }
 0xb02   : > { %16327 = vmatpush1.bf16.xpose.msra.mxu1 %v22312_v3  ;;  %v22395_v3 = vld [vmem:[%s27628_s0 + $0xce8] ss:$16 sps:$4 sm:$0xff]  }
 0xb03   : > { %16409 = vmatpush1.bf16.xpose.msra.mxu0 %v22315_v4  ;;  %16328 = vmatprep.subr.bf16.mxu1 %v22320_v5  ;;  %v22396_v4 = vld [vmem:[%s27628_s0 + $0xb0c] ss:$16 sps:$4 sm:$0xff]  }
 0xb04   : > { %16410 = vmatprep.subr.bf16.mxu0 %v22323_v6  ;;  %v22398_v5 = vld [vmem:[%s27628_s0 + $0xd0c] ss:$16 sps:$4 sm:$0xff]   ;;  %v22400_v6 = vld [vmem:[%s27628_s0 + $0xb08] ss:$16 sps:$4 sm:$0xff]  }
 0xb0a   : > { %16329 = vmatpush1.bf16.xpose.msra.mxu1 %v22318_v7  ;;  %v22401_v7 = vld [vmem:[%s27628_s0 + $0xd08] ss:$16 sps:$4 sm:$0xff]  }
 0xb0b   : > { %16411 = vmatpush1.bf16.xpose.msra.mxu0 %v22321_v8  ;;  %16330 = vmatprep.subr.bf16.mxu1 %v22326_v9  ;;  %v22402_v8 = vld [vmem:[%s27628_s0 + $0xb2c] ss:$16 sps:$4 sm:$0xff]  }
 0xb0c   : > { %16412 = vmatprep.subr.bf16.mxu0 %v22329_v10  ;;  %v22404_v9 = vld [vmem:[%s27628_s0 + $0xd2c] ss:$16 sps:$4 sm:$0xff]   ;;  %v22406_v10 = vld [vmem:[%s27628_s0 + $0xb28] ss:$16 sps:$4 sm:$0xff]  }
 0xb12   : > { %16331 = vmatpush1.bf16.xpose.msra.mxu1 %v22324_v11  ;;  %v22407_v11 = vld [vmem:[%s27628_s0 + $0xd28] ss:$16 sps:$4 sm:$0xff]  }
 0xb13   : > { %16413 = vmatpush1.bf16.xpose.msra.mxu0 %v22327_v12  ;;  %16332 = vmatprep.subr.bf16.mxu1 %v22332_v13  ;;  %v22408_v12 = vld [vmem:[%s27628_s0 + $0xb4c] ss:$16 sps:$4 sm:$0xff]  }
 0xb14   : > { %16414 = vmatprep.subr.bf16.mxu0 %v22335_v14  ;;  %v22410_v13 = vld [vmem:[%s27628_s0 + $0xd4c] ss:$16 sps:$4 sm:$0xff]   ;;  %v11937_v14 = vsub.s32 6, %v27556_v38 }
 0xb1a   : > { %16333 = vmatpush1.bf16.xpose.msra.mxu1 %v22330_v15  ;;  %v22412_v15 = vld [vmem:[%s27628_s0 + $0xb48] ss:$16 sps:$4 sm:$0xff]  }
 0xb1b   : > { %16415 = vmatpush1.bf16.xpose.msra.mxu0 %v22333_v16  ;;  %16334 = vmatprep.subr.bf16.mxu1 %v22338_v17  ;;  %v11941_v16 = vsub.s32 7, %v27556_v38  ;;  %v22413_v17 = vld [vmem:[%s27628_s0 + $0xd48] ss:$16 sps:$4 sm:$0xff]  }
 0xb1c   : > { %16416 = vmatprep.subr.bf16.mxu0 %v22341_v18  ;;  %v28250_v18 = vld [vmem:[%s27872_s30 + $0x8] sm:$0xff] }
 0xb22   : > { %16335 = vmatpush1.bf16.xpose.msra.mxu1 %v22336_v19  ;;  %v22414_v19 = vld [vmem:[%s27628_s0 + $0xb6c] ss:$16 sps:$4 sm:$0xff]  }
 0xb23   : > { %16417 = vmatpush1.bf16.xpose.msra.mxu0 %v22339_v20  ;;  %16336 = vmatprep.subr.bf16.mxu1 %v22344_v21  ;;  %v22416_v20 = vld [vmem:[%s27628_s0 + $0xd6c] ss:$16 sps:$4 sm:$0xff]   ;;  %v22830_v21 = vld [vmem:[%s27872_s30] sm:$0xff] }
 0xb24   : > { %16418 = vmatprep.subr.bf16.mxu0 %v22347_v22  ;;  %v11938_v22 = vrot.slane %v22830_v21, %v11937_v14 }
 0xb2a   : > { %16337 = vmatpush1.bf16.xpose.msra.mxu1 %v22342_v23  ;;  %v11946_v23 = vrot.slane %v28250_v18, %v27559_v39 }
 0xb2b   : > { %16419 = vmatpush1.bf16.xpose.msra.mxu0 %v22345_v24  ;;  %19165 = vmatprep.subr.msk.bf16.mxu1 %vm10844_vm0, %v22348_v25  ;;  %v11942_v24 = vrot.slane %v22830_v21, %v11941_v16  ;;  %v11950_v25 = vrot.slane %v28250_v18, %v27568_v41  ;;  %v22465_v21 = vld [vmem:[%s27628_s0 + $0x1060] ss:$16 sps:$4 sm:$0xff]  }
 0xb2c   : > { %19182 = vmatprep.subr.msk.bf16.mxu0 %vm10844_vm0, %v22350_v26 }
 0xb31   : > { %16339 = vmatmul.mubr.bf16.vlgmr.msra.gmra.mrb[20].mxu1 %v27728_v0 }
 0xb32   : > { %16421 = vmatmul.mubr.bf16.vlgmr.msra.gmra.mrb[20].mxu0 %v27728_v0  ;;  %16348 = vmatpush1.bf16.xpose.msra.mxu1 %v22352_v27 }
 0xb33   : > { %19181 = vmatprep.mubr.msk.bf16.mxu1 %vm10844_vm0, %v27724_v61  ;;  %16430 = vmatpush1.bf16.xpose.msra.mxu0 %v22353_v28 }
 0xb34   : > { %19198 = vmatprep.mubr.msk.bf16.mxu0 %vm10844_vm0, %v27724_v61  ;;  %19166 = vmatprep.subr.msk.bf16.mxu1 %vm10844_vm0, %v22354_v29 }
 0xb35   : > { %19183 = vmatprep.subr.msk.bf16.mxu0 %vm10844_vm0, %v22356_v31 }
 0xb3a   : > { %16350 = vmatpush1.bf16.xpose.msra.mxu1 %v22358_v33 }
 0xb3b   : > { %16432 = vmatpush1.bf16.xpose.msra.mxu0 %v22359_v34  ;;  %19167 = vmatprep.subr.msk.bf16.mxu1 %vm10844_vm0, %v22360_v35 }
 0xb3c   : > { %19184 = vmatprep.subr.msk.bf16.mxu0 %vm10844_vm0, %v22362_v37  ;;  %v22418_v37 = vld [vmem:[%s27628_s0 + $0xb68] ss:$16 sps:$4 sm:$0xff]  }
 0xb42   : > { %16352 = vmatpush1.bf16.xpose.msra.mxu1 %v22364_v36 }
 0xb43   : > { %16434 = vmatpush1.bf16.xpose.msra.mxu0 %v22365_v43  ;;  %19168 = vmatprep.subr.msk.bf16.mxu1 %vm10844_vm0, %v22366_v44 }
 0xb44   : > { %19185 = vmatprep.subr.msk.bf16.mxu0 %vm10844_vm0, %v22368_v45  ;;  %v22419_v45 = vld [vmem:[%s27628_s0 + $0xd68] ss:$16 sps:$4 sm:$0xff]  }
 0xb4a   : > { %16354 = vmatpush1.bf16.xpose.msra.mxu1 %v22370_v46  ;;  %v22420_v46 = vld [vmem:[%s27628_s0 + $0xb8c] ss:$16 sps:$4 sm:$0xff]  }
 0xb4b   : > { %16436 = vmatpush1.bf16.xpose.msra.mxu0 %v22371_v47  ;;  %19169 = vmatprep.subr.msk.bf16.mxu1 %vm10844_vm0, %v22372_v48  ;;  %v22422_v48 = vld [vmem:[%s27628_s0 + $0xd8c] ss:$16 sps:$4 sm:$0xff]  }
 0xb4c   : > { %19186 = vmatprep.subr.msk.bf16.mxu0 %vm10844_vm0, %v22374_v49  ;;  %v22424_v49 = vld [vmem:[%s27628_s0 + $0xb88] ss:$16 sps:$4 sm:$0xff]  }
 0xb52   : > { %16356 = vmatpush1.bf16.xpose.msra.mxu1 %v22376_v50  ;;  %v22425_v50 = vld [vmem:[%s27628_s0 + $0xd88] ss:$16 sps:$4 sm:$0xff]  }
 0xb53   : > { %16438 = vmatpush1.bf16.xpose.msra.mxu0 %v22377_v51  ;;  %19170 = vmatprep.subr.msk.bf16.mxu1 %vm10844_vm0, %v22378_v52  ;;  %v22426_v51 = vld [vmem:[%s27628_s0 + $0xbac] ss:$16 sps:$4 sm:$0xff]  }
 0xb54   : > { %19187 = vmatprep.subr.msk.bf16.mxu0 %vm10844_vm0, %v22380_v55  ;;  %v22428_v52 = vld [vmem:[%s27628_s0 + $0xdac] ss:$16 sps:$4 sm:$0xff]   ;;  %v22430_v55 = vld [vmem:[%s27628_s0 + $0xba8] ss:$16 sps:$4 sm:$0xff]  }
 0xb5a   : > { %16358 = vmatpush1.bf16.xpose.msra.mxu1 %v22382_v53  ;;  %v22431_v53 = vld [vmem:[%s27628_s0 + $0xda8] ss:$16 sps:$4 sm:$0xff]  }
 0xb5b   : > { %16440 = vmatpush1.bf16.xpose.msra.mxu0 %v22383_v54  ;;  %19171 = vmatprep.subr.msk.bf16.mxu1 %vm10844_vm0, %v22384_v56  ;;  %v22432_v54 = vld [vmem:[%s27628_s0 + $0xbcc] ss:$16 sps:$4 sm:$0xff]  }
 0xb5c   : > { %19188 = vmatprep.subr.msk.bf16.mxu0 %vm10844_vm0, %v22386_v57  ;;  %v22434_v56 = vld [vmem:[%s27628_s0 + $0xdcc] ss:$16 sps:$4 sm:$0xff]   ;;  %v22436_v57 = vld [vmem:[%s27628_s0 + $0xbc8] ss:$16 sps:$4 sm:$0xff]  }
 0xb62   : > { %16360 = vmatpush1.bf16.xpose.msra.mxu1 %v22388_v58  ;;  %v22437_v58 = vld [vmem:[%s27628_s0 + $0xdc8] ss:$16 sps:$4 sm:$0xff]  }
 0xb63   : > { %16442 = vmatpush1.bf16.xpose.msra.mxu0 %v22389_v59  ;;  %19172 = vmatprep.subr.msk.bf16.mxu1 %vm10844_vm0, %v22390_v62  ;;  %v22438_v59 = vld [vmem:[%s27628_s0 + $0xbec] ss:$16 sps:$4 sm:$0xff]  }
 0xb64   : > { %19189 = vmatprep.subr.msk.bf16.mxu0 %vm10844_vm0, %v22392_v63  ;;  %v22440_v62 = vld [vmem:[%s27628_s0 + $0xdec] ss:$16 sps:$4 sm:$0xff]   ;;  %v22442_v63 = vld [vmem:[%s27628_s0 + $0xbe8] ss:$16 sps:$4 sm:$0xff]  }
 0xb6a   : > { %16362 = vmatpush1.bf16.xpose.msra.mxu1 %v22394_v2  ;;  %v22443_v2 = vld [vmem:[%s27628_s0 + $0xde8] ss:$16 sps:$4 sm:$0xff]  }
 0xb6b   : > { %16444 = vmatpush1.bf16.xpose.msra.mxu0 %v22395_v3  ;;  %19173 = vmatprep.subr.msk.bf16.mxu1 %vm10844_vm0, %v22396_v4  ;;  %v22446_v3 = vld [vmem:[%s27628_s0 + $0xe04] ss:$16 sps:$4 sm:$0xff]  }
 0xb6c   : > { %19190 = vmatprep.subr.msk.bf16.mxu0 %vm10844_vm0, %v22398_v5  ;;  %v22449_v4 = vld [vmem:[%s27628_s0 + $0x1004] ss:$16 sps:$4 sm:$0xff]   ;;  %v22444_v5 = vld [vmem:[%s27628_s0 + $0xe00] ss:$16 sps:$4 sm:$0xff]  }
 0xb72   : > { %16364 = vmatpush1.bf16.xpose.msra.mxu1 %v22400_v6  ;;  %v22447_v6 = vld [vmem:[%s27628_s0 + $0x1000] ss:$16 sps:$4 sm:$0xff]  }
 0xb73   : > { %16446 = vmatpush1.bf16.xpose.msra.mxu0 %v22401_v7  ;;  %19174 = vmatprep.subr.msk.bf16.mxu1 %vm10844_vm0, %v22402_v8  ;;  %v22452_v7 = vld [vmem:[%s27628_s0 + $0xe24] ss:$16 sps:$4 sm:$0xff]  }
 0xb74   : > { %19191 = vmatprep.subr.msk.bf16.mxu0 %vm10844_vm0, %v22404_v9  ;;  %v22455_v8 = vld [vmem:[%s27628_s0 + $0x1024] ss:$16 sps:$4 sm:$0xff]   ;;  %v22450_v9 = vld [vmem:[%s27628_s0 + $0xe20] ss:$16 sps:$4 sm:$0xff]  }
 0xb7a   : > { %16366 = vmatpush1.bf16.xpose.msra.mxu1 %v22406_v10  ;;  %v22453_v10 = vld [vmem:[%s27628_s0 + $0x1020] ss:$16 sps:$4 sm:$0xff]  }
 0xb7b   : > { %16448 = vmatpush1.bf16.xpose.msra.mxu0 %v22407_v11  ;;  %19175 = vmatprep.subr.msk.bf16.mxu1 %vm10844_vm0, %v22408_v12  ;;  %v22458_v11 = vld [vmem:[%s27628_s0 + $0xe44] ss:$16 sps:$4 sm:$0xff]  }
 0xb7c   : > { %19192 = vmatprep.subr.msk.bf16.mxu0 %vm10844_vm0, %v22410_v13  ;;  %v22461_v12 = vld [vmem:[%s27628_s0 + $0x1044] ss:$16 sps:$4 sm:$0xff]   ;;  %v22456_v13 = vld [vmem:[%s27628_s0 + $0xe40] ss:$16 sps:$4 sm:$0xff]  }
 0xb82   : > { %16368 = vmatpush1.bf16.xpose.msra.mxu1 %v22412_v15  ;;  %v22459_v15 = vld [vmem:[%s27628_s0 + $0x1040] ss:$16 sps:$4 sm:$0xff]  }
 0xb83   : > { %16450 = vmatpush1.bf16.xpose.msra.mxu0 %v22413_v17  ;;  %19176 = vmatprep.subr.msk.bf16.mxu1 %vm10844_vm0, %v22414_v19  ;;  %v22464_v17 = vld [vmem:[%s27628_s0 + $0xe64] ss:$16 sps:$4 sm:$0xff]  }
 0xb84   : > { %v16217_v26 = vpop.f32.mrb[16].mxu1  ;;  %19193 = vmatprep.subr.msk.bf16.mxu0 %vm10844_vm0, %v22416_v20  ;;  %v22467_v19 = vld [vmem:[%s27628_s0 + $0x1064] ss:$16 sps:$4 sm:$0xff]   ;;  %v22462_v20 = vld [vmem:[%s27628_s0 + $0xe60] ss:$16 sps:$4 sm:$0xff]  }
 0xb85   : > { %v19388_v27 = vadd.f32 %v16217_v26, %v11938_v22  ;;  %v16299_v28 = vpop.f32.mrb[16].mxu0  ;;  %v16219_v29 = vpop.f32.mrb[17].mxu1  ;;  %v22470_v22 = vld [vmem:[%s27628_s0 + $0xe84] ss:$16 sps:$4 sm:$0xff]  }
 0xb86   : > { %v19390_v31 = vadd.f32 %v16299_v28, %v11946_v23  ;;  %v19389_v33 = vadd.f32 %v16219_v29, %v11942_v24  ;;  %v16301_v34 = vpop.f32.mrb[17].mxu0  ;;  %v16221_v35 = vpop.f32.mrb[18].mxu1  ;;  %v22473_v23 = vld [vmem:[%s27628_s0 + $0x1084] ss:$16 sps:$4 sm:$0xff]   ;;  %v22468_v24 = vld [vmem:[%s27628_s0 + $0xe80] ss:$16 sps:$4 sm:$0xff]  }
 0xb87   : > { %16804 = vst [vmem:[%s27893_s14 + $0x30] sm:$0xff] %v19388_v27  ;;  %v19391_v36 = vadd.f32 %v16301_v34, %v11950_v25  ;;  %v16303_v43 = vpop.f32.mrb[18].mxu0  ;;  %v16222_v44 = vpop.f32.mrb[19].mxu1  ;;  %v22471_v25 = vld [vmem:[%s27628_s0 + $0x1080] ss:$16 sps:$4 sm:$0xff]  }
 0xb88   : > { %16806 = vst [vmem:[%s27893_s14 + $0x40] sm:$0xff] %v19390_v31  ;;  %16805 = vst [vmem:[%s27893_s14 + $0x38] sm:$0xff] %v19389_v33  ;;  %v16304_v47 = vpop.f32.mrb[19].mxu0  ;;  %v22476_v26 = vld [vmem:[%s27628_s0 + $0xea4] ss:$16 sps:$4 sm:$0xff]  }
 0xb89   : > { %16807 = vst [vmem:[%s27893_s14 + $0x48] sm:$0xff] %v19391_v36  ;;  %v22479_v27 = vld [vmem:[%s27628_s0 + $0x10a4] ss:$16 sps:$4 sm:$0xff]   ;;  %v22474_v28 = vld [vmem:[%s27628_s0 + $0xea0] ss:$16 sps:$4 sm:$0xff]  }
 0xb8a   : > { %16370 = vmatpush1.bf16.xpose.msra.mxu1 %v22418_v37  ;;  %v22477_v29 = vld [vmem:[%s27628_s0 + $0x10a0] ss:$16 sps:$4 sm:$0xff]   ;;  %v22482_v31 = vld [vmem:[%s27628_s0 + $0xec4] ss:$16 sps:$4 sm:$0xff]  }
 0xb8b   : > { %16452 = vmatpush1.bf16.xpose.msra.mxu0 %v22419_v45  ;;  %19177 = vmatprep.subr.msk.bf16.mxu1 %vm10844_vm0, %v22420_v46  ;;  %v22485_v33 = vld [vmem:[%s27628_s0 + $0x10c4] ss:$16 sps:$4 sm:$0xff]   ;;  %v22480_v34 = vld [vmem:[%s27628_s0 + $0xec0] ss:$16 sps:$4 sm:$0xff]  }
 0xb8c   : > { %19194 = vmatprep.subr.msk.bf16.mxu0 %vm10844_vm0, %v22422_v48  ;;  %v22483_v35 = vld [vmem:[%s27628_s0 + $0x10c0] ss:$16 sps:$4 sm:$0xff]   ;;  %v22488_v37 = vld [vmem:[%s27628_s0 + $0xee4] ss:$16 sps:$4 sm:$0xff]  }
 0xb8d   : > { %v22491_v36 = vld [vmem:[%s27628_s0 + $0x10e4] ss:$16 sps:$4 sm:$0xff]   ;;  %v22486_v43 = vld [vmem:[%s27628_s0 + $0xee0] ss:$16 sps:$4 sm:$0xff]  }
 0xb8e   : > { %v22489_v44 = vld [vmem:[%s27628_s0 + $0x10e0] ss:$16 sps:$4 sm:$0xff]   ;;  %v22494_v45 = vld [vmem:[%s27628_s0 + $0xf04] ss:$16 sps:$4 sm:$0xff]  }
 0xb8f   : > { %v22497_v46 = vld [vmem:[%s27628_s0 + $0x1104] ss:$16 sps:$4 sm:$0xff]   ;;  %v22492_v47 = vld [vmem:[%s27628_s0 + $0xf00] ss:$16 sps:$4 sm:$0xff]  }
 0xb90   : > { %v22495_v48 = vld [vmem:[%s27628_s0 + $0x1100] ss:$16 sps:$4 sm:$0xff]  }
 0xb92   : > { %16372 = vmatpush1.bf16.xpose.msra.mxu1 %v22424_v49  ;;  %v22500_v49 = vld [vmem:[%s27628_s0 + $0xf24] ss:$16 sps:$4 sm:$0xff]  }
 0xb93   : > { %16454 = vmatpush1.bf16.xpose.msra.mxu0 %v22425_v50  ;;  %19178 = vmatprep.subr.msk.bf16.mxu1 %vm10844_vm0, %v22426_v51  ;;  %v22503_v50 = vld [vmem:[%s27628_s0 + $0x1124] ss:$16 sps:$4 sm:$0xff]   ;;  %v22498_v51 = vld [vmem:[%s27628_s0 + $0xf20] ss:$16 sps:$4 sm:$0xff]  }
 0xb94   : > { %19195 = vmatprep.subr.msk.bf16.mxu0 %vm10844_vm0, %v22428_v52  ;;  %v22501_v52 = vld [vmem:[%s27628_s0 + $0x1120] ss:$16 sps:$4 sm:$0xff]  }
 0xb9a   : > { %16374 = vmatpush1.bf16.xpose.msra.mxu1 %v22430_v55  ;;  %v22506_v55 = vld [vmem:[%s27628_s0 + $0xf44] ss:$16 sps:$4 sm:$0xff]  }
 0xb9b   : > { %16456 = vmatpush1.bf16.xpose.msra.mxu0 %v22431_v53  ;;  %19179 = vmatprep.subr.msk.bf16.mxu1 %vm10844_vm0, %v22432_v54  ;;  %v22509_v53 = vld [vmem:[%s27628_s0 + $0x1144] ss:$16 sps:$4 sm:$0xff]   ;;  %v22504_v54 = vld [vmem:[%s27628_s0 + $0xf40] ss:$16 sps:$4 sm:$0xff]  }
 0xb9c   : > { %19196 = vmatprep.subr.msk.bf16.mxu0 %vm10844_vm0, %v22434_v56  ;;  %v22507_v56 = vld [vmem:[%s27628_s0 + $0x1140] ss:$16 sps:$4 sm:$0xff]  }
 0xba2   : > { %16376 = vmatpush1.bf16.xpose.msra.mxu1 %v22436_v57  ;;  %v22512_v57 = vld [vmem:[%s27628_s0 + $0xf64] ss:$16 sps:$4 sm:$0xff]  }
 0xba3   : > { %16458 = vmatpush1.bf16.xpose.msra.mxu0 %v22437_v58  ;;  %19180 = vmatprep.subr.msk.bf16.mxu1 %vm10844_vm0, %v22438_v59  ;;  %v22515_v58 = vld [vmem:[%s27628_s0 + $0x1164] ss:$16 sps:$4 sm:$0xff]   ;;  %v22510_v59 = vld [vmem:[%s27628_s0 + $0xf60] ss:$16 sps:$4 sm:$0xff]  }
 0xba4   : > { %19197 = vmatprep.subr.msk.bf16.mxu0 %vm10844_vm0, %v22440_v62  ;;  %v22513_v62 = vld [vmem:[%s27628_s0 + $0x1160] ss:$16 sps:$4 sm:$0xff]  }
 0xbaa   : > { %16378 = vmatpush1.bf16.xpose.msra.mxu1 %v22442_v63  ;;  %v22518_v63 = vld [vmem:[%s27628_s0 + $0xf84] ss:$16 sps:$4 sm:$0xff]  }
 0xbab   : > { %16460 = vmatpush1.bf16.xpose.msra.mxu0 %v22443_v2  ;;  %16470 = vmatprep.subr.bf16.mxu1 %v22446_v3  ;;  %v22521_v2 = vld [vmem:[%s27628_s0 + $0x1184] ss:$16 sps:$4 sm:$0xff]   ;;  %v22516_v3 = vld [vmem:[%s27628_s0 + $0xf80] ss:$16 sps:$4 sm:$0xff]  }
 0xbac   : > { %16552 = vmatprep.subr.bf16.mxu0 %v22449_v4  ;;  %v22519_v4 = vld [vmem:[%s27628_s0 + $0x1180] ss:$16 sps:$4 sm:$0xff]  }
 0xbb1   : > { %16380 = vmatmul.mubr.bf16.vlgmr.msra.gmra.mrb[20].mxu1 %v27730_v1 }
 0xbb2   : > { %16462 = vmatmul.mubr.bf16.vlgmr.msra.gmra.mrb[20].mxu0 %v27730_v1  ;;  %16471 = vmatpush1.bf16.xpose.msra.mxu1 %v22444_v5  ;;  %v22524_v5 = vld [vmem:[%s27628_s0 + $0xfa4] ss:$16 sps:$4 sm:$0xff]  }
 0xbb3   : > { %16502 = vmatprep.mubr.bf16.mxu1 %v27722_v60  ;;  %16553 = vmatpush1.bf16.xpose.msra.mxu0 %v22447_v6  ;;  %v22527_v6 = vld [vmem:[%s27628_s0 + $0x11a4] ss:$16 sps:$4 sm:$0xff]  }
 0xbb4   : > { %16584 = vmatprep.mubr.bf16.mxu0 %v27722_v60  ;;  %16472 = vmatprep.subr.bf16.mxu1 %v22452_v7  ;;  %v22522_v7 = vld [vmem:[%s27628_s0 + $0xfa0] ss:$16 sps:$4 sm:$0xff]  }
 0xbb5   : > { %16554 = vmatprep.subr.bf16.mxu0 %v22455_v8  ;;  %v22525_v8 = vld [vmem:[%s27628_s0 + $0x11a0] ss:$16 sps:$4 sm:$0xff]  }
 0xbba   : > { %16473 = vmatpush1.bf16.xpose.msra.mxu1 %v22450_v9  ;;  %v22530_v9 = vld [vmem:[%s27628_s0 + $0xfc4] ss:$16 sps:$4 sm:$0xff]  }
 0xbbb   : > { %16555 = vmatpush1.bf16.xpose.msra.mxu0 %v22453_v10  ;;  %16474 = vmatprep.subr.bf16.mxu1 %v22458_v11  ;;  %v22533_v10 = vld [vmem:[%s27628_s0 + $0x11c4] ss:$16 sps:$4 sm:$0xff]   ;;  %v22528_v11 = vld [vmem:[%s27628_s0 + $0xfc0] ss:$16 sps:$4 sm:$0xff]  }
 0xbbc   : > { %16556 = vmatprep.subr.bf16.mxu0 %v22461_v12  ;;  %v22531_v12 = vld [vmem:[%s27628_s0 + $0x11c0] ss:$16 sps:$4 sm:$0xff]  }
 0xbc2   : > { %16475 = vmatpush1.bf16.xpose.msra.mxu1 %v22456_v13  ;;  %v22536_v13 = vld [vmem:[%s27628_s0 + $0xfe4] ss:$16 sps:$4 sm:$0xff]  }
 0xbc3   : > { %16557 = vmatpush1.bf16.xpose.msra.mxu0 %v22459_v15  ;;  %16476 = vmatprep.subr.bf16.mxu1 %v22464_v17  ;;  %v22539_v15 = vld [vmem:[%s27628_s0 + $0x11e4] ss:$16 sps:$4 sm:$0xff]   ;;  %v22534_v17 = vld [vmem:[%s27628_s0 + $0xfe0] ss:$16 sps:$4 sm:$0xff]  }
 0xbc4   : > { %16558 = vmatprep.subr.bf16.mxu0 %v22467_v19  ;;  %v22537_v19 = vld [vmem:[%s27628_s0 + $0x11e0] ss:$16 sps:$4 sm:$0xff]  }
 0xbca   : > { %16477 = vmatpush1.bf16.xpose.msra.mxu1 %v22462_v20  ;;  %v22540_v20 = vld [vmem:[%s27628_s0 + $0xe0c] ss:$16 sps:$4 sm:$0xff]  }
 0xbcb   : > { %16559 = vmatpush1.bf16.xpose.msra.mxu0 %v22465_v21  ;;  %16478 = vmatprep.subr.bf16.mxu1 %v22470_v22  ;;  %v22542_v21 = vld [vmem:[%s27628_s0 + $0x100c] ss:$16 sps:$4 sm:$0xff]   ;;  %v22544_v22 = vld [vmem:[%s27628_s0 + $0xe08] ss:$16 sps:$4 sm:$0xff]  }
 0xbcc   : > { %16560 = vmatprep.subr.bf16.mxu0 %v22473_v23  ;;  %v22545_v23 = vld [vmem:[%s27628_s0 + $0x1008] ss:$16 sps:$4 sm:$0xff]  }
 0xbd2   : > { %16479 = vmatpush1.bf16.xpose.msra.mxu1 %v22468_v24  ;;  %v22546_v24 = vld [vmem:[%s27628_s0 + $0xe2c] ss:$16 sps:$4 sm:$0xff]  }
 0xbd3   : > { %16561 = vmatpush1.bf16.xpose.msra.mxu0 %v22471_v25  ;;  %16480 = vmatprep.subr.bf16.mxu1 %v22476_v26  ;;  %v22548_v25 = vld [vmem:[%s27628_s0 + $0x102c] ss:$16 sps:$4 sm:$0xff]   ;;  %v22550_v26 = vld [vmem:[%s27628_s0 + $0xe28] ss:$16 sps:$4 sm:$0xff]  }
 0xbd4   : > { %16562 = vmatprep.subr.bf16.mxu0 %v22479_v27  ;;  %v22551_v27 = vld [vmem:[%s27628_s0 + $0x1028] ss:$16 sps:$4 sm:$0xff]  }
 0xbda   : > { %16481 = vmatpush1.bf16.xpose.msra.mxu1 %v22474_v28  ;;  %v22552_v28 = vld [vmem:[%s27628_s0 + $0xe4c] ss:$16 sps:$4 sm:$0xff]  }
 0xbdb   : > { %16563 = vmatpush1.bf16.xpose.msra.mxu0 %v22477_v29  ;;  %16482 = vmatprep.subr.bf16.mxu1 %v22482_v31  ;;  %v22554_v29 = vld [vmem:[%s27628_s0 + $0x104c] ss:$16 sps:$4 sm:$0xff]   ;;  %v22556_v31 = vld [vmem:[%s27628_s0 + $0xe48] ss:$16 sps:$4 sm:$0xff]  }
 0xbdc   : > { %16564 = vmatprep.subr.bf16.mxu0 %v22485_v33  ;;  %v22557_v33 = vld [vmem:[%s27628_s0 + $0x1048] ss:$16 sps:$4 sm:$0xff]  }
 0xbe2   : > { %16483 = vmatpush1.bf16.xpose.msra.mxu1 %v22480_v34  ;;  %v22558_v34 = vld [vmem:[%s27628_s0 + $0xe6c] ss:$16 sps:$4 sm:$0xff]  }
 0xbe3   : > { %16565 = vmatpush1.bf16.xpose.msra.mxu0 %v22483_v35  ;;  %16484 = vmatprep.subr.bf16.mxu1 %v22488_v37  ;;  %v22560_v35 = vld [vmem:[%s27628_s0 + $0x106c] ss:$16 sps:$4 sm:$0xff]   ;;  %v22562_v37 = vld [vmem:[%s27628_s0 + $0xe68] ss:$16 sps:$4 sm:$0xff]  }
 0xbe4   : > { %16566 = vmatprep.subr.bf16.mxu0 %v22491_v36  ;;  %v22563_v36 = vld [vmem:[%s27628_s0 + $0x1068] ss:$16 sps:$4 sm:$0xff]  }
 0xbea   : > { %16485 = vmatpush1.bf16.xpose.msra.mxu1 %v22486_v43  ;;  %v22564_v43 = vld [vmem:[%s27628_s0 + $0xe8c] ss:$16 sps:$4 sm:$0xff]  }
 0xbeb   : > { %16567 = vmatpush1.bf16.xpose.msra.mxu0 %v22489_v44  ;;  %16486 = vmatprep.subr.bf16.mxu1 %v22494_v45  ;;  %v22566_v44 = vld [vmem:[%s27628_s0 + $0x108c] ss:$16 sps:$4 sm:$0xff]   ;;  %v22568_v45 = vld [vmem:[%s27628_s0 + $0xe88] ss:$16 sps:$4 sm:$0xff]  }
 0xbec   : > { %16568 = vmatprep.subr.bf16.mxu0 %v22497_v46  ;;  %v22569_v46 = vld [vmem:[%s27628_s0 + $0x1088] ss:$16 sps:$4 sm:$0xff]  }
 0xbf2   : > { %16487 = vmatpush1.bf16.xpose.msra.mxu1 %v22492_v47  ;;  %v22570_v47 = vld [vmem:[%s27628_s0 + $0xeac] ss:$16 sps:$4 sm:$0xff]  }
 0xbf3   : > { %16569 = vmatpush1.bf16.xpose.msra.mxu0 %v22495_v48  ;;  %16488 = vmatprep.subr.bf16.mxu1 %v22500_v49  ;;  %v22572_v48 = vld [vmem:[%s27628_s0 + $0x10ac] ss:$16 sps:$4 sm:$0xff]   ;;  %v22574_v49 = vld [vmem:[%s27628_s0 + $0xea8] ss:$16 sps:$4 sm:$0xff]  }
 0xbf4   : > { %16570 = vmatprep.subr.bf16.mxu0 %v22503_v50  ;;  %v22575_v50 = vld [vmem:[%s27628_s0 + $0x10a8] ss:$16 sps:$4 sm:$0xff]  }
 0xbfa   : > { %16489 = vmatpush1.bf16.xpose.msra.mxu1 %v22498_v51  ;;  %v22576_v51 = vld [vmem:[%s27628_s0 + $0xecc] ss:$16 sps:$4 sm:$0xff]  }
 0xbfb   : > { %16571 = vmatpush1.bf16.xpose.msra.mxu0 %v22501_v52  ;;  %16490 = vmatprep.subr.bf16.mxu1 %v22506_v55  ;;  %v22578_v52 = vld [vmem:[%s27628_s0 + $0x10cc] ss:$16 sps:$4 sm:$0xff]   ;;  %v22580_v55 = vld [vmem:[%s27628_s0 + $0xec8] ss:$16 sps:$4 sm:$0xff]  }
 0xbfc   : > { %16572 = vmatprep.subr.bf16.mxu0 %v22509_v53  ;;  %v22581_v53 = vld [vmem:[%s27628_s0 + $0x10c8] ss:$16 sps:$4 sm:$0xff]  }
 0xc02   : > { %16491 = vmatpush1.bf16.xpose.msra.mxu1 %v22504_v54  ;;  %v22582_v54 = vld [vmem:[%s27628_s0 + $0xeec] ss:$16 sps:$4 sm:$0xff]  }
 0xc03   : > { %16573 = vmatpush1.bf16.xpose.msra.mxu0 %v22507_v56  ;;  %16492 = vmatprep.subr.bf16.mxu1 %v22512_v57  ;;  %v22584_v56 = vld [vmem:[%s27628_s0 + $0x10ec] ss:$16 sps:$4 sm:$0xff]   ;;  %v22586_v57 = vld [vmem:[%s27628_s0 + $0xee8] ss:$16 sps:$4 sm:$0xff]  }
 0xc04   : > { %16574 = vmatprep.subr.bf16.mxu0 %v22515_v58  ;;  %v22587_v58 = vld [vmem:[%s27628_s0 + $0x10e8] ss:$16 sps:$4 sm:$0xff]  }
 0xc0a   : > { %16493 = vmatpush1.bf16.xpose.msra.mxu1 %v22510_v59  ;;  %v22588_v59 = vld [vmem:[%s27628_s0 + $0xf0c] ss:$16 sps:$4 sm:$0xff]  }
 0xc0b   : > { %16575 = vmatpush1.bf16.xpose.msra.mxu0 %v22513_v62  ;;  %16494 = vmatprep.subr.bf16.mxu1 %v22518_v63  ;;  %v22590_v62 = vld [vmem:[%s27628_s0 + $0x110c] ss:$16 sps:$4 sm:$0xff]   ;;  %v22592_v63 = vld [vmem:[%s27628_s0 + $0xf08] ss:$16 sps:$4 sm:$0xff]  }
 0xc0c   : > { %16576 = vmatprep.subr.bf16.mxu0 %v22521_v2  ;;  %v22593_v2 = vld [vmem:[%s27628_s0 + $0x1108] ss:$16 sps:$4 sm:$0xff]  }
 0xc12   : > { %16495 = vmatpush1.bf16.xpose.msra.mxu1 %v22516_v3  ;;  %v22594_v3 = vld [vmem:[%s27628_s0 + $0xf2c] ss:$16 sps:$4 sm:$0xff]  }
 0xc13   : > { %16577 = vmatpush1.bf16.xpose.msra.mxu0 %v22519_v4  ;;  %16496 = vmatprep.subr.bf16.mxu1 %v22524_v5  ;;  %v22596_v4 = vld [vmem:[%s27628_s0 + $0x112c] ss:$16 sps:$4 sm:$0xff]   ;;  %v22598_v5 = vld [vmem:[%s27628_s0 + $0xf28] ss:$16 sps:$4 sm:$0xff]  }
 0xc14   : > { %16578 = vmatprep.subr.bf16.mxu0 %v22527_v6  ;;  %v22599_v6 = vld [vmem:[%s27628_s0 + $0x1128] ss:$16 sps:$4 sm:$0xff]  }
 0xc1a   : > { %16497 = vmatpush1.bf16.xpose.msra.mxu1 %v22522_v7  ;;  %v22600_v7 = vld [vmem:[%s27628_s0 + $0xf4c] ss:$16 sps:$4 sm:$0xff]  }
 0xc1b   : > { %16579 = vmatpush1.bf16.xpose.msra.mxu0 %v22525_v8  ;;  %16498 = vmatprep.subr.bf16.mxu1 %v22530_v9  ;;  %v22602_v8 = vld [vmem:[%s27628_s0 + $0x114c] ss:$16 sps:$4 sm:$0xff]   ;;  %v22604_v9 = vld [vmem:[%s27628_s0 + $0xf48] ss:$16 sps:$4 sm:$0xff]  }
 0xc1c   : > { %16580 = vmatprep.subr.bf16.mxu0 %v22533_v10  ;;  %v22605_v10 = vld [vmem:[%s27628_s0 + $0x1148] ss:$16 sps:$4 sm:$0xff]  }
 0xc22   : > { %16499 = vmatpush1.bf16.xpose.msra.mxu1 %v22528_v11  ;;  %v22606_v11 = vld [vmem:[%s27628_s0 + $0xf6c] ss:$16 sps:$4 sm:$0xff]  }
 0xc23   : > { %16581 = vmatpush1.bf16.xpose.msra.mxu0 %v22531_v12  ;;  %16500 = vmatprep.subr.bf16.mxu1 %v22536_v13  ;;  %v22608_v12 = vld [vmem:[%s27628_s0 + $0x116c] ss:$16 sps:$4 sm:$0xff]   ;;  %v11954_v13 = vrot.slane %v28250_v18, %v27562_v40 }
 0xc24   : > { %16582 = vmatprep.subr.bf16.mxu0 %v22539_v15  ;;  %v11962_v15 = vrot.slane %v28250_v18, %v28059_v30 }
 0xc2a   : > { %16501 = vmatpush1.bf16.xpose.msra.mxu1 %v22534_v17  ;;  %v11958_v17 = vrot.slane %v28250_v18, %v27571_v42 }
 0xc2b   : > { %16583 = vmatpush1.bf16.xpose.msra.mxu0 %v22537_v19  ;;  %19199 = vmatprep.subr.msk.bf16.mxu1 %vm10844_vm0, %v22540_v20  ;;  %v11966_v19 = vrot.slane %v28250_v18, %v28063_v32 }
 0xc2c   : > { %19216 = vmatprep.subr.msk.bf16.mxu0 %vm10844_vm0, %v22542_v21 }
 0xc31   : > { %16503 = vmatmul.mubr.bf16.vlgmr.msra.gmra.mrb[24].mxu1 %v27728_v0 }
 0xc32   : > { %16585 = vmatmul.mubr.bf16.vlgmr.msra.gmra.mrb[24].mxu0 %v27728_v0  ;;  %16512 = vmatpush1.bf16.xpose.msra.mxu1 %v22544_v22 }
 0xc33   : > { %19215 = vmatprep.mubr.msk.bf16.mxu1 %vm10844_vm0, %v27724_v61  ;;  %16594 = vmatpush1.bf16.xpose.msra.mxu0 %v22545_v23 }
 0xc34   : > { %19232 = vmatprep.mubr.msk.bf16.mxu0 %vm10844_vm0, %v27724_v61  ;;  %19200 = vmatprep.subr.msk.bf16.mxu1 %vm10844_vm0, %v22546_v24 }
 0xc35   : > { %19217 = vmatprep.subr.msk.bf16.mxu0 %vm10844_vm0, %v22548_v25 }
 0xc3a   : > { %16514 = vmatpush1.bf16.xpose.msra.mxu1 %v22550_v26 }
 0xc3b   : > { %16596 = vmatpush1.bf16.xpose.msra.mxu0 %v22551_v27  ;;  %19201 = vmatprep.subr.msk.bf16.mxu1 %vm10844_vm0, %v22552_v28  ;;  %v22610_v28 = vld [vmem:[%s27628_s0 + $0xf68] ss:$16 sps:$4 sm:$0xff]  }
 0xc3c   : > { %19218 = vmatprep.subr.msk.bf16.mxu0 %vm10844_vm0, %v22554_v29 }
 0xc42   : > { %16516 = vmatpush1.bf16.xpose.msra.mxu1 %v22556_v31 }
 0xc43   : > { %16598 = vmatpush1.bf16.xpose.msra.mxu0 %v22557_v33  ;;  %19202 = vmatprep.subr.msk.bf16.mxu1 %vm10844_vm0, %v22558_v34  ;;  %v22611_v33 = vld [vmem:[%s27628_s0 + $0x1168] ss:$16 sps:$4 sm:$0xff]   ;;  %v22612_v34 = vld [vmem:[%s27628_s0 + $0xf8c] ss:$16 sps:$4 sm:$0xff]  }
 0xc44   : > { %19219 = vmatprep.subr.msk.bf16.mxu0 %vm10844_vm0, %v22560_v35 }
 0xc4a   : > { %16518 = vmatpush1.bf16.xpose.msra.mxu1 %v22562_v37  ;;  %v22614_v37 = vld [vmem:[%s27628_s0 + $0x118c] ss:$16 sps:$4 sm:$0xff]  }
 0xc4b   : > { %16600 = vmatpush1.bf16.xpose.msra.mxu0 %v22563_v36  ;;  %19203 = vmatprep.subr.msk.bf16.mxu1 %vm10844_vm0, %v22564_v43  ;;  %v22616_v36 = vld [vmem:[%s27628_s0 + $0xf88] ss:$16 sps:$4 sm:$0xff]  }
 0xc4c   : > { %19220 = vmatprep.subr.msk.bf16.mxu0 %vm10844_vm0, %v22566_v44  ;;  %v22617_v43 = vld [vmem:[%s27628_s0 + $0x1188] ss:$16 sps:$4 sm:$0xff]   ;;  %v22618_v44 = vld [vmem:[%s27628_s0 + $0xfac] ss:$16 sps:$4 sm:$0xff]  }
 0xc52   : > { %16520 = vmatpush1.bf16.xpose.msra.mxu1 %v22568_v45  ;;  %v22620_v45 = vld [vmem:[%s27628_s0 + $0x11ac] ss:$16 sps:$4 sm:$0xff]  }
 0xc53   : > { %16602 = vmatpush1.bf16.xpose.msra.mxu0 %v22569_v46  ;;  %19204 = vmatprep.subr.msk.bf16.mxu1 %vm10844_vm0, %v22570_v47  ;;  %v22622_v46 = vld [vmem:[%s27628_s0 + $0xfa8] ss:$16 sps:$4 sm:$0xff]  }
 0xc54   : > { %19221 = vmatprep.subr.msk.bf16.mxu0 %vm10844_vm0, %v22572_v48  ;;  %v22623_v47 = vld [vmem:[%s27628_s0 + $0x11a8] ss:$16 sps:$4 sm:$0xff]   ;;  %v22624_v48 = vld [vmem:[%s27628_s0 + $0xfcc] ss:$16 sps:$4 sm:$0xff]  }
 0xc5a   : > { %16522 = vmatpush1.bf16.xpose.msra.mxu1 %v22574_v49  ;;  %v22626_v49 = vld [vmem:[%s27628_s0 + $0x11cc] ss:$16 sps:$4 sm:$0xff]  }
 0xc5b   : > { %16604 = vmatpush1.bf16.xpose.msra.mxu0 %v22575_v50  ;;  %19205 = vmatprep.subr.msk.bf16.mxu1 %vm10844_vm0, %v22576_v51  ;;  %v22628_v50 = vld [vmem:[%s27628_s0 + $0xfc8] ss:$16 sps:$4 sm:$0xff]  }
 0xc5c   : > { %19222 = vmatprep.subr.msk.bf16.mxu0 %vm10844_vm0, %v22578_v52  ;;  %v22629_v51 = vld [vmem:[%s27628_s0 + $0x11c8] ss:$16 sps:$4 sm:$0xff]   ;;  %v22630_v52 = vld [vmem:[%s27628_s0 + $0xfec] ss:$16 sps:$4 sm:$0xff]  }
 0xc62   : > { %16524 = vmatpush1.bf16.xpose.msra.mxu1 %v22580_v55  ;;  %v22632_v55 = vld [vmem:[%s27628_s0 + $0x11ec] ss:$16 sps:$4 sm:$0xff]  }
 0xc63   : > { %16606 = vmatpush1.bf16.xpose.msra.mxu0 %v22581_v53  ;;  %19206 = vmatprep.subr.msk.bf16.mxu1 %vm10844_vm0, %v22582_v54  ;;  %v22634_v53 = vld [vmem:[%s27628_s0 + $0xfe8] ss:$16 sps:$4 sm:$0xff]  }
 0xc64   : > { %19223 = vmatprep.subr.msk.bf16.mxu0 %vm10844_vm0, %v22584_v56  ;;  %v22635_v54 = vld [vmem:[%s27628_s0 + $0x11e8] ss:$16 sps:$4 sm:$0xff]   ;;  %v22638_v56 = vld [vmem:[%s27628_s0 + $0x1204] ss:$16 sps:$4 sm:$0xff]  }
 0xc6a   : > { %16526 = vmatpush1.bf16.xpose.msra.mxu1 %v22586_v57  ;;  %v22641_v57 = vld [vmem:[%s27628_s0 + $0x1404] ss:$16 sps:$4 sm:$0xff]  }
 0xc6b   : > { %16608 = vmatpush1.bf16.xpose.msra.mxu0 %v22587_v58  ;;  %19207 = vmatprep.subr.msk.bf16.mxu1 %vm10844_vm0, %v22588_v59  ;;  %v22636_v58 = vld [vmem:[%s27628_s0 + $0x1200] ss:$16 sps:$4 sm:$0xff]  }
 0xc6c   : > { %19224 = vmatprep.subr.msk.bf16.mxu0 %vm10844_vm0, %v22590_v62  ;;  %v22639_v59 = vld [vmem:[%s27628_s0 + $0x1400] ss:$16 sps:$4 sm:$0xff]   ;;  %v22644_v62 = vld [vmem:[%s27628_s0 + $0x1224] ss:$16 sps:$4 sm:$0xff]  }
 0xc72   : > { %16528 = vmatpush1.bf16.xpose.msra.mxu1 %v22592_v63  ;;  %v22647_v63 = vld [vmem:[%s27628_s0 + $0x1424] ss:$16 sps:$4 sm:$0xff]  }
 0xc73   : > { %16610 = vmatpush1.bf16.xpose.msra.mxu0 %v22593_v2  ;;  %19208 = vmatprep.subr.msk.bf16.mxu1 %vm10844_vm0, %v22594_v3  ;;  %v22642_v2 = vld [vmem:[%s27628_s0 + $0x1220] ss:$16 sps:$4 sm:$0xff]  }
 0xc74   : > { %19225 = vmatprep.subr.msk.bf16.mxu0 %vm10844_vm0, %v22596_v4  ;;  %v22645_v3 = vld [vmem:[%s27628_s0 + $0x1420] ss:$16 sps:$4 sm:$0xff]   ;;  %v22650_v4 = vld [vmem:[%s27628_s0 + $0x1244] ss:$16 sps:$4 sm:$0xff]  }
 0xc7a   : > { %16530 = vmatpush1.bf16.xpose.msra.mxu1 %v22598_v5  ;;  %v22653_v5 = vld [vmem:[%s27628_s0 + $0x1444] ss:$16 sps:$4 sm:$0xff]  }
 0xc7b   : > { %16612 = vmatpush1.bf16.xpose.msra.mxu0 %v22599_v6  ;;  %19209 = vmatprep.subr.msk.bf16.mxu1 %vm10844_vm0, %v22600_v7  ;;  %v22648_v6 = vld [vmem:[%s27628_s0 + $0x1240] ss:$16 sps:$4 sm:$0xff]  }
 0xc7c   : > { %19226 = vmatprep.subr.msk.bf16.mxu0 %vm10844_vm0, %v22602_v8  ;;  %v22651_v7 = vld [vmem:[%s27628_s0 + $0x1440] ss:$16 sps:$4 sm:$0xff]   ;;  %v22656_v8 = vld [vmem:[%s27628_s0 + $0x1264] ss:$16 sps:$4 sm:$0xff]  }
 0xc82   : > { %16532 = vmatpush1.bf16.xpose.msra.mxu1 %v22604_v9  ;;  %v22654_v9 = vld [vmem:[%s27628_s0 + $0x1260] ss:$16 sps:$4 sm:$0xff]  }
 0xc83   : > { %16614 = vmatpush1.bf16.xpose.msra.mxu0 %v22605_v10  ;;  %19210 = vmatprep.subr.msk.bf16.mxu1 %vm10844_vm0, %v22606_v11  ;;  %v22657_v10 = vld [vmem:[%s27628_s0 + $0x1460] ss:$16 sps:$4 sm:$0xff]   ;;  %v22662_v11 = vld [vmem:[%s27628_s0 + $0x1284] ss:$16 sps:$4 sm:$0xff]  }
 0xc84   : > { %v16381_v20 = vpop.f32.mrb[20].mxu1  ;;  %19227 = vmatprep.subr.msk.bf16.mxu0 %vm10844_vm0, %v22608_v12  ;;  %v22665_v12 = vld [vmem:[%s27628_s0 + $0x1484] ss:$16 sps:$4 sm:$0xff]  }
 0xc85   : > { %v19392_v21 = vadd.f32 %v16381_v20, %v11954_v13  ;;  %v16463_v22 = vpop.f32.mrb[20].mxu0  ;;  %v16383_v23 = vpop.f32.mrb[21].mxu1  ;;  %v22660_v13 = vld [vmem:[%s27628_s0 + $0x1280] ss:$16 sps:$4 sm:$0xff]  }
 0xc86   : > { %v19394_v24 = vadd.f32 %v16463_v22, %v11962_v15  ;;  %v19393_v25 = vadd.f32 %v16383_v23, %v11958_v17  ;;  %v16465_v26 = vpop.f32.mrb[21].mxu0  ;;  %v16385_v27 = vpop.f32.mrb[22].mxu1  ;;  %v22663_v15 = vld [vmem:[%s27628_s0 + $0x1480] ss:$16 sps:$4 sm:$0xff]   ;;  %v22668_v17 = vld [vmem:[%s27628_s0 + $0x12a4] ss:$16 sps:$4 sm:$0xff]  }
 0xc87   : > { %16808 = vst [vmem:[%s27893_s14 + $0x50] sm:$0xff] %v19392_v21  ;;  %v19395_v18 = vadd.f32 %v16465_v26, %v11966_v19  ;;  %v16467_v29 = vpop.f32.mrb[22].mxu0  ;;  %v16386_v31 = vpop.f32.mrb[23].mxu1  ;;  %v22671_v19 = vld [vmem:[%s27628_s0 + $0x14a4] ss:$16 sps:$4 sm:$0xff]  }
 0xc88   : > { %16810 = vst [vmem:[%s27893_s14 + $0x60] sm:$0xff] %v19394_v24  ;;  %16809 = vst [vmem:[%s27893_s14 + $0x58] sm:$0xff] %v19393_v25  ;;  %v16468_v35 = vpop.f32.mrb[23].mxu0  ;;  %v22666_v20 = vld [vmem:[%s27628_s0 + $0x12a0] ss:$16 sps:$4 sm:$0xff]  }
 0xc89   : > { %16811 = vst [vmem:[%s27893_s14 + $0x68] sm:$0xff] %v19395_v18  ;;  %v22669_v21 = vld [vmem:[%s27628_s0 + $0x14a0] ss:$16 sps:$4 sm:$0xff]   ;;  %v22674_v22 = vld [vmem:[%s27628_s0 + $0x12c4] ss:$16 sps:$4 sm:$0xff]  }
 0xc8a   : > { %16534 = vmatpush1.bf16.xpose.msra.mxu1 %v22610_v28  ;;  %v22677_v23 = vld [vmem:[%s27628_s0 + $0x14c4] ss:$16 sps:$4 sm:$0xff]   ;;  %v22672_v24 = vld [vmem:[%s27628_s0 + $0x12c0] ss:$16 sps:$4 sm:$0xff]  }
 0xc8b   : > { %16616 = vmatpush1.bf16.xpose.msra.mxu0 %v22611_v33  ;;  %19211 = vmatprep.subr.msk.bf16.mxu1 %vm10844_vm0, %v22612_v34  ;;  %v22675_v25 = vld [vmem:[%s27628_s0 + $0x14c0] ss:$16 sps:$4 sm:$0xff]   ;;  %v22680_v26 = vld [vmem:[%s27628_s0 + $0x12e4] ss:$16 sps:$4 sm:$0xff]  }
 0xc8c   : > { %19228 = vmatprep.subr.msk.bf16.mxu0 %vm10844_vm0, %v22614_v37  ;;  %v22683_v27 = vld [vmem:[%s27628_s0 + $0x14e4] ss:$16 sps:$4 sm:$0xff]   ;;  %v22678_v28 = vld [vmem:[%s27628_s0 + $0x12e0] ss:$16 sps:$4 sm:$0xff]  }
 0xc8d   : > { %v22681_v18 = vld [vmem:[%s27628_s0 + $0x14e0] ss:$16 sps:$4 sm:$0xff]   ;;  %v22686_v29 = vld [vmem:[%s27628_s0 + $0x1304] ss:$16 sps:$4 sm:$0xff]  }
 0xc8e   : > { %v22689_v31 = vld [vmem:[%s27628_s0 + $0x1504] ss:$16 sps:$4 sm:$0xff]   ;;  %v22684_v33 = vld [vmem:[%s27628_s0 + $0x1300] ss:$16 sps:$4 sm:$0xff]  }
 0xc8f   : > { %v22687_v34 = vld [vmem:[%s27628_s0 + $0x1500] ss:$16 sps:$4 sm:$0xff]   ;;  %v22692_v35 = vld [vmem:[%s27628_s0 + $0x1324] ss:$16 sps:$4 sm:$0xff]  }
 0xc90   : > { %v22695_v37 = vld [vmem:[%s27628_s0 + $0x1524] ss:$16 sps:$4 sm:$0xff]  }
 0xc92   : > { %16536 = vmatpush1.bf16.xpose.msra.mxu1 %v22616_v36  ;;  %v22690_v36 = vld [vmem:[%s27628_s0 + $0x1320] ss:$16 sps:$4 sm:$0xff]  }
 0xc93   : > { %16618 = vmatpush1.bf16.xpose.msra.mxu0 %v22617_v43  ;;  %19212 = vmatprep.subr.msk.bf16.mxu1 %vm10844_vm0, %v22618_v44  ;;  %v22693_v43 = vld [vmem:[%s27628_s0 + $0x1520] ss:$16 sps:$4 sm:$0xff]   ;;  %v22698_v44 = vld [vmem:[%s27628_s0 + $0x1344] ss:$16 sps:$4 sm:$0xff]  }
 0xc94   : > { %19229 = vmatprep.subr.msk.bf16.mxu0 %vm10844_vm0, %v22620_v45  ;;  %v22701_v45 = vld [vmem:[%s27628_s0 + $0x1544] ss:$16 sps:$4 sm:$0xff]  }
 0xc9a   : > { %16538 = vmatpush1.bf16.xpose.msra.mxu1 %v22622_v46  ;;  %v22696_v46 = vld [vmem:[%s27628_s0 + $0x1340] ss:$16 sps:$4 sm:$0xff]  }
 0xc9b   : > { %16620 = vmatpush1.bf16.xpose.msra.mxu0 %v22623_v47  ;;  %19213 = vmatprep.subr.msk.bf16.mxu1 %vm10844_vm0, %v22624_v48  ;;  %v22699_v47 = vld [vmem:[%s27628_s0 + $0x1540] ss:$16 sps:$4 sm:$0xff]   ;;  %v22704_v48 = vld [vmem:[%s27628_s0 + $0x1364] ss:$16 sps:$4 sm:$0xff]  }
 0xc9c   : > { %19230 = vmatprep.subr.msk.bf16.mxu0 %vm10844_vm0, %v22626_v49  ;;  %v22707_v49 = vld [vmem:[%s27628_s0 + $0x1564] ss:$16 sps:$4 sm:$0xff]  }
 0xca2   : > { %16540 = vmatpush1.bf16.xpose.msra.mxu1 %v22628_v50  ;;  %v22702_v50 = vld [vmem:[%s27628_s0 + $0x1360] ss:$16 sps:$4 sm:$0xff]  }
 0xca3   : > { %16622 = vmatpush1.bf16.xpose.msra.mxu0 %v22629_v51  ;;  %19214 = vmatprep.subr.msk.bf16.mxu1 %vm10844_vm0, %v22630_v52  ;;  %v22705_v51 = vld [vmem:[%s27628_s0 + $0x1560] ss:$16 sps:$4 sm:$0xff]   ;;  %v22710_v52 = vld [vmem:[%s27628_s0 + $0x1384] ss:$16 sps:$4 sm:$0xff]  }
 0xca4   : > { %19231 = vmatprep.subr.msk.bf16.mxu0 %vm10844_vm0, %v22632_v55  ;;  %v22713_v55 = vld [vmem:[%s27628_s0 + $0x1584] ss:$16 sps:$4 sm:$0xff]  }
 0xcaa   : > { %16542 = vmatpush1.bf16.xpose.msra.mxu1 %v22634_v53  ;;  %v22708_v53 = vld [vmem:[%s27628_s0 + $0x1380] ss:$16 sps:$4 sm:$0xff]  }
 0xcab   : > { %16624 = vmatpush1.bf16.xpose.msra.mxu0 %v22635_v54  ;;  %16634 = vmatprep.subr.bf16.mxu1 %v22638_v56  ;;  %v22711_v54 = vld [vmem:[%s27628_s0 + $0x1580] ss:$16 sps:$4 sm:$0xff]   ;;  %v22716_v56 = vld [vmem:[%s27628_s0 + $0x13a4] ss:$16 sps:$4 sm:$0xff]  }
 0xcac   : > { %16716 = vmatprep.subr.bf16.mxu0 %v22641_v57  ;;  %v22719_v57 = vld [vmem:[%s27628_s0 + $0x15a4] ss:$16 sps:$4 sm:$0xff]  }
 0xcb1   : > { %16544 = vmatmul.mubr.bf16.vlgmr.msra.gmra.mrb[24].mxu1 %v27730_v1 }
 0xcb2   : > { %16626 = vmatmul.mubr.bf16.vlgmr.msra.gmra.mrb[24].mxu0 %v27730_v1  ;;  %16635 = vmatpush1.bf16.xpose.msra.mxu1 %v22636_v58  ;;  %v22714_v58 = vld [vmem:[%s27628_s0 + $0x13a0] ss:$16 sps:$4 sm:$0xff]  }
 0xcb3   : > { %16666 = vmatprep.mubr.bf16.mxu1 %v27722_v60  ;;  %16717 = vmatpush1.bf16.xpose.msra.mxu0 %v22639_v59  ;;  %v22717_v59 = vld [vmem:[%s27628_s0 + $0x15a0] ss:$16 sps:$4 sm:$0xff]  }
 0xcb4   : > { %16748 = vmatprep.mubr.bf16.mxu0 %v27722_v60  ;;  %16636 = vmatprep.subr.bf16.mxu1 %v22644_v62  ;;  %v22659_v60 = vld [vmem:[%s27628_s0 + $0x1464] ss:$16 sps:$4 sm:$0xff]  }
 0xcb5   : > { %16718 = vmatprep.subr.bf16.mxu0 %v22647_v63  ;;  %v22722_v62 = vld [vmem:[%s27628_s0 + $0x13c4] ss:$16 sps:$4 sm:$0xff]  }
 0xcb6   : > { %v22725_v63 = vld [vmem:[%s27628_s0 + $0x15c4] ss:$16 sps:$4 sm:$0xff]  }
 0xcba   : > { %16637 = vmatpush1.bf16.xpose.msra.mxu1 %v22642_v2  ;;  %v22720_v2 = vld [vmem:[%s27628_s0 + $0x13c0] ss:$16 sps:$4 sm:$0xff]  }
 0xcbb   : > { %16719 = vmatpush1.bf16.xpose.msra.mxu0 %v22645_v3  ;;  %16638 = vmatprep.subr.bf16.mxu1 %v22650_v4  ;;  %v22723_v3 = vld [vmem:[%s27628_s0 + $0x15c0] ss:$16 sps:$4 sm:$0xff]   ;;  %v22728_v4 = vld [vmem:[%s27628_s0 + $0x13e4] ss:$16 sps:$4 sm:$0xff]  }
 0xcbc   : > { %16720 = vmatprep.subr.bf16.mxu0 %v22653_v5  ;;  %v22731_v5 = vld [vmem:[%s27628_s0 + $0x15e4] ss:$16 sps:$4 sm:$0xff]  }
 0xcc2   : > { %16639 = vmatpush1.bf16.xpose.msra.mxu1 %v22648_v6  ;;  %v22726_v6 = vld [vmem:[%s27628_s0 + $0x13e0] ss:$16 sps:$4 sm:$0xff]  }
 0xcc3   : > { %16721 = vmatpush1.bf16.xpose.msra.mxu0 %v22651_v7  ;;  %16640 = vmatprep.subr.bf16.mxu1 %v22656_v8  ;;  %v22729_v7 = vld [vmem:[%s27628_s0 + $0x15e0] ss:$16 sps:$4 sm:$0xff]   ;;  %v22732_v8 = vld [vmem:[%s27628_s0 + $0x120c] ss:$16 sps:$4 sm:$0xff]  }
 0xcc4   : > { %16722 = vmatprep.subr.bf16.mxu0 %v22659_v60  ;;  %v22734_v60 = vld [vmem:[%s27628_s0 + $0x140c] ss:$16 sps:$4 sm:$0xff]  }
 0xcca   : > { %16641 = vmatpush1.bf16.xpose.msra.mxu1 %v22654_v9  ;;  %v22736_v9 = vld [vmem:[%s27628_s0 + $0x1208] ss:$16 sps:$4 sm:$0xff]  }
 0xccb   : > { %16723 = vmatpush1.bf16.xpose.msra.mxu0 %v22657_v10  ;;  %16642 = vmatprep.subr.bf16.mxu1 %v22662_v11  ;;  %v22737_v10 = vld [vmem:[%s27628_s0 + $0x1408] ss:$16 sps:$4 sm:$0xff]   ;;  %v22738_v11 = vld [vmem:[%s27628_s0 + $0x122c] ss:$16 sps:$4 sm:$0xff]  }
 0xccc   : > { %16724 = vmatprep.subr.bf16.mxu0 %v22665_v12  ;;  %v22740_v12 = vld [vmem:[%s27628_s0 + $0x142c] ss:$16 sps:$4 sm:$0xff]  }
 0xcd2   : > { %16643 = vmatpush1.bf16.xpose.msra.mxu1 %v22660_v13  ;;  %v22742_v13 = vld [vmem:[%s27628_s0 + $0x1228] ss:$16 sps:$4 sm:$0xff]  }
 0xcd3   : > { %16725 = vmatpush1.bf16.xpose.msra.mxu0 %v22663_v15  ;;  %16644 = vmatprep.subr.bf16.mxu1 %v22668_v17  ;;  %v22743_v15 = vld [vmem:[%s27628_s0 + $0x1428] ss:$16 sps:$4 sm:$0xff]   ;;  %v22746_v17 = vld [vmem:[%s27628_s0 + $0x144c] ss:$16 sps:$4 sm:$0xff]  }
 0xcd4   : > { %16726 = vmatprep.subr.bf16.mxu0 %v22671_v19  ;;  %v22748_v19 = vld [vmem:[%s27628_s0 + $0x1248] ss:$16 sps:$4 sm:$0xff]  }
 0xcda   : > { %16645 = vmatpush1.bf16.xpose.msra.mxu1 %v22666_v20  ;;  %v22750_v20 = vld [vmem:[%s27628_s0 + $0x126c] ss:$16 sps:$4 sm:$0xff]  }
 0xcdb   : > { %16727 = vmatpush1.bf16.xpose.msra.mxu0 %v22669_v21  ;;  %16646 = vmatprep.subr.bf16.mxu1 %v22674_v22  ;;  %v22752_v21 = vld [vmem:[%s27628_s0 + $0x146c] ss:$16 sps:$4 sm:$0xff]   ;;  %v22754_v22 = vld [vmem:[%s27628_s0 + $0x1268] ss:$16 sps:$4 sm:$0xff]  }
 0xcdc   : > { %16728 = vmatprep.subr.bf16.mxu0 %v22677_v23  ;;  %v22755_v23 = vld [vmem:[%s27628_s0 + $0x1468] ss:$16 sps:$4 sm:$0xff]  }
 0xce2   : > { %16647 = vmatpush1.bf16.xpose.msra.mxu1 %v22672_v24  ;;  %v22756_v24 = vld [vmem:[%s27628_s0 + $0x128c] ss:$16 sps:$4 sm:$0xff]  }
 0xce3   : > { %16729 = vmatpush1.bf16.xpose.msra.mxu0 %v22675_v25  ;;  %16648 = vmatprep.subr.bf16.mxu1 %v22680_v26  ;;  %v22758_v25 = vld [vmem:[%s27628_s0 + $0x148c] ss:$16 sps:$4 sm:$0xff]   ;;  %v22760_v26 = vld [vmem:[%s27628_s0 + $0x1288] ss:$16 sps:$4 sm:$0xff]  }
 0xce4   : > { %16730 = vmatprep.subr.bf16.mxu0 %v22683_v27  ;;  %v22761_v27 = vld [vmem:[%s27628_s0 + $0x1488] ss:$16 sps:$4 sm:$0xff]  }
 0xcea   : > { %16649 = vmatpush1.bf16.xpose.msra.mxu1 %v22678_v28  ;;  %v22762_v28 = vld [vmem:[%s27628_s0 + $0x12ac] ss:$16 sps:$4 sm:$0xff]  }
 0xceb   : > { %16731 = vmatpush1.bf16.xpose.msra.mxu0 %v22681_v18  ;;  %16650 = vmatprep.subr.bf16.mxu1 %v22686_v29  ;;  %v22764_v18 = vld [vmem:[%s27628_s0 + $0x14ac] ss:$16 sps:$4 sm:$0xff]   ;;  %v22766_v29 = vld [vmem:[%s27628_s0 + $0x12a8] ss:$16 sps:$4 sm:$0xff]  }
 0xcec   : > { %16732 = vmatprep.subr.bf16.mxu0 %v22689_v31  ;;  %v22767_v31 = vld [vmem:[%s27628_s0 + $0x14a8] ss:$16 sps:$4 sm:$0xff]  }
 0xcf2   : > { %16651 = vmatpush1.bf16.xpose.msra.mxu1 %v22684_v33  ;;  %v22768_v33 = vld [vmem:[%s27628_s0 + $0x12cc] ss:$16 sps:$4 sm:$0xff]  }
 0xcf3   : > { %16733 = vmatpush1.bf16.xpose.msra.mxu0 %v22687_v34  ;;  %16652 = vmatprep.subr.bf16.mxu1 %v22692_v35  ;;  %v22770_v34 = vld [vmem:[%s27628_s0 + $0x14cc] ss:$16 sps:$4 sm:$0xff]   ;;  %v22772_v35 = vld [vmem:[%s27628_s0 + $0x12c8] ss:$16 sps:$4 sm:$0xff]  }
 0xcf4   : > { %16734 = vmatprep.subr.bf16.mxu0 %v22695_v37  ;;  %v22773_v37 = vld [vmem:[%s27628_s0 + $0x14c8] ss:$16 sps:$4 sm:$0xff]  }
 0xcfa   : > { %16653 = vmatpush1.bf16.xpose.msra.mxu1 %v22690_v36  ;;  %v22774_v36 = vld [vmem:[%s27628_s0 + $0x12ec] ss:$16 sps:$4 sm:$0xff]  }
 0xcfb   : > { %16735 = vmatpush1.bf16.xpose.msra.mxu0 %v22693_v43  ;;  %16654 = vmatprep.subr.bf16.mxu1 %v22698_v44  ;;  %v22776_v43 = vld [vmem:[%s27628_s0 + $0x14ec] ss:$16 sps:$4 sm:$0xff]   ;;  %v22778_v44 = vld [vmem:[%s27628_s0 + $0x12e8] ss:$16 sps:$4 sm:$0xff]  }
 0xcfc   : > { %16736 = vmatprep.subr.bf16.mxu0 %v22701_v45  ;;  %v22779_v45 = vld [vmem:[%s27628_s0 + $0x14e8] ss:$16 sps:$4 sm:$0xff]  }
 0xd02   : > { %16655 = vmatpush1.bf16.xpose.msra.mxu1 %v22696_v46  ;;  %v22780_v46 = vld [vmem:[%s27628_s0 + $0x130c] ss:$16 sps:$4 sm:$0xff]  }
 0xd03   : > { %16737 = vmatpush1.bf16.xpose.msra.mxu0 %v22699_v47  ;;  %16656 = vmatprep.subr.bf16.mxu1 %v22704_v48  ;;  %v22782_v47 = vld [vmem:[%s27628_s0 + $0x150c] ss:$16 sps:$4 sm:$0xff]   ;;  %v22784_v48 = vld [vmem:[%s27628_s0 + $0x1308] ss:$16 sps:$4 sm:$0xff]  }
 0xd04   : > { %16738 = vmatprep.subr.bf16.mxu0 %v22707_v49  ;;  %v22785_v49 = vld [vmem:[%s27628_s0 + $0x1508] ss:$16 sps:$4 sm:$0xff]  }
 0xd0a   : > { %16657 = vmatpush1.bf16.xpose.msra.mxu1 %v22702_v50  ;;  %v22786_v50 = vld [vmem:[%s27628_s0 + $0x132c] ss:$16 sps:$4 sm:$0xff]  }
 0xd0b   : > { %16739 = vmatpush1.bf16.xpose.msra.mxu0 %v22705_v51  ;;  %16658 = vmatprep.subr.bf16.mxu1 %v22710_v52  ;;  %v22788_v51 = vld [vmem:[%s27628_s0 + $0x152c] ss:$16 sps:$4 sm:$0xff]   ;;  %v22790_v52 = vld [vmem:[%s27628_s0 + $0x1328] ss:$16 sps:$4 sm:$0xff]  }
 0xd0c   : > { %16740 = vmatprep.subr.bf16.mxu0 %v22713_v55  ;;  %v22791_v55 = vld [vmem:[%s27628_s0 + $0x1528] ss:$16 sps:$4 sm:$0xff]  }
 0xd12   : > { %16659 = vmatpush1.bf16.xpose.msra.mxu1 %v22708_v53  ;;  %v22792_v53 = vld [vmem:[%s27628_s0 + $0x134c] ss:$16 sps:$4 sm:$0xff]  }
 0xd13   : > { %16741 = vmatpush1.bf16.xpose.msra.mxu0 %v22711_v54  ;;  %16660 = vmatprep.subr.bf16.mxu1 %v22716_v56  ;;  %v22794_v54 = vld [vmem:[%s27628_s0 + $0x154c] ss:$16 sps:$4 sm:$0xff]   ;;  %v22796_v56 = vld [vmem:[%s27628_s0 + $0x1348] ss:$16 sps:$4 sm:$0xff]  }
 0xd14   : > { %16742 = vmatprep.subr.bf16.mxu0 %v22719_v57  ;;  %v22797_v57 = vld [vmem:[%s27628_s0 + $0x1548] ss:$16 sps:$4 sm:$0xff]  }
 0xd1a   : > { %16661 = vmatpush1.bf16.xpose.msra.mxu1 %v22714_v58  ;;  %v28618_v58 = vld [vmem:[%s27872_s30 + $0x10] sm:$0x3f] }
 0xd1b   : > { %16743 = vmatpush1.bf16.xpose.msra.mxu0 %v22717_v59  ;;  %16662 = vmatprep.subr.bf16.mxu1 %v22722_v62  ;;  %v22798_v59 = vld [vmem:[%s27628_s0 + $0x136c] ss:$16 sps:$4 sm:$0xff]  }
 0xd1c   : > { %16744 = vmatprep.subr.bf16.mxu0 %v22725_v63  ;;  %v22800_v62 = vld [vmem:[%s27628_s0 + $0x156c] ss:$16 sps:$4 sm:$0xff]  }
 0xd1d   : > { %v22831_v63 = vld [vmem:[%s27872_s30 + $0x8] sm:$0xff]  ;;  %s16826_s30 = scalar_lea.sflag [#allocation5], %s27603_s12 }
 0xd22   : > { %16663 = vmatpush1.bf16.xpose.msra.mxu1 %v22720_v2  ;;  %v11970_v2 = vrot.slane %v22831_v63, %v11937_v14 }
 0xd23   : > { %16745 = vmatpush1.bf16.xpose.msra.mxu0 %v22723_v3  ;;  %16664 = vmatprep.subr.bf16.mxu1 %v22728_v4  ;;  %v11978_v3 = vrot.slane %v28618_v58, %v27559_v39  ;;  %v11974_v4 = vrot.slane %v22831_v63, %v11941_v16 }
 0xd24   : > { %16746 = vmatprep.subr.bf16.mxu0 %v22731_v5  ;;  %v11982_v5 = vrot.slane %v28618_v58, %v27568_v41 }
 0xd2a   : > { %16665 = vmatpush1.bf16.xpose.msra.mxu1 %v22726_v6 }
 0xd2b   : > { %16747 = vmatpush1.bf16.xpose.msra.mxu0 %v22729_v7  ;;  %19233 = vmatprep.subr.msk.bf16.mxu1 %vm10844_vm0, %v22732_v8 }
 0xd2c   : > { %19250 = vmatprep.subr.msk.bf16.mxu0 %vm10844_vm0, %v22734_v60 }
 0xd31   : > { %16667 = vmatmul.mubr.bf16.vlgmr.msra.gmra.mrb[28].mxu1 %v27728_v0 }
 0xd32   : > { %16749 = vmatmul.mubr.bf16.vlgmr.msra.gmra.mrb[28].mxu0 %v27728_v0  ;;  %16676 = vmatpush1.bf16.xpose.msra.mxu1 %v22736_v9  ;;  %v22744_v0 = vld [vmem:[%s27628_s0 + $0x124c] ss:$16 sps:$4 sm:$0xff]   ;;  %v22802_v9 = vld [vmem:[%s27628_s0 + $0x1368] ss:$16 sps:$4 sm:$0xff]  }
 0xd33   : > { %19249 = vmatprep.mubr.msk.bf16.mxu1 %vm10844_vm0, %v27724_v61  ;;  %16758 = vmatpush1.bf16.xpose.msra.mxu0 %v22737_v10 }
 0xd34   : > { %19266 = vmatprep.mubr.msk.bf16.mxu0 %vm10844_vm0, %v27724_v61  ;;  %19234 = vmatprep.subr.msk.bf16.mxu1 %vm10844_vm0, %v22738_v11  ;;  %v22749_v61 = vld [vmem:[%s27628_s0 + $0x1448] ss:$16 sps:$4 sm:$0xff]  }
 0xd35   : > { %19251 = vmatprep.subr.msk.bf16.mxu0 %vm10844_vm0, %v22740_v12  ;;  %v22803_v12 = vld [vmem:[%s27628_s0 + $0x1568] ss:$16 sps:$4 sm:$0xff]  }
 0xd3a   : > { %16678 = vmatpush1.bf16.xpose.msra.mxu1 %v22742_v13  ;;  %v22804_v13 = vld [vmem:[%s27628_s0 + $0x138c] ss:$16 sps:$4 sm:$0xff]  }
 0xd3b   : > { %16760 = vmatpush1.bf16.xpose.msra.mxu0 %v22743_v15  ;;  %19235 = vmatprep.subr.msk.bf16.mxu1 %vm10844_vm0, %v22744_v0  ;;  %v22806_v0 = vld [vmem:[%s27628_s0 + $0x158c] ss:$16 sps:$4 sm:$0xff]  }
 0xd3c   : > { %19252 = vmatprep.subr.msk.bf16.mxu0 %vm10844_vm0, %v22746_v17  ;;  %v22808_v17 = vld [vmem:[%s27628_s0 + $0x1388] ss:$16 sps:$4 sm:$0xff]  }
 0xd42   : > { %16680 = vmatpush1.bf16.xpose.msra.mxu1 %v22748_v19  ;;  %v22809_v19 = vld [vmem:[%s27628_s0 + $0x1588] ss:$16 sps:$4 sm:$0xff]  }
 0xd43   : > { %16762 = vmatpush1.bf16.xpose.msra.mxu0 %v22749_v61  ;;  %19236 = vmatprep.subr.msk.bf16.mxu1 %vm10844_vm0, %v22750_v20  ;;  %v22810_v61 = vld [vmem:[%s27628_s0 + $0x13ac] ss:$16 sps:$4 sm:$0xff]  }
 0xd44   : > { %19253 = vmatprep.subr.msk.bf16.mxu0 %vm10844_vm0, %v22752_v21  ;;  %v22812_v20 = vld [vmem:[%s27628_s0 + $0x15ac] ss:$16 sps:$4 sm:$0xff]   ;;  %v22814_v21 = vld [vmem:[%s27628_s0 + $0x13a8] ss:$16 sps:$4 sm:$0xff]  }
 0xd4a   : > { %16682 = vmatpush1.bf16.xpose.msra.mxu1 %v22754_v22  ;;  %v22815_v22 = vld [vmem:[%s27628_s0 + $0x15a8] ss:$16 sps:$4 sm:$0xff]  }
 0xd4b   : > { %16764 = vmatpush1.bf16.xpose.msra.mxu0 %v22755_v23  ;;  %19237 = vmatprep.subr.msk.bf16.mxu1 %vm10844_vm0, %v22756_v24  ;;  %v22816_v23 = vld [vmem:[%s27628_s0 + $0x13cc] ss:$16 sps:$4 sm:$0xff]  }
 0xd4c   : > { %19254 = vmatprep.subr.msk.bf16.mxu0 %vm10844_vm0, %v22758_v25  ;;  %v22818_v24 = vld [vmem:[%s27628_s0 + $0x15cc] ss:$16 sps:$4 sm:$0xff]   ;;  %v22820_v25 = vld [vmem:[%s27628_s0 + $0x13c8] ss:$16 sps:$4 sm:$0xff]  }
 0xd52   : > { %16684 = vmatpush1.bf16.xpose.msra.mxu1 %v22760_v26  ;;  %v22821_v26 = vld [vmem:[%s27628_s0 + $0x15c8] ss:$16 sps:$4 sm:$0xff]  }
 0xd53   : > { %16766 = vmatpush1.bf16.xpose.msra.mxu0 %v22761_v27  ;;  %19238 = vmatprep.subr.msk.bf16.mxu1 %vm10844_vm0, %v22762_v28  ;;  %v22822_v27 = vld [vmem:[%s27628_s0 + $0x13ec] ss:$16 sps:$4 sm:$0xff]  }
 0xd54   : > { %19255 = vmatprep.subr.msk.bf16.mxu0 %vm10844_vm0, %v22764_v18  ;;  %v22824_v28 = vld [vmem:[%s27628_s0 + $0x15ec] ss:$16 sps:$4 sm:$0xff]   ;;  %v22826_v18 = vld [vmem:[%s27628_s0 + $0x13e8] ss:$16 sps:$4 sm:$0xff]  }
 0xd5a   : > { %16686 = vmatpush1.bf16.xpose.msra.mxu1 %v22766_v29  ;;  %v22827_v29 = vld [vmem:[%s27628_s0 + $0x15e8] ss:$16 sps:$4 sm:$0xff]   ;;  %s22931_s0 = smov [#allocation4]  }
 0xd5b   : > { %16768 = vmatpush1.bf16.xpose.msra.mxu0 %v22767_v31  ;;  %19239 = vmatprep.subr.msk.bf16.mxu1 %vm10844_vm0, %v22768_v33  ;;  %s22836_s1 = sshll.u32 %s22931_s0, 4  ;;  %s22837_s1 = int_to_ptr.vmem [resolvable:$false] %s22836_s1 }
 0xd5c   : > { %19256 = vmatprep.subr.msk.bf16.mxu0 %vm10844_vm0, %v22770_v34  ;;  %s22838_s2 = scalar_lea.vmem %s22837_s1, 256  ;;  %p22839_p1 = scmp.lt.s32.totalorder %s16854_s29, %s22837_s1 }
 0xd5d   : > { %p22840_p2 = scmp.lt.s32.totalorder %s22838_s2, %s22832_s13 }
 0xd5f   : > { %p22841_p3 = por %p22840_p2, %p22839_p1 }
 0xd61   : > { %p22842_p4 = pnand %p22841_p3, %p22835_p0 }
 0xd62   : > { %16688 = vmatpush1.bf16.xpose.msra.mxu1 %v22772_v35 }
 0xd63   : > { %16770 = vmatpush1.bf16.xpose.msra.mxu0 %v22773_v37  ;;  %19240 = vmatprep.subr.msk.bf16.mxu1 %vm10844_vm0, %v22774_v36 }
 0xd64   : > { %19257 = vmatprep.subr.msk.bf16.mxu0 %vm10844_vm0, %v22776_v43 }
 0xd6a   : > { %16690 = vmatpush1.bf16.xpose.msra.mxu1 %v22778_v44 }
 0xd6b   : > { %16772 = vmatpush1.bf16.xpose.msra.mxu0 %v22779_v45  ;;  %19241 = vmatprep.subr.msk.bf16.mxu1 %vm10844_vm0, %v22780_v46 }
 0xd6c   : > { %19258 = vmatprep.subr.msk.bf16.mxu0 %vm10844_vm0, %v22782_v47 }
 0xd72   : > { %16692 = vmatpush1.bf16.xpose.msra.mxu1 %v22784_v48 }
 0xd73   : > { %16774 = vmatpush1.bf16.xpose.msra.mxu0 %v22785_v49  ;;  %19242 = vmatprep.subr.msk.bf16.mxu1 %vm10844_vm0, %v22786_v50 }
 0xd74   : > { %19259 = vmatprep.subr.msk.bf16.mxu0 %vm10844_vm0, %v22788_v51 }
 0xd7a   : > { %16694 = vmatpush1.bf16.xpose.msra.mxu1 %v22790_v52 }
 0xd7b   : > { %16776 = vmatpush1.bf16.xpose.msra.mxu0 %v22791_v55  ;;  %19243 = vmatprep.subr.msk.bf16.mxu1 %vm10844_vm0, %v22792_v53 }
 0xd7c   : > { %19260 = vmatprep.subr.msk.bf16.mxu0 %vm10844_vm0, %v22794_v54 }
 0xd82   : > { %16696 = vmatpush1.bf16.xpose.msra.mxu1 %v22796_v56 }
 0xd83   : > { %16778 = vmatpush1.bf16.xpose.msra.mxu0 %v22797_v57  ;;  %19244 = vmatprep.subr.msk.bf16.mxu1 %vm10844_vm0, %v22798_v59 }
 0xd84   : > { %v16545_v6 = vpop.f32.mrb[24].mxu1  ;;  %19261 = vmatprep.subr.msk.bf16.mxu0 %vm10844_vm0, %v22800_v62 }
 0xd85   : > { %v19396_v14 = vadd.f32 %v16545_v6, %v11970_v2  ;;  %v16627_v7 = vpop.f32.mrb[24].mxu0  ;;  %v16547_v39 = vpop.f32.mrb[25].mxu1 }
 0xd86   : > { %v19398_v38 = vadd.f32 %v16627_v7, %v11978_v3  ;;  %v19397_v16 = vadd.f32 %v16547_v39, %v11974_v4  ;;  %v16629_v8 = vpop.f32.mrb[25].mxu0  ;;  %v16549_v60 = vpop.f32.mrb[26].mxu1 }
 0xd87   : > { %16812 = vst [vmem:[%s27893_s14 + $0x70] sm:$0xff] %v19396_v14  ;;  %v19399_v41 = vadd.f32 %v16629_v8, %v11982_v5  ;;  %v16631_v10 = vpop.f32.mrb[26].mxu0  ;;  %v16550_v11 = vpop.f32.mrb[27].mxu1 }
 0xd88   : > { %16814 = vst [vmem:[%s27893_s14 + $0x80] sm:$0xff] %v19398_v38  ;;  %16813 = vst [vmem:[%s27893_s14 + $0x78] sm:$0xff] %v19397_v16  ;;  %v16632_v15 = vpop.f32.mrb[27].mxu0 }
 0xd89   : > { %16815 = vst [vmem:[%s27893_s14 + $0x88] sm:$0xff] %v19399_v41 }
 0xd8a   : > { %16698 = vmatpush1.bf16.xpose.msra.mxu1 %v22802_v9 }
 0xd8b   : > { %16780 = vmatpush1.bf16.xpose.msra.mxu0 %v22803_v12  ;;  %19245 = vmatprep.subr.msk.bf16.mxu1 %vm10844_vm0, %v22804_v13 }
 0xd8c   : > { %19262 = vmatprep.subr.msk.bf16.mxu0 %vm10844_vm0, %v22806_v0 }
 0xd92   : > { %16700 = vmatpush1.bf16.xpose.msra.mxu1 %v22808_v17 }
 0xd93   : > { %16782 = vmatpush1.bf16.xpose.msra.mxu0 %v22809_v19  ;;  %19246 = vmatprep.subr.msk.bf16.mxu1 %vm10844_vm0, %v22810_v61 }
 0xd94   : > { %19263 = vmatprep.subr.msk.bf16.mxu0 %vm10844_vm0, %v22812_v20 }
 0xd9a   : > { %16702 = vmatpush1.bf16.xpose.msra.mxu1 %v22814_v21 }
 0xd9b   : > { %16784 = vmatpush1.bf16.xpose.msra.mxu0 %v22815_v22  ;;  %19247 = vmatprep.subr.msk.bf16.mxu1 %vm10844_vm0, %v22816_v23 }
 0xd9c   : > { %19264 = vmatprep.subr.msk.bf16.mxu0 %vm10844_vm0, %v22818_v24 }
 0xda2   : > { %16704 = vmatpush1.bf16.xpose.msra.mxu1 %v22820_v25 }
 0xda3   : > { %16786 = vmatpush1.bf16.xpose.msra.mxu0 %v22821_v26  ;;  %19248 = vmatprep.subr.msk.bf16.mxu1 %vm10844_vm0, %v22822_v27 }
 0xda4   : > { %19265 = vmatprep.subr.msk.bf16.mxu0 %vm10844_vm0, %v22824_v28 }
 0xdaa   : > { %16706 = vmatpush1.bf16.xpose.msra.mxu1 %v22826_v18 }
 0xdab   : > { %16788 = vmatpush1.bf16.xpose.msra.mxu0 %v22827_v29 }
 0xdb1   : > { %16708 = vmatmul.mubr.bf16.vlgmr.msra.gmra.mrb[28].mxu1 %v27730_v1 }
 0xdb2   : > { %16790 = vmatmul.mubr.bf16.vlgmr.msra.gmra.mrb[28].mxu0 %v27730_v1 }
 0xdb3   : > { %22845 = shalt.err (!%p22842_p4)
}
 0xdb4   : > { %s22846_s16 = scalar_lea.hbm %s28669_s25, 128  ;;  %s22850_s24 = scalar_lea.hbm %s28761_s11, 256 }
 0xdb5   : > { %p22847_p7 = scmp.ne.s32.totalorder %s28669_s25, %s22846_s16  ;;  %p22851_p10 = scmp.lt.u32.totalorder %s28669_s25, %s28761_s11 }
 0xdb6   : > { %p22852_p11 = scmp.lt.u32.totalorder %s22850_s24, %s22846_s16  ;;  %p22854_p13 = scmp.lt.u32.totalorder %s22846_s16, %s28669_s25 }
 0xdb7   : > { %p22848_p8 = pnand %p22847_p7, %p23031_p5 }
 0xdb8   : > { %p22853_p12 = por %p22852_p11, %p22851_p10 }
 0xdb9   : > { %p22849_p9 = pneg %p22848_p8 }
 0xdba   : > { %p22855_p0 = por %p22854_p13, %p22853_p12 }
 0xdbc   : > { %p22856_p1 = pnand %p22855_p0, %p22849_p9 }
 0xdbe   : > { %22859 = shalt.err (!%p22856_p1)
}
 0xdbf   : > { %19614 = dma.vmem_to_hbm [thread:$0]  (%p23031_p5), %s16854_s29, 128, %s28669_s25, %s16826_s30   ;;  %v11986_v1 = vrot.slane %v28618_v58, %v27562_v40  ;;  %v11994_v31 = vrot.slane %v28618_v58, %v28059_v30  ;;  %v11990_v33 = vrot.slane %v28618_v58, %v27571_v42  ;;  %v11998_v34 = vrot.slane %v28618_v58, %v28063_v32 }
 0xdc0   : > { %s19273_s2 = smul.u32 2816, %s23014_s21  ;;  %s16840_s13 = sshll.u32 %s27893_s14, 4  ;;  %s28706_s13 = int_to_ptr.vmem [resolvable:$true] %s16840_s13 }
 0xdc1   : > { %s16821_s30 = scalar_lea.sflag [#allocation3], %s27603_s12  ;;  %s22860_s16 = scalar_lea.vmem %s28706_s13, 2816 }
 0xdc2   : > { %s28704_s29 = scalar_lea.hbm %s28760_s10, %s19273_s2  ;;  %p22861_p2 = scmp.ne.s32.totalorder %s28706_s13, %s22860_s16 }
 0xdc3   : > { %s22932_s15 = smov [#allocation2]  }
 0xdc4   : > { %p22862_p3 = pnand %p22861_p2, %p23031_p5  ;;  %s22864_s22 = sshll.u32 %s22932_s15, 4  ;;  %s22865_s22 = int_to_ptr.vmem [resolvable:$false] %s22864_s22 }
 0xdc5   : > { %s22866_s24 = scalar_lea.vmem %s22865_s22, 5632  ;;  %p22867_p7 = scmp.lt.s32.totalorder %s28706_s13, %s22865_s22 }
 0xdc6   : > { %p22863_p4 = pneg %p22862_p3  ;;  %p22868_p8 = scmp.lt.s32.totalorder %s22866_s24, %s22860_s16 }
 0xdc8   : > { %p22869_p9 = por %p22868_p8, %p22867_p7 }
 0xdca   : > { %p22870_p10 = pnand %p22869_p9, %p22863_p4 }
 0xe84   : > { %v16709_v35 = vpop.f32.mrb[28].mxu1 }
 0xe85   : > { %v19400_v37 = vadd.f32 %v16709_v35, %v11986_v1  ;;  %v16791_v36 = vpop.f32.mrb[28].mxu0  ;;  %v16711_v43 = vpop.f32.mrb[29].mxu1 }
 0xe86   : > { %v19402_v40 = vadd.f32 %v16791_v36, %v11994_v31  ;;  %v19401_v44 = vadd.f32 %v16711_v43, %v11990_v33  ;;  %v16793_v30 = vpop.f32.mrb[29].mxu0  ;;  %v16713_v45 = vpop.f32.mrb[30].mxu1 }
 0xe87   : > { %16816 = vst [vmem:[%s27893_s14 + $0x90] sm:$0xff] %v19400_v37  ;;  %v19403_v42 = vadd.f32 %v16793_v30, %v11998_v34  ;;  %v16795_v46 = vpop.f32.mrb[30].mxu0  ;;  %v16714_v47 = vpop.f32.mrb[31].mxu1 }
 0xe88   : > { %16818 = vst [vmem:[%s27893_s14 + $0xa0] sm:$0xff] %v19402_v40  ;;  %16817 = vst [vmem:[%s27893_s14 + $0x98] sm:$0xff] %v19401_v44  ;;  %v16796_v32 = vpop.f32.mrb[31].mxu0 }
 0xe89   : > { %16819 = vst [vmem:[%s27893_s14 + $0xa8] sm:$0xff] %v19403_v42 }
 0xe8a   : > { %22873 = shalt.err (!%p22870_p10)
}
 0xe8b   : > { %s22874_s12 = scalar_lea.hbm %s28704_s29, 2816  ;;  %s22878_s1 = scalar_lea.hbm %s28760_s10, 5632 }
 0xe8c   : > { %p22875_p11 = scmp.ne.s32.totalorder %s28704_s29, %s22874_s12  ;;  %p22879_p0 = scmp.lt.u32.totalorder %s28704_s29, %s28760_s10 }
 0xe8d   : > { %p22880_p1 = scmp.lt.u32.totalorder %s22878_s1, %s22874_s12  ;;  %p22882_p3 = scmp.lt.u32.totalorder %s22874_s12, %s28704_s29 }
 0xe8e   : > { %p22876_p12 = pnand %p22875_p11, %p23031_p5 }
 0xe8f   : > { %p22881_p2 = por %p22880_p1, %p22879_p0 }
 0xe90   : > { %p22877_p13 = pneg %p22876_p12 }
 0xe91   : > { %p22883_p4 = por %p22882_p3, %p22881_p2 }
 0xe93   : > { %p22884_p7 = pnand %p22883_p4, %p22877_p13 }
 0xe95   : > { %22887 = shalt.err (!%p22884_p7)
}
 0xe96   : > { %19613 = dma.vmem_to_hbm [thread:$0]  (%p23031_p5), %s28706_s13, 2816, %s28704_s29, %s16821_s30  }
 0xe97 PF: > { %p19624_p8 = scmp.ge.s32.totalorder %s22926_s20, 2  ;;  %s16865_s21 = sand.u32 1, %s22914_s17  }
 0xe98   : > { %s16866_s16 = scalar_lea.sflag [#allocation3], %s16865_s21 }
 0xe99   : > { %p19618_p9 = pnand %p19624_p8, %p23035_p6 }
 0xe9b   : > { %22905 = dma.done.wait (!%p19618_p9), %s16866_s16, 2816  }
 0xe9c   : > { %22907 = vsyncadd (!%p19618_p9), %s16866_s16, 4294964480  ;;  %s16875_s15 = scalar_lea.sflag [#allocation5], %s16865_s21 }
 0xe9d   : > { %22909 = dma.done.wait (!%p19618_p9), %s16875_s15, 128  }
 0xe9e   : > { %22911 = vsyncadd (!%p19618_p9), %s16875_s15, 4294967168  ;;  %p25_p5 = scmp.ge.s32.totalorder %s23018_s23, 4   ;;  %s28770_s17 = smov %s22918_s18 }
 0xe9f   : > { %s28771_s18 = smov %s22922_s19  ;;  %s28772_s19 = smov %s23029_s26 }
 0xea0   : > { %s28773_s20 = smov %s23018_s23  ;;  %27 = sbr.rel (!%p25_p5) target bundleno = 9 (0x9), region = 115 }
 0xea7   :  { %16880 = vsyncpa [#allocation3], 1 }
 0xea8   :  { %16882 = vsyncpa [#allocation3 + $0x1], 1 }
 0xea9   :  { %16883 = vsyncpa [#allocation5], 1 }
 0xeaa   :  { %16885 = vsyncpa [#allocation5 + $0x1], 1 }

</bundles_post_ra>
